<compile_context>
chip_gen: v5e
topology: v5e:2x2
jax: 0.10.0
libtpu: 0.0.40
codegen_flags: <defaults>
</compile_context>

<pallas_src>
import numpy as np
import jax
import jax.numpy as jnp
from jax.experimental import pallas as pl
from jax.experimental.pallas import tpu as pltpu


# ----------------------------- Pallas kernel ---------------------------------
def hypernet_kernel(x_ref, w1_ref, b1_ref, w2_ref, b2_ref, o_ref):
    # x_ref : (TN, E)   f32   tokens x embed (tokens-major)
    # w1_ref: (E, H)    bf16  fc1 weight (in, out)
    # b1_ref: (1, H)    f32
    # w2_ref: (H, 8E)   bf16  fc2 weight, columns pre-interleaved as
    #                   [L1 col0 | L2 row0 | L1 col1 | L2 row1 | ...] (each E wide)
    # b2_ref: (1, 8E)   f32   matching bias layout
    # o_ref : (TN, E)
    E = o_ref.shape[-1]
    x = x_ref[...].astype(jnp.float32)            # f32 for the per-token contractions

    # --- generate_weights: fc1 -> relu (MXU, f32 accumulation) ---
    h = jnp.dot(x.astype(w1_ref.dtype), w1_ref[...],
                preferred_element_type=jnp.float32) + b1_ref[...]
    h = jnp.maximum(h, 0.0)                       # (TN, H) f32

    # --- fc2: ONE (TN,H)@(H,8E) matmul; (TN,8E) f32 slab stays in VMEM ---
    w_all = jnp.dot(h.astype(w2_ref.dtype), w2_ref[...],
                    preferred_element_type=jnp.float32) + b2_ref[...]

    # --- apply_main_network: fused layer-1 / layer-2 consumption ---
    # Pair j = [layer-1 weight column j | layer-2 weight row j]; both slices are
    # E wide and 128-lane aligned, so slicing the slab is layout-friendly.
    acc = None
    for j in range(4):
        base = 2 * j * E
        wj = w_all[:, base:base + E]              # (TN, E) layer-1 per-token col j
        wk = w_all[:, base + E:base + 2 * E]      # (TN, E) layer-2 per-token row j
        y1j = jnp.maximum(jnp.sum(x * wj, axis=1, keepdims=True), 0.0)   # (TN, 1)
        term = y1j * wk
        acc = term if acc is None else acc + term
    o_ref[...] = jnp.maximum(acc, 0.0).astype(o_ref.dtype)


# ----------------------- one-time parameter re-layout -------------------------
def prepare_hypernet_params(W1, b1, W2, b2, *, mxu_dtype=jnp.bfloat16):
    """Hoisted out of the forward pass: run once at parameter-load time.

    W1: (E, H)  fc1 weight in (in, out) form;  b1: (H,)
    W2: (H, 8E) fc2 weight in (in, out) form;  b2: (8E,) with the module's flat
        column order: layer-1 columns flat-indexed e*4+j (torch .view(..., E, 4)),
        layer-2 columns 4E + k*E + e (torch .view(..., 4, E)).
    mxu_dtype: dtype for the matmul weights.  bf16 (default) for throughput;
        jnp.float32 if bf16 weight-generation drift is unacceptable.
    Returns kernel-ready params with fc2 columns interleaved as
    [L1 col j | L2 row j] pairs so the kernel consumes aligned 2E slices.
    """
    E, H = W1.shape
    # layer-1 hyper-weights: flat column e*4 + j  -> (4, H, E) (j-major)
    W2a = jnp.transpose(W2[:, :4 * E].reshape(H, E, 4), (2, 0, 1))   # (4, H, E)
    b2a = b2[:4 * E].reshape(E, 4).T                                 # (4, E)
    # layer-2 hyper-weights: flat column 4E + k*E + e -> (4, H, E) (k-major)
    W2b = jnp.transpose(W2[:, 4 * E:].reshape(H, 4, E), (1, 0, 2))   # (4, H, E)
    b2b = b2[4 * E:].reshape(4, E)                                   # (4, E)

    # interleave pairs: column block order [L1_0, L2_0, L1_1, L2_1, ...]
    W2k = (jnp.stack([W2a, W2b], axis=1)          # (4, 2, H, E) [j, s, h, e]
           .transpose(2, 0, 1, 3)                 # (H, 4, 2, E) [h, j, s, e]
           .reshape(H, 8 * E)
           .astype(mxu_dtype))
    b2k = (jnp.stack([b2a, b2b], axis=1)          # (4, 2, E)
           .reshape(1, 8 * E)
           .astype(jnp.float32))
    W1k = W1.astype(mxu_dtype)                    # (E, H)
    b1k = b1.reshape(1, H).astype(jnp.float32)    # (1, H)
    return W1k, b1k, W2k, b2k


# ------------------------------ wrapper ---------------------------------------
def _pick_token_tile(n_tokens, token_tile):
    """Sublane-aligned token tile aiming for an even grid step count >= 2 (so
    dimension_semantics=("parallel",) can feed both v7x TensorCores)."""
    if n_tokens <= 8:
        return 8
    target = max(8, min(token_tile, (n_tokens + 1) // 2))
    pairs = max(1, round(n_tokens / (2 * target)))
    tile = pl.cdiv(n_tokens, 2 * pairs)
    return max(8, pl.cdiv(tile, 8) * 8)


def _make_weight_spec(shape, single_buffered):
    idx = lambda i: (0,) * len(shape)
    if single_buffered:
        # grid-invariant: one buffer is enough, saves a little VMEM + one DMA buffer
        return pl.BlockSpec(shape, idx, pipeline_mode=pl.Buffered(1))
    return pl.BlockSpec(shape, idx)


def _hypernet_call(x2, W1k, b1k, W2k, b2k, *, tile, single_buffered):
    n_total, E = x2.shape
    H = W1k.shape[1]
    flops = 2 * n_total * (E * H + H * 8 * E + 8 * E)   # fc1 + fc2 + 2 contractions
    bytes_accessed = (2 * n_total * E * x2.dtype.itemsize
                      + W1k.size * W1k.dtype.itemsize + W2k.size * W2k.dtype.itemsize
                      + b1k.size * 4 + b2k.size * 4)
    return pl.pallas_call(
        hypernet_kernel,
        out_shape=jax.ShapeDtypeStruct((n_total, E), x2.dtype),
        grid_spec=pltpu.PrefetchScalarGridSpec(
            num_scalar_prefetch=0,
            grid=(n_total // tile,),
            in_specs=[
                pl.BlockSpec((tile, E), lambda i: (i, 0)),        # x tokens (streamed)
                _make_weight_spec((E, H), single_buffered),       # fc1 W (resident)
                _make_weight_spec((1, H), single_buffered),       # fc1 b
                _make_weight_spec((H, 8 * E), single_buffered),   # fc2 W (interleaved)
                _make_weight_spec((1, 8 * E), single_buffered),   # fc2 b
            ],
            out_specs=pl.BlockSpec((tile, E), lambda i: (i, 0)),
        ),
        compiler_params=pltpu.CompilerParams(
            dimension_semantics=("parallel",),
            vmem_limit_bytes=32 * 1024 * 1024),
        cost_estimate=pl.CostEstimate(flops=flops, transcendentals=0,
                                      bytes_accessed=bytes_accessed),
    )(x2, W1k, b1k, W2k, b2k)


def hypernet_forward(x, params, *, token_tile=512):
    """x: (B, C, E) float32.  params from prepare_hypernet_params.  Returns (B, C, E).

    token_tile=512 works well on all generations (VMEM per tile is only a few MiB);
    the tile is sublane-aligned, the token axis zero-padded when ragged, and the
    grid step count kept even (>= 2 when possible) for v7x megacore sharding.
    """
    W1k, b1k, W2k, b2k = params
    B, C, E = x.shape
    N = B * C
    tile = _pick_token_tile(N, token_tile)
    n_total = pl.cdiv(N, tile) * tile

    x2 = x.reshape(N, E)
    if n_total != N:                              # pad ragged token count
        x2 = jnp.concatenate([x2, jnp.zeros((n_total - N, E), x.dtype)], axis=0)

    try:
        out = _hypernet_call(x2, W1k, b1k, W2k, b2k, tile=tile, single_buffered=True)
    except Exception:
        # pl.Buffered(1) on the grid-invariant weights is a tiny optional VMEM saving;
        # fall back to default double buffering if this JAX build rejects it.
        out = _hypernet_call(x2, W1k, b1k, W2k, b2k, tile=tile, single_buffered=False)
    return out[:N].reshape(B, C, E)


# --------------------------- pure-JAX reference --------------------------------
def hypernet_reference(x, W1, b1, W2, b2, *, mxu_dtype=jnp.bfloat16):
    """Module semantics.  fc1/fc2 matmul operands are cast to `mxu_dtype` (f32
    accumulation) to mirror the kernel's MXU numerics; per-token contractions stay
    full f32.  Pass mxu_dtype=jnp.float32 (and prepare the kernel params with the
    same dtype) for the exact f32 PyTorch-module numerics."""
    B, C, E = x.shape
    hi = jax.lax.Precision.HIGHEST
    h = jnp.dot(x.reshape(B * C, E).astype(mxu_dtype), W1.astype(mxu_dtype),
                preferred_element_type=jnp.float32) + b1
    h = jnp.maximum(h, 0.0)
    w = (jnp.dot(h.astype(mxu_dtype), W2.astype(mxu_dtype),
                 preferred_element_type=jnp.float32) + b2).reshape(B, C, -1)
    wa = w[..., :4 * E].reshape(B, C, E, 4)
    y1 = jnp.maximum(jnp.einsum('bce,bcej->bcj', x, wa, precision=hi), 0.0)
    wb = w[..., 4 * E:].reshape(B, C, 4, E)
    y2 = jnp.maximum(jnp.einsum('bck,bckj->bcj', y1, wb, precision=hi), 0.0)
    return y2


# --------------------------------- main ----------------------------------------
if __name__ == "__main__":
    # hidden_size=16 is fixed by the module; E=128 keeps every block lane-dense.
    B, C, E, H = 2, 333, 128, 16          # N = 666 tokens -> padding + 2-step grid
    NW = 8 * E                            # num_weights = E*4 + 4*E

    key = jax.random.PRNGKey(0)
    kx, k1, k2, k3, k4 = jax.random.split(key, 5)
    x = jax.random.normal(kx, (B, C, E), dtype=jnp.float32)
    W1 = jax.random.normal(k1, (E, H), dtype=jnp.float32) * 0.1   # fc1 (in, out)
    b1 = jax.random.normal(k2, (H,), dtype=jnp.float32) * 0.1
    W2 = jax.random.normal(k3, (H, NW), dtype=jnp.float32) * 0.1  # fc2 (in, out)
    b2 = jax.random.normal(k4, (NW,), dtype=jnp.float32) * 0.1

    params = prepare_hypernet_params(W1, b1, W2, b2)   # one-time re-layout (hoisted)
    out = hypernet_forward(x, params, token_tile=512)
    out = jax.block_until_ready(out)

    ref = hypernet_reference(x, W1, b1, W2, b2)
    if not np.allclose(np.asarray(out), np.asarray(ref), rtol=2e-3, atol=2e-3):
        raise AssertionError("Pallas kernel does not match reference")

    print("KERNEL_OK")
</pallas_src>

<mosaic_0001>
module attributes {stable_mosaic.version = 11 : i64} {
  func.func @hypernet_kernel(%arg0: i32, %arg1: memref<336x128xf32, #tpu.memory_space<vmem>>, %arg2: memref<128x16xbf16, #tpu.memory_space<vmem>>, %arg3: memref<1x16xf32, #tpu.memory_space<vmem>>, %arg4: memref<16x1024xbf16, #tpu.memory_space<vmem>>, %arg5: memref<1x1024xf32, #tpu.memory_space<vmem>>, %arg6: memref<336x128xf32, #tpu.memory_space<vmem>>) attributes {dimension_semantics = [#tpu.dimension_semantics<parallel>], iteration_bounds = array<i64: 2>, scalar_prefetch = 0 : i64, scratch_operands = 0 : i64, tpu.core_type = #tpu.core_type<tc>, window_params = [{transform_indices = @transform_0, window_bounds = array<i64: 336, 128>}, {pipeline_mode = #tpu.pipeline_mode<synchronous>, transform_indices = @transform_1, window_bounds = array<i64: 128, 16>}, {pipeline_mode = #tpu.pipeline_mode<synchronous>, transform_indices = @transform_2, window_bounds = array<i64: 1, 16>}, {pipeline_mode = #tpu.pipeline_mode<synchronous>, transform_indices = @transform_3, window_bounds = array<i64: 16, 1024>}, {pipeline_mode = #tpu.pipeline_mode<synchronous>, transform_indices = @transform_4, window_bounds = array<i64: 1, 1024>}, {transform_indices = @transform_5, window_bounds = array<i64: 336, 128>}]} {
    %c0 = arith.constant 0 : index
    %c0_0 = arith.constant 0 : index
    %0 = vector.load %arg1[%c0, %c0_0] : memref<336x128xf32, #tpu.memory_space<vmem>>, vector<336x128xf32>
    %1 = arith.truncf %0 : vector<336x128xf32> to vector<336x128xbf16>
    %c0_1 = arith.constant 0 : index
    %c0_2 = arith.constant 0 : index
    %2 = vector.load %arg2[%c0_1, %c0_2] : memref<128x16xbf16, #tpu.memory_space<vmem>>, vector<128x16xbf16>
    %cst = arith.constant dense<0.000000e+00> : vector<336x16xf32>
    %3 = tpu.matmul %1, %2, %cst {dimension_numbers = #tpu.dot_dimension_numbers<[1], [0], [0], [1], [0, 0, 1, 1], [], []>} : vector<336x128xbf16>, vector<128x16xbf16>, vector<336x16xf32> -> vector<336x16xf32>
    %c0_3 = arith.constant 0 : index
    %c0_4 = arith.constant 0 : index
    %4 = vector.load %arg3[%c0_3, %c0_4] : memref<1x16xf32, #tpu.memory_space<vmem>>, vector<1x16xf32>
    %5 = vector.broadcast %4 : vector<1x16xf32> to vector<336x16xf32>
    %6 = arith.addf %3, %5 : vector<336x16xf32>
    %cst_5 = arith.constant 0.000000e+00 : f32
    %7 = vector.broadcast %cst_5 : f32 to vector<336x16xf32>
    %8 = arith.maximumf %6, %7 : vector<336x16xf32>
    %9 = arith.truncf %8 : vector<336x16xf32> to vector<336x16xbf16>
    %c0_6 = arith.constant 0 : index
    %c0_7 = arith.constant 0 : index
    %10 = vector.load %arg4[%c0_6, %c0_7] : memref<16x1024xbf16, #tpu.memory_space<vmem>>, vector<16x1024xbf16>
    %cst_8 = arith.constant dense<0.000000e+00> : vector<336x1024xf32>
    %11 = tpu.matmul %9, %10, %cst_8 {dimension_numbers = #tpu.dot_dimension_numbers<[1], [0], [0], [1], [0, 0, 1, 1], [], []>} : vector<336x16xbf16>, vector<16x1024xbf16>, vector<336x1024xf32> -> vector<336x1024xf32>
    %c0_9 = arith.constant 0 : index
    %c0_10 = arith.constant 0 : index
    %12 = vector.load %arg5[%c0_9, %c0_10] : memref<1x1024xf32, #tpu.memory_space<vmem>>, vector<1x1024xf32>
    %13 = vector.broadcast %12 : vector<1x1024xf32> to vector<336x1024xf32>
    %14 = arith.addf %11, %13 : vector<336x1024xf32>
    %15 = vector.extract_strided_slice %14 {offsets = [0, 0], sizes = [336, 128], strides = [1, 1]} : vector<336x1024xf32> to vector<336x128xf32>
    %16 = vector.extract_strided_slice %14 {offsets = [0, 128], sizes = [336, 128], strides = [1, 1]} : vector<336x1024xf32> to vector<336x128xf32>
    %17 = arith.mulf %0, %15 : vector<336x128xf32>
    %cst_11 = arith.constant dense<0.000000e+00> : vector<336xf32>
    %18 = vector.multi_reduction <add>, %17, %cst_11 [1] : vector<336x128xf32> to vector<336xf32>
    %19 = vector.shape_cast %18 : vector<336xf32> to vector<336x1xf32>
    %cst_12 = arith.constant 0.000000e+00 : f32
    %20 = vector.broadcast %cst_12 : f32 to vector<336x1xf32>
    %21 = arith.maximumf %19, %20 : vector<336x1xf32>
    %22 = vector.broadcast %21 : vector<336x1xf32> to vector<336x128xf32>
    %23 = arith.mulf %22, %16 : vector<336x128xf32>
    %24 = vector.extract_strided_slice %14 {offsets = [0, 256], sizes = [336, 128], strides = [1, 1]} : vector<336x1024xf32> to vector<336x128xf32>
    %25 = vector.extract_strided_slice %14 {offsets = [0, 384], sizes = [336, 128], strides = [1, 1]} : vector<336x1024xf32> to vector<336x128xf32>
    %26 = arith.mulf %0, %24 : vector<336x128xf32>
    %cst_13 = arith.constant dense<0.000000e+00> : vector<336xf32>
    %27 = vector.multi_reduction <add>, %26, %cst_13 [1] : vector<336x128xf32> to vector<336xf32>
    %28 = vector.shape_cast %27 : vector<336xf32> to vector<336x1xf32>
    %cst_14 = arith.constant 0.000000e+00 : f32
    %29 = vector.broadcast %cst_14 : f32 to vector<336x1xf32>
    %30 = arith.maximumf %28, %29 : vector<336x1xf32>
    %31 = vector.broadcast %30 : vector<336x1xf32> to vector<336x128xf32>
    %32 = arith.mulf %31, %25 : vector<336x128xf32>
    %33 = arith.addf %23, %32 : vector<336x128xf32>
    %34 = vector.extract_strided_slice %14 {offsets = [0, 512], sizes = [336, 128], strides = [1, 1]} : vector<336x1024xf32> to vector<336x128xf32>
    %35 = vector.extract_strided_slice %14 {offsets = [0, 640], sizes = [336, 128], strides = [1, 1]} : vector<336x1024xf32> to vector<336x128xf32>
    %36 = arith.mulf %0, %34 : vector<336x128xf32>
    %cst_15 = arith.constant dense<0.000000e+00> : vector<336xf32>
    %37 = vector.multi_reduction <add>, %36, %cst_15 [1] : vector<336x128xf32> to vector<336xf32>
    %38 = vector.shape_cast %37 : vector<336xf32> to vector<336x1xf32>
    %cst_16 = arith.constant 0.000000e+00 : f32
    %39 = vector.broadcast %cst_16 : f32 to vector<336x1xf32>
    %40 = arith.maximumf %38, %39 : vector<336x1xf32>
    %41 = vector.broadcast %40 : vector<336x1xf32> to vector<336x128xf32>
    %42 = arith.mulf %41, %35 : vector<336x128xf32>
    %43 = arith.addf %33, %42 : vector<336x128xf32>
    %44 = vector.extract_strided_slice %14 {offsets = [0, 768], sizes = [336, 128], strides = [1, 1]} : vector<336x1024xf32> to vector<336x128xf32>
    %45 = vector.extract_strided_slice %14 {offsets = [0, 896], sizes = [336, 128], strides = [1, 1]} : vector<336x1024xf32> to vector<336x128xf32>
    %46 = arith.mulf %0, %44 : vector<336x128xf32>
    %cst_17 = arith.constant dense<0.000000e+00> : vector<336xf32>
    %47 = vector.multi_reduction <add>, %46, %cst_17 [1] : vector<336x128xf32> to vector<336xf32>
    %48 = vector.shape_cast %47 : vector<336xf32> to vector<336x1xf32>
    %cst_18 = arith.constant 0.000000e+00 : f32
    %49 = vector.broadcast %cst_18 : f32 to vector<336x1xf32>
    %50 = arith.maximumf %48, %49 : vector<336x1xf32>
    %51 = vector.broadcast %50 : vector<336x1xf32> to vector<336x128xf32>
    %52 = arith.mulf %51, %45 : vector<336x128xf32>
    %53 = arith.addf %43, %52 : vector<336x128xf32>
    %cst_19 = arith.constant 0.000000e+00 : f32
    %54 = vector.broadcast %cst_19 : f32 to vector<336x128xf32>
    %55 = arith.maximumf %53, %54 : vector<336x128xf32>
    %c0_20 = arith.constant 0 : index
    %c0_21 = arith.constant 0 : index
    %56 = vector.load %arg6[%c0_20, %c0_21] : memref<336x128xf32, #tpu.memory_space<vmem>>, vector<336x128xf32>
    tpu.vector_store %arg6[%c0_20, %c0_21], %55 {strides = array<i32>} : memref<336x128xf32, #tpu.memory_space<vmem>>, vector<336x128xf32>,
    return
  }
  func.func @transform_0(%arg0: i32) -> (i32, i32) {
    %c0_i32 = arith.constant 0 : i32
    %c0_i32_0 = arith.constant 0 : i32
    return %arg0, %c0_i32 : i32, i32
  }
  func.func @transform_1(%arg0: i32) -> (i32, i32) {
    %c0_i32 = arith.constant 0 : i32
    %c0_i32_0 = arith.constant 0 : i32
    %c0_i32_1 = arith.constant 0 : i32
    return %c0_i32, %c0_i32_0 : i32, i32
  }
  func.func @transform_2(%arg0: i32) -> (i32, i32) {
    %c0_i32 = arith.constant 0 : i32
    %c0_i32_0 = arith.constant 0 : i32
    %c0_i32_1 = arith.constant 0 : i32
    return %c0_i32, %c0_i32_0 : i32, i32
  }
  func.func @transform_3(%arg0: i32) -> (i32, i32) {
    %c0_i32 = arith.constant 0 : i32
    %c0_i32_0 = arith.constant 0 : i32
    %c0_i32_1 = arith.constant 0 : i32
    return %c0_i32, %c0_i32_0 : i32, i32
  }
  func.func @transform_4(%arg0: i32) -> (i32, i32) {
    %c0_i32 = arith.constant 0 : i32
    %c0_i32_0 = arith.constant 0 : i32
    %c0_i32_1 = arith.constant 0 : i32
    return %c0_i32, %c0_i32_0 : i32, i32
  }
  func.func @transform_5(%arg0: i32) -> (i32, i32) {
    %c0_i32 = arith.constant 0 : i32
    %c0_i32_0 = arith.constant 0 : i32
    return %arg0, %c0_i32 : i32, i32
  }
}

module attributes {stable_mosaic.version = 11 : i64} {
  func.func @hypernet_kernel(%arg0: i32, %arg1: memref<336x128xf32, #tpu.memory_space<vmem>>, %arg2: memref<128x16xbf16, #tpu.memory_space<vmem>>, %arg3: memref<1x16xf32, #tpu.memory_space<vmem>>, %arg4: memref<16x1024xbf16, #tpu.memory_space<vmem>>, %arg5: memref<1x1024xf32, #tpu.memory_space<vmem>>, %arg6: memref<336x128xf32, #tpu.memory_space<vmem>>) attributes {dimension_semantics = [#tpu.dimension_semantics<parallel>], iteration_bounds = array<i64: 2>, scalar_prefetch = 0 : i64, scratch_operands = 0 : i64, tpu.core_type = #tpu.core_type<tc>, window_params = [{transform_indices = @transform_0, window_bounds = array<i64: 336, 128>}, {pipeline_mode = #tpu.pipeline_mode<synchronous>, transform_indices = @transform_1, window_bounds = array<i64: 128, 16>}, {pipeline_mode = #tpu.pipeline_mode<synchronous>, transform_indices = @transform_2, window_bounds = array<i64: 1, 16>}, {pipeline_mode = #tpu.pipeline_mode<synchronous>, transform_indices = @transform_3, window_bounds = array<i64: 16, 1024>}, {pipeline_mode = #tpu.pipeline_mode<synchronous>, transform_indices = @transform_4, window_bounds = array<i64: 1, 1024>}, {transform_indices = @transform_5, window_bounds = array<i64: 336, 128>}]} {
    %c0 = arith.constant 0 : index
    %c0_0 = arith.constant 0 : index
    %0 = vector.load %arg1[%c0, %c0_0] : memref<336x128xf32, #tpu.memory_space<vmem>>, vector<336x128xf32>
    %1 = arith.truncf %0 : vector<336x128xf32> to vector<336x128xbf16>
    %c0_1 = arith.constant 0 : index
    %c0_2 = arith.constant 0 : index
    %2 = vector.load %arg2[%c0_1, %c0_2] : memref<128x16xbf16, #tpu.memory_space<vmem>>, vector<128x16xbf16>
    %cst = arith.constant dense<0.000000e+00> : vector<336x16xf32>
    %3 = tpu.matmul %1, %2, %cst {dimension_numbers = #tpu.dot_dimension_numbers<[1], [0], [0], [1], [0, 0, 1, 1], [], []>} : vector<336x128xbf16>, vector<128x16xbf16>, vector<336x16xf32> -> vector<336x16xf32>
    %c0_3 = arith.constant 0 : index
    %c0_4 = arith.constant 0 : index
    %4 = vector.load %arg3[%c0_3, %c0_4] : memref<1x16xf32, #tpu.memory_space<vmem>>, vector<1x16xf32>
    %5 = vector.broadcast %4 : vector<1x16xf32> to vector<336x16xf32>
    %6 = arith.addf %3, %5 : vector<336x16xf32>
    %cst_5 = arith.constant 0.000000e+00 : f32
    %7 = vector.broadcast %cst_5 : f32 to vector<336x16xf32>
    %8 = arith.maximumf %6, %7 : vector<336x16xf32>
    %9 = arith.truncf %8 : vector<336x16xf32> to vector<336x16xbf16>
    %c0_6 = arith.constant 0 : index
    %c0_7 = arith.constant 0 : index
    %10 = vector.load %arg4[%c0_6, %c0_7] : memref<16x1024xbf16, #tpu.memory_space<vmem>>, vector<16x1024xbf16>
    %cst_8 = arith.constant dense<0.000000e+00> : vector<336x1024xf32>
    %11 = tpu.matmul %9, %10, %cst_8 {dimension_numbers = #tpu.dot_dimension_numbers<[1], [0], [0], [1], [0, 0, 1, 1], [], []>} : vector<336x16xbf16>, vector<16x1024xbf16>, vector<336x1024xf32> -> vector<336x1024xf32>
    %c0_9 = arith.constant 0 : index
    %c0_10 = arith.constant 0 : index
    %12 = vector.load %arg5[%c0_9, %c0_10] : memref<1x1024xf32, #tpu.memory_space<vmem>>, vector<1x1024xf32>
    %13 = vector.broadcast %12 : vector<1x1024xf32> to vector<336x1024xf32>
    %14 = arith.addf %11, %13 : vector<336x1024xf32>
    %15 = vector.extract_strided_slice %14 {offsets = [0, 0], sizes = [336, 128], strides = [1, 1]} : vector<336x1024xf32> to vector<336x128xf32>
    %16 = vector.extract_strided_slice %14 {offsets = [0, 128], sizes = [336, 128], strides = [1, 1]} : vector<336x1024xf32> to vector<336x128xf32>
    %17 = arith.mulf %0, %15 : vector<336x128xf32>
    %cst_11 = arith.constant dense<0.000000e+00> : vector<336xf32>
    %18 = vector.multi_reduction <add>, %17, %cst_11 [1] : vector<336x128xf32> to vector<336xf32>
    %19 = vector.shape_cast %18 : vector<336xf32> to vector<336x1xf32>
    %cst_12 = arith.constant 0.000000e+00 : f32
    %20 = vector.broadcast %cst_12 : f32 to vector<336x1xf32>
    %21 = arith.maximumf %19, %20 : vector<336x1xf32>
    %22 = vector.broadcast %21 : vector<336x1xf32> to vector<336x128xf32>
    %23 = arith.mulf %22, %16 : vector<336x128xf32>
    %24 = vector.extract_strided_slice %14 {offsets = [0, 256], sizes = [336, 128], strides = [1, 1]} : vector<336x1024xf32> to vector<336x128xf32>
    %25 = vector.extract_strided_slice %14 {offsets = [0, 384], sizes = [336, 128], strides = [1, 1]} : vector<336x1024xf32> to vector<336x128xf32>
    %26 = arith.mulf %0, %24 : vector<336x128xf32>
    %cst_13 = arith.constant dense<0.000000e+00> : vector<336xf32>
    %27 = vector.multi_reduction <add>, %26, %cst_13 [1] : vector<336x128xf32> to vector<336xf32>
    %28 = vector.shape_cast %27 : vector<336xf32> to vector<336x1xf32>
    %cst_14 = arith.constant 0.000000e+00 : f32
    %29 = vector.broadcast %cst_14 : f32 to vector<336x1xf32>
    %30 = arith.maximumf %28, %29 : vector<336x1xf32>
    %31 = vector.broadcast %30 : vector<336x1xf32> to vector<336x128xf32>
    %32 = arith.mulf %31, %25 : vector<336x128xf32>
    %33 = arith.addf %23, %32 : vector<336x128xf32>
    %34 = vector.extract_strided_slice %14 {offsets = [0, 512], sizes = [336, 128], strides = [1, 1]} : vector<336x1024xf32> to vector<336x128xf32>
    %35 = vector.extract_strided_slice %14 {offsets = [0, 640], sizes = [336, 128], strides = [1, 1]} : vector<336x1024xf32> to vector<336x128xf32>
    %36 = arith.mulf %0, %34 : vector<336x128xf32>
    %cst_15 = arith.constant dense<0.000000e+00> : vector<336xf32>
    %37 = vector.multi_reduction <add>, %36, %cst_15 [1] : vector<336x128xf32> to vector<336xf32>
    %38 = vector.shape_cast %37 : vector<336xf32> to vector<336x1xf32>
    %cst_16 = arith.constant 0.000000e+00 : f32
    %39 = vector.broadcast %cst_16 : f32 to vector<336x1xf32>
    %40 = arith.maximumf %38, %39 : vector<336x1xf32>
    %41 = vector.broadcast %40 : vector<336x1xf32> to vector<336x128xf32>
    %42 = arith.mulf %41, %35 : vector<336x128xf32>
    %43 = arith.addf %33, %42 : vector<336x128xf32>
    %44 = vector.extract_strided_slice %14 {offsets = [0, 768], sizes = [336, 128], strides = [1, 1]} : vector<336x1024xf32> to vector<336x128xf32>
    %45 = vector.extract_strided_slice %14 {offsets = [0, 896], sizes = [336, 128], strides = [1, 1]} : vector<336x1024xf32> to vector<336x128xf32>
    %46 = arith.mulf %0, %44 : vector<336x128xf32>
    %cst_17 = arith.constant dense<0.000000e+00> : vector<336xf32>
    %47 = vector.multi_reduction <add>, %46, %cst_17 [1] : vector<336x128xf32> to vector<336xf32>
    %48 = vector.shape_cast %47 : vector<336xf32> to vector<336x1xf32>
    %cst_18 = arith.constant 0.000000e+00 : f32
    %49 = vector.broadcast %cst_18 : f32 to vector<336x1xf32>
    %50 = arith.maximumf %48, %49 : vector<336x1xf32>
    %51 = vector.broadcast %50 : vector<336x1xf32> to vector<336x128xf32>
    %52 = arith.mulf %51, %45 : vector<336x128xf32>
    %53 = arith.addf %43, %52 : vector<336x128xf32>
    %cst_19 = arith.constant 0.000000e+00 : f32
    %54 = vector.broadcast %cst_19 : f32 to vector<336x128xf32>
    %55 = arith.maximumf %53, %54 : vector<336x128xf32>
    %c0_20 = arith.constant 0 : index
    %c0_21 = arith.constant 0 : index
    %56 = vector.load %arg6[%c0_20, %c0_21] : memref<336x128xf32, #tpu.memory_space<vmem>>, vector<336x128xf32>
    tpu.vector_store %arg6[%c0_20, %c0_21], %55 {strides = array<i32>} : memref<336x128xf32, #tpu.memory_space<vmem>>, vector<336x128xf32>,
    return
  }
  func.func @transform_0(%arg0: i32) -> (i32, i32) {
    %c0_i32 = arith.constant 0 : i32
    %c0_i32_0 = arith.constant 0 : i32
    return %arg0, %c0_i32 : i32, i32
  }
  func.func @transform_1(%arg0: i32) -> (i32, i32) {
    %c0_i32 = arith.constant 0 : i32
    %c0_i32_0 = arith.constant 0 : i32
    %c0_i32_1 = arith.constant 0 : i32
    return %c0_i32, %c0_i32_0 : i32, i32
  }
  func.func @transform_2(%arg0: i32) -> (i32, i32) {
    %c0_i32 = arith.constant 0 : i32
    %c0_i32_0 = arith.constant 0 : i32
    %c0_i32_1 = arith.constant 0 : i32
    return %c0_i32, %c0_i32_0 : i32, i32
  }
  func.func @transform_3(%arg0: i32) -> (i32, i32) {
    %c0_i32 = arith.constant 0 : i32
    %c0_i32_0 = arith.constant 0 : i32
    %c0_i32_1 = arith.constant 0 : i32
    return %c0_i32, %c0_i32_0 : i32, i32
  }
  func.func @transform_4(%arg0: i32) -> (i32, i32) {
    %c0_i32 = arith.constant 0 : i32
    %c0_i32_0 = arith.constant 0 : i32
    %c0_i32_1 = arith.constant 0 : i32
    return %c0_i32, %c0_i32_0 : i32, i32
  }
  func.func @transform_5(%arg0: i32) -> (i32, i32) {
    %c0_i32 = arith.constant 0 : i32
    %c0_i32_0 = arith.constant 0 : i32
    return %arg0, %c0_i32 : i32, i32
  }
}

</mosaic_0001>

<bundles_post_ra>
// kernel: tpu_custom_call.1
= control target key start
LH: loop header
LB: loop body
LE: loop exit
PB: predicated region body
PF: predicated region fallthrough
CT: control target
= control target key end

     0   :  { %10 = vsyncpa [#allocation3], 0  ;;  %s5492_s0 = inlined_call_operand.hbm [shape: f32[672,128], index: 0, kind: input, shape index: {}]   ;;  %s5493_s1 = inlined_call_operand.vmem [shape: bf16[128,16], index: 1, kind: input, shape index: {}]   ;;  %s5494_s2 = inlined_call_operand.vmem [shape: f32[1,16], index: 2, kind: input, shape index: {}]   ;;  %s5495_s3 = inlined_call_operand.vmem [shape: bf16[16,1024], index: 3, kind: input, shape index: {}]   ;;  %s5496_s4 = inlined_call_operand.vmem [shape: f32[1,1024], index: 4, kind: input, shape index: {}]   ;;  %s5497_s5 = inlined_call_operand.hbm [shape: f32[672,128], index: 5, kind: output, shape index: {}]  }
   0x1   :  { %12 = vsyncpa [#allocation3 + $0x1], 0 }
   0x2   :  { %13 = vsyncpa [#allocation4], 0 }
   0x3   :  { %15 = vsyncpa [#allocation4 + $0x1], 0  ;;  %s3269_s18 = smov 0   ;;  %s3271_s19 = smov 0  }
   0x4   :  { %s3273_s20 = smov 0   ;;  %s3275_s21 = smov 0  }
   0x5 LB: > { %s3290_s22 = sadd.s32 4294967295, %s3233_s21   ;;  %s2737_s23 = sadd.s32 4294967294, %s3233_s21   ;;  %s3233_s21 = sphi %s3275_s21, %s5889_s21   ;;  %s3229_s20 = sphi %s3273_s20, %s5888_s20   ;;  %s3225_s19 = sphi %s3271_s19, %s5887_s19   ;;  %s3221_s18 = sphi %s3269_s18, %s5886_s18  }
   0x6   : > { %s3294_s24 = sadd.s32 1, %s3233_s21   ;;  %s28_s25 = sadd.s32 1, %s3229_s20 }
   0x7   : > { %s25_s26 = ssub.s32 %s3233_s21, %s3294_s24  ;;  %p35_p0 = scmp.ne.s32.totalorder %s3229_s20, %s3225_s19 }
   0x8   : > { %p26_p1 = scmp.eq.s32.totalorder %s25_s26, 0  ;;  %p36_p2 = scmp.eq.s32.totalorder %s3233_s21, 0 }
   0x9   : > { %p41_p3 = scmp.ne.s32.totalorder %s3225_s19, %s3221_s18  ;;  %p42_p4 = scmp.eq.s32.totalorder %s3290_s22, 0 }
   0xa   : > { %s3306_s27 = scalar_select %p26_p1, %s3229_s20, %s28_s25  }
   0xb   : > { %p37_p5 = por %p36_p2, %p35_p0  ;;  %p3308_p6 = por %p42_p4, %p41_p3 }
   0xc   : > { %p149_p7 = scmp.eq.s32.totalorder %s3290_s22, 1  ;;  %p155_p8 = scmp.eq.s32.totalorder %s2737_s23, 1 }
   0xd   : > { %p2739_p9 = scmp.ge.s32.totalorder %s3233_s21, 2  ;;  %p3012_p10 = scmp.lt.s32.totalorder %s3233_s21, 2 }
   0xe   : > { %p3315_p11 = por %p149_p7, %p35_p0  ;;  %p3319_p12 = por %p155_p8, %p41_p3 }
   0xf   : > { %s187_s6 = sand.u32 1, %s3229_s20   ;;  %s2977_s7 = smul.u32 336, %s3233_s21 }
  0x10   : > { %s2998_s8 = smul.u32 336, %s187_s6  ;;  %p3328_p13 = pnand %p3012_p10, %p37_p5 }
  0x11   : > { %s196_s11 = scalar_lea.hbm %s5492_s0, %s2977_s7  ;;  %s188_s16 = scalar_lea.sflag [#allocation3], %s187_s6 }
  0x12   : > { %s197_s13 = sshll.u32 %s196_s11, 4  ;;  %s191_s14 = scalar_lea.vmem [#allocation2], %s2998_s8  ;;  %s198_s13 = int_to_ptr.hbm [resolvable:$true] %s197_s13 }
  0x13   : > { %s199_s15 = sshll.u32 %s191_s14, 4  ;;  %s3137_s17 = sshra.s32 %s198_s13, 4  ;;  %s200_s15 = int_to_ptr.vmem [resolvable:$true] %s199_s15  ;;  %s3138_s17 = int_to_ptr.hbm [resolvable:$true] %s3137_s17 }
  0x14   : > { %s3139_s23 = scalar_lea.hbm %s3138_s17, 336  ;;  %p3141_p1 = pneg %p3328_p13 }
  0x15   : > { %p3140_p0 = scmp.ne.s32.totalorder %s3138_s17, %s3139_s23  ;;  %s3144_s7 = scalar_lea.hbm %s5492_s0, 672 }
  0x16   : > { %p3145_p4 = scmp.lt.s32.totalorder %s3138_s17, %s5492_s0  ;;  %p3146_p5 = scmp.lt.s32.totalorder %s3144_s7, %s3139_s23 }
  0x17   : > { %p3142_p2 = pnand %p3141_p1, %p3140_p0 }
  0x18   : > { %p3147_p7 = por %p3146_p5, %p3145_p4 }
  0x19   : > { %p3143_p3 = pneg %p3142_p2 }
  0x1b   : > { %p3148_p8 = pnand %p3147_p7, %p3143_p3 }
  0x1d   : > { %3151 = shalt.err (!%p3148_p8)
}
  0x1e   : > { %s3235_s6 = smov 128   ;;  %s3236_s8 = smov 8  }
  0x1f   : > { %3007 = dma.hbm_to_vmem [thread:$0]  (!%p3328_p13), %s198_s13, 5376, %s200_s15, %s188_s16, %s3235_s6, %s3235_s6, %s3236_s8  }
  0x20   : > { %p2741_p10 = scmp.ge.s32.totalorder %s3233_s21, 1  ;;  %p207_p0 = scmp.lt.s32.totalorder %s3233_s21, 3 }
  0x22   : > { %p208_p1 = pnand %p2741_p10, %p207_p0 }
  0x24   : > { %211 = sbr.rel (%p208_p1) target bundleno = 1395 (0x573), region = 40 }
  0x29   : > { %s3345_s11 = sand.u32 1, %s3225_s19  }
  0x2a   : > { %s2999_s14 = smul.u32 336, %s3345_s11  ;;  %s214_s17 = scalar_lea.sflag [#allocation3], %s3345_s11 }
  0x2c   : > { %s3351_s23 = scalar_lea.vmem [#allocation2], %s2999_s14 }
  0x2d   : > { %3212 = dma.done.wait (%p3308_p6), %s214_s17, 5376  }
  0x2e   : > { %3214 = vsyncadd (%p3308_p6), %s214_s17, 4294961920  ;;  %v2985_v0 = vld [vmem:[%s5493_s1 + $0x38] sm:$0xff]  ;;  %v2984_v1 = vld [vmem:[%s5493_s1 + $0x30] sm:$0xff]  ;;  %vm622_vm0 = vcmask 130048   ;;  %s5082_s25 = scalar_lea.vmem [#allocation5], %s2999_s14  ;;  %s2994_s14 = smul.u32 336, %s3290_s22 }
  0x2f   : > { %379 = vmatpush.bf16.msra.mxu0 %v2985_v0  ;;  %v2983_v2 = vld [vmem:[%s5493_s1 + $0x28] sm:$0xff]  ;;  %v2982_v3 = vld [vmem:[%s5493_s1 + $0x20] sm:$0xff]  ;;  %v2981_v4 = vld [vmem:[%s5493_s1 + $0x18] sm:$0xff]  ;;  %s2661_s22 = sshll.u32 %s5082_s25, 4  ;;  %s2649_s9 = scalar_lea.sflag [#allocation4], %s3345_s11  ;;  %s2662_s22 = int_to_ptr.vmem [resolvable:$true] %s2661_s22 }
  0x30   : > { %v2980_v5 = vld [vmem:[%s5493_s1 + $0x10] sm:$0xff]  ;;  %v2979_v6 = vld [vmem:[%s5493_s1 + $0x8] sm:$0xff]  ;;  %v2978_v7 = vld [vmem:[%s5493_s1] sm:$0xff]  ;;  %s2660_s28 = scalar_lea.hbm %s5497_s5, %s2994_s14  ;;  %s3187_s12 = scalar_lea.hbm %s5497_s5, 672 }
  0x31   : > { %v3382_v8 = vld [vmem:[%s3351_s23] sm:$0xff]  ;;  %v3385_v9 = vld [vmem:[%s3351_s23 + $0x8] sm:$0xff]  ;;  %v3390_v11 = vld [vmem:[%s3351_s23 + $0x10] sm:$0xff]  ;;  %s2663_s7 = sshll.u32 %s2660_s28, 4  ;;  %s2664_s7 = int_to_ptr.hbm [resolvable:$true] %s2663_s7 }
  0x32   : > { %v290_v10 = vpack.c.bf16 %v3385_v9, %v3382_v8  ;;  %v3393_v12 = vld [vmem:[%s3351_s23 + $0x18] sm:$0xff]  ;;  %v3398_v14 = vld [vmem:[%s3351_s23 + $0x20] sm:$0xff]  ;;  %v3401_v15 = vld [vmem:[%s3351_s23 + $0x28] sm:$0xff]  ;;  %s3181_s10 = sshra.s32 %s2664_s7, 4  ;;  %s3182_s10 = int_to_ptr.hbm [resolvable:$true] %s3181_s10 }
  0x33   : > { %380 = vmatpush.bf16.msra.mxu0 %v2984_v1  ;;  %v291_v13 = vpack.c.bf16 %v3393_v12, %v3390_v11  ;;  %v292_v16 = vpack.c.bf16 %v3401_v15, %v3398_v14  ;;  %v3406_v17 = vld [vmem:[%s3351_s23 + $0x30] sm:$0xff]  ;;  %v3409_v18 = vld [vmem:[%s3351_s23 + $0x38] sm:$0xff]  ;;  %v3414_v20 = vld [vmem:[%s3351_s23 + $0x40] sm:$0xff]  ;;  %s3183_s6 = scalar_lea.hbm %s3182_s10, 336  ;;  %p3188_p3 = scmp.lt.s32.totalorder %s3182_s10, %s5497_s5 }
  0x34   : > { %v293_v19 = vpack.c.bf16 %v3409_v18, %v3406_v17  ;;  %v3417_v21 = vld [vmem:[%s3351_s23 + $0x48] sm:$0xff]  ;;  %v3422_v23 = vld [vmem:[%s3351_s23 + $0x50] sm:$0xff]  ;;  %v3425_v24 = vld [vmem:[%s3351_s23 + $0x58] sm:$0xff]  ;;  %p3184_p6 = scmp.ne.s32.totalorder %s3182_s10, %s3183_s6  ;;  %p3189_p4 = scmp.lt.s32.totalorder %s3187_s12, %s3183_s6 }
  0x35   : > { %v294_v22 = vpack.c.bf16 %v3417_v21, %v3414_v20  ;;  %v295_v25 = vpack.c.bf16 %v3425_v24, %v3422_v23  ;;  %v3430_v26 = vld [vmem:[%s3351_s23 + $0x60] sm:$0xff]  ;;  %v3433_v27 = vld [vmem:[%s3351_s23 + $0x68] sm:$0xff]  ;;  %v3438_v29 = vld [vmem:[%s3351_s23 + $0x70] sm:$0xff] }
  0x36   : > { %v296_v28 = vpack.c.bf16 %v3433_v27, %v3430_v26  ;;  %v3441_v30 = vld [vmem:[%s3351_s23 + $0x78] sm:$0xff]  ;;  %v3446_v32 = vld [vmem:[%s3351_s23 + $0x80] sm:$0xff]  ;;  %v3449_v33 = vld [vmem:[%s3351_s23 + $0x88] sm:$0xff]  ;;  %p3185_p13 = pnand %p3184_p6, %p3315_p11  ;;  %p3190_p5 = por %p3189_p4, %p3188_p3 }
  0x37   : > { %381 = vmatpush.bf16.msra.mxu0 %v2983_v2  ;;  %v297_v31 = vpack.c.bf16 %v3441_v30, %v3438_v29  ;;  %v298_v34 = vpack.c.bf16 %v3449_v33, %v3446_v32  ;;  %v3456_v36 = vld [vmem:[%s5494_s2] ss:$0 sm:$0xff]  ;;  %v3464_v43 = vld [vmem:[%s3351_s23 + $0x98] sm:$0xff]  ;;  %v3482_v56 = vld [vmem:[%s3351_s23 + $0xa8] sm:$0xff] }
  0x38   : > { %v3461_v42 = vld [vmem:[%s3351_s23 + $0x90] sm:$0xff]  ;;  %v3479_v55 = vld [vmem:[%s3351_s23 + $0xa0] sm:$0xff]  ;;  %v3494_v2 = vld [vmem:[%s3351_s23 + $0xb8] sm:$0xff]  ;;  %p3186_p2 = pneg %p3185_p13 }
  0x39   : > { %v299_v45 = vpack.c.bf16 %v3464_v43, %v3461_v42  ;;  %v2776_v50 = vld [vmem:[%s5495_s3] sm:$0xf]  ;;  %v300_v58 = vpack.c.bf16 %v3482_v56, %v3479_v55 }
  0x3a   : > { %v2990_v51 = vld [vmem:[%s5495_s3 + $0x1c] sm:$0xf0]  ;;  %p3191_p7 = pnand %p3190_p5, %p3186_p2 }
  0x3b   : > { %382 = vmatpush.bf16.msra.mxu0 %v2982_v3  ;;  %v2777_v52 = vor.u32 %v2990_v51, %v2776_v50  ;;  %v3491_v1 = vld [vmem:[%s3351_s23 + $0xb0] sm:$0xff] }
  0x3d   : > { %2995 = vmatpush.bf16.msra.mxu1 %v2777_v52  ;;  %2996 = vmatpush.bf16.msra.mxu2 %v2777_v52 }
  0x3e   : > { %2997 = vmatpush.bf16.msra.mxu3 %v2777_v52 }
  0x3f   : > { %383 = vmatpush.bf16.msra.mxu0 %v2981_v4  ;;  %v301_v4 = vpack.c.bf16 %v3494_v2, %v3491_v1 }
  0x43   : > { %384 = vmatpush.bf16.msra.mxu0 %v2980_v5 }
  0x47   : > { %385 = vmatpush.bf16.msra.mxu0 %v2979_v6 }
  0x4b   : > { %386 = vmatpush.bf16.msra.mxu0 %v2978_v7 }
  0x4e   : > { %387 = vmatmul.bf16.vlgmr.msra.gmra.mxu0 %v290_v10 }
  0x4f   : > { %693 = vmatpush.bf16.msrb.mxu0 %v2777_v52 }
  0x5e   : > { %392 = vmatmul.bf16.gmra.mxu0 %v291_v13 }
  0x6e   : > { %397 = vmatmul.bf16.gmra.mxu0 %v292_v16 }
  0x7e   : > { %402 = vmatmul.bf16.gmra.mxu0 %v293_v19  ;;  %v3503_v19 = vld [vmem:[%s3351_s23 + $0xc0] sm:$0xff] }
  0x8e   : > { %407 = vmatmul.bf16.gmra.mxu0 %v294_v22  ;;  %v3506_v22 = vld [vmem:[%s3351_s23 + $0xc8] sm:$0xff] }
  0x9e   : > { %412 = vmatmul.bf16.gmra.mxu0 %v295_v25 }
  0xae   : > { %417 = vmatmul.bf16.gmra.mxu0 %v296_v28  ;;  %v302_v28 = vpack.c.bf16 %v3506_v22, %v3503_v19 }
  0xbe   : > { %422 = vmatmul.bf16.gmra.mxu0 %v297_v31 }
  0xcb   : > { %v388_v35 = vpop.f32.mrf.mxu0 }
  0xcc   : > { %v389_v37 = vadd.f32 %v3456_v36, %v388_v35 }
  0xce   : > { %427 = vmatmul.bf16.gmra.mxu0 %v298_v34  ;;  %v493_v40 = vmax.f32 %v389_v37, 0.0 }
  0xd3   : > { %v390_v38 = vpop.f32.mrf.mxu0 }
  0xd4   : > { %v391_v39 = vadd.f32 %v3456_v36, %v390_v38 }
  0xd6   : > { %v494_v41 = vmax.f32 %v391_v39, 0.0 }
  0xd8   : > { %v3466_v44 = vpack.c.bf16 %v494_v41, %v493_v40  ;;  %v3517_v40 = vld [vmem:[%s3351_s23 + $0xd0] sm:$0xff]  ;;  %v3520_v41 = vld [vmem:[%s3351_s23 + $0xd8] sm:$0xff] }
  0xdb   : > { %v393_v46 = vpop.f32.mrf.mxu0 }
  0xdc   : > { %v394_v47 = vadd.f32 %v3456_v36, %v393_v46  ;;  %v303_v46 = vpack.c.bf16 %v3520_v41, %v3517_v40 }
  0xde   : > { %432 = vmatmul.bf16.gmra.mxu0 %v299_v45  ;;  %v495_v53 = vmax.f32 %v394_v47, 0.0 }
  0xe3   : > { %v395_v48 = vpop.f32.mrf.mxu0 }
  0xe4   : > { %v396_v49 = vadd.f32 %v3456_v36, %v395_v48 }
  0xe6   : > { %v496_v54 = vmax.f32 %v396_v49, 0.0 }
  0xe8   : > { %v3484_v57 = vpack.c.bf16 %v496_v54, %v495_v53  ;;  %v3531_v53 = vld [vmem:[%s3351_s23 + $0xe0] sm:$0xff]  ;;  %v3534_v54 = vld [vmem:[%s3351_s23 + $0xe8] sm:$0xff] }
  0xeb   : > { %v398_v59 = vpop.f32.mrf.mxu0 }
  0xec   : > { %v399_v60 = vadd.f32 %v3456_v36, %v398_v59  ;;  %v304_v59 = vpack.c.bf16 %v3534_v54, %v3531_v53 }
  0xee   : > { %437 = vmatmul.bf16.gmra.mxu0 %v300_v58  ;;  %v497_v63 = vmax.f32 %v399_v60, 0.0 }
  0xf3   : > { %v400_v61 = vpop.f32.mrf.mxu0 }
  0xf4   : > { %v401_v62 = vadd.f32 %v3456_v36, %v400_v61 }
  0xf6   : > { %v498_v0 = vmax.f32 %v401_v62, 0.0 }
  0xf8   : > { %v3496_v3 = vpack.c.bf16 %v498_v0, %v497_v63 }
  0xfb   : > { %v403_v5 = vpop.f32.mrf.mxu0 }
  0xfc   : > { %v404_v6 = vadd.f32 %v3456_v36, %v403_v5  ;;  %v3545_v5 = vld [vmem:[%s3351_s23 + $0xf0] sm:$0xff] }
  0xfe   : > { %442 = vmatmul.bf16.gmra.mxu0 %v301_v4  ;;  %v499_v13 = vmax.f32 %v404_v6, 0.0  ;;  %v3548_v6 = vld [vmem:[%s3351_s23 + $0xf8] sm:$0xff] }
 0x103   : > { %v405_v7 = vpop.f32.mrf.mxu0 }
 0x104   : > { %v406_v10 = vadd.f32 %v3456_v36, %v405_v7 }
 0x106   : > { %v500_v16 = vmax.f32 %v406_v10, 0.0  ;;  %v305_v10 = vpack.c.bf16 %v3548_v6, %v3545_v5 }
 0x108   : > { %v3508_v25 = vpack.c.bf16 %v500_v16, %v499_v13 }
 0x10a   : > { %5536 = vst [vmem:[#allocation8_spill] sm:$0xff] %v3508_v25  ;;  %2809 = vmatmul.msk.bf16.vlgmr.msra.gmra.mxu1 %vm622_vm0, %v3508_v25 }
 0x10b   : > { %v408_v31 = vpop.f32.mrf.mxu0 }
 0x10c   : > { %v409_v34 = vadd.f32 %v3456_v36, %v408_v31 }
 0x10e   : > { %447 = vmatmul.bf16.gmra.mxu0 %v302_v28  ;;  %v501_v38 = vmax.f32 %v409_v34, 0.0  ;;  %v2987_v34 = vld [vmem:[%s5495_s3 + $0xc] sm:$0xf] }
 0x113   : > { %v410_v35 = vpop.f32.mrf.mxu0 }
 0x114   : > { %v411_v37 = vadd.f32 %v3456_v36, %v410_v35  ;;  %v2786_v35 = vld [vmem:[%s5495_s3 + $0x28] sm:$0xf0] }
 0x116   : > { %v502_v39 = vmax.f32 %v411_v37, 0.0  ;;  %v2789_v37 = vor.u32 %v2987_v34, %v2786_v35 }
 0x118   : > { %v3522_v45 = vpack.c.bf16 %v502_v39, %v501_v38  ;;  %1035 = vmatpush.bf16.msrb.mxu1 %v2789_v37 }
 0x11a   : > { %5537 = vst [vmem:[#allocation9_spill] sm:$0xff] %v3522_v45  ;;  %2810 = vmatmul.msk.bf16.gmra.mxu1 %vm622_vm0, %v3522_v45 }
 0x11b   : > { %v413_v47 = vpop.f32.mrf.mxu0 }
 0x11c   : > { %v414_v48 = vadd.f32 %v3456_v36, %v413_v47  ;;  %v3568_v47 = vld [vmem:[%s3351_s23 + $0x108] sm:$0xff] }
 0x11e   : > { %452 = vmatmul.bf16.gmra.mxu0 %v303_v46  ;;  %v503_v51 = vmax.f32 %v414_v48, 0.0  ;;  %v3565_v46 = vld [vmem:[%s3351_s23 + $0x100] sm:$0xff] }
 0x123   : > { %v415_v49 = vpop.f32.mrf.mxu0 }
 0x124   : > { %v416_v50 = vadd.f32 %v3456_v36, %v415_v49  ;;  %v306_v49 = vpack.c.bf16 %v3568_v47, %v3565_v46 }
 0x126   : > { %v504_v52 = vmax.f32 %v416_v50, 0.0  ;;  %v2986_v50 = vld [vmem:[%s5495_s3 + $0x4] sm:$0xf] }
 0x128   : > { %v3536_v58 = vpack.c.bf16 %v504_v52, %v503_v51  ;;  %v2778_v51 = vld [vmem:[%s5495_s3 + $0x20] sm:$0xf0] }
 0x12a   : > { %2811 = vmatmul.msk.bf16.gmra.mxu1 %vm622_vm0, %v3536_v58 }
 0x12b   : > { %v418_v60 = vpop.f32.mrf.mxu0 }
 0x12c   : > { %v419_v61 = vadd.f32 %v3456_v36, %v418_v60 }
 0x12e   : > { %457 = vmatmul.bf16.gmra.mxu0 %v304_v59  ;;  %v505_v0 = vmax.f32 %v419_v61, 0.0  ;;  %v2781_v59 = vor.u32 %v2986_v50, %v2778_v51 }
 0x130   : > { %807 = vmatpush.bf16.msrb.mxu2 %v2781_v59 }
 0x133   : > { %v420_v62 = vpop.f32.mrf.mxu0 }
 0x134   : > { %v421_v63 = vadd.f32 %v3456_v36, %v420_v62 }
 0x136   : > { %v506_v4 = vmax.f32 %v421_v63, 0.0 }
 0x138   : > { %v3550_v7 = vpack.c.bf16 %v506_v4, %v505_v0  ;;  %v3585_v4 = vld [vmem:[%s3351_s23 + $0x110] sm:$0xff] }
 0x13a   : > { %2812 = vmatmul.msk.bf16.gmra.mxu1 %vm622_vm0, %v3550_v7 }
 0x13b   : > { %v423_v13 = vpop.f32.mrf.mxu0 }
 0x13c   : > { %v424_v16 = vadd.f32 %v3456_v36, %v423_v13 }
 0x13e   : > { %462 = vmatmul.bf16.gmra.mxu0 %v305_v10  ;;  %v507_v38 = vmax.f32 %v424_v16, 0.0  ;;  %v3588_v10 = vld [vmem:[%s3351_s23 + $0x118] sm:$0xff] }
 0x13f   : > { %5539 = vst [vmem:[#allocation11_spill] sm:$0xff] %v3588_v10  ;;  %v307_v16 = vpack.c.bf16 %v3588_v10, %v3585_v4 }
 0x143   : > { %v425_v28 = vpop.f32.mrf.mxu0 }
 0x144   : > { %v426_v31 = vadd.f32 %v3456_v36, %v425_v28 }
 0x146   : > { %v508_v39 = vmax.f32 %v426_v31, 0.0 }
 0x148   : > { %v3570_v48 = vpack.c.bf16 %v508_v39, %v507_v38  ;;  %v3599_v39 = vld [vmem:[%s3351_s23 + $0x120] sm:$0xff] }
 0x149   : > { %5540 = vst [vmem:[#allocation12_spill] sm:$0xff] %v3599_v39 }
 0x14a   : > { %5538 = vst [vmem:[#allocation10_spill] sm:$0xff] %v3570_v48  ;;  %2813 = vmatmul.msk.bf16.gmra.mxu1 %vm622_vm0, %v3570_v48 }
 0x14b   : > { %v428_v52 = vpop.f32.mrf.mxu0 }
 0x14c   : > { %v429_v60 = vadd.f32 %v3456_v36, %v428_v52 }
 0x14e   : > { %467 = vmatmul.bf16.gmra.mxu0 %v306_v49  ;;  %v509_v63 = vmax.f32 %v429_v60, 0.0  ;;  %v3602_v49 = vld [vmem:[%s3351_s23 + $0x128] sm:$0xff] }
 0x14f   : > { %5541 = vst [vmem:[#allocation13_spill] sm:$0xff] %v3602_v49  ;;  %v308_v51 = vpack.c.bf16 %v3602_v49, %v3599_v39 }
 0x153   : > { %v430_v61 = vpop.f32.mrf.mxu0 }
 0x154   : > { %v431_v62 = vadd.f32 %v3456_v36, %v430_v61 }
 0x156   : > { %v510_v0 = vmax.f32 %v431_v62, 0.0 }
 0x158   : > { %v3590_v13 = vpack.c.bf16 %v510_v0, %v509_v63  ;;  %v3615_v0 = vld [vmem:[%s3351_s23 + $0x130] sm:$0xff] }
 0x159   : > { %5543 = vst [vmem:[#allocation15_spill] sm:$0xff] %v3615_v0 }
 0x15a   : > { %2814 = vmatmul.msk.bf16.gmra.mxu1 %vm622_vm0, %v3590_v13 }
 0x15b   : > { %v433_v28 = vpop.f32.mrf.mxu0 }
 0x15c   : > { %v434_v31 = vadd.f32 %v3456_v36, %v433_v28 }
 0x15e   : > { %472 = vmatmul.bf16.gmra.mxu0 %v307_v16  ;;  %v511_v37 = vmax.f32 %v434_v31, 0.0  ;;  %v3618_v16 = vld [vmem:[%s3351_s23 + $0x138] sm:$0xff] }
 0x15f   : > { %5544 = vst [vmem:[#allocation16_spill] sm:$0xff] %v3618_v16  ;;  %v309_v31 = vpack.c.bf16 %v3618_v16, %v3615_v0 }
 0x163   : > { %v435_v34 = vpop.f32.mrf.mxu0 }
 0x164   : > { %v436_v35 = vadd.f32 %v3456_v36, %v435_v34 }
 0x166   : > { %v512_v38 = vmax.f32 %v436_v35, 0.0  ;;  %v3631_v35 = vld [vmem:[%s5496_s4] sm:$0xff] }
 0x168   : > { %v3604_v50 = vpack.c.bf16 %v512_v38, %v511_v37 }
 0x16a   : > { %5542 = vst [vmem:[#allocation14_spill] sm:$0xff] %v3604_v50  ;;  %2815 = vmatmul.msk.bf16.vlgmr.msra.gmra.mxu2 %vm622_vm0, %v3604_v50  ;;  %2869 = vmatmul.msk.bf16.vlgmr.msrb.gmra.mxu1 %vm622_vm0, %v3466_v44 }
 0x16b   : > { %v438_v52 = vpop.f32.mrf.mxu0 }
 0x16c   : > { %v439_v59 = vadd.f32 %v3456_v36, %v438_v52  ;;  %v3636_v52 = vperm.slane %v3631_v35, 0 }
 0x16e   : > { %477 = vmatmul.bf16.gmra.mxu0 %v308_v51  ;;  %v513_v62 = vmax.f32 %v439_v59, 0.0 }
 0x173   : > { %v440_v60 = vpop.f32.mrf.mxu0 }
 0x174   : > { %v441_v61 = vadd.f32 %v3456_v36, %v440_v60 }
 0x176   : > { %v514_v63 = vmax.f32 %v441_v61, 0.0 }
 0x178   : > { %v3620_v28 = vpack.c.bf16 %v514_v63, %v513_v62  ;;  %v3639_v62 = vld [vmem:[%s3351_s23 + $0x140] sm:$0xff]  ;;  %v3642_v63 = vld [vmem:[%s3351_s23 + $0x148] sm:$0xff] }
 0x179   : > { %5546 = vst [vmem:[#allocation18_spill] sm:$0xff] %v3642_v63 }
 0x17a   : > { %5545 = vst [vmem:[#allocation17_spill] sm:$0xff] %v3620_v28  ;;  %2816 = vmatmul.msk.bf16.gmra.mxu2 %vm622_vm0, %v3620_v28  ;;  %2870 = vmatmul.msk.bf16.gmra.mxu1 %vm622_vm0, %v3484_v57 }
 0x17b   : > { %v443_v34 = vpop.f32.mrf.mxu0 }
 0x17c   : > { %v444_v37 = vadd.f32 %v3456_v36, %v443_v34 }
 0x17e   : > { %482 = vmatmul.bf16.gmra.mxu0 %v309_v31  ;;  %v515_v59 = vmax.f32 %v444_v37, 0.0  ;;  %v310_v37 = vpack.c.bf16 %v3642_v63, %v3639_v62 }
 0x183   : > { %v445_v38 = vpop.f32.mrf.mxu0 }
 0x184   : > { %v446_v51 = vadd.f32 %v3456_v36, %v445_v38 }
 0x186   : > { %v516_v60 = vmax.f32 %v446_v51, 0.0 }
 0x187   : > { %v710_v61 = vpop.f32.mrf.mxu1 }
 0x188   : > { %v3644_v31 = vpack.c.bf16 %v516_v60, %v515_v59  ;;  %v711_v16 = vadd.f32 %v710_v61, %v3636_v52 }
 0x18a   : > { %5547 = vst [vmem:[#allocation19_spill] sm:$0xff] %v3644_v31  ;;  %2817 = vmatmul.msk.bf16.gmra.mxu2 %vm622_vm0, %v3644_v31  ;;  %2871 = vmatmul.msk.bf16.gmra.mxu1 %vm622_vm0, %v3496_v3  ;;  %v1604_v34 = vmul.f32 %v711_v16, %v3406_v17 }
 0x18b   : > { %v448_v38 = vpop.f32.mrf.mxu0 }
 0x18c   : > { %1652 = vadd.xlane.f32.xlu0 %v1604_v34  ;;  %v449_v60 = vadd.f32 %v3456_v36, %v448_v38 }
 0x18e   : > { %487 = vmatmul.bf16.gmra.mxu0 %v310_v37  ;;  %v517_v39 = vmax.f32 %v449_v60, 0.0 }
 0x18f   : > { %v712_v51 = vpop.f32.mrf.mxu1 }
 0x190   : > { %v713_v59 = vadd.f32 %v712_v51, %v3636_v52 }
 0x192   : > { %v1605_v61 = vmul.f32 %v713_v59, %v3409_v18 }
 0x193   : > { %v450_v0 = vpop.f32.mrf.mxu0 }
 0x194   : > { %v451_v49 = vadd.f32 %v3456_v36, %v450_v0  ;;  %1654 = vadd.xlane.f32.xlu1 %v1605_v61  ;;  %v2800_v61 = vld [vmem:[%s5495_s3 + $0x18] sm:$0xf] }
 0x196   : > { %v518_v10 = vmax.f32 %v451_v49, 0.0 }
 0x197   : > { %v715_v17 = vpop.f32.mrf.mxu1 }
 0x198   : > { %v3658_v16 = vpack.c.bf16 %v518_v10, %v517_v39  ;;  %v716_v63 = vadd.f32 %v715_v17, %v3636_v52  ;;  %v2993_v17 = vld [vmem:[%s5495_s3 + $0x34] sm:$0xf0] }
 0x19a   : > { %5548 = vst [vmem:[#allocation20_spill] sm:$0xff] %v3658_v16  ;;  %2818 = vmatmul.msk.bf16.gmra.mxu2 %vm622_vm0, %v3658_v16  ;;  %2872 = vmatmul.msk.bf16.gmra.mxu1 %vm622_vm0, %v3508_v25  ;;  %v1606_v34 = vmul.f32 %v716_v63, %v3414_v20 }
 0x19b   : > { %v453_v18 = vpop.f32.mrf.mxu0 }
 0x19c   : > { %1656 = vadd.xlane.f32.xlu2 %v1606_v34  ;;  %v454_v10 = vadd.f32 %v3456_v36, %v453_v18  ;;  %v2801_v34 = vor.u32 %v2993_v17, %v2800_v61 }
 0x19e   : > { %2806 = vmatmul.msk.bf16.vlgmr.msrb.gmra.mxu0 %vm622_vm0, %v3466_v44  ;;  %v519_v51 = vmax.f32 %v454_v10, 0.0 }
 0x19f   : > { %v717_v0 = vpop.f32.mrf.mxu1  ;;  %1377 = vmatpush.bf16.msra.mxu0 %v2801_v34 }
 0x1a0   : > { %v718_v49 = vadd.f32 %v717_v0, %v3636_v52  ;;  %v2792_v0 = vld [vmem:[%s5495_s3 + $0x10] sm:$0xf] }
 0x1a2   : > { %v1607_v39 = vmul.f32 %v718_v49, %v3417_v21  ;;  %v2992_v49 = vld [vmem:[%s5495_s3 + $0x2c] sm:$0xf0] }
 0x1a3   : > { %v455_v37 = vpop.f32.mrf.mxu0  ;;  %v2793_v10 = vor.u32 %v2992_v49, %v2792_v0 }
 0x1a4   : > { %v456_v38 = vadd.f32 %v3456_v36, %v455_v37  ;;  %1658 = vadd.xlane.f32.xlu0 %v1607_v39 }
 0x1a5   : > { %1149 = vmatpush.bf16.msra.mxu2 %v2793_v10 }
 0x1a6   : > { %v520_v59 = vmax.f32 %v456_v38, 0.0 }
 0x1a7   : > { %v720_v60 = vpop.f32.mrf.mxu1 }
 0x1a8   : > { %v3672_v20 = vpack.c.bf16 %v520_v59, %v519_v51  ;;  %v721_v63 = vadd.f32 %v720_v60, %v3636_v52 }
 0x1aa   : > { %5549 = vst [vmem:[#allocation21_spill] sm:$0xff] %v3672_v20  ;;  %2819 = vmatmul.msk.bf16.gmra.mxu2 %vm622_vm0, %v3672_v20  ;;  %2873 = vmatmul.msk.bf16.gmra.mxu1 %vm622_vm0, %v3522_v45  ;;  %v1608_v21 = vmul.f32 %v721_v63, %v3422_v23 }
 0x1ab   : > { %v458_v18 = vpop.f32.mrf.mxu0 }
 0x1ac   : > { %1660 = vadd.xlane.f32.xlu1 %v1608_v21  ;;  %v459_v37 = vadd.f32 %v3456_v36, %v458_v18 }
 0x1ae   : > { %2807 = vmatmul.msk.bf16.gmra.mxu0 %vm622_vm0, %v3484_v57  ;;  %v521_v60 = vmax.f32 %v459_v37, 0.0 }
 0x1af   : > { %v722_v39 = vpop.f32.mrf.mxu1 }
 0x1b0   : > { %v723_v23 = vadd.f32 %v722_v39, %v3636_v52 }
 0x1b2   : > { %v1609_v38 = vmul.f32 %v723_v23, %v3425_v24 }
 0x1b3   : > { %v460_v51 = vpop.f32.mrf.mxu0 }
 0x1b4   : > { %v461_v59 = vadd.f32 %v3456_v36, %v460_v51  ;;  %1662 = vadd.xlane.f32.xlu2 %v1609_v38 }
 0x1b6   : > { %v522_v63 = vmax.f32 %v461_v59, 0.0 }
 0x1b7   : > { %v725_v61 = vpop.f32.mrf.mxu1 }
 0x1b8   : > { %v3698_v17 = vpack.c.bf16 %v522_v63, %v521_v60  ;;  %v726_v21 = vadd.f32 %v725_v61, %v3636_v52  ;;  %v2784_v60 = vld [vmem:[%s5495_s3 + $0x8] sm:$0xf] }
 0x1b9   : > { %v2991_v63 = vld [vmem:[%s5495_s3 + $0x24] sm:$0xf0] }
 0x1ba   : > { %5550 = vst [vmem:[#allocation22_spill] sm:$0xff] %v3698_v17  ;;  %2820 = vmatmul.msk.bf16.gmra.mxu2 %vm622_vm0, %v3698_v17  ;;  %2874 = vmatmul.msk.bf16.gmra.mxu1 %vm622_vm0, %v3536_v58  ;;  %v1610_v34 = vmul.f32 %v726_v21, %v3430_v26 }
 0x1bb   : > { %v463_v24 = vpop.f32.mrf.mxu0 }
 0x1bc   : > { %1664 = vadd.xlane.f32.xlu0 %v1610_v34  ;;  %v464_v0 = vadd.f32 %v3456_v36, %v463_v24 }
 0x1be   : > { %2808 = vmatmul.msk.bf16.gmra.mxu0 %vm622_vm0, %v3496_v3  ;;  %v523_v23 = vmax.f32 %v464_v0, 0.0 }
 0x1bf   : > { %v727_v18 = vpop.f32.mrf.mxu1 }
 0x1c0   : > { %v728_v49 = vadd.f32 %v727_v18, %v3636_v52 }
 0x1c2   : > { %v1611_v10 = vmul.f32 %v728_v49, %v3433_v27  ;;  %v2785_v27 = vor.u32 %v2991_v63, %v2784_v60 }
 0x1c3   : > { %v465_v39 = vpop.f32.mrf.mxu0 }
 0x1c4   : > { %v466_v37 = vadd.f32 %v3456_v36, %v465_v39  ;;  %1666 = vadd.xlane.f32.xlu1 %v1611_v10  ;;  %921 = vmatpush.bf16.msrb.mxu3 %v2785_v27 }
 0x1c6   : > { %v524_v38 = vmax.f32 %v466_v37, 0.0 }
 0x1c7   : > { %v730_v51 = vpop.f32.mrf.mxu1 }
 0x1c8   : > { %v3712_v26 = vpack.c.bf16 %v524_v38, %v523_v23  ;;  %v731_v59 = vadd.f32 %v730_v51, %v3636_v52 }
 0x1ca   : > { %5551 = vst [vmem:[#allocation23_spill] sm:$0xff] %v3712_v26  ;;  %2821 = vmatmul.msk.bf16.vlgmr.msra.gmra.mxu3 %vm622_vm0, %v3712_v26  ;;  %2827 = vmatmul.msk.bf16.vlgmr.msrb.gmra.mxu2 %vm622_vm0, %v3466_v44  ;;  %v1612_v61 = vmul.f32 %v731_v59, %v3438_v29 }
 0x1cb   : > { %2875 = vmatmul.msk.bf16.gmra.mxu1 %vm622_vm0, %v3550_v7  ;;  %v468_v21 = vpop.f32.mrf.mxu0 }
 0x1cc   : > { %1668 = vadd.xlane.f32.xlu2 %v1612_v61  ;;  %v469_v24 = vadd.f32 %v3456_v36, %v468_v21 }
 0x1ce   : > { %2932 = vmatmul.msk.bf16.vlgmr.msra.gmra.mxu0 %vm622_vm0, %v3466_v44  ;;  %v525_v10 = vmax.f32 %v469_v24, 0.0 }
 0x1cf   : > { %v732_v34 = vpop.f32.mrf.mxu1 }
 0x1d0   : > { %v733_v18 = vadd.f32 %v732_v34, %v3636_v52 }
 0x1d2   : > { %v1613_v0 = vmul.f32 %v733_v18, %v3441_v30 }
 0x1d3   : > { %v470_v49 = vpop.f32.mrf.mxu0 }
 0x1d4   : > { %v471_v29 = vadd.f32 %v3456_v36, %v470_v49  ;;  %1670 = vadd.xlane.f32.xlu0 %v1613_v0 }
 0x1d6   : > { %v526_v39 = vmax.f32 %v471_v29, 0.0 }
 0x1d7   : > { %v735_v23 = vpop.f32.mrf.mxu1 }
 0x1d8   : > { %v3734_v37 = vpack.c.bf16 %v526_v39, %v525_v10  ;;  %v736_v38 = vadd.f32 %v735_v23, %v3636_v52 }
 0x1da   : > { %5552 = vst [vmem:[#allocation24_spill] sm:$0xff] %v3734_v37  ;;  %2822 = vmatmul.msk.bf16.gmra.mxu3 %vm622_vm0, %v3734_v37  ;;  %2828 = vmatmul.msk.bf16.gmra.mxu2 %vm622_vm0, %v3484_v57  ;;  %v1614_v51 = vmul.f32 %v736_v38, %v3446_v32 }
 0x1db   : > { %2876 = vmatmul.msk.bf16.gmra.mxu1 %vm622_vm0, %v3570_v48  ;;  %v473_v30 = vpop.f32.mrf.mxu0 }
 0x1dc   : > { %1672 = vadd.xlane.f32.xlu1 %v1614_v51  ;;  %v474_v60 = vadd.f32 %v3456_v36, %v473_v30 }
 0x1de   : > { %2933 = vmatmul.msk.bf16.gmra.mxu0 %vm622_vm0, %v3484_v57  ;;  %v527_v21 = vmax.f32 %v474_v60, 0.0 }
 0x1df   : > { %v737_v59 = vpop.f32.mrf.mxu1 }
 0x1e0   : > { %v738_v63 = vadd.f32 %v737_v59, %v3636_v52 }
 0x1e2   : > { %v1615_v27 = vmul.f32 %v738_v63, %v3449_v33 }
 0x1e3   : > { %v475_v61 = vpop.f32.mrf.mxu0 }
 0x1e4   : > { %v476_v34 = vadd.f32 %v3456_v36, %v475_v61  ;;  %1674 = vadd.xlane.f32.xlu2 %v1615_v27 }
 0x1e6   : > { %v528_v32 = vmax.f32 %v476_v34, 0.0 }
 0x1e7   : > { %v3750_v24 = vpop.f32.mrf.mxu1 }
 0x1e8   : > { %v3752_v18 = vpack.c.bf16 %v528_v32, %v527_v21 }
 0x1ea   : > { %2823 = vmatmul.msk.bf16.gmra.mxu3 %vm622_vm0, %v3752_v18  ;;  %2829 = vmatmul.msk.bf16.gmra.mxu2 %vm622_vm0, %v3496_v3 }
 0x1eb   : > { %2877 = vmatmul.msk.bf16.gmra.mxu1 %vm622_vm0, %v3590_v13  ;;  %v478_v33 = vpop.f32.mrf.mxu0 }
 0x1ec   : > { %v479_v29 = vadd.f32 %v3456_v36, %v478_v33 }
 0x1ed   : > { %v740_v0 = vpop.f32.mrf.mxu2 }
 0x1ee   : > { %v741_v49 = vadd.f32 %v740_v0, %v3636_v52  ;;  %2934 = vmatmul.msk.bf16.gmra.mxu0 %vm622_vm0, %v3496_v3  ;;  %v529_v38 = vmax.f32 %v479_v29, 0.0 }
 0x1ef   : > { %v3763_v10 = vpop.f32.mrf.mxu1 }
 0x1f0   : > { %v1616_v39 = vmul.f32 %v741_v49, %v3461_v42 }
 0x1f2   : > { %1676 = vadd.xlane.f32.xlu0 %v1616_v39 }
 0x1f3   : > { %v480_v23 = vpop.f32.mrf.mxu0 }
 0x1f4   : > { %v481_v51 = vadd.f32 %v3456_v36, %v480_v23 }
 0x1f5   : > { %v742_v30 = vpop.f32.mrf.mxu2 }
 0x1f6   : > { %v530_v59 = vmax.f32 %v481_v51, 0.0  ;;  %v743_v60 = vadd.f32 %v742_v30, %v3636_v52 }
 0x1f7   : > { %v3769_v63 = vpop.f32.mrf.mxu1 }
 0x1f8   : > { %v3771_v27 = vpack.c.bf16 %v530_v59, %v529_v38  ;;  %v1617_v61 = vmul.f32 %v743_v60, %v3464_v43 }
 0x1fa   : > { %2824 = vmatmul.msk.bf16.gmra.mxu3 %vm622_vm0, %v3771_v27  ;;  %1678 = vadd.xlane.f32.xlu1 %v1617_v61 }
 0x1fb   : > { %2830 = vmatmul.msk.bf16.gmra.mxu2 %vm622_vm0, %v3508_v25  ;;  %2878 = vmatmul.msk.bf16.gmra.mxu1 %vm622_vm0, %v3604_v50  ;;  %v483_v42 = vpop.f32.mrf.mxu0 }
 0x1fc   : > { %v484_v43 = vadd.f32 %v3456_v36, %v483_v42 }
 0x1fd   : > { %v745_v21 = vpop.f32.mrf.mxu2 }
 0x1fe   : > { %v746_v34 = vadd.f32 %v745_v21, %v3636_v52  ;;  %2935 = vmatmul.msk.bf16.gmra.mxu0 %vm622_vm0, %v3508_v25  ;;  %v531_v49 = vmax.f32 %v484_v43, 0.0 }
 0x1ff   : > { %v3783_v32 = vpop.f32.mrf.mxu1 }
 0x200   : > { %v1618_v33 = vmul.f32 %v746_v34, %v3479_v55 }
 0x202   : > { %1680 = vadd.xlane.f32.xlu2 %v1618_v33 }
 0x203   : > { %v485_v0 = vpop.f32.mrf.mxu0 }
 0x204   : > { %v486_v29 = vadd.f32 %v3456_v36, %v485_v0 }
 0x205   : > { %v747_v39 = vpop.f32.mrf.mxu2 }
 0x206   : > { %v532_v23 = vmax.f32 %v486_v29, 0.0  ;;  %v748_v38 = vadd.f32 %v747_v39, %v3636_v52 }
 0x207   : > { %v3789_v51 = vpop.f32.mrf.mxu1 }
 0x208   : > { %5553 = vst [vmem:[#allocation25_spill] sm:$0xff] %v3789_v51  ;;  %v3791_v30 = vpack.c.bf16 %v532_v23, %v531_v49  ;;  %v1619_v59 = vmul.f32 %v748_v38, %v3482_v56 }
 0x20a   : > { %2825 = vmatmul.msk.bf16.gmra.mxu3 %vm622_vm0, %v3791_v30  ;;  %1682 = vadd.xlane.f32.xlu0 %v1619_v59 }
 0x20b   : > { %2831 = vmatmul.msk.bf16.gmra.mxu2 %vm622_vm0, %v3522_v45  ;;  %2879 = vmatmul.msk.bf16.gmra.mxu1 %vm622_vm0, %v3620_v28  ;;  %v488_v55 = vpop.f32.mrf.mxu0 }
 0x20c   : > { %v489_v56 = vadd.f32 %v3456_v36, %v488_v55 }
 0x20d   : > { %v750_v60 = vpop.f32.mrf.mxu2 }
 0x20e   : > { %v751_v61 = vadd.f32 %v750_v60, %v3636_v52  ;;  %2936 = vmatmul.msk.bf16.gmra.mxu0 %vm622_vm0, %v3522_v45  ;;  %v533_v43 = vmax.f32 %v489_v56, 0.0 }
 0x20f   : > { %v3803_v42 = vpop.f32.mrf.mxu1 }
 0x210   : > { %5554 = vst [vmem:[#allocation26_spill] sm:$0xff] %v3803_v42  ;;  %v1620_v21 = vmul.f32 %v751_v61, %v3491_v1  ;;  %v4248_v42 = vld [vmem:[%s3351_s23 + $0x98] sm:$0xff] }
 0x211   : > { %5624 = vst [vmem:[#allocation84_spill] sm:$0xff] %v4248_v42 }
 0x212   : > { %1684 = vadd.xlane.f32.xlu1 %v1620_v21 }
 0x213   : > { %v490_v34 = vpop.f32.mrf.mxu0 }
 0x214   : > { %v491_v33 = vadd.f32 %v3456_v36, %v490_v34 }
 0x215   : > { %v752_v0 = vpop.f32.mrf.mxu2 }
 0x216   : > { %v534_v49 = vmax.f32 %v491_v33, 0.0  ;;  %v753_v29 = vadd.f32 %v752_v0, %v3636_v52  ;;  %v2988_v0 = vld [vmem:[%s5495_s3 + $0x14] sm:$0xf] }
 0x217   : > { %v3809_v39 = vpop.f32.mrf.mxu1 }
 0x218   : > { %5555 = vst [vmem:[#allocation27_spill] sm:$0xff] %v3809_v39  ;;  %v3811_v23 = vpack.c.bf16 %v534_v49, %v533_v43  ;;  %v1621_v38 = vmul.f32 %v753_v29, %v3494_v2  ;;  %v2794_v49 = vld [vmem:[%s5495_s3 + $0x30] sm:$0xf0] }
 0x21a   : > { %2826 = vmatmul.msk.bf16.gmra.mxu3 %vm622_vm0, %v3811_v23  ;;  %1686 = vadd.xlane.f32.xlu2 %v1621_v38 }
 0x21b   : > { %2832 = vmatmul.msk.bf16.gmra.mxu2 %vm622_vm0, %v3536_v58  ;;  %2880 = vmatmul.msk.bf16.gmra.mxu1 %vm622_vm0, %v3644_v31  ;;  %v695_v36 = vpop.f32.mrf.mxu0 }
 0x21c   : > { %v696_v1 = vadd.f32 %v695_v36, %v3636_v52 }
 0x21d   : > { %v755_v59 = vpop.f32.mrf.mxu2 }
 0x21e   : > { %2937 = vmatmul.msk.bf16.gmra.mxu0 %vm622_vm0, %v3536_v58  ;;  %v1598_v55 = vmul.f32 %v696_v1, %v3382_v8  ;;  %v756_v60 = vadd.f32 %v755_v59, %v3636_v52 }
 0x21f   : > { %v3824_v2 = vpop.f32.mrf.mxu1 }
 0x220   : > { %5556 = vst [vmem:[#allocation28_spill] sm:$0xff] %v3824_v2  ;;  %1640 = vadd.xlane.f32.xlu0 %v1598_v55  ;;  %v1622_v34 = vmul.f32 %v756_v60, %v3503_v19  ;;  %v2797_v19 = vor.u32 %v2988_v0, %v2794_v49 }
 0x222   : > { %1263 = vmatpush.bf16.msra.mxu3 %v2797_v19 }
 0x223   : > { %v697_v61 = vpop.f32.mrf.mxu0 }
 0x224   : > { %v698_v29 = vadd.f32 %v697_v61, %v3636_v52 }
 0x225   : > { %v757_v56 = vpop.f32.mrf.mxu2 }
 0x226   : > { %v758_v21 = vadd.f32 %v757_v56, %v3636_v52  ;;  %v1599_v59 = vmul.f32 %v698_v29, %v3385_v9  ;;  %v2989_v56 = vld [vmem:[%s5495_s3 + $0x1c] sm:$0xf] }
 0x227   : > { %v3829_v43 = vpop.f32.mrf.mxu1 }
 0x228   : > { %5557 = vst [vmem:[#allocation29_spill] sm:$0xff] %v3829_v43  ;;  %1688 = vadd.xlane.f32.xlu0 %v1622_v34  ;;  %v1623_v33 = vmul.f32 %v758_v21, %v3506_v22  ;;  %v2802_v21 = vld [vmem:[%s5495_s3 + $0x38] sm:$0xf0] }
 0x229   : > { %v2805_v34 = vor.u32 %v2989_v56, %v2802_v21 }
 0x22a   : > { %1690 = vadd.xlane.f32.xlu1 %v1623_v33  ;;  %2848 = vmatmul.msk.bf16.vlgmr.msrb.gmra.mxu3 %vm622_vm0, %v3466_v44 }
 0x22b   : > { %2833 = vmatmul.msk.bf16.gmra.mxu2 %vm622_vm0, %v3550_v7  ;;  %2881 = vmatmul.msk.bf16.gmra.mxu1 %vm622_vm0, %v3658_v16  ;;  %v700_v22 = vpop.f32.mrf.mxu0 }
 0x22c   : > { %v701_v38 = vadd.f32 %v700_v22, %v3636_v52  ;;  %1491 = vmatpush.bf16.msra.mxu1 %v2805_v34 }
 0x22d   : > { %v760_v36 = vpop.f32.mrf.mxu2 }
 0x22e   : > { %v761_v1 = vadd.f32 %v760_v36, %v3636_v52  ;;  %2938 = vmatmul.msk.bf16.gmra.mxu0 %vm622_vm0, %v3550_v7  ;;  %v1600_v61 = vmul.f32 %v701_v38, %v3390_v11 }
 0x22f   : > { %v3850_v55 = vpop.f32.mrf.mxu1 }
 0x230   : > { %5558 = vst [vmem:[#allocation30_spill] sm:$0xff] %v3850_v55  ;;  %1642 = vadd.xlane.f32.xlu0 %v1599_v59  ;;  %v1624_v60 = vmul.f32 %v761_v1, %v3517_v40 }
 0x232   : > { %1692 = vadd.xlane.f32.xlu2 %v1624_v60  ;;  %1644 = vadd.xlane.f32.xlu1 %v1600_v61 }
 0x233   : > { %v702_v33 = vpop.f32.mrf.mxu0 }
 0x234   : > { %v703_v0 = vadd.f32 %v702_v33, %v3636_v52 }
 0x235   : > { %v762_v49 = vpop.f32.mrf.mxu2 }
 0x236   : > { %v763_v40 = vadd.f32 %v762_v49, %v3636_v52  ;;  %v1601_v19 = vmul.f32 %v703_v0, %v3393_v12  ;;  %v3885_v49 = vperm.slane %v3631_v35, 6 }
 0x237   : > { %v3862_v29 = vpop.f32.mrf.mxu1 }
 0x238   : > { %5559 = vst [vmem:[#allocation31_spill] sm:$0xff] %v3862_v29  ;;  %v1625_v22 = vmul.f32 %v763_v40, %v3520_v41 }
 0x239   : > { %5562 = vst [vmem:[#allocation34_spill] sm:$0xff] %v3885_v49 }
 0x23a   : > { %2849 = vmatmul.msk.bf16.gmra.mxu3 %vm622_vm0, %v3484_v57  ;;  %1646 = vadd.xlane.f32.xlu1 %v1601_v19 }
 0x23b   : > { %2834 = vmatmul.msk.bf16.gmra.mxu2 %vm622_vm0, %v3570_v48  ;;  %2882 = vmatmul.msk.bf16.gmra.mxu1 %vm622_vm0, %v3672_v20  ;;  %v705_v38 = vpop.f32.mrf.mxu0 }
 0x23c   : > { %1694 = vadd.xlane.f32.xlu0 %v1625_v22  ;;  %v706_v36 = vadd.f32 %v705_v38, %v3636_v52 }
 0x23d   : > { %v765_v1 = vpop.f32.mrf.mxu2 }
 0x23e   : > { %v766_v59 = vadd.f32 %v765_v1, %v3636_v52  ;;  %2939 = vmatmul.msk.bf16.gmra.mxu0 %vm622_vm0, %v3570_v48  ;;  %v1602_v41 = vmul.f32 %v706_v36, %v3398_v14 }
 0x23f   : > { %v3877_v60 = vpop.f32.mrf.mxu1 }
 0x240   : > { %5560 = vst [vmem:[#allocation32_spill] sm:$0xff] %v3877_v60  ;;  %1648 = vadd.xlane.f32.xlu2 %v1602_v41  ;;  %v1626_v61 = vmul.f32 %v766_v59, %v3531_v53 }
 0x242   : > { %1696 = vadd.xlane.f32.xlu1 %v1626_v61 }
 0x243   : > { %v707_v56 = vpop.f32.mrf.mxu0 }
 0x244   : > { %v708_v21 = vadd.f32 %v707_v56, %v3636_v52 }
 0x245   : > { %v767_v34 = vpop.f32.mrf.mxu2 }
 0x246   : > { %v1603_v33 = vmul.f32 %v708_v21, %v3401_v15  ;;  %v768_v40 = vadd.f32 %v767_v34, %v3636_v52 }
 0x248   : > { %v3882_v0 = vpop.f32.mrf.mxu1  ;;  %1650 = vadd.xlane.f32.xlu2 %v1603_v33  ;;  %v1627_v38 = vmul.f32 %v768_v40, %v3534_v54 }
 0x249   : > { %5561 = vst [vmem:[#allocation33_spill] sm:$0xff] %v3882_v0 }
 0x24a   : > { %2850 = vmatmul.msk.bf16.gmra.mxu3 %vm622_vm0, %v3496_v3 }
 0x24b   : > { %2835 = vmatmul.msk.bf16.gmra.mxu2 %vm622_vm0, %v3590_v13  ;;  %2883 = vmatmul.msk.bf16.gmra.mxu1 %vm622_vm0, %v3698_v17  ;;  %v1379_v53 = vpop.f32.mrf.mxu0 }
 0x24c   : > { %v1380_v15 = vadd.f32 %v1379_v53, %v3885_v49 }
 0x24d   : > { %v770_v19 = vpop.f32.mrf.mxu3  ;;  %v3895_v22 = vpop.f32.mrf.mxu2 }
 0x24e   : > { %2940 = vmatmul.msk.bf16.gmra.mxu0 %vm622_vm0, %v3590_v13  ;;  %v2312_v36 = vmul.f32 %v1380_v15, %v3382_v8  ;;  %v771_v1 = vadd.f32 %v770_v19, %v3636_v52 }
 0x250   : > { %v3902_v59 = vpop.f32.mrf.mxu1  ;;  %1698 = vadd.xlane.f32.xlu2 %v1627_v38  ;;  %2354 = vadd.xlane.f32.xlu0 %v2312_v36  ;;  %v1628_v56 = vmul.f32 %v771_v1, %v3545_v5  ;;  %v3928_v1 = vpop.xlane.xlu0 %1652 }
 0x251   : > { %5563 = vst [vmem:[#allocation35_spill] sm:$0xff] %v3902_v59 }
 0x252   : > { %5566 = vst [vmem:[#allocation38_spill] sm:$0xff] %v3928_v1  ;;  %v4177_v1 = vld [vmem:[%s3351_s23 + $0x78] sm:$0xff] }
 0x253   : > { %v1381_v41 = vpop.f32.mrf.mxu0 }
 0x254   : > { %v1382_v61 = vadd.f32 %v1381_v41, %v3885_v49 }
 0x255   : > { %v772_v21 = vpop.f32.mrf.mxu3  ;;  %v3906_v34 = vpop.f32.mrf.mxu2 }
 0x256   : > { %v2313_v33 = vmul.f32 %v1382_v61, %v3385_v9  ;;  %v773_v54 = vadd.f32 %v772_v21, %v3636_v52 }
 0x258   : > { %v3910_v40 = vpop.f32.mrf.mxu1  ;;  %2356 = vadd.xlane.f32.xlu1 %v2313_v33  ;;  %1700 = vadd.xlane.f32.xlu0 %v1628_v56  ;;  %v1629_v9 = vmul.f32 %v773_v54, %v3548_v6 }
 0x259   : > { %5564 = vst [vmem:[#allocation36_spill] sm:$0xff] %v3910_v40 }
 0x25a   : > { %2851 = vmatmul.msk.bf16.gmra.mxu3 %vm622_vm0, %v3508_v25 }
 0x25b   : > { %2836 = vmatmul.msk.bf16.gmra.mxu2 %vm622_vm0, %v3604_v50  ;;  %2884 = vmatmul.msk.bf16.gmra.mxu1 %vm622_vm0, %v3712_v26  ;;  %v1384_v8 = vpop.f32.mrf.mxu0 }
 0x25c   : > { %v1385_v5 = vadd.f32 %v1384_v8, %v3885_v49  ;;  %v3940_v8 = vpop.xlane.xlu0 %1658 }
 0x25d   : > { %v775_v53 = vpop.f32.mrf.mxu3  ;;  %v3920_v15 = vpop.f32.mrf.mxu2  ;;  %5568 = vst [vmem:[#allocation40_spill] sm:$0xff] %v3940_v8 }
 0x25e   : > { %2941 = vmatmul.msk.bf16.gmra.mxu0 %vm622_vm0, %v3604_v50  ;;  %v2314_v19 = vmul.f32 %v1385_v5, %v3390_v11  ;;  %v776_v38 = vadd.f32 %v775_v53, %v3636_v52 }
 0x260   : > { %v3926_v36 = vpop.f32.mrf.mxu1  ;;  %2358 = vadd.xlane.f32.xlu2 %v2314_v19  ;;  %1702 = vadd.xlane.f32.xlu1 %v1629_v9  ;;  %v1630_v6 = vmul.f32 %v776_v38, %v3565_v46  ;;  %v3948_v9 = vpop.xlane.xlu1 %1654 }
 0x261   : > { %5565 = vst [vmem:[#allocation37_spill] sm:$0xff] %v3926_v36  ;;  %v3967_v36 = vld [vmem:[%s3351_s23 + $0x28] sm:$0xff] }
 0x262   : > { %5569 = vst [vmem:[#allocation41_spill] sm:$0xff] %v3948_v9 }
 0x263   : > { %v1386_v41 = vpop.f32.mrf.mxu0 }
 0x264   : > { %v1387_v61 = vadd.f32 %v1386_v41, %v3885_v49 }
 0x265   : > { %v777_v56 = vpop.f32.mrf.mxu3  ;;  %v3932_v21 = vpop.f32.mrf.mxu2 }
 0x266   : > { %v2315_v33 = vmul.f32 %v1387_v61, %v3393_v12  ;;  %v778_v11 = vadd.f32 %v777_v56, %v3636_v52 }
 0x268   : > { %v3936_v54 = vpop.f32.mrf.mxu1  ;;  %2360 = vadd.xlane.f32.xlu0 %v2315_v33  ;;  %1704 = vadd.xlane.f32.xlu2 %v1630_v6  ;;  %v1631_v5 = vmul.f32 %v778_v11, %v3568_v47  ;;  %v3958_v6 = vpop.xlane.xlu0 %1664 }
 0x269   : > { %5567 = vst [vmem:[#allocation39_spill] sm:$0xff] %v3936_v54  ;;  %v3962_v11 = vpop.xlane.xlu1 %1660 }
 0x26a   : > { %2852 = vmatmul.msk.bf16.gmra.mxu3 %vm622_vm0, %v3522_v45  ;;  %5571 = vst [vmem:[#allocation43_spill] sm:$0xff] %v3958_v6 }
 0x26b   : > { %2837 = vmatmul.msk.bf16.gmra.mxu2 %vm622_vm0, %v3620_v28  ;;  %2885 = vmatmul.msk.bf16.gmra.mxu1 %vm622_vm0, %v3734_v37  ;;  %v1389_v46 = vpop.f32.mrf.mxu0  ;;  %5572 = vst [vmem:[#allocation44_spill] sm:$0xff] %v3962_v11 }
 0x26c   : > { %v1390_v12 = vadd.f32 %v1389_v46, %v3885_v49 }
 0x26d   : > { %v780_v53 = vpop.f32.mrf.mxu3  ;;  %v3950_v19 = vpop.f32.mrf.mxu2 }
 0x26e   : > { %2942 = vmatmul.msk.bf16.gmra.mxu0 %vm622_vm0, %v3620_v28  ;;  %v2316_v38 = vmul.f32 %v1390_v12, %v3398_v14  ;;  %v781_v41 = vadd.f32 %v780_v53, %v3636_v52  ;;  %v3973_v53 = vpop.xlane.xlu2 %1656 }
 0x26f   : > { %5574 = vst [vmem:[#allocation46_spill] sm:$0xff] %v3973_v53 }
 0x270   : > { %v3956_v61 = vpop.f32.mrf.mxu1  ;;  %2362 = vadd.xlane.f32.xlu1 %v2316_v38  ;;  %1706 = vadd.xlane.f32.xlu0 %v1631_v5  ;;  %v1632_v33 = vmul.f32 %v781_v41, %v3585_v4  ;;  %v3977_v4 = vpop.xlane.xlu0 %1670 }
 0x271   : > { %5570 = vst [vmem:[#allocation42_spill] sm:$0xff] %v3956_v61 }
 0x272   : > { %5575 = vst [vmem:[#allocation47_spill] sm:$0xff] %v3977_v4 }
 0x273   : > { %v1391_v47 = vpop.f32.mrf.mxu0 }
 0x274   : > { %v1392_v56 = vadd.f32 %v1391_v47, %v3885_v49  ;;  %v5576_v47 = vld [vmem:[#allocation11_spill] sm:$0xff] }
 0x275   : > { %v782_v46 = vpop.f32.mrf.mxu3  ;;  %v3964_v54 = vpop.f32.mrf.mxu2 }
 0x276   : > { %v2317_v14 = vmul.f32 %v3967_v36, %v1392_v56  ;;  %v783_v12 = vadd.f32 %v782_v46, %v3636_v52  ;;  %v3985_v46 = vpop.xlane.xlu1 %1666 }
 0x277   : > { %5577 = vst [vmem:[#allocation11_spill] sm:$0xff] %v3985_v46  ;;  %v5582_v46 = vld [vmem:[#allocation12_spill] sm:$0xff] }
 0x278   : > { %v3971_v5 = vpop.f32.mrf.mxu1  ;;  %2364 = vadd.xlane.f32.xlu2 %v2317_v14  ;;  %1708 = vadd.xlane.f32.xlu1 %v1632_v33  ;;  %v1633_v56 = vmul.f32 %v783_v12, %v5576_v47  ;;  %v3998_v12 = vpop.xlane.xlu2 %1662 }
 0x279   : > { %5573 = vst [vmem:[#allocation45_spill] sm:$0xff] %v3971_v5  ;;  %v3992_v5 = vld [vmem:[%s3351_s23 + $0x30] sm:$0xff] }
 0x27a   : > { %2853 = vmatmul.msk.bf16.gmra.mxu3 %vm622_vm0, %v3536_v58  ;;  %5580 = vst [vmem:[#allocation50_spill] sm:$0xff] %v3998_v12  ;;  %v5593_v12 = vld [vmem:[#allocation15_spill] sm:$0xff] }
 0x27b   : > { %2838 = vmatmul.msk.bf16.gmra.mxu2 %vm622_vm0, %v3644_v31  ;;  %2886 = vmatmul.msk.bf16.gmra.mxu1 %vm622_vm0, %v3752_v18  ;;  %v1394_v38 = vpop.f32.mrf.mxu0 }
 0x27c   : > { %v1395_v41 = vadd.f32 %v1394_v38, %v3885_v49  ;;  %v4000_v38 = vpop.xlane.xlu0 %1676 }
 0x27d   : > { %v785_v33 = vpop.f32.mrf.mxu3  ;;  %5581 = vst [vmem:[#allocation51_spill] sm:$0xff] %v4000_v38 }
 0x27e   : > { %v3987_v14 = vpop.f32.mrf.mxu2  ;;  %2943 = vmatmul.msk.bf16.gmra.mxu0 %vm622_vm0, %v3644_v31  ;;  %v2318_v61 = vmul.f32 %v3992_v5, %v1395_v41  ;;  %v786_v4 = vadd.f32 %v785_v33, %v3636_v52  ;;  %v4004_v6 = vpop.xlane.xlu1 %1672  ;;  %v4009_v41 = vld [vmem:[%s3351_s23 + $0x38] sm:$0xff] }
 0x27f   : > { %5578 = vst [vmem:[#allocation48_spill] sm:$0xff] %v3987_v14  ;;  %v3068_v14 = vld [vmem:[%s3351_s23 + $0x20] sm:$0xff] }
 0x280   : > { %v3996_v40 = vpop.f32.mrf.mxu1  ;;  %2366 = vadd.xlane.f32.xlu0 %v2318_v61  ;;  %1710 = vadd.xlane.f32.xlu2 %v1633_v56  ;;  %v1634_v0 = vmul.f32 %v786_v4, %v5582_v46  ;;  %5583 = vst [vmem:[#allocation12_spill] sm:$0xff] %v4004_v6  ;;  %v5588_v46 = vld [vmem:[#allocation13_spill] sm:$0xff] }
 0x281   : > { %5579 = vst [vmem:[#allocation49_spill] sm:$0xff] %v3996_v40  ;;  %v4015_v40 = vpop.xlane.xlu2 %1668 }
 0x282   : > { %5586 = vst [vmem:[#allocation54_spill] sm:$0xff] %v4015_v40 }
 0x283   : > { %v1396_v47 = vpop.f32.mrf.mxu0 }
 0x284   : > { %v1397_v59 = vadd.f32 %v1396_v47, %v3885_v49  ;;  %v4019_v4 = vpop.xlane.xlu0 %1682 }
 0x285   : > { %v787_v60 = vpop.f32.mrf.mxu3  ;;  %5587 = vst [vmem:[#allocation55_spill] sm:$0xff] %v4019_v4  ;;  %v4034_v4 = vld [vmem:[%s3351_s23 + $0x40] sm:$0xff] }
 0x286   : > { %v4006_v29 = vpop.f32.mrf.mxu2  ;;  %v2319_v33 = vmul.f32 %v4009_v41, %v1397_v59  ;;  %v788_v61 = vadd.f32 %v787_v60, %v3636_v52 }
 0x287   : > { %5584 = vst [vmem:[#allocation52_spill] sm:$0xff] %v4006_v29 }
 0x288   : > { %v4013_v56 = vpop.f32.mrf.mxu1  ;;  %2368 = vadd.xlane.f32.xlu1 %v2319_v33  ;;  %1712 = vadd.xlane.f32.xlu0 %v1634_v0  ;;  %v1635_v47 = vmul.f32 %v788_v61, %v5588_v46  ;;  %v4027_v33 = vpop.xlane.xlu1 %1678 }
 0x289   : > { %5585 = vst [vmem:[#allocation53_spill] sm:$0xff] %v4013_v56  ;;  %v4040_v61 = vpop.xlane.xlu2 %1674 }
 0x28a   : > { %2854 = vmatmul.msk.bf16.gmra.mxu3 %vm622_vm0, %v3550_v7  ;;  %5589 = vst [vmem:[#allocation13_spill] sm:$0xff] %v4027_v33 }
 0x28b   : > { %2839 = vmatmul.msk.bf16.gmra.mxu2 %vm622_vm0, %v3658_v16  ;;  %2887 = vmatmul.msk.bf16.gmra.mxu1 %vm622_vm0, %v3771_v27  ;;  %v1399_v59 = vpop.f32.mrf.mxu0  ;;  %5592 = vst [vmem:[#allocation58_spill] sm:$0xff] %v4040_v61 }
 0x28c   : > { %v1400_v60 = vadd.f32 %v1399_v59, %v3885_v49 }
 0x28d   : > { %v790_v0 = vpop.f32.mrf.mxu3 }
 0x28e   : > { %v4029_v56 = vpop.f32.mrf.mxu2  ;;  %2944 = vmatmul.msk.bf16.gmra.mxu0 %vm622_vm0, %v3658_v16  ;;  %v2320_v38 = vmul.f32 %v4034_v4, %v1400_v60  ;;  %v791_v6 = vadd.f32 %v790_v0, %v3636_v52  ;;  %v4051_v60 = vld [vmem:[%s3351_s23 + $0x48] sm:$0xff] }
 0x28f   : > { %5590 = vst [vmem:[#allocation56_spill] sm:$0xff] %v4029_v56 }
 0x290   : > { %v4038_v40 = vpop.f32.mrf.mxu1  ;;  %2370 = vadd.xlane.f32.xlu2 %v2320_v38  ;;  %1714 = vadd.xlane.f32.xlu1 %v1635_v47  ;;  %v1636_v11 = vmul.f32 %v791_v6, %v5593_v12  ;;  %v4046_v55 = vpop.xlane.xlu1 %1684 }
 0x291   : > { %5591 = vst [vmem:[#allocation57_spill] sm:$0xff] %v4038_v40  ;;  %v4057_v40 = vpop.xlane.xlu2 %1680 }
 0x292   : > { %5594 = vst [vmem:[#allocation15_spill] sm:$0xff] %v4046_v55  ;;  %v4076_v55 = vld [vmem:[%s3351_s23 + $0x50] sm:$0xff] }
 0x293   : > { %v1401_v59 = vpop.f32.mrf.mxu0  ;;  %v4042_v46 = vpop.xlane.xlu0 %1640  ;;  %5597 = vst [vmem:[#allocation61_spill] sm:$0xff] %v4057_v40 }
 0x294   : > { %v1402_v33 = vadd.f32 %v1401_v59, %v3885_v49 }
 0x295   : > { %v792_v8 = vpop.f32.mrf.mxu3 }
 0x296   : > { %v4048_v43 = vpop.f32.mrf.mxu2  ;;  %v2321_v0 = vmul.f32 %v4051_v60, %v1402_v33  ;;  %v793_v38 = vadd.f32 %v792_v8, %v3636_v52  ;;  %v5598_v33 = vld [vmem:[#allocation16_spill] sm:$0xff] }
 0x297   : > { %5595 = vst [vmem:[#allocation59_spill] sm:$0xff] %v4048_v43 }
 0x298   : > { %v4055_v47 = vpop.f32.mrf.mxu1  ;;  %2372 = vadd.xlane.f32.xlu0 %v2321_v0  ;;  %1716 = vadd.xlane.f32.xlu2 %v1636_v11  ;;  %v1637_v59 = vmul.f32 %v793_v38, %v5598_v33  ;;  %v4083_v38 = vperm.slane %v3631_v35, 1 }
 0x299   : > { %5596 = vst [vmem:[#allocation60_spill] sm:$0xff] %v4055_v47 }
 0x29a   : > { %2855 = vmatmul.msk.bf16.gmra.mxu3 %vm622_vm0, %v3570_v48  ;;  %v815_v9 = vadd.f32 %v3920_v15, %v4083_v38 }
 0x29b   : > { %2840 = vmatmul.msk.bf16.gmra.mxu2 %vm622_vm0, %v3672_v20  ;;  %2888 = vmatmul.msk.bf16.gmra.mxu1 %vm622_vm0, %v3791_v30  ;;  %v1404_v6 = vpop.f32.mrf.mxu0  ;;  %v4065_v12 = vpop.xlane.xlu0 %1688 }
 0x29c   : > { %v1405_v8 = vadd.f32 %v1404_v6, %v3885_v49  ;;  %v4085_v6 = vpop.xlane.xlu2 %1686 }
 0x29d   : > { %v795_v0 = vpop.f32.mrf.mxu3  ;;  %v4069_v11 = vpop.xlane.xlu1 %1690  ;;  %5602 = vst [vmem:[#allocation64_spill] sm:$0xff] %v4085_v6 }
 0x29e   : > { %5599 = vst [vmem:[#allocation16_spill] sm:$0xff] %v4069_v11  ;;  %v4071_v47 = vpop.f32.mrf.mxu2  ;;  %2945 = vmatmul.msk.bf16.gmra.mxu0 %vm622_vm0, %v3672_v20  ;;  %v2322_v40 = vmul.f32 %v4076_v55, %v1405_v8  ;;  %v796_v61 = vadd.f32 %v795_v0, %v3636_v52 }
 0x29f   : > { %5600 = vst [vmem:[#allocation62_spill] sm:$0xff] %v4071_v47  ;;  %v812_v47 = vadd.f32 %v3906_v34, %v4083_v38 }
 0x2a0   : > { %v4080_v43 = vpop.f32.mrf.mxu1  ;;  %2374 = vadd.xlane.f32.xlu1 %v2322_v40  ;;  %1718 = vadd.xlane.f32.xlu0 %v1637_v59  ;;  %v1638_v0 = vmul.f32 %v796_v61, %v3639_v62 }
 0x2a1   : > { %5601 = vst [vmem:[#allocation63_spill] sm:$0xff] %v4080_v43  ;;  %v4096_v43 = vld [vmem:[%s3351_s23 + $0x58] sm:$0xff] }
 0x2a3   : > { %v1406_v33 = vpop.f32.mrf.mxu0  ;;  %v1643_v11 = vpop.xlane.xlu0 %1642 }
 0x2a4   : > { %v1407_v53 = vadd.f32 %v1406_v33, %v3885_v49  ;;  %v1725_v8 = vmax.f32 %v1643_v11, 0.0 }
 0x2a5   : > { %v797_v56 = vpop.f32.mrf.mxu3  ;;  %v1645_v59 = vpop.xlane.xlu1 %1644 }
 0x2a6   : > { %v4091_v2 = vmul.f32 %v1725_v8, %v812_v47  ;;  %v4093_v40 = vpop.f32.mrf.mxu2  ;;  %v2323_v6 = vmul.f32 %v4096_v43, %v1407_v53  ;;  %v1726_v29 = vmax.f32 %v1645_v59, 0.0  ;;  %v798_v34 = vadd.f32 %v797_v56, %v3636_v52  ;;  %v4108_v61 = vpop.xlane.xlu2 %1692  ;;  %v5606_v53 = vld [vmem:[#allocation18_spill] sm:$0xff] }
 0x2a7   : > { %5603 = vst [vmem:[#allocation65_spill] sm:$0xff] %v4093_v40 }
 0x2a8   : > { %v4102_v33 = vpop.f32.mrf.mxu1  ;;  %2376 = vadd.xlane.f32.xlu2 %v2323_v6  ;;  %1720 = vadd.xlane.f32.xlu1 %v1638_v0  ;;  %v4104_v62 = vmul.f32 %v1726_v29, %v815_v9  ;;  %5605 = vst [vmem:[#allocation67_spill] sm:$0xff] %v4108_v61  ;;  %v1639_v56 = vmul.f32 %v798_v34, %v5606_v53  ;;  %v4119_v29 = vperm.slane %v3631_v35, 2  ;;  %v4124_v6 = vld [vmem:[%s3351_s23 + $0x60] sm:$0xff] }
 0x2a9   : > { %5604 = vst [vmem:[#allocation66_spill] sm:$0xff] %v4102_v33  ;;  %v817_v0 = vadd.f32 %v3932_v21, %v4083_v38  ;;  %v820_v33 = vadd.f32 %v3950_v19, %v4083_v38 }
 0x2aa   : > { %2856 = vmatmul.msk.bf16.gmra.mxu3 %vm622_vm0, %v3590_v13 }
 0x2ab   : > { %2841 = vmatmul.msk.bf16.gmra.mxu2 %vm622_vm0, %v3698_v17  ;;  %2889 = vmatmul.msk.bf16.gmra.mxu1 %vm622_vm0, %v3811_v23  ;;  %v1409_v15 = vpop.f32.mrf.mxu0 }
 0x2ac   : > { %v1410_v52 = vadd.f32 %v1409_v15, %v3885_v49 }
 0x2ad   : > { %v923_v47 = vpop.f32.mrf.mxu3  ;;  %v1647_v9 = vpop.xlane.xlu1 %1646 }
 0x2ae   : > { %v4116_v11 = vpop.f32.mrf.mxu2  ;;  %2946 = vmatmul.msk.bf16.gmra.mxu0 %vm622_vm0, %v3698_v17  ;;  %v2324_v8 = vmul.f32 %v4124_v6, %v1410_v52  ;;  %v1727_v59 = vmax.f32 %v1647_v9, 0.0  ;;  %v924_v15 = vadd.f32 %v923_v47, %v4119_v29 }
 0x2af   : > { %5607 = vst [vmem:[#allocation18_spill] sm:$0xff] %v4116_v11 }
 0x2b0   : > { %v4129_v34 = vpop.f32.mrf.mxu1  ;;  %2378 = vadd.xlane.f32.xlu0 %v2324_v8  ;;  %1722 = vadd.xlane.f32.xlu2 %v1639_v56  ;;  %v4131_v35 = vmul.f32 %v1727_v59, %v817_v0  ;;  %v3060_v8 = vld [vmem:[%s3351_s23] sm:$0xff] }
 0x2b1   : > { %5608 = vst [vmem:[#allocation68_spill] sm:$0xff] %v4129_v34  ;;  %v4142_v34 = vld [vmem:[%s3351_s23 + $0x68] sm:$0xff]  ;;  %v1808_v0 = vmul.f32 %v3060_v8, %v924_v15 }
 0x2b3   : > { %v1411_v53 = vpop.f32.mrf.mxu0  ;;  %v1649_v61 = vpop.xlane.xlu2 %1648 }
 0x2b4   : > { %v1412_v52 = vadd.f32 %v1411_v53, %v3885_v49  ;;  %v1728_v11 = vmax.f32 %v1649_v61, 0.0 }
 0x2b5   : > { %v925_v40 = vpop.f32.mrf.mxu3 }
 0x2b6   : > { %v4137_v21 = vmul.f32 %v1728_v11, %v820_v33  ;;  %v4139_v9 = vpop.f32.mrf.mxu2  ;;  %v2325_v56 = vmul.f32 %v4142_v34, %v1412_v52  ;;  %v926_v19 = vadd.f32 %v925_v40, %v4119_v29  ;;  %v822_v11 = vadd.f32 %v3964_v54, %v4083_v38 }
 0x2b7   : > { %5610 = vst [vmem:[#allocation70_spill] sm:$0xff] %v4139_v9  ;;  %v3063_v9 = vld [vmem:[%s3351_s23 + $0x10] sm:$0xff] }
 0x2b8   : > { %5609 = vst [vmem:[#allocation69_spill] sm:$0xff] %v4137_v21  ;;  %v4146_v47 = vpop.f32.mrf.mxu1  ;;  %2380 = vadd.xlane.f32.xlu1 %v2325_v56  ;;  %1850 = vadd.xlane.f32.xlu0 %v1808_v0  ;;  %v4165_v56 = vld [vmem:[%s3351_s23 + $0x70] sm:$0xff]  ;;  %v3062_v0 = vld [vmem:[%s3351_s23 + $0x8] sm:$0xff] }
 0x2b9   : > { %5611 = vst [vmem:[#allocation71_spill] sm:$0xff] %v4146_v47  ;;  %v1809_v47 = vmul.f32 %v3062_v0, %v926_v19 }
 0x2ba   : > { %2857 = vmatmul.msk.bf16.gmra.mxu3 %vm622_vm0, %v3604_v50 }
 0x2bb   : > { %2842 = vmatmul.msk.bf16.gmra.mxu2 %vm622_vm0, %v3712_v26  ;;  %2953 = vmatmul.msk.bf16.vlgmr.msra.gmra.mxu1 %vm622_vm0, %v3466_v44  ;;  %v1414_v33 = vpop.f32.mrf.mxu0  ;;  %v1651_v61 = vpop.xlane.xlu2 %1650 }
 0x2bc   : > { %v1415_v59 = vadd.f32 %v1414_v33, %v3885_v49  ;;  %v1729_v15 = vmax.f32 %v1651_v61, 0.0 }
 0x2bd   : > { %v928_v53 = vpop.f32.mrf.mxu3 }
 0x2be   : > { %v4158_v40 = vmul.f32 %v1729_v15, %v822_v11  ;;  %v4160_v52 = vpop.f32.mrf.mxu2  ;;  %2947 = vmatmul.msk.bf16.gmra.mxu0 %vm622_vm0, %v3712_v26  ;;  %v2326_v8 = vmul.f32 %v4165_v56, %v1415_v59  ;;  %v929_v33 = vadd.f32 %v928_v53, %v4119_v29 }
 0x2bf   : > { %5613 = vst [vmem:[#allocation73_spill] sm:$0xff] %v4160_v52 }
 0x2c0   : > { %5612 = vst [vmem:[#allocation72_spill] sm:$0xff] %v4158_v40  ;;  %v4169_v54 = vpop.f32.mrf.mxu1  ;;  %2382 = vadd.xlane.f32.xlu2 %v2326_v8  ;;  %1852 = vadd.xlane.f32.xlu1 %v1809_v47  ;;  %v1810_v39 = vmul.f32 %v3063_v9, %v929_v33 }
 0x2c1   : > { %5614 = vst [vmem:[#allocation74_spill] sm:$0xff] %v4169_v54 }
 0x2c3   : > { %v1416_v61 = vpop.f32.mrf.mxu0 }
 0x2c4   : > { %v1417_v11 = vadd.f32 %v1416_v61, %v3885_v49  ;;  %v3066_v61 = vld [vmem:[%s3351_s23 + $0x18] sm:$0xff] }
 0x2c5   : > { %v930_v15 = vpop.f32.mrf.mxu3 }
 0x2c6   : > { %v4173_v52 = vpop.f32.mrf.mxu2  ;;  %v2327_v19 = vmul.f32 %v4177_v1, %v1417_v11  ;;  %v931_v47 = vadd.f32 %v930_v15, %v4119_v29 }
 0x2c7   : > { %5615 = vst [vmem:[#allocation75_spill] sm:$0xff] %v4173_v52 }
 0x2c8   : > { %v4180_v59 = vpop.f32.mrf.mxu1  ;;  %1854 = vadd.xlane.f32.xlu2 %v1810_v39  ;;  %2384 = vadd.xlane.f32.xlu0 %v2327_v19  ;;  %v4195_v39 = vld [vmem:[%s3351_s23 + $0x80] sm:$0xff]  ;;  %v1811_v11 = vmul.f32 %v3066_v61, %v931_v47 }
 0x2c9   : > { %5616 = vst [vmem:[#allocation76_spill] sm:$0xff] %v4180_v59 }
 0x2ca   : > { %2858 = vmatmul.msk.bf16.gmra.mxu3 %vm622_vm0, %v3620_v28  ;;  %v4208_v28 = vld [vmem:[%s3351_s23 + $0x88] sm:$0xff] }
 0x2cb   : > { %2843 = vmatmul.msk.bf16.gmra.mxu2 %vm622_vm0, %v3734_v37  ;;  %2954 = vmatmul.msk.bf16.gmra.mxu1 %vm622_vm0, %v3484_v57  ;;  %v1419_v9 = vpop.f32.mrf.mxu0 }
 0x2cc   : > { %v1420_v53 = vadd.f32 %v1419_v9, %v3885_v49  ;;  %v4202_v9 = vpop.xlane.xlu0 %1694 }
 0x2cd   : > { %v933_v8 = vpop.f32.mrf.mxu3 }
 0x2ce   : > { %v4190_v0 = vpop.f32.mrf.mxu2  ;;  %2948 = vmatmul.msk.bf16.gmra.mxu0 %vm622_vm0, %v3734_v37  ;;  %v2328_v33 = vmul.f32 %v4195_v39, %v1420_v53  ;;  %v934_v19 = vadd.f32 %v933_v8, %v4119_v29  ;;  %v4214_v8 = vpop.xlane.xlu1 %1696 }
 0x2cf   : > { %5617 = vst [vmem:[#allocation77_spill] sm:$0xff] %v4190_v0 }
 0x2d0   : > { %v4199_v15 = vpop.f32.mrf.mxu1  ;;  %2386 = vadd.xlane.f32.xlu1 %v2328_v33  ;;  %1856 = vadd.xlane.f32.xlu0 %v1811_v11  ;;  %v1812_v47 = vmul.f32 %v3068_v14, %v934_v19 }
 0x2d1   : > { %5618 = vst [vmem:[#allocation78_spill] sm:$0xff] %v4199_v15  ;;  %v4237_v15 = vpop.xlane.xlu2 %1698 }
 0x2d3   : > { %v1421_v59 = vpop.f32.mrf.mxu0 }
 0x2d4   : > { %v1422_v54 = vadd.f32 %v1421_v59, %v3885_v49  ;;  %v4219_v59 = vpop.xlane.xlu0 %2354 }
 0x2d5   : > { %v935_v0 = vpop.f32.mrf.mxu3 }
 0x2d6   : > { %v4205_v52 = vpop.f32.mrf.mxu2  ;;  %v2329_v53 = vmul.f32 %v4208_v28, %v1422_v54  ;;  %v936_v33 = vadd.f32 %v935_v0, %v4119_v29 }
 0x2d7   : > { %5619 = vst [vmem:[#allocation79_spill] sm:$0xff] %v4205_v52 }
 0x2d8   : > { %v4212_v61 = vpop.f32.mrf.mxu1  ;;  %2388 = vadd.xlane.f32.xlu2 %v2329_v53  ;;  %1858 = vadd.xlane.f32.xlu1 %v1812_v47  ;;  %v1813_v0 = vmul.f32 %v3967_v36, %v936_v33  ;;  %v4232_v53 = vld [vmem:[%s3351_s23 + $0x90] sm:$0xff] }
 0x2d9   : > { %5620 = vst [vmem:[#allocation80_spill] sm:$0xff] %v4212_v61 }
 0x2da   : > { %2859 = vmatmul.msk.bf16.gmra.mxu3 %vm622_vm0, %v3644_v31 }
 0x2db   : > { %2844 = vmatmul.msk.bf16.gmra.mxu2 %vm622_vm0, %v3752_v18  ;;  %2955 = vmatmul.msk.bf16.gmra.mxu1 %vm622_vm0, %v3496_v3  ;;  %v1424_v14 = vpop.f32.mrf.mxu0 }
 0x2dc   : > { %v1425_v54 = vadd.f32 %v1424_v14, %v3885_v49  ;;  %v4239_v14 = vpop.xlane.xlu1 %2356  ;;  %v4242_v52 = vpop.xlane.xlu0 %1700 }
 0x2dd   : > { %v938_v11 = vpop.f32.mrf.mxu3 }
 0x2de   : > { %v4226_v19 = vpop.f32.mrf.mxu2  ;;  %2949 = vmatmul.msk.bf16.gmra.mxu0 %vm622_vm0, %v3752_v18  ;;  %v2330_v47 = vmul.f32 %v4232_v53, %v1425_v54 }
 0x2df   : > { %5621 = vst [vmem:[#allocation81_spill] sm:$0xff] %v4226_v19  ;;  %v939_v19 = vadd.f32 %v938_v11, %v4119_v29  ;;  %v4254_v11 = vpop.xlane.xlu2 %2358 }
 0x2e0   : > { %v4235_v61 = vpop.f32.mrf.mxu1  ;;  %1860 = vadd.xlane.f32.xlu2 %v1813_v0  ;;  %2390 = vadd.xlane.f32.xlu0 %v2330_v47 }
 0x2e1   : > { %5622 = vst [vmem:[#allocation82_spill] sm:$0xff] %v4235_v61  ;;  %v1814_v0 = vmul.f32 %v3992_v5, %v939_v19 }
 0x2e3   : > { %v1426_v31 = vpop.f32.mrf.mxu0 }
 0x2e4   : > { %v1427_v40 = vadd.f32 %v1426_v31, %v3885_v49  ;;  %v4256_v61 = vpop.xlane.xlu1 %1702  ;;  %v4266_v19 = vpop.xlane.xlu0 %2360 }
 0x2e5   : > { %v940_v36 = vpop.f32.mrf.mxu3  ;;  %5626 = vst [vmem:[#allocation86_spill] sm:$0xff] %v4266_v19 }
 0x2e6   : > { %v4245_v33 = vpop.f32.mrf.mxu2  ;;  %v2331_v54 = vmul.f32 %v4248_v42, %v1427_v40  ;;  %v941_v31 = vadd.f32 %v940_v36, %v4119_v29  ;;  %v4273_v36 = vld [vmem:[%s3351_s23 + $0xa0] sm:$0xff] }
 0x2e7   : > { %5623 = vst [vmem:[#allocation83_spill] sm:$0xff] %v4245_v33 }
 0x2e8   : > { %v4252_v47 = vpop.f32.mrf.mxu1  ;;  %2392 = vadd.xlane.f32.xlu1 %v2331_v54  ;;  %1862 = vadd.xlane.f32.xlu0 %v1814_v0  ;;  %v1815_v33 = vmul.f32 %v4009_v41, %v941_v31  ;;  %v4291_v31 = vld [vmem:[%s3351_s23 + $0xa8] sm:$0xff] }
 0x2e9   : > { %5625 = vst [vmem:[#allocation85_spill] sm:$0xff] %v4252_v47 }
 0x2ea   : > { %2860 = vmatmul.msk.bf16.gmra.mxu3 %vm622_vm0, %v3658_v16  ;;  %5630 = vst [vmem:[#allocation90_spill] sm:$0xff] %v4291_v31 }
 0x2eb   : > { %2845 = vmatmul.msk.bf16.gmra.mxu2 %vm622_vm0, %v3771_v27  ;;  %2956 = vmatmul.msk.bf16.gmra.mxu1 %vm622_vm0, %v3508_v25  ;;  %v1429_v5 = vpop.f32.mrf.mxu0 }
 0x2ec   : > { %v1430_v40 = vadd.f32 %v1429_v5, %v3885_v49  ;;  %v4279_v5 = vpop.xlane.xlu2 %1704  ;;  %v4285_v51 = vpop.xlane.xlu0 %1706 }
 0x2ed   : > { %v943_v54 = vpop.f32.mrf.mxu3 }
 0x2ee   : > { %v4268_v0 = vpop.f32.mrf.mxu2  ;;  %2950 = vmatmul.msk.bf16.gmra.mxu0 %vm622_vm0, %v3771_v27  ;;  %v2332_v47 = vmul.f32 %v4273_v36, %v1430_v40  ;;  %v944_v21 = vadd.f32 %v943_v54, %v4119_v29 }
 0x2ef   : > { %5627 = vst [vmem:[#allocation87_spill] sm:$0xff] %v4268_v0  ;;  %v4282_v0 = vpop.xlane.xlu1 %2362 }
 0x2f0   : > { %v4277_v16 = vpop.f32.mrf.mxu1  ;;  %2394 = vadd.xlane.f32.xlu2 %v2332_v47  ;;  %1864 = vadd.xlane.f32.xlu1 %v1815_v33  ;;  %v1816_v41 = vmul.f32 %v4034_v4, %v944_v21 }
 0x2f1   : > { %5628 = vst [vmem:[#allocation88_spill] sm:$0xff] %v4277_v16 }
 0x2f3   : > { %v1431_v19 = vpop.f32.mrf.mxu0 }
 0x2f4   : > { %v1432_v42 = vadd.f32 %v1431_v19, %v3885_v49  ;;  %v4303_v21 = vpop.xlane.xlu2 %2364  ;;  %v4317_v16 = vpop.xlane.xlu0 %2366 }
 0x2f5   : > { %v945_v50 = vpop.f32.mrf.mxu3  ;;  %5632 = vst [vmem:[#allocation92_spill] sm:$0xff] %v4303_v21 }
 0x2f6   : > { %v4287_v25 = vpop.f32.mrf.mxu2  ;;  %v2333_v33 = vmul.f32 %v4291_v31, %v1432_v42  ;;  %v946_v40 = vadd.f32 %v945_v50, %v4119_v29  ;;  %v4313_v50 = vld [vmem:[%s3351_s23 + $0xb0] sm:$0xff] }
 0x2f7   : > { %5629 = vst [vmem:[#allocation89_spill] sm:$0xff] %v4287_v25  ;;  %v4306_v19 = vpop.xlane.xlu1 %1708 }
 0x2f8   : > { %v4294_v47 = vpop.f32.mrf.mxu1  ;;  %1866 = vadd.xlane.f32.xlu2 %v1816_v41  ;;  %2396 = vadd.xlane.f32.xlu0 %v2333_v33  ;;  %5633 = vst [vmem:[#allocation93_spill] sm:$0xff] %v4306_v19 }
 0x2f9   : > { %5631 = vst [vmem:[#allocation91_spill] sm:$0xff] %v4294_v47  ;;  %v1817_v47 = vmul.f32 %v4051_v60, %v946_v40 }
 0x2fa   : > { %2861 = vmatmul.msk.bf16.gmra.mxu3 %vm622_vm0, %v3672_v20 }
 0x2fb   : > { %2846 = vmatmul.msk.bf16.gmra.mxu2 %vm622_vm0, %v3791_v30  ;;  %2957 = vmatmul.msk.bf16.gmra.mxu1 %vm622_vm0, %v3522_v45  ;;  %v1434_v4 = vpop.f32.mrf.mxu0  ;;  %v4328_v45 = vld [vmem:[%s3351_s23 + $0xb8] sm:$0xff] }
 0x2fc   : > { %v1435_v42 = vadd.f32 %v1434_v4, %v3885_v49  ;;  %v4323_v21 = vpop.xlane.xlu2 %1710 }
 0x2fd   : > { %v948_v54 = vpop.f32.mrf.mxu3 }
 0x2fe   : > { %v4308_v41 = vpop.f32.mrf.mxu2  ;;  %2951 = vmatmul.msk.bf16.gmra.mxu0 %vm622_vm0, %v3791_v30  ;;  %v2334_v33 = vmul.f32 %v4313_v50, %v1435_v42  ;;  %v949_v4 = vadd.f32 %v948_v54, %v4119_v29 }
 0x2ff   : > { %5634 = vst [vmem:[#allocation94_spill] sm:$0xff] %v4308_v41  ;;  %v4332_v42 = vpop.xlane.xlu1 %2368 }
 0x300   : > { %v4319_v25 = vpop.f32.mrf.mxu1  ;;  %2398 = vadd.xlane.f32.xlu1 %v2334_v33  ;;  %1868 = vadd.xlane.f32.xlu0 %v1817_v47  ;;  %v1818_v40 = vmul.f32 %v4076_v55, %v949_v4  ;;  %5637 = vst [vmem:[#allocation97_spill] sm:$0xff] %v4332_v42  ;;  %v4334_v47 = vpop.xlane.xlu0 %1712 }
 0x301   : > { %5635 = vst [vmem:[#allocation95_spill] sm:$0xff] %v4319_v25 }
 0x302   : > { %5638 = vst [vmem:[#allocation98_spill] sm:$0xff] %v4334_v47 }
 0x303   : > { %v1436_v20 = vpop.f32.mrf.mxu0 }
 0x304   : > { %v1437_v41 = vadd.f32 %v1436_v20, %v3885_v49  ;;  %v4354_v25 = vpop.xlane.xlu2 %2370 }
 0x305   : > { %v950_v19 = vpop.f32.mrf.mxu3  ;;  %5641 = vst [vmem:[#allocation101_spill] sm:$0xff] %v4354_v25  ;;  %v4370_v25 = vld [vmem:[%s3351_s23 + $0xc8] sm:$0xff] }
 0x306   : > { %v4325_v31 = vpop.f32.mrf.mxu2  ;;  %v2335_v60 = vmul.f32 %v4328_v45, %v1437_v41  ;;  %v951_v20 = vadd.f32 %v950_v19, %v4119_v29  ;;  %v4350_v19 = vld [vmem:[%s3351_s23 + $0xc0] sm:$0xff] }
 0x307   : > { %5636 = vst [vmem:[#allocation96_spill] sm:$0xff] %v4325_v31  ;;  %v4356_v31 = vpop.xlane.xlu1 %1714 }
 0x308   : > { %v4336_v54 = vpop.f32.mrf.mxu1  ;;  %2400 = vadd.xlane.f32.xlu2 %v2335_v60  ;;  %1870 = vadd.xlane.f32.xlu1 %v1818_v40  ;;  %v1819_v60 = vmul.f32 %v4096_v43, %v951_v20  ;;  %5640 = vst [vmem:[#allocation100_spill] sm:$0xff] %v4350_v19 }
 0x309   : > { %5639 = vst [vmem:[#allocation99_spill] sm:$0xff] %v4336_v54  ;;  %v1748_v54 = vmax.f32 %v4065_v12, 0.0 }
 0x30a   : > { %2862 = vmatmul.msk.bf16.gmra.mxu3 %vm622_vm0, %v3698_v17 }
 0x30b   : > { %2847 = vmatmul.msk.bf16.gmra.mxu2 %vm622_vm0, %v3811_v23  ;;  %2958 = vmatmul.msk.bf16.gmra.mxu1 %vm622_vm0, %v3536_v58  ;;  %v1439_v55 = vpop.f32.mrf.mxu0  ;;  %v4361_v42 = vpop.xlane.xlu0 %2372 }
 0x30c   : > { %v1440_v41 = vadd.f32 %v1439_v55, %v3885_v49  ;;  %5643 = vst [vmem:[#allocation103_spill] sm:$0xff] %v4361_v42 }
 0x30d   : > { %v953_v33 = vpop.f32.mrf.mxu3 }
 0x30e   : > { %v869_v4 = vpop.f32.mrf.mxu2  ;;  %2952 = vmatmul.msk.bf16.gmra.mxu0 %vm622_vm0, %v3811_v23  ;;  %v2336_v40 = vmul.f32 %v4350_v19, %v1440_v41  ;;  %v954_v20 = vadd.f32 %v953_v33, %v4119_v29 }
 0x30f   : > { %v870_v55 = vadd.f32 %v869_v4, %v4083_v38 }
 0x310   : > { %v4359_v17 = vpop.f32.mrf.mxu1  ;;  %1872 = vadd.xlane.f32.xlu2 %v1819_v60  ;;  %2402 = vadd.xlane.f32.xlu0 %v2336_v40  ;;  %v1820_v60 = vmul.f32 %v4124_v6, %v954_v20  ;;  %v4374_v40 = vpop.xlane.xlu2 %1716 }
 0x311   : > { %5642 = vst [vmem:[#allocation102_spill] sm:$0xff] %v4359_v17  ;;  %v4363_v43 = vmul.f32 %v1748_v54, %v870_v55 }
 0x313   : > { %5644 = vst [vmem:[#allocation104_spill] sm:$0xff] %v4363_v43  ;;  %v1441_v47 = vpop.f32.mrf.mxu0  ;;  %v4378_v54 = vpop.xlane.xlu1 %2374 }
 0x314   : > { %v1442_v41 = vadd.f32 %v1441_v47, %v3885_v49  ;;  %5647 = vst [vmem:[#allocation107_spill] sm:$0xff] %v4378_v54  ;;  %v4380_v33 = vpop.xlane.xlu0 %1718 }
 0x315   : > { %v955_v12 = vpop.f32.mrf.mxu3  ;;  %5648 = vst [vmem:[#allocation108_spill] sm:$0xff] %v4380_v33 }
 0x316   : > { %v4367_v19 = vpop.f32.mrf.mxu2  ;;  %v2337_v4 = vmul.f32 %v4370_v25, %v1442_v41  ;;  %v956_v47 = vadd.f32 %v955_v12, %v4119_v29 }
 0x317   : > { %5645 = vst [vmem:[#allocation105_spill] sm:$0xff] %v4367_v19 }
 0x318   : > { %v4376_v17 = vpop.f32.mrf.mxu1  ;;  %2404 = vadd.xlane.f32.xlu1 %v2337_v4  ;;  %1874 = vadd.xlane.f32.xlu0 %v1820_v60  ;;  %v4393_v4 = vld [vmem:[%s3351_s23 + $0xd0] sm:$0xff]  ;;  %v1821_v60 = vmul.f32 %v4142_v34, %v956_v47  ;;  %v4409_v34 = vld [vmem:[%s3351_s23 + $0xd8] sm:$0xff] }
 0x319   : > { %5646 = vst [vmem:[#allocation106_spill] sm:$0xff] %v4376_v17 }
 0x31a   : > { %2863 = vmatmul.msk.bf16.gmra.mxu3 %vm622_vm0, %v3712_v26 }
 0x31b   : > { %2890 = vmatmul.msk.bf16.vlgmr.msra.gmra.mxu2 %vm622_vm0, %v3466_v44  ;;  %2959 = vmatmul.msk.bf16.gmra.mxu1 %vm622_vm0, %v3550_v7  ;;  %v1444_v6 = vpop.f32.mrf.mxu0  ;;  %v4399_v19 = vpop.xlane.xlu2 %2376 }
 0x31c   : > { %v1445_v55 = vadd.f32 %v1444_v6, %v3885_v49  ;;  %5651 = vst [vmem:[#allocation111_spill] sm:$0xff] %v4399_v19  ;;  %v4401_v43 = vpop.xlane.xlu1 %1720 }
 0x31d   : > { %v958_v20 = vpop.f32.mrf.mxu3  ;;  %5652 = vst [vmem:[#allocation112_spill] sm:$0xff] %v4401_v43 }
 0x31e   : > { %v4390_v41 = vpop.f32.mrf.mxu2  ;;  %v2338_v12 = vmul.f32 %v4393_v4, %v1445_v55  ;;  %v959_v6 = vadd.f32 %v958_v20, %v4119_v29 }
 0x31f   : > { %5649 = vst [vmem:[#allocation109_spill] sm:$0xff] %v4390_v41 }
 0x320   : > { %v4397_v17 = vpop.f32.mrf.mxu1  ;;  %2406 = vadd.xlane.f32.xlu2 %v2338_v12  ;;  %1876 = vadd.xlane.f32.xlu1 %v1821_v60  ;;  %v1822_v55 = vmul.f32 %v4165_v56, %v959_v6  ;;  %v1751_v12 = vmax.f32 %v4202_v9, 0.0 }
 0x321   : > { %5650 = vst [vmem:[#allocation110_spill] sm:$0xff] %v4397_v17 }
 0x323   : > { %v1446_v26 = vpop.f32.mrf.mxu0  ;;  %v4404_v54 = vpop.xlane.xlu0 %2378 }
 0x324   : > { %5653 = vst [vmem:[#allocation113_spill] sm:$0xff] %v4404_v54  ;;  %v1447_v41 = vadd.f32 %v1446_v26, %v3885_v49  ;;  %v4419_v26 = vld [vmem:[%s5496_s4] sm:$0xff] }
 0x325   : > { %v960_v33 = vpop.f32.mrf.mxu3  ;;  %v4422_v20 = vperm.slane %v4419_v26, 3 }
 0x326   : > { %v876_v42 = vpop.f32.mrf.mxu2  ;;  %v2339_v47 = vmul.f32 %v4409_v34, %v1447_v41  ;;  %v4426_v41 = vpop.xlane.xlu2 %1722  ;;  %v961_v9 = vadd.f32 %v960_v33, %v4119_v29 }
 0x327   : > { %v877_v60 = vadd.f32 %v876_v42, %v4083_v38  ;;  %5656 = vst [vmem:[#allocation116_spill] sm:$0xff] %v4426_v41  ;;  %v1724_v42 = vmax.f32 %v4042_v46, 0.0  ;;  %v1038_v33 = vadd.f32 %v3750_v24, %v4422_v20 }
 0x328   : > { %v4414_v17 = vpop.f32.mrf.mxu1  ;;  %1878 = vadd.xlane.f32.xlu2 %v1822_v55  ;;  %2408 = vadd.xlane.f32.xlu0 %v2339_v47  ;;  %v1823_v41 = vmul.f32 %v4177_v1, %v961_v9 }
 0x329   : > { %5654 = vst [vmem:[#allocation114_spill] sm:$0xff] %v4414_v17  ;;  %v4424_v56 = vmul.f32 %v1751_v12, %v877_v60  ;;  %v810_v60 = vadd.f32 %v3895_v22, %v4083_v38 }
 0x32a   : > { %2864 = vmatmul.msk.bf16.gmra.mxu3 %vm622_vm0, %v3734_v37  ;;  %v4444_v37 = vld [vmem:[%s3351_s23 + $0xe0] sm:$0xff] }
 0x32b   : > { %5655 = vst [vmem:[#allocation115_spill] sm:$0xff] %v4424_v56  ;;  %2891 = vmatmul.msk.bf16.gmra.mxu2 %vm622_vm0, %v3484_v57  ;;  %2960 = vmatmul.msk.bf16.gmra.mxu1 %vm622_vm0, %v3570_v48  ;;  %v1449_v6 = vpop.f32.mrf.mxu0  ;;  %v4436_v55 = vpop.xlane.xlu1 %2380  ;;  %v1766_v19 = vmul.f32 %v1724_v42, %v810_v60 }
 0x32c   : > { %5657 = vst [vmem:[#allocation117_spill] sm:$0xff] %v4436_v55  ;;  %v1450_v47 = vadd.f32 %v1449_v6, %v3885_v49  ;;  %v1851_v12 = vpop.xlane.xlu0 %1850  ;;  %v1752_v55 = vmax.f32 %v4214_v8, 0.0 }
 0x32d   : > { %v1934_v17 = vmax.f32 %v1851_v12, 0.0  ;;  %v963_v46 = vpop.f32.mrf.mxu3  ;;  %5658 = vst [vmem:[#allocation118_spill] sm:$0xff] %v4444_v37 }
 0x32e   : > { %v879_v56 = vpop.f32.mrf.mxu2  ;;  %v2340_v54 = vmul.f32 %v4444_v37, %v1450_v47  ;;  %v964_v48 = vadd.f32 %v963_v46, %v4119_v29 }
 0x32f   : > { %v1976_v6 = vmul.f32 %v1934_v17, %v1038_v33  ;;  %v880_v43 = vadd.f32 %v879_v56, %v4083_v38  ;;  %v1040_v17 = vadd.f32 %v3763_v10, %v4422_v20  ;;  %v2438_v10 = vmax.f32 %v4219_v59, 0.0 }
 0x330   : > { %v4450_v24 = vpop.f32.mrf.mxu1  ;;  %2410 = vadd.xlane.f32.xlu1 %v2340_v54  ;;  %1880 = vadd.xlane.f32.xlu0 %v1823_v41  ;;  %v4463_v54 = vperm.slane %v4419_v26, 7  ;;  %v4466_v41 = vld [vmem:[%s3351_s23 + $0xe8] sm:$0xff]  ;;  %v1824_v42 = vmul.f32 %v4195_v39, %v964_v48  ;;  %v1043_v59 = vadd.f32 %v3769_v63, %v4422_v20 }
 0x331   : > { %5659 = vst [vmem:[#allocation119_spill] sm:$0xff] %v4450_v24  ;;  %v4452_v22 = vadd.f32 %v1976_v6, %v1766_v19  ;;  %v4454_v12 = vmul.f32 %v1752_v55, %v880_v43  ;;  %v1753_v55 = vmax.f32 %v4237_v15, 0.0 }
 0x333   : > { %5660 = vst [vmem:[#allocation120_spill] sm:$0xff] %v4452_v22  ;;  %v1451_v47 = vpop.f32.mrf.mxu0  ;;  %v4457_v37 = vpop.xlane.xlu2 %2382 }
 0x334   : > { %v1452_v1 = vadd.f32 %v1451_v47, %v3885_v49  ;;  %v1853_v8 = vpop.xlane.xlu1 %1852 }
 0x335   : > { %v1935_v56 = vmax.f32 %v1853_v8, 0.0  ;;  %v965_v9 = vpop.f32.mrf.mxu3 }
 0x336   : > { %v881_v19 = vpop.f32.mrf.mxu2  ;;  %v2341_v43 = vmul.f32 %v4466_v41, %v1452_v1  ;;  %v966_v48 = vadd.f32 %v965_v9, %v4119_v29 }
 0x337   : > { %v1977_v33 = vmul.f32 %v1935_v56, %v1040_v17  ;;  %v882_v60 = vadd.f32 %v881_v19, %v4083_v38 }
 0x338   : > { %v1493_v46 = vpop.f32.mrf.mxu1  ;;  %2412 = vadd.xlane.f32.xlu2 %v2341_v43  ;;  %1882 = vadd.xlane.f32.xlu1 %v1824_v42  ;;  %v1825_v42 = vmul.f32 %v4208_v28, %v966_v48 }
 0x339   : > { %v4474_v6 = vadd.f32 %v1977_v33, %v4091_v2  ;;  %v4476_v47 = vmul.f32 %v1753_v55, %v882_v60  ;;  %v1494_v8 = vadd.f32 %v1493_v46, %v4463_v54  ;;  %v4495_v55 = vld [vmem:[%s3351_s23 + $0xf0] sm:$0xff]  ;;  %v1754_v60 = vmax.f32 %v4242_v52, 0.0 }
 0x33a   : > { %2865 = vmatmul.msk.bf16.gmra.mxu3 %vm622_vm0, %v3752_v18 }
 0x33b   : > { %5661 = vst [vmem:[#allocation121_spill] sm:$0xff] %v4474_v6  ;;  %v4482_v39 = vmul.f32 %v2438_v10, %v1494_v8  ;;  %2892 = vmatmul.msk.bf16.gmra.mxu2 %vm622_vm0, %v3496_v3  ;;  %2961 = vmatmul.msk.bf16.gmra.mxu1 %vm622_vm0, %v3590_v13  ;;  %v1454_v2 = vpop.f32.mrf.mxu0  ;;  %v1855_v15 = vpop.xlane.xlu2 %1854  ;;  %v2439_v8 = vmax.f32 %v4239_v14, 0.0  ;;  %v5689_v6 = vld [vmem:[#allocation93_spill] sm:$0xff] }
 0x33c   : > { %v1455_v1 = vadd.f32 %v1454_v2, %v3885_v49  ;;  %v1936_v17 = vmax.f32 %v1855_v15, 0.0  ;;  %v4491_v56 = vpop.xlane.xlu0 %2384 }
 0x33d   : > { %5662 = vst [vmem:[#allocation122_spill] sm:$0xff] %v4482_v39  ;;  %v968_v9 = vpop.f32.mrf.mxu3 }
 0x33e   : > { %v1978_v19 = vmul.f32 %v1936_v17, %v1043_v59  ;;  %v884_v43 = vpop.f32.mrf.mxu2  ;;  %v2342_v33 = vmul.f32 %v4495_v55, %v1455_v1  ;;  %v969_v48 = vadd.f32 %v968_v9, %v4119_v29  ;;  %v1045_v17 = vadd.f32 %v3783_v32, %v4422_v20 }
 0x33f   : > { %v885_v46 = vadd.f32 %v884_v43, %v4083_v38 }
 0x340   : > { %v4501_v63 = vadd.f32 %v1978_v19, %v4104_v62  ;;  %v1495_v10 = vpop.f32.mrf.mxu1  ;;  %1884 = vadd.xlane.f32.xlu2 %v1825_v42  ;;  %2414 = vadd.xlane.f32.xlu0 %v2342_v33  ;;  %v4516_v42 = vld [vmem:[%s3351_s23 + $0xf8] sm:$0xff]  ;;  %v1826_v9 = vmul.f32 %v4232_v53, %v969_v48  ;;  %v5667_v48 = vld [vmem:[#allocation8_spill] sm:$0xff] }
 0x341   : > { %v4504_v2 = vmul.f32 %v1754_v60, %v885_v46  ;;  %v1496_v28 = vadd.f32 %v1495_v10, %v4463_v54  ;;  %v1755_v60 = vmax.f32 %v4256_v61, 0.0 }
 0x342   : > { %5663 = vst [vmem:[#allocation123_spill] sm:$0xff] %v4501_v63 }
 0x343   : > { %v4508_v15 = vmul.f32 %v2439_v8, %v1496_v28  ;;  %v1456_v52 = vpop.f32.mrf.mxu0  ;;  %v4510_v59 = vpop.xlane.xlu1 %2386  ;;  %v2440_v28 = vmax.f32 %v4254_v11, 0.0 }
 0x344   : > { %v1457_v62 = vadd.f32 %v1456_v52, %v3885_v49  ;;  %v1857_v1 = vpop.xlane.xlu0 %1856 }
 0x345   : > { %5664 = vst [vmem:[#allocation124_spill] sm:$0xff] %v4508_v15  ;;  %v1937_v19 = vmax.f32 %v1857_v1, 0.0  ;;  %v970_v43 = vpop.f32.mrf.mxu3  ;;  %v5668_v1 = vld [vmem:[#allocation14_spill] sm:$0xff] }
 0x346   : > { %v886_v14 = vpop.f32.mrf.mxu2  ;;  %v2343_v33 = vmul.f32 %v4516_v42, %v1457_v62  ;;  %v971_v53 = vadd.f32 %v970_v43, %v4119_v29 }
 0x347   : > { %v1979_v46 = vmul.f32 %v1937_v19, %v1045_v17  ;;  %v887_v10 = vadd.f32 %v886_v14, %v4083_v38  ;;  %v5669_v14 = vld [vmem:[#allocation25_spill] sm:$0xff] }
 0x348   : > { %v1498_v8 = vpop.f32.mrf.mxu1  ;;  %2416 = vadd.xlane.f32.xlu1 %v2343_v33  ;;  %1886 = vadd.xlane.f32.xlu0 %v1826_v9  ;;  %v1048_v43 = vadd.f32 %v5669_v14, %v4422_v20  ;;  %v5672_v14 = vld [vmem:[#allocation69_spill] sm:$0xff] }
 0x349   : > { %v4524_v32 = vadd.f32 %v1979_v46, %v4131_v35  ;;  %v4526_v52 = vmul.f32 %v1755_v60, %v887_v10  ;;  %v1499_v62 = vadd.f32 %v1498_v8, %v4463_v54  ;;  %v4544_v46 = vld [vmem:[%s3351_s23 + $0x100] sm:$0xff] }
 0x34a   : > { %2866 = vmatmul.msk.bf16.gmra.mxu3 %vm622_vm0, %v3771_v27  ;;  %v5670_v8 = vld [vmem:[#allocation84_spill] sm:$0xff] }
 0x34b   : > { %5665 = vst [vmem:[#allocation125_spill] sm:$0xff] %v4524_v32  ;;  %v4532_v61 = vmul.f32 %v2440_v28, %v1499_v62  ;;  %2893 = vmatmul.msk.bf16.gmra.mxu2 %vm622_vm0, %v5667_v48  ;;  %2962 = vmatmul.msk.bf16.gmra.mxu1 %vm622_vm0, %v5668_v1  ;;  %v1459_v35 = vpop.f32.mrf.mxu0  ;;  %v4538_v11 = vpop.xlane.xlu2 %2388  ;;  %v1827_v28 = vmul.f32 %v5670_v8, %v971_v53  ;;  %v1756_v62 = vmax.f32 %v4279_v5, 0.0 }
 0x34c   : > { %v1460_v17 = vadd.f32 %v1459_v35, %v3885_v49  ;;  %v1859_v19 = vpop.xlane.xlu1 %1858  ;;  %v5671_v35 = vld [vmem:[#allocation86_spill] sm:$0xff] }
 0x34d   : > { %5666 = vst [vmem:[#allocation126_spill] sm:$0xff] %v4532_v61  ;;  %v1938_v33 = vmax.f32 %v1859_v19, 0.0  ;;  %v973_v9 = vpop.f32.mrf.mxu3  ;;  %v2441_v63 = vmax.f32 %v5671_v35, 0.0 }
 0x34e   : > { %v889_v60 = vpop.f32.mrf.mxu2  ;;  %v2344_v10 = vmul.f32 %v4544_v46, %v1460_v17  ;;  %v974_v53 = vadd.f32 %v973_v9, %v4119_v29  ;;  %v1757_v9 = vmax.f32 %v4285_v51, 0.0  ;;  %v5681_v51 = vld [vmem:[#allocation48_spill] sm:$0xff] }
 0x34f   : > { %v1980_v24 = vmul.f32 %v1938_v33, %v1048_v43  ;;  %v890_v32 = vadd.f32 %v889_v60, %v4083_v38  ;;  %v5676_v33 = vld [vmem:[#allocation26_spill] sm:$0xff] }
 0x350   : > { %v1500_v61 = vpop.f32.mrf.mxu1  ;;  %2418 = vadd.xlane.f32.xlu2 %v2344_v10  ;;  %1888 = vadd.xlane.f32.xlu1 %v1827_v28  ;;  %v1050_v60 = vadd.f32 %v5676_v33, %v4422_v20 }
 0x351   : > { %v4552_v19 = vadd.f32 %v1980_v24, %v5672_v14  ;;  %v4554_v15 = vmul.f32 %v1756_v62, %v890_v32  ;;  %v1501_v17 = vadd.f32 %v1500_v61, %v4463_v54  ;;  %v1828_v62 = vmul.f32 %v4273_v36, %v974_v53  ;;  %v4567_v61 = vld [vmem:[%s3351_s23 + $0x108] sm:$0xff] }
 0x353   : > { %5673 = vst [vmem:[#allocation8_spill] sm:$0xff] %v4552_v19  ;;  %v4558_v8 = vmul.f32 %v2441_v63, %v1501_v17  ;;  %v1461_v5 = vpop.f32.mrf.mxu0  ;;  %v1861_v43 = vpop.xlane.xlu2 %1860  ;;  %v5678_v19 = vld [vmem:[#allocation72_spill] sm:$0xff] }
 0x354   : > { %5674 = vst [vmem:[#allocation14_spill] sm:$0xff] %v4554_v15  ;;  %v1462_v10 = vadd.f32 %v1461_v5, %v3885_v49  ;;  %v1939_v28 = vmax.f32 %v1861_v43, 0.0  ;;  %v4563_v35 = vpop.xlane.xlu0 %2390  ;;  %v2442_v43 = vmax.f32 %v4282_v0, 0.0 }
 0x355   : > { %5675 = vst [vmem:[#allocation25_spill] sm:$0xff] %v4558_v8  ;;  %v975_v24 = vpop.f32.mrf.mxu3 }
 0x356   : > { %5677 = vst [vmem:[#allocation84_spill] sm:$0xff] %v4563_v35  ;;  %v1981_v14 = vmul.f32 %v1939_v28, %v1050_v60  ;;  %v891_v32 = vpop.f32.mrf.mxu2  ;;  %v2345_v63 = vmul.f32 %v4567_v61, %v1462_v10  ;;  %v976_v53 = vadd.f32 %v975_v24, %v4119_v29  ;;  %v825_v10 = vadd.f32 %v5681_v51, %v4083_v38  ;;  %v5683_v28 = vld [vmem:[#allocation9_spill] sm:$0xff]  ;;  %v4597_v35 = vld [vmem:[%s3351_s23 + $0x110] sm:$0xff] }
 0x357   : > { %v892_v17 = vadd.f32 %v891_v32, %v4083_v38 }
 0x358   : > { %v4573_v33 = vadd.f32 %v1981_v14, %v5678_v19  ;;  %v1503_v5 = vpop.f32.mrf.mxu1  ;;  %1890 = vadd.xlane.f32.xlu2 %v1828_v62  ;;  %2420 = vadd.xlane.f32.xlu0 %v2345_v63  ;;  %v5684_v14 = vld [vmem:[#allocation17_spill] sm:$0xff]  ;;  %v5686_v63 = vld [vmem:[#allocation38_spill] sm:$0xff] }
 0x359   : > { %v4576_v60 = vmul.f32 %v1757_v9, %v892_v17  ;;  %v1504_v36 = vadd.f32 %v1503_v5, %v4463_v54  ;;  %v1730_v9 = vmax.f32 %v5686_v63, 0.0  ;;  %v5687_v17 = vld [vmem:[#allocation27_spill] sm:$0xff]  ;;  %v5690_v63 = vld [vmem:[#allocation92_spill] sm:$0xff] }
 0x35a   : > { %5679 = vst [vmem:[#allocation86_spill] sm:$0xff] %v4573_v33  ;;  %2867 = vmatmul.msk.bf16.gmra.mxu3 %vm622_vm0, %v3791_v30  ;;  %v1053_v5 = vadd.f32 %v5687_v17, %v4422_v20  ;;  %v2443_v17 = vmax.f32 %v5690_v63, 0.0 }
 0x35b   : > { %5680 = vst [vmem:[#allocation69_spill] sm:$0xff] %v4576_v60  ;;  %v4584_v19 = vmul.f32 %v2442_v43, %v1504_v36  ;;  %2894 = vmatmul.msk.bf16.gmra.mxu2 %vm622_vm0, %v5683_v28  ;;  %2963 = vmatmul.msk.bf16.gmra.mxu1 %vm622_vm0, %v5684_v14  ;;  %v1464_v0 = vpop.f32.mrf.mxu0  ;;  %v4590_v32 = vpop.xlane.xlu1 %2392  ;;  %v1772_v60 = vmul.f32 %v1730_v9, %v825_v10  ;;  %v5693_v10 = vld [vmem:[#allocation52_spill] sm:$0xff] }
 0x35c   : > { %5685 = vst [vmem:[#allocation72_spill] sm:$0xff] %v4590_v32  ;;  %v1465_v62 = vadd.f32 %v1464_v0, %v3885_v49  ;;  %v1863_v24 = vpop.xlane.xlu0 %1862  ;;  %v1758_v32 = vmax.f32 %v5689_v6, 0.0  ;;  %v827_v6 = vadd.f32 %v5693_v10, %v4083_v38  ;;  %v1759_v10 = vmax.f32 %v4323_v21, 0.0 }
 0x35d   : > { %5682 = vst [vmem:[#allocation26_spill] sm:$0xff] %v4584_v19  ;;  %v1940_v51 = vmax.f32 %v1863_v24, 0.0  ;;  %v978_v43 = vpop.f32.mrf.mxu3  ;;  %v5688_v19 = vld [vmem:[#allocation90_spill] sm:$0xff] }
 0x35e   : > { %v894_v36 = vpop.f32.mrf.mxu2  ;;  %v2346_v33 = vmul.f32 %v4597_v35, %v1465_v62  ;;  %v1829_v8 = vmul.f32 %v5688_v19, %v976_v53  ;;  %v979_v53 = vadd.f32 %v978_v43, %v4119_v29  ;;  %v4621_v43 = vld [vmem:[%s3351_s23 + $0x118] sm:$0xff] }
 0x35f   : > { %v1982_v15 = vmul.f32 %v1940_v51, %v1053_v5  ;;  %v895_v0 = vadd.f32 %v894_v36, %v4083_v38  ;;  %v5696_v51 = vld [vmem:[#allocation41_spill] sm:$0xff] }
 0x360   : > { %v1505_v39 = vpop.f32.mrf.mxu1  ;;  %2422 = vadd.xlane.f32.xlu1 %v2346_v33  ;;  %1892 = vadd.xlane.f32.xlu0 %v1829_v8 }
 0x361   : > { %v4604_v24 = vadd.f32 %v1982_v15, %v1772_v60  ;;  %v4606_v22 = vmul.f32 %v1758_v32, %v895_v0  ;;  %v1506_v62 = vadd.f32 %v1505_v39, %v4463_v54  ;;  %v1731_v15 = vmax.f32 %v5696_v51, 0.0  ;;  %v5697_v60 = vld [vmem:[#allocation28_spill] sm:$0xff] }
 0x362   : > { %v1055_v32 = vadd.f32 %v5697_v60, %v4422_v20  ;;  %v2444_v51 = vmax.f32 %v4317_v16, 0.0  ;;  %v5702_v16 = vld [vmem:[#allocation19_spill] sm:$0xff] }
 0x363   : > { %5691 = vst [vmem:[#allocation48_spill] sm:$0xff] %v4604_v24  ;;  %v4612_v19 = vmul.f32 %v2443_v17, %v1506_v62  ;;  %v1466_v9 = vpop.f32.mrf.mxu0  ;;  %v4614_v5 = vpop.xlane.xlu2 %2394  ;;  %v1830_v17 = vmul.f32 %v4313_v50, %v979_v53  ;;  %v1773_v62 = vmul.f32 %v1731_v15, %v827_v6 }
 0x364   : > { %5692 = vst [vmem:[#allocation9_spill] sm:$0xff] %v4606_v22  ;;  %v1467_v8 = vadd.f32 %v1466_v9, %v3885_v49  ;;  %v1865_v33 = vpop.xlane.xlu1 %1864 }
 0x365   : > { %5694 = vst [vmem:[#allocation17_spill] sm:$0xff] %v4612_v19  ;;  %v1941_v36 = vmax.f32 %v1865_v33, 0.0  ;;  %v980_v39 = vpop.f32.mrf.mxu3 }
 0x366   : > { %5695 = vst [vmem:[#allocation38_spill] sm:$0xff] %v4614_v5  ;;  %v896_v0 = vpop.f32.mrf.mxu2  ;;  %v2347_v63 = vmul.f32 %v4621_v43, %v1467_v8  ;;  %v5700_v8 = vld [vmem:[#allocation56_spill] sm:$0xff]  ;;  %v981_v53 = vadd.f32 %v980_v39, %v4119_v29 }
 0x367   : > { %v1983_v5 = vmul.f32 %v1941_v36, %v1055_v32  ;;  %v897_v9 = vadd.f32 %v896_v0, %v4083_v38  ;;  %v830_v50 = vadd.f32 %v5700_v8, %v4083_v38  ;;  %v5704_v32 = vld [vmem:[#allocation29_spill] sm:$0xff] }
 0x368   : > { %v1508_v24 = vpop.f32.mrf.mxu1  ;;  %2424 = vadd.xlane.f32.xlu2 %v2347_v63  ;;  %1894 = vadd.xlane.f32.xlu1 %v1830_v17  ;;  %v1058_v36 = vadd.f32 %v5704_v32, %v4422_v20 }
 0x369   : > { %v4628_v33 = vadd.f32 %v1983_v5, %v1773_v62  ;;  %v4630_v60 = vmul.f32 %v1759_v10, %v897_v9  ;;  %v1509_v19 = vadd.f32 %v1508_v24, %v4463_v54  ;;  %v5703_v24 = vld [vmem:[#allocation46_spill] sm:$0xff]  ;;  %v1831_v9 = vmul.f32 %v4328_v45, %v981_v53 }
 0x36a   : > { %2868 = vmatmul.msk.bf16.gmra.mxu3 %vm622_vm0, %v3811_v23  ;;  %v1732_v15 = vmax.f32 %v5703_v24, 0.0 }
 0x36b   : > { %5698 = vst [vmem:[#allocation27_spill] sm:$0xff] %v4628_v33  ;;  %v4638_v21 = vmul.f32 %v2444_v51, %v1509_v19  ;;  %2895 = vmatmul.msk.bf16.gmra.mxu2 %vm622_vm0, %v3536_v58  ;;  %2964 = vmatmul.msk.bf16.gmra.mxu1 %vm622_vm0, %v5702_v16  ;;  %v1469_v6 = vpop.f32.mrf.mxu0  ;;  %v1867_v5 = vpop.xlane.xlu2 %1866  ;;  %v4652_v51 = vld [vmem:[%s3351_s23 + $0x120] sm:$0xff] }
 0x36c   : > { %5699 = vst [vmem:[#allocation90_spill] sm:$0xff] %v4630_v60  ;;  %v1470_v39 = vadd.f32 %v1469_v6, %v3885_v49  ;;  %v1942_v0 = vmax.f32 %v1867_v5, 0.0  ;;  %v4648_v63 = vpop.xlane.xlu0 %2396  ;;  %v1774_v17 = vmul.f32 %v1732_v15, %v830_v50  ;;  %v5706_v33 = vld [vmem:[#allocation98_spill] sm:$0xff]  ;;  %v5708_v5 = vld [vmem:[#allocation97_spill] sm:$0xff] }
 0x36d   : > { %5701 = vst [vmem:[#allocation93_spill] sm:$0xff] %v4638_v21  ;;  %v983_v19 = vpop.f32.mrf.mxu3  ;;  %v1760_v24 = vmax.f32 %v5706_v33, 0.0  ;;  %v2445_v50 = vmax.f32 %v5708_v5, 0.0 }
 0x36e   : > { %5705 = vst [vmem:[#allocation92_spill] sm:$0xff] %v4648_v63  ;;  %v1984_v62 = vmul.f32 %v1942_v0, %v1058_v36  ;;  %v899_v10 = vpop.f32.mrf.mxu2  ;;  %v2348_v8 = vmul.f32 %v4652_v51, %v1470_v39  ;;  %v984_v53 = vadd.f32 %v983_v19, %v4119_v29  ;;  %v5710_v36 = vld [vmem:[#allocation59_spill] sm:$0xff] }
 0x36f   : > { %v900_v21 = vadd.f32 %v899_v10, %v4083_v38  ;;  %v832_v39 = vadd.f32 %v5710_v36, %v4083_v38  ;;  %v4675_v19 = vld [vmem:[%s3351_s23 + $0x128] sm:$0xff] }
 0x370   : > { %v4657_v32 = vadd.f32 %v1984_v62, %v1774_v17  ;;  %v1510_v6 = vpop.f32.mrf.mxu1  ;;  %1896 = vadd.xlane.f32.xlu2 %v1831_v9  ;;  %2426 = vadd.xlane.f32.xlu0 %v2348_v8  ;;  %v5713_v9 = vld [vmem:[#allocation40_spill] sm:$0xff] }
 0x371   : > { %v4660_v15 = vmul.f32 %v1760_v24, %v900_v21  ;;  %v1511_v45 = vadd.f32 %v1510_v6, %v4463_v54  ;;  %v1733_v8 = vmax.f32 %v5713_v9, 0.0  ;;  %v5714_v21 = vld [vmem:[#allocation30_spill] sm:$0xff]  ;;  %v5716_v9 = vld [vmem:[#allocation101_spill] sm:$0xff] }
 0x372   : > { %5707 = vst [vmem:[#allocation52_spill] sm:$0xff] %v4657_v32  ;;  %v1060_v24 = vadd.f32 %v5714_v21, %v4422_v20  ;;  %v2446_v21 = vmax.f32 %v5716_v9, 0.0 }
 0x373   : > { %5709 = vst [vmem:[#allocation41_spill] sm:$0xff] %v4660_v15  ;;  %v4666_v33 = vmul.f32 %v2445_v50, %v1511_v45  ;;  %v1471_v0 = vpop.f32.mrf.mxu0  ;;  %v4668_v17 = vpop.xlane.xlu1 %2398  ;;  %v5715_v50 = vld [vmem:[#allocation100_spill] sm:$0xff]  ;;  %v1775_v32 = vmul.f32 %v1733_v8, %v832_v39 }
 0x374   : > { %5712 = vst [vmem:[#allocation56_spill] sm:$0xff] %v4668_v17  ;;  %v1472_v62 = vadd.f32 %v1471_v0, %v3885_v49  ;;  %v1869_v10 = vpop.xlane.xlu0 %1868  ;;  %v1832_v45 = vmul.f32 %v5715_v50, %v984_v53  ;;  %v1761_v17 = vmax.f32 %v4356_v31, 0.0  ;;  %v5718_v31 = vld [vmem:[#allocation62_spill] sm:$0xff]  ;;  %v5721_v8 = vld [vmem:[#allocation44_spill] sm:$0xff] }
 0x375   : > { %5711 = vst [vmem:[#allocation28_spill] sm:$0xff] %v4666_v33  ;;  %v1943_v5 = vmax.f32 %v1869_v10, 0.0  ;;  %v985_v6 = vpop.f32.mrf.mxu3  ;;  %v4705_v50 = vld [vmem:[%s3351_s23 + $0x130] sm:$0xff] }
 0x376   : > { %v901_v63 = vpop.f32.mrf.mxu2  ;;  %v2349_v36 = vmul.f32 %v4675_v19, %v1472_v62  ;;  %v986_v53 = vadd.f32 %v985_v6, %v4119_v29 }
 0x377   : > { %v1985_v33 = vmul.f32 %v1943_v5, %v1060_v24  ;;  %v902_v0 = vadd.f32 %v901_v63, %v4083_v38  ;;  %v835_v63 = vadd.f32 %v5718_v31, %v4083_v38  ;;  %v1734_v24 = vmax.f32 %v5721_v8, 0.0  ;;  %v5723_v8 = vld [vmem:[#allocation103_spill] sm:$0xff] }
 0x378   : > { %v1513_v15 = vpop.f32.mrf.mxu1  ;;  %2428 = vadd.xlane.f32.xlu1 %v2349_v36  ;;  %1898 = vadd.xlane.f32.xlu0 %v1832_v45 }
 0x379   : > { %v4682_v10 = vadd.f32 %v1985_v33, %v1775_v32  ;;  %v4684_v60 = vmul.f32 %v1761_v17, %v902_v0  ;;  %v1514_v22 = vadd.f32 %v1513_v15, %v4463_v54  ;;  %v5719_v32 = vld [vmem:[#allocation20_spill] sm:$0xff]  ;;  %v1833_v0 = vmul.f32 %v4370_v25, %v986_v53 }
 0x37a   : > { %2911 = vmatmul.msk.bf16.vlgmr.msra.gmra.mxu3 %vm622_vm0, %v3466_v44  ;;  %v5722_v44 = vld [vmem:[#allocation31_spill] sm:$0xff]  ;;  %v1776_v9 = vmul.f32 %v1734_v24, %v835_v63  ;;  %v5727_v24 = vld [vmem:[#allocation50_spill] sm:$0xff] }
 0x37b   : > { %5717 = vst [vmem:[#allocation19_spill] sm:$0xff] %v4682_v10  ;;  %v4692_v39 = vmul.f32 %v2446_v21, %v1514_v22  ;;  %2896 = vmatmul.msk.bf16.gmra.mxu2 %vm622_vm0, %v3550_v7  ;;  %2965 = vmatmul.msk.bf16.gmra.mxu1 %vm622_vm0, %v5719_v32  ;;  %v1474_v33 = vpop.f32.mrf.mxu0  ;;  %v4698_v17 = vpop.xlane.xlu2 %2400  ;;  %v1063_v5 = vadd.f32 %v5722_v44, %v4422_v20  ;;  %v1762_v21 = vmax.f32 %v4374_v40, 0.0  ;;  %v2447_v44 = vmax.f32 %v5723_v8, 0.0 }
 0x37c   : > { %5720 = vst [vmem:[#allocation46_spill] sm:$0xff] %v4698_v17  ;;  %v1475_v15 = vadd.f32 %v1474_v33, %v3885_v49  ;;  %v1871_v62 = vpop.xlane.xlu1 %1870 }
 0x37d   : > { %v1944_v6 = vmax.f32 %v1871_v62, 0.0  ;;  %v988_v22 = vpop.f32.mrf.mxu3 }
 0x37e   : > { %v904_v36 = vpop.f32.mrf.mxu2  ;;  %v2350_v45 = vmul.f32 %v4705_v50, %v1475_v15  ;;  %v5725_v15 = vld [vmem:[#allocation65_spill] sm:$0xff]  ;;  %v989_v53 = vadd.f32 %v988_v22, %v4119_v29  ;;  %v5730_v22 = vld [vmem:[#allocation108_spill] sm:$0xff] }
 0x37f   : > { %v1986_v31 = vmul.f32 %v1944_v6, %v1063_v5  ;;  %v905_v33 = vadd.f32 %v904_v36, %v4083_v38  ;;  %v837_v25 = vadd.f32 %v5725_v15, %v4083_v38  ;;  %v1735_v5 = vmax.f32 %v5727_v24, 0.0  ;;  %v5728_v6 = vld [vmem:[#allocation32_spill] sm:$0xff] }
 0x380   : > { %v1515_v49 = vpop.f32.mrf.mxu1  ;;  %2430 = vadd.xlane.f32.xlu2 %v2350_v45  ;;  %1900 = vadd.xlane.f32.xlu1 %v1833_v0  ;;  %v1065_v36 = vadd.f32 %v5728_v6, %v4422_v20  ;;  %v1834_v8 = vmul.f32 %v4393_v4, %v989_v53  ;;  %v5732_v6 = vld [vmem:[#allocation107_spill] sm:$0xff]  ;;  %v5733_v4 = vld [vmem:[#allocation18_spill] sm:$0xff] }
 0x381   : > { %v4712_v62 = vadd.f32 %v1986_v31, %v1776_v9  ;;  %v4714_v17 = vmul.f32 %v1762_v21, %v905_v33  ;;  %v1516_v10 = vadd.f32 %v1515_v49, %v4463_v54  ;;  %v1777_v21 = vmul.f32 %v1735_v5, %v837_v25 }
 0x382   : > { %v840_v53 = vadd.f32 %v5733_v4, %v4083_v38  ;;  %v5741_v4 = vld [vmem:[#allocation118_spill] sm:$0xff] }
 0x383   : > { %5724 = vst [vmem:[#allocation29_spill] sm:$0xff] %v4712_v62  ;;  %v4720_v40 = vmul.f32 %v2447_v44, %v1516_v10  ;;  %v1873_v63 = vpop.xlane.xlu2 %1872  ;;  %v4725_v0 = vpop.xlane.xlu0 %2402  ;;  %v1763_v10 = vmax.f32 %v5730_v22, 0.0 }
 0x384   : > { %v1945_v45 = vmax.f32 %v1873_v63, 0.0  ;;  %5729 = vst [vmem:[#allocation97_spill] sm:$0xff] %v4725_v0  ;;  %v2448_v0 = vmax.f32 %v5732_v6, 0.0 }
 0x385   : > { %5726 = vst [vmem:[#allocation98_spill] sm:$0xff] %v4720_v40  ;;  %v990_v9 = vpop.f32.mrf.mxu3 }
 0x386   : > { %v1987_v31 = vmul.f32 %v1945_v45, %v1065_v36  ;;  %v906_v49 = vpop.f32.mrf.mxu2  ;;  %v991_v33 = vadd.f32 %v990_v9, %v4119_v29  ;;  %v5735_v36 = vld [vmem:[#allocation10_spill] sm:$0xff]  ;;  %v5736_v45 = vld [vmem:[#allocation21_spill] sm:$0xff] }
 0x387   : > { %v907_v44 = vadd.f32 %v906_v49, %v4083_v38  ;;  %v5739_v49 = vld [vmem:[#allocation33_spill] sm:$0xff] }
 0x388   : > { %v4731_v15 = vadd.f32 %v1987_v31, %v1777_v21  ;;  %v1518_v24 = vpop.f32.mrf.mxu1  ;;  %1902 = vadd.xlane.f32.xlu2 %v1834_v8  ;;  %v1835_v63 = vmul.f32 %v4409_v34, %v991_v33  ;;  %v5738_v21 = vld [vmem:[#allocation43_spill] sm:$0xff] }
 0x389   : > { %v4735_v62 = vmul.f32 %v1763_v10, %v907_v44  ;;  %v1519_v25 = vadd.f32 %v1518_v24, %v4463_v54  ;;  %v1736_v31 = vmax.f32 %v5738_v21, 0.0  ;;  %v5740_v44 = vld [vmem:[#allocation112_spill] sm:$0xff] }
 0x38a   : > { %5731 = vst [vmem:[#allocation59_spill] sm:$0xff] %v4731_v15  ;;  %2912 = vmatmul.msk.bf16.gmra.mxu3 %vm622_vm0, %v3484_v57  ;;  %1904 = vadd.xlane.f32.xlu0 %v1835_v63  ;;  %v1068_v57 = vadd.f32 %v5739_v49, %v4422_v20  ;;  %v1764_v24 = vmax.f32 %v5740_v44, 0.0  ;;  %v5742_v15 = vld [vmem:[#allocation111_spill] sm:$0xff]  ;;  %v5744_v49 = vld [vmem:[#allocation70_spill] sm:$0xff] }
 0x38b   : > { %v4742_v5 = vmul.f32 %v2448_v0, %v1519_v25  ;;  %2897 = vmatmul.msk.bf16.gmra.mxu2 %vm622_vm0, %v5735_v36  ;;  %2966 = vmatmul.msk.bf16.gmra.mxu1 %vm622_vm0, %v5736_v45  ;;  %v4748_v34 = vpop.xlane.xlu1 %2404  ;;  %v1875_v9 = vpop.xlane.xlu0 %1874  ;;  %v1778_v10 = vmul.f32 %v1736_v31, %v840_v53  ;;  %v842_v53 = vadd.f32 %v5744_v49, %v4083_v38 }
 0x38c   : > { %5737 = vst [vmem:[#allocation30_spill] sm:$0xff] %v4748_v34  ;;  %v1946_v33 = vmax.f32 %v1875_v9, 0.0 }
 0x38d   : > { %5734 = vst [vmem:[#allocation40_spill] sm:$0xff] %v4742_v5  ;;  %v993_v8 = vpop.f32.mrf.mxu3  ;;  %v2449_v5 = vmax.f32 %v5742_v15, 0.0 }
 0x38e   : > { %v909_v22 = vpop.f32.mrf.mxu2  ;;  %v994_v0 = vadd.f32 %v993_v8, %v4119_v29  ;;  %v1988_v63 = vmul.f32 %v1946_v33, %v1068_v57  ;;  %v5747_v8 = vld [vmem:[#allocation11_spill] sm:$0xff] }
 0x38f   : > { %v910_v6 = vadd.f32 %v909_v22, %v4083_v38  ;;  %v1737_v22 = vmax.f32 %v5747_v8, 0.0 }
 0x390   : > { %v1520_v25 = vpop.f32.mrf.mxu1  ;;  %v1836_v34 = vmul.f32 %v5741_v4, %v994_v0  ;;  %v4758_v21 = vadd.f32 %v1988_v63, %v1778_v10  ;;  %v5748_v0 = vld [vmem:[#allocation35_spill] sm:$0xff] }
 0x391   : > { %v4760_v40 = vmul.f32 %v1764_v24, %v910_v6  ;;  %v1521_v9 = vadd.f32 %v1520_v25, %v4463_v54  ;;  %v1070_v15 = vadd.f32 %v5748_v0, %v4422_v20  ;;  %v1779_v6 = vmul.f32 %v1737_v22, %v842_v53  ;;  %v5752_v0 = vld [vmem:[#allocation73_spill] sm:$0xff] }
 0x392   : > { %5743 = vst [vmem:[#allocation100_spill] sm:$0xff] %v4758_v21  ;;  %1906 = vadd.xlane.f32.xlu1 %v1836_v34  ;;  %v5749_v34 = vld [vmem:[#allocation116_spill] sm:$0xff] }
 0x393   : > { %v4765_v31 = vmul.f32 %v2449_v5, %v1521_v9  ;;  %v4767_v57 = vpop.xlane.xlu2 %2406  ;;  %v1877_v33 = vpop.xlane.xlu1 %1876  ;;  %v1765_v25 = vmax.f32 %v5749_v34, 0.0 }
 0x394   : > { %5746 = vst [vmem:[#allocation62_spill] sm:$0xff] %v4767_v57  ;;  %v1947_v10 = vmax.f32 %v1877_v33, 0.0  ;;  %v5750_v57 = vld [vmem:[#allocation113_spill] sm:$0xff] }
 0x395   : > { %5745 = vst [vmem:[#allocation101_spill] sm:$0xff] %v4765_v31  ;;  %v995_v44 = vpop.f32.mrf.mxu3  ;;  %v2450_v31 = vmax.f32 %v5750_v57, 0.0 }
 0x396   : > { %v911_v24 = vpop.f32.mrf.mxu2  ;;  %v996_v63 = vadd.f32 %v995_v44, %v4119_v29  ;;  %v1989_v4 = vmul.f32 %v1947_v10, %v1070_v15  ;;  %v845_v44 = vadd.f32 %v5752_v0, %v4083_v38  ;;  %v5755_v15 = vld [vmem:[#allocation54_spill] sm:$0xff] }
 0x397   : > { %v912_v5 = vadd.f32 %v911_v24, %v4083_v38  ;;  %v1738_v10 = vmax.f32 %v5755_v15, 0.0  ;;  %v5756_v24 = vld [vmem:[#allocation36_spill] sm:$0xff]  ;;  %v5758_v15 = vld [vmem:[#allocation75_spill] sm:$0xff] }
 0x398   : > { %v1523_v9 = vpop.f32.mrf.mxu1  ;;  %v1837_v49 = vmul.f32 %v4466_v41, %v996_v63  ;;  %v4777_v8 = vadd.f32 %v1989_v4, %v1779_v6  ;;  %v5753_v41 = vld [vmem:[#allocation22_spill] sm:$0xff]  ;;  %v1073_v63 = vadd.f32 %v5756_v24, %v4422_v20 }
 0x399   : > { %v4779_v21 = vmul.f32 %v1765_v25, %v912_v5  ;;  %v1524_v33 = vadd.f32 %v1523_v9, %v4463_v54 }
 0x39a   : > { %5751 = vst [vmem:[#allocation20_spill] sm:$0xff] %v4777_v8  ;;  %2913 = vmatmul.msk.bf16.gmra.mxu3 %vm622_vm0, %v3496_v3  ;;  %1908 = vadd.xlane.f32.xlu2 %v1837_v49  ;;  %v1780_v3 = vmul.f32 %v1738_v10, %v845_v44  ;;  %v847_v8 = vadd.f32 %v5758_v15, %v4083_v38 }
 0x39b   : > { %v4786_v53 = vmul.f32 %v2450_v31, %v1524_v33  ;;  %2898 = vmatmul.msk.bf16.gmra.mxu2 %vm622_vm0, %v3590_v13  ;;  %2967 = vmatmul.msk.bf16.gmra.mxu1 %vm622_vm0, %v5753_v41  ;;  %v1879_v57 = vpop.xlane.xlu2 %1878  ;;  %v4792_v22 = vpop.xlane.xlu0 %2408  ;;  %v5757_v33 = vld [vmem:[#allocation117_spill] sm:$0xff] }
 0x39c   : > { %5754 = vst [vmem:[#allocation44_spill] sm:$0xff] %v4792_v22  ;;  %v1948_v6 = vmax.f32 %v1879_v57, 0.0  ;;  %v2451_v0 = vmax.f32 %v5757_v33, 0.0  ;;  %v4806_v57 = vperm.slane %v4419_v26, 4 }
 0x39d   : > { %v998_v34 = vpop.f32.mrf.mxu3 }
 0x39e   : > { %v1990_v25 = vmul.f32 %v1948_v6, %v1073_v63  ;;  %v999_v31 = vadd.f32 %v998_v34, %v4119_v29  ;;  %v1151_v4 = vpop.f32.mrf.mxu2  ;;  %v5760_v63 = vld [vmem:[#allocation47_spill] sm:$0xff] }
 0x39f   : > { %v1739_v6 = vmax.f32 %v5760_v63, 0.0  ;;  %v2452_v63 = vmax.f32 %v4457_v37, 0.0 }
 0x3a0   : > { %v4798_v5 = vadd.f32 %v1990_v25, %v1780_v3  ;;  %v1525_v9 = vpop.f32.mrf.mxu1  ;;  %v1838_v49 = vmul.f32 %v4495_v55, %v999_v31  ;;  %v5761_v55 = vld [vmem:[#allocation37_spill] sm:$0xff] }
 0x3a1   : > { %v1526_v22 = vadd.f32 %v1525_v9, %v4463_v54  ;;  %v1075_v34 = vadd.f32 %v5761_v55, %v4422_v20  ;;  %v1781_v31 = vmul.f32 %v1739_v6, %v847_v8  ;;  %v1152_v9 = vadd.f32 %v1151_v4, %v4806_v57  ;;  %v5763_v55 = vld [vmem:[#allocation77_spill] sm:$0xff]  ;;  %v3091_v8 = vld [vmem:[%s3351_s23] sm:$0xff] }
 0x3a2   : > { %1910 = vadd.xlane.f32.xlu0 %v1838_v49 }
 0x3a3   : > { %v4808_v44 = vmul.f32 %v2451_v0, %v1526_v22  ;;  %v4810_v10 = vpop.xlane.xlu1 %2410  ;;  %v1881_v24 = vpop.xlane.xlu0 %1880  ;;  %v2060_v4 = vmul.f32 %v3091_v8, %v1152_v9 }
 0x3a4   : > { %5759 = vst [vmem:[#allocation31_spill] sm:$0xff] %v4810_v10  ;;  %v1949_v3 = vmax.f32 %v1881_v24, 0.0  ;;  %v850_v24 = vadd.f32 %v5763_v55, %v4083_v38 }
 0x3a5   : > { %v1000_v25 = vpop.f32.mrf.mxu3 }
 0x3a6   : > { %v1991_v33 = vmul.f32 %v1949_v3, %v1075_v34  ;;  %v1001_v26 = vadd.f32 %v1000_v25, %v4119_v29  ;;  %v1153_v49 = vpop.f32.mrf.mxu2  ;;  %v5765_v34 = vld [vmem:[#allocation23_spill] sm:$0xff]  ;;  %v5767_v3 = vld [vmem:[#allocation12_spill] sm:$0xff] }
 0x3a7   : > { %v1740_v25 = vmax.f32 %v5767_v3, 0.0 }
 0x3a8   : > { %v4817_v22 = vadd.f32 %v1991_v33, %v1781_v31  ;;  %v1528_v0 = vpop.f32.mrf.mxu1  ;;  %v1839_v15 = vmul.f32 %v4516_v42, %v1001_v26  ;;  %v5768_v31 = vld [vmem:[#allocation39_spill] sm:$0xff]  ;;  %v1154_v33 = vadd.f32 %v1153_v49, %v4806_v57 }
 0x3a9   : > { %v1529_v10 = vadd.f32 %v1528_v0, %v4463_v54  ;;  %v1782_v26 = vmul.f32 %v1740_v25, %v850_v24  ;;  %v5769_v49 = vld [vmem:[#allocation79_spill] sm:$0xff] }
 0x3aa   : > { %5762 = vst [vmem:[#allocation103_spill] sm:$0xff] %v4817_v22  ;;  %2914 = vmatmul.msk.bf16.gmra.mxu3 %vm622_vm0, %v5667_v48  ;;  %1912 = vadd.xlane.f32.xlu1 %v1839_v15  ;;  %v1078_v48 = vadd.f32 %v5768_v31, %v4422_v20  ;;  %v3092_v22 = vld [vmem:[%s3351_s23 + $0x8] sm:$0xff] }
 0x3ab   : > { %v4827_v6 = vmul.f32 %v2452_v63, %v1529_v10  ;;  %2899 = vmatmul.msk.bf16.gmra.mxu2 %vm622_vm0, %v5668_v1  ;;  %2968 = vmatmul.msk.bf16.gmra.mxu1 %vm622_vm0, %v5765_v34  ;;  %v4833_v37 = vpop.xlane.xlu2 %2412  ;;  %v1883_v42 = vpop.xlane.xlu1 %1882  ;;  %v2061_v3 = vmul.f32 %v3092_v22, %v1154_v33 }
 0x3ac   : > { %5766 = vst [vmem:[#allocation50_spill] sm:$0xff] %v4833_v37  ;;  %2102 = vadd.xlane.f32.xlu0 %v2060_v4  ;;  %v1950_v10 = vmax.f32 %v1883_v42, 0.0  ;;  %v852_v4 = vadd.f32 %v5769_v49, %v4083_v38 }
 0x3ad   : > { %5764 = vst [vmem:[#allocation65_spill] sm:$0xff] %v4827_v6  ;;  %v1003_v9 = vpop.f32.mrf.mxu3  ;;  %v2453_v6 = vmax.f32 %v4491_v56, 0.0 }
 0x3ae   : > { %v1992_v0 = vmul.f32 %v1950_v10, %v1078_v48  ;;  %v1004_v15 = vadd.f32 %v1003_v9, %v4119_v29  ;;  %v1156_v63 = vpop.f32.mrf.mxu2  ;;  %v5771_v48 = vld [vmem:[#allocation58_spill] sm:$0xff] }
 0x3af   : > { %v1741_v10 = vmax.f32 %v5771_v48, 0.0  ;;  %v1157_v56 = vadd.f32 %v1156_v63, %v4806_v57  ;;  %v2454_v48 = vmax.f32 %v4510_v59, 0.0  ;;  %v5773_v63 = vld [vmem:[#allocation81_spill] sm:$0xff] }
 0x3b0   : > { %v4840_v55 = vadd.f32 %v1992_v0, %v1782_v26  ;;  %v1530_v8 = vpop.f32.mrf.mxu1  ;;  %v1840_v37 = vmul.f32 %v4544_v46, %v1004_v15  ;;  %v5772_v46 = vld [vmem:[#allocation42_spill] sm:$0xff] }
 0x3b1   : > { %v1531_v31 = vadd.f32 %v1530_v8, %v4463_v54  ;;  %v1080_v22 = vadd.f32 %v5772_v46, %v4422_v20  ;;  %v1783_v26 = vmul.f32 %v1741_v10, %v852_v4  ;;  %v5774_v10 = vld [vmem:[#allocation24_spill] sm:$0xff] }
 0x3b2   : > { %1914 = vadd.xlane.f32.xlu2 %v1840_v37  ;;  %2104 = vadd.xlane.f32.xlu1 %v2061_v3  ;;  %v3093_v3 = vld [vmem:[%s3351_s23 + $0x10] sm:$0xff] }
 0x3b3   : > { %v4848_v24 = vmul.f32 %v2453_v6, %v1531_v31  ;;  %v1885_v42 = vpop.xlane.xlu2 %1884  ;;  %v4850_v25 = vpop.xlane.xlu0 %2414  ;;  %v2062_v31 = vmul.f32 %v3093_v3, %v1157_v56 }
 0x3b4   : > { %5770 = vst [vmem:[#allocation32_spill] sm:$0xff] %v4850_v25  ;;  %v1951_v33 = vmax.f32 %v1885_v42, 0.0  ;;  %v855_v42 = vadd.f32 %v5773_v63, %v4083_v38 }
 0x3b5   : > { %v1005_v9 = vpop.f32.mrf.mxu3 }
 0x3b6   : > { %v1993_v0 = vmul.f32 %v1951_v33, %v1080_v22  ;;  %v1006_v37 = vadd.f32 %v1005_v9, %v4119_v29  ;;  %v1158_v15 = vpop.f32.mrf.mxu2  ;;  %v5776_v22 = vld [vmem:[#allocation51_spill] sm:$0xff]  ;;  %v5777_v33 = vld [vmem:[#allocation45_spill] sm:$0xff] }
 0x3b7   : > { %v1742_v56 = vmax.f32 %v5776_v22, 0.0  ;;  %v1083_v9 = vadd.f32 %v5777_v33, %v4422_v20  ;;  %v2455_v22 = vmax.f32 %v4538_v11, 0.0 }
 0x3b8   : > { %v4857_v8 = vadd.f32 %v1993_v0, %v1783_v26  ;;  %v1533_v6 = vpop.f32.mrf.mxu1  ;;  %v1841_v49 = vmul.f32 %v4567_v61, %v1006_v37  ;;  %v1159_v37 = vadd.f32 %v1158_v15, %v4806_v57 }
 0x3b9   : > { %v1534_v46 = vadd.f32 %v1533_v6, %v4463_v54  ;;  %v1784_v0 = vmul.f32 %v1742_v56, %v855_v42  ;;  %v3094_v42 = vld [vmem:[%s3351_s23 + $0x18] sm:$0xff] }
 0x3ba   : > { %2915 = vmatmul.msk.bf16.gmra.mxu3 %vm622_vm0, %v5683_v28  ;;  %2106 = vadd.xlane.f32.xlu2 %v2062_v31  ;;  %v2063_v56 = vmul.f32 %v3094_v42, %v1159_v37 }
 0x3bb   : > { %v4867_v4 = vmul.f32 %v2454_v48, %v1534_v46  ;;  %2900 = vmatmul.msk.bf16.gmra.mxu2 %vm622_vm0, %v5684_v14  ;;  %2969 = vmatmul.msk.bf16.gmra.mxu1 %vm622_vm0, %v5774_v10  ;;  %v4873_v61 = vpop.xlane.xlu1 %2416  ;;  %v1887_v59 = vpop.xlane.xlu0 %1886 }
 0x3bc   : > { %5775 = vst [vmem:[#allocation108_spill] sm:$0xff] %v4873_v61  ;;  %1916 = vadd.xlane.f32.xlu0 %v1841_v49  ;;  %v1952_v28 = vmax.f32 %v1887_v59, 0.0  ;;  %v5778_v49 = vld [vmem:[#allocation83_spill] sm:$0xff] }
 0x3bd   : > { %v1008_v26 = vpop.f32.mrf.mxu3  ;;  %v857_v59 = vadd.f32 %v5778_v49, %v4083_v38 }
 0x3be   : > { %v1994_v6 = vmul.f32 %v1952_v28, %v1083_v9  ;;  %v1009_v3 = vadd.f32 %v1008_v26, %v4119_v29  ;;  %v1161_v31 = vpop.f32.mrf.mxu2  ;;  %v5780_v26 = vld [vmem:[#allocation13_spill] sm:$0xff] }
 0x3bf   : > { %v1162_v49 = vadd.f32 %v1161_v31, %v4806_v57 }
 0x3c0   : > { %v4880_v48 = vadd.f32 %v1994_v6, %v1784_v0  ;;  %v1535_v46 = vpop.f32.mrf.mxu1  ;;  %v1842_v63 = vmul.f32 %v4597_v35, %v1009_v3  ;;  %v1743_v0 = vmax.f32 %v5780_v26, 0.0  ;;  %v5781_v35 = vld [vmem:[#allocation49_spill] sm:$0xff] }
 0x3c1   : > { %v1536_v33 = vadd.f32 %v1535_v46, %v4463_v54  ;;  %v1085_v6 = vadd.f32 %v5781_v35, %v4422_v20 }
 0x3c2   : > { %1918 = vadd.xlane.f32.xlu1 %v1842_v63  ;;  %v1785_v46 = vmul.f32 %v1743_v0, %v857_v59 }
 0x3c3   : > { %v4888_v15 = vmul.f32 %v2455_v22, %v1536_v33  ;;  %v4890_v9 = vpop.xlane.xlu2 %2418  ;;  %v1889_v28 = vpop.xlane.xlu1 %1888 }
 0x3c4   : > { %5779 = vst [vmem:[#allocation107_spill] sm:$0xff] %v4890_v9  ;;  %2108 = vadd.xlane.f32.xlu0 %v2063_v56  ;;  %v1953_v11 = vmax.f32 %v1889_v28, 0.0  ;;  %v5782_v9 = vld [vmem:[#allocation87_spill] sm:$0xff]  ;;  %v3095_v56 = vld [vmem:[%s3351_s23 + $0x20] sm:$0xff] }
 0x3c5   : > { %v1010_v3 = vpop.f32.mrf.mxu3  ;;  %v860_v26 = vadd.f32 %v5782_v9, %v4083_v38  ;;  %v2064_v28 = vmul.f32 %v3095_v56, %v1162_v49  ;;  %v5785_v9 = vld [vmem:[#allocation53_spill] sm:$0xff] }
 0x3c6   : > { %v1995_v63 = vmul.f32 %v1953_v11, %v1085_v6  ;;  %v1011_v37 = vadd.f32 %v1010_v3, %v4119_v29  ;;  %v1163_v22 = vpop.f32.mrf.mxu2  ;;  %v1088_v35 = vadd.f32 %v5785_v9, %v4422_v20 }
 0x3c8   : > { %v4897_v33 = vadd.f32 %v1995_v63, %v1785_v46  ;;  %v1843_v42 = vmul.f32 %v4621_v43, %v1011_v37  ;;  %v5784_v43 = vld [vmem:[#allocation61_spill] sm:$0xff] }
 0x3c9   : > { %v1744_v0 = vmax.f32 %v5784_v43, 0.0  ;;  %v5786_v43 = vld [vmem:[#allocation89_spill] sm:$0xff] }
 0x3ca   : > { %2916 = vmatmul.msk.bf16.gmra.mxu3 %vm622_vm0, %v3536_v58  ;;  %1920 = vadd.xlane.f32.xlu2 %v1843_v42  ;;  %v1164_v58 = vadd.f32 %v1163_v22, %v4806_v57  ;;  %v3096_v42 = vld [vmem:[%s3351_s23 + $0x28] sm:$0xff]  ;;  %v862_v61 = vadd.f32 %v5786_v43, %v4083_v38  ;;  %v3097_v43 = vld [vmem:[%s3351_s23 + $0x30] sm:$0xff] }
 0x3cb   : > { %2901 = vmatmul.msk.bf16.gmra.mxu2 %vm622_vm0, %v5702_v16  ;;  %2970 = vmatmul.msk.bf16.gmra.mxu1 %vm622_vm0, %v3752_v18  ;;  %v1891_v31 = vpop.xlane.xlu2 %1890  ;;  %v4909_v59 = vpop.xlane.xlu0 %2420  ;;  %v1786_v3 = vmul.f32 %v1744_v0, %v860_v26  ;;  %v5788_v26 = vld [vmem:[#allocation55_spill] sm:$0xff]  ;;  %v5789_v0 = vld [vmem:[#allocation57_spill] sm:$0xff] }
 0x3cc   : > { %5783 = vst [vmem:[#allocation18_spill] sm:$0xff] %v4909_v59  ;;  %2110 = vadd.xlane.f32.xlu1 %v2064_v28  ;;  %v1954_v6 = vmax.f32 %v1891_v31, 0.0  ;;  %v2065_v56 = vmul.f32 %v3096_v42, %v1164_v58  ;;  %v1745_v31 = vmax.f32 %v5788_v26, 0.0  ;;  %v1090_v9 = vadd.f32 %v5789_v0, %v4422_v20  ;;  %v5790_v42 = vld [vmem:[#allocation94_spill] sm:$0xff] }
 0x3cd   : > { %v1013_v11 = vpop.f32.mrf.mxu3 }
 0x3ce   : > { %v1996_v46 = vmul.f32 %v1954_v6, %v1088_v35  ;;  %v1014_v49 = vadd.f32 %v1013_v11, %v4119_v29  ;;  %v1166_v63 = vpop.f32.mrf.mxu2  ;;  %v1787_v11 = vmul.f32 %v1745_v31, %v862_v61  ;;  %v5793_v31 = vld [vmem:[#allocation60_spill] sm:$0xff] }
 0x3cf   : > { %v1167_v58 = vadd.f32 %v1166_v63, %v4806_v57  ;;  %v1093_v0 = vadd.f32 %v5793_v31, %v4422_v20 }
 0x3d0   : > { %v4916_v37 = vadd.f32 %v1996_v46, %v1786_v3  ;;  %v1844_v59 = vmul.f32 %v4652_v51, %v1014_v49 }
 0x3d2   : > { %2112 = vadd.xlane.f32.xlu2 %v2065_v56  ;;  %1922 = vadd.xlane.f32.xlu0 %v1844_v59  ;;  %v865_v56 = vadd.f32 %v5790_v42, %v4083_v38  ;;  %v3098_v42 = vld [vmem:[%s3351_s23 + $0x38] sm:$0xff] }
 0x3d3   : > { %v4922_v22 = vpop.xlane.xlu1 %2422  ;;  %v1893_v28 = vpop.xlane.xlu0 %1892 }
 0x3d4   : > { %5787 = vst [vmem:[#allocation10_spill] sm:$0xff] %v4922_v22  ;;  %v1955_v35 = vmax.f32 %v1893_v28, 0.0  ;;  %v2066_v28 = vmul.f32 %v3097_v43, %v1167_v58 }
 0x3d5   : > { %v1015_v6 = vpop.f32.mrf.mxu3 }
 0x3d6   : > { %v1997_v51 = vmul.f32 %v1955_v35, %v1090_v9  ;;  %v1016_v3 = vadd.f32 %v1015_v6, %v4119_v29  ;;  %v1168_v46 = vpop.f32.mrf.mxu2 }
 0x3d8   : > { %v4929_v49 = vadd.f32 %v1997_v51, %v1787_v11  ;;  %v1845_v59 = vmul.f32 %v4675_v19, %v1016_v3  ;;  %v5792_v19 = vld [vmem:[#allocation15_spill] sm:$0xff] }
 0x3d9   : > { %v1746_v26 = vmax.f32 %v5792_v19, 0.0  ;;  %v5794_v19 = vld [vmem:[#allocation96_spill] sm:$0xff] }
 0x3da   : > { %2917 = vmatmul.msk.bf16.gmra.mxu3 %vm622_vm0, %v3550_v7  ;;  %1924 = vadd.xlane.f32.xlu1 %v1845_v59  ;;  %v1169_v7 = vadd.f32 %v1168_v46, %v4806_v57  ;;  %v867_v31 = vadd.f32 %v5794_v19, %v4083_v38  ;;  %v4965_v19 = vld [vmem:[%s3351_s23 + $0x138] sm:$0xff] }
 0x3db   : > { %2902 = vmatmul.msk.bf16.gmra.mxu2 %vm622_vm0, %v5719_v32  ;;  %2971 = vmatmul.msk.bf16.gmra.mxu1 %vm622_vm0, %v3771_v27  ;;  %v4941_v61 = vpop.xlane.xlu2 %2424  ;;  %v1895_v63 = vpop.xlane.xlu1 %1894  ;;  %v1788_v6 = vmul.f32 %v1746_v26, %v865_v56  ;;  %v5796_v56 = vld [vmem:[#allocation64_spill] sm:$0xff]  ;;  %v5797_v26 = vld [vmem:[#allocation63_spill] sm:$0xff] }
 0x3dc   : > { %5791 = vst [vmem:[#allocation21_spill] sm:$0xff] %v4941_v61  ;;  %2114 = vadd.xlane.f32.xlu0 %v2066_v28  ;;  %v1956_v9 = vmax.f32 %v1895_v63, 0.0  ;;  %v2067_v43 = vmul.f32 %v3098_v42, %v1169_v7  ;;  %v1747_v63 = vmax.f32 %v5796_v56, 0.0  ;;  %v3099_v42 = vld [vmem:[%s3351_s23 + $0x40] sm:$0xff] }
 0x3dd   : > { %v1018_v35 = vpop.f32.mrf.mxu3 }
 0x3de   : > { %v1998_v11 = vmul.f32 %v1956_v9, %v1093_v0  ;;  %v1019_v58 = vadd.f32 %v1018_v35, %v4119_v29  ;;  %v1171_v51 = vpop.f32.mrf.mxu2  ;;  %v1095_v0 = vadd.f32 %v5797_v26, %v4422_v20  ;;  %v1789_v7 = vmul.f32 %v1747_v63, %v867_v31 }
 0x3df   : > { %v1172_v9 = vadd.f32 %v1171_v51, %v4806_v57 }
 0x3e0   : > { %v4948_v3 = vadd.f32 %v1998_v11, %v1788_v6  ;;  %v1846_v59 = vmul.f32 %v4705_v50, %v1019_v58 }
 0x3e2   : > { %1926 = vadd.xlane.f32.xlu2 %v1846_v59  ;;  %2116 = vadd.xlane.f32.xlu1 %v2067_v43  ;;  %v2068_v43 = vmul.f32 %v3099_v42, %v1172_v9 }
 0x3e3   : > { %v1897_v46 = vpop.xlane.xlu2 %1896  ;;  %v4954_v28 = vpop.xlane.xlu0 %2426 }
 0x3e4   : > { %5795 = vst [vmem:[#allocation43_spill] sm:$0xff] %v4954_v28  ;;  %v1957_v50 = vmax.f32 %v1897_v46, 0.0  ;;  %v5799_v46 = vld [vmem:[#allocation66_spill] sm:$0xff] }
 0x3e5   : > { %v1020_v35 = vpop.f32.mrf.mxu3  ;;  %v1098_v63 = vadd.f32 %v5799_v46, %v4422_v20  ;;  %v3102_v46 = vld [vmem:[%s3351_s23 + $0x48] sm:$0xff] }
 0x3e6   : > { %v1999_v6 = vmul.f32 %v1957_v50, %v1095_v0  ;;  %v1021_v11 = vadd.f32 %v1020_v35, %v4119_v29  ;;  %v1173_v58 = vpop.f32.mrf.mxu2 }
 0x3e7   : > { %v1174_v9 = vadd.f32 %v1173_v58, %v4806_v57  ;;  %v5803_v58 = vld [vmem:[#allocation16_spill] sm:$0xff] }
 0x3e8   : > { %v4961_v59 = vadd.f32 %v1999_v6, %v1789_v7  ;;  %v1847_v56 = vmul.f32 %v4965_v19, %v1021_v11  ;;  %v5800_v7 = vld [vmem:[#allocation104_spill] sm:$0xff] }
 0x3e9   : > { %v3101_v11 = vld [vmem:[%s3351_s23 + $0x140] sm:$0xff] }
 0x3ea   : > { %2918 = vmatmul.msk.bf16.gmra.mxu3 %vm622_vm0, %v5735_v36  ;;  %2118 = vadd.xlane.f32.xlu2 %v2068_v43  ;;  %v5801_v43 = vld [vmem:[#allocation105_spill] sm:$0xff] }
 0x3eb   : > { %2903 = vmatmul.msk.bf16.gmra.mxu2 %vm622_vm0, %v5736_v45  ;;  %2972 = vmatmul.msk.bf16.gmra.mxu1 %vm622_vm0, %v3791_v30  ;;  %v4974_v51 = vpop.xlane.xlu1 %2428  ;;  %v1899_v31 = vpop.xlane.xlu0 %1898 }
 0x3ec   : > { %5798 = vst [vmem:[#allocation33_spill] sm:$0xff] %v4974_v51  ;;  %1928 = vadd.xlane.f32.xlu0 %v1847_v56  ;;  %v1958_v26 = vmax.f32 %v1899_v31, 0.0  ;;  %v872_v51 = vadd.f32 %v5801_v43, %v4083_v38  ;;  %v2069_v56 = vmul.f32 %v3102_v46, %v1174_v9  ;;  %v3103_v46 = vld [vmem:[%s3351_s23 + $0x148] sm:$0xff] }
 0x3ed   : > { %v1023_v0 = vpop.f32.mrf.mxu3 }
 0x3ee   : > { %v2000_v36 = vmul.f32 %v1958_v26, %v1098_v63  ;;  %v1024_v50 = vadd.f32 %v1023_v0, %v4119_v29  ;;  %v1176_v35 = vpop.f32.mrf.mxu2  ;;  %v1749_v63 = vmax.f32 %v5803_v58, 0.0  ;;  %v5804_v26 = vld [vmem:[#allocation68_spill] sm:$0xff]  ;;  %v5805_v58 = vld [vmem:[#allocation109_spill] sm:$0xff] }
 0x3ef   : > { %v1100_v0 = vadd.f32 %v5804_v26, %v4422_v20  ;;  %v875_v22 = vadd.f32 %v5805_v58, %v4083_v38 }
 0x3f0   : > { %v4981_v6 = vadd.f32 %v2000_v36, %v5800_v7  ;;  %v1848_v42 = vmul.f32 %v3101_v11, %v1024_v50  ;;  %v1791_v50 = vmul.f32 %v1749_v63, %v872_v51  ;;  %v1177_v11 = vadd.f32 %v1176_v35, %v4806_v57  ;;  %v5806_v51 = vld [vmem:[#allocation67_spill] sm:$0xff] }
 0x3f1   : > { %v1750_v35 = vmax.f32 %v5806_v51, 0.0  ;;  %v5807_v63 = vld [vmem:[#allocation71_spill] sm:$0xff] }
 0x3f2   : > { %1930 = vadd.xlane.f32.xlu1 %v1848_v42  ;;  %v1103_v26 = vadd.f32 %v5807_v63, %v4422_v20  ;;  %v3105_v51 = vld [vmem:[%s3351_s23 + $0x58] sm:$0xff] }
 0x3f3   : > { %v4987_v31 = vpop.xlane.xlu2 %2430  ;;  %v1901_v28 = vpop.xlane.xlu1 %1900  ;;  %v5809_v63 = vld [vmem:[#allocation115_spill] sm:$0xff] }
 0x3f4   : > { %5802 = vst [vmem:[#allocation112_spill] sm:$0xff] %v4987_v31  ;;  %2120 = vadd.xlane.f32.xlu0 %v2069_v56  ;;  %v1959_v36 = vmax.f32 %v1901_v28, 0.0  ;;  %v3104_v28 = vld [vmem:[%s3351_s23 + $0x50] sm:$0xff] }
 0x3f5   : > { %v1025_v7 = vpop.f32.mrf.mxu3  ;;  %v2070_v56 = vmul.f32 %v3104_v28, %v1177_v11 }
 0x3f6   : > { %v2001_v43 = vmul.f32 %v1959_v36, %v1100_v0  ;;  %v1026_v42 = vadd.f32 %v1025_v7, %v4119_v29  ;;  %v1178_v61 = vpop.f32.mrf.mxu2  ;;  %v5808_v36 = vld [vmem:[#allocation74_spill] sm:$0xff] }
 0x3f7   : > { %v1179_v38 = vadd.f32 %v1178_v61, %v4806_v57  ;;  %v1105_v7 = vadd.f32 %v5808_v36, %v4422_v20 }
 0x3f8   : > { %v4994_v9 = vadd.f32 %v2001_v43, %v1791_v50  ;;  %v1849_v31 = vmul.f32 %v3103_v46, %v1026_v42  ;;  %v1792_v50 = vmul.f32 %v1750_v35, %v875_v22  ;;  %v5810_v35 = vld [vmem:[#allocation76_spill] sm:$0xff] }
 0x3f9   : > { %v2071_v61 = vmul.f32 %v3105_v51, %v1179_v38 }
 0x3fa   : > { %2919 = vmatmul.msk.bf16.gmra.mxu3 %vm622_vm0, %v3590_v13  ;;  %1932 = vadd.xlane.f32.xlu2 %v1849_v31 }
 0x3fb   : > { %2904 = vmatmul.msk.bf16.gmra.mxu2 %vm622_vm0, %v5753_v41  ;;  %2973 = vmatmul.msk.bf16.gmra.mxu1 %vm622_vm0, %v3811_v23  ;;  %v1903_v29 = vpop.xlane.xlu2 %1902 }
 0x3fc   : > { %2122 = vadd.xlane.f32.xlu1 %v2070_v56  ;;  %v1960_v13 = vmax.f32 %v1903_v29, 0.0  ;;  %v3106_v56 = vld [vmem:[%s3351_s23 + $0x60] sm:$0xff] }
 0x3fd   : > { %v5010_v31 = vpop.f32.mrf.mxu3  ;;  %v1905_v0 = vpop.xlane.xlu0 %1904 }
 0x3fe   : > { %v2002_v11 = vmul.f32 %v1960_v13, %v1103_v26  ;;  %v1181_v43 = vpop.f32.mrf.mxu2  ;;  %v1961_v42 = vmax.f32 %v1905_v0, 0.0  ;;  %v1108_v26 = vadd.f32 %v5810_v35, %v4422_v20 }
 0x3ff   : > { %v1182_v46 = vadd.f32 %v1181_v43, %v4806_v57 }
 0x400   : > { %v5015_v58 = vadd.f32 %v2002_v11, %v1792_v50  ;;  %v2003_v28 = vmul.f32 %v1961_v42, %v1105_v7  ;;  %v3107_v11 = vld [vmem:[%s3351_s23 + $0x68] sm:$0xff] }
 0x401   : > { %v2072_v29 = vmul.f32 %v3106_v56, %v1182_v46 }
 0x402   : > { %v5020_v25 = vadd.f32 %v2003_v28, %v5809_v63  ;;  %2124 = vadd.xlane.f32.xlu2 %v2071_v61  ;;  %v5811_v28 = vld [vmem:[#allocation78_spill] sm:$0xff] }
 0x403   : > { %2126 = vadd.xlane.f32.xlu0 %v2072_v29  ;;  %v1110_v51 = vadd.f32 %v5811_v28, %v4422_v20  ;;  %v3108_v63 = vld [vmem:[%s3351_s23 + $0x70] sm:$0xff] }
 0x405   : > { %v1267_v36 = vpop.f32.mrf.mxu3  ;;  %v1907_v22 = vpop.xlane.xlu1 %1906 }
 0x406   : > { %v1183_v13 = vpop.f32.mrf.mxu2  ;;  %v1962_v0 = vmax.f32 %v1907_v22, 0.0 }
 0x407   : > { %v1184_v50 = vadd.f32 %v1183_v13, %v4806_v57  ;;  %v5812_v13 = vld [vmem:[#allocation80_spill] sm:$0xff] }
 0x408   : > { %v2004_v7 = vmul.f32 %v1962_v0, %v1108_v26  ;;  %v1113_v0 = vadd.f32 %v5812_v13, %v4422_v20 }
 0x409   : > { %v2073_v38 = vmul.f32 %v3107_v11, %v1184_v50 }
 0x40a   : > { %v5027_v43 = vadd.f32 %v2004_v7, %v4454_v12  ;;  %2920 = vmatmul.msk.bf16.gmra.mxu3 %vm622_vm0, %v5668_v1 }
 0x40b   : > { %2905 = vmatmul.msk.bf16.gmra.mxu2 %vm622_vm0, %v5765_v34  ;;  %2128 = vadd.xlane.f32.xlu1 %v2073_v38 }
 0x40d   : > { %v5033_v42 = vpop.f32.mrf.mxu3  ;;  %v1909_v46 = vpop.xlane.xlu2 %1908 }
 0x40e   : > { %v1186_v61 = vpop.f32.mrf.mxu2  ;;  %v1963_v56 = vmax.f32 %v1909_v46, 0.0  ;;  %v3109_v46 = vld [vmem:[%s3351_s23 + $0x78] sm:$0xff] }
 0x40f   : > { %v1187_v29 = vadd.f32 %v1186_v61, %v4806_v57 }
 0x410   : > { %v2005_v12 = vmul.f32 %v1963_v56, %v1110_v51 }
 0x411   : > { %v2074_v22 = vmul.f32 %v3108_v63, %v1187_v29 }
 0x412   : > { %v5040_v1 = vadd.f32 %v2005_v12, %v4476_v47  ;;  %v3110_v47 = vld [vmem:[%s5496_s4] sm:$0xff] }
 0x413   : > { %2130 = vadd.xlane.f32.xlu2 %v2074_v22  ;;  %v5058_v61 = vperm.slane %v3110_v47, 5 }
 0x415   : > { %v5042_v35 = vpop.f32.mrf.mxu3  ;;  %v1911_v26 = vpop.xlane.xlu0 %1910  ;;  %v1266_v13 = vadd.f32 %v5010_v31, %v5058_v61  ;;  %v5818_v31 = vld [vmem:[#allocation122_spill] sm:$0xff] }
 0x416   : > { %v1188_v50 = vpop.f32.mrf.mxu2  ;;  %v1964_v7 = vmax.f32 %v1911_v26, 0.0 }
 0x417   : > { %v1189_v11 = vadd.f32 %v1188_v50, %v4806_v57 }
 0x418   : > { %v2006_v38 = vmul.f32 %v1964_v7, %v1113_v0  ;;  %v3111_v7 = vld [vmem:[%s3351_s23 + $0x80] sm:$0xff] }
 0x419   : > { %v2075_v28 = vmul.f32 %v3109_v46, %v1189_v11 }
 0x41a   : > { %v5049_v51 = vadd.f32 %v2006_v38, %v4504_v2  ;;  %2921 = vmatmul.msk.bf16.gmra.mxu3 %vm622_vm0, %v5684_v14  ;;  %v5814_v2 = vld [vmem:[#allocation82_spill] sm:$0xff] }
 0x41b   : > { %2906 = vmatmul.msk.bf16.gmra.mxu2 %vm622_vm0, %v5774_v10  ;;  %2132 = vadd.xlane.f32.xlu0 %v2075_v28  ;;  %v1115_v12 = vadd.f32 %v5814_v2, %v4422_v20  ;;  %v5816_v28 = vld [vmem:[#allocation120_spill] sm:$0xff] }
 0x41c   : > { %5813 = vst [vmem:[#allocation118_spill] sm:$0xff] %v5049_v51 }
 0x41d   : > { %v5060_v56 = vpop.f32.mrf.mxu3  ;;  %v1913_v29 = vpop.xlane.xlu1 %1912 }
 0x41e   : > { %v1191_v63 = vpop.f32.mrf.mxu2  ;;  %v1965_v22 = vmax.f32 %v1913_v29, 0.0 }
 0x41f   : > { %v1192_v14 = vadd.f32 %v1191_v63, %v4806_v57  ;;  %v2103_v26 = vpop.xlane.xlu0 %2102  ;;  %v5817_v63 = vld [vmem:[#allocation85_spill] sm:$0xff] }
 0x420   : > { %v2007_v0 = vmul.f32 %v1965_v22, %v1115_v12  ;;  %v2186_v50 = vmax.f32 %v2103_v26, 0.0  ;;  %v1118_v51 = vadd.f32 %v5817_v63, %v4422_v20  ;;  %v5819_v63 = vld [vmem:[#allocation14_spill] sm:$0xff] }
 0x421   : > { %v2076_v11 = vmul.f32 %v3111_v7, %v1192_v14 }
 0x422   : > { %v5069_v38 = vadd.f32 %v2007_v0, %v4526_v52  ;;  %v2228_v46 = vmul.f32 %v2186_v50, %v1266_v13  ;;  %v1268_v52 = vadd.f32 %v1267_v36, %v5058_v61  ;;  %v5821_v36 = vld [vmem:[#allocation121_spill] sm:$0xff] }
 0x423   : > { %2134 = vadd.xlane.f32.xlu1 %v2076_v11 }
 0x424   : > { %5815 = vst [vmem:[#allocation111_spill] sm:$0xff] %v5069_v38  ;;  %v2270_v47 = vadd.f32 %v2228_v46, %v5816_v28  ;;  %v3112_v46 = vld [vmem:[%s3351_s23 + $0x88] sm:$0xff] }
 0x425   : > { %v5072_v29 = vpop.f32.mrf.mxu3  ;;  %v1915_v2 = vpop.xlane.xlu2 %1914 }
 0x426   : > { %v2522_v12 = vadd.f32 %v5818_v31, %v2270_v47  ;;  %v1193_v22 = vpop.f32.mrf.mxu2  ;;  %v1966_v26 = vmax.f32 %v1915_v2, 0.0  ;;  %v2105_v14 = vpop.xlane.xlu1 %2104 }
 0x427   : > { %v1194_v13 = vadd.f32 %v1193_v22, %v4806_v57  ;;  %v2187_v0 = vmax.f32 %v2105_v14, 0.0 }
 0x428   : > { %v2564_v50 = vmax.f32 %v2522_v12, 0.0  ;;  %v2008_v7 = vmul.f32 %v1966_v26, %v1118_v51  ;;  %v5822_v51 = vld [vmem:[#allocation124_spill] sm:$0xff]  ;;  %v1271_v26 = vadd.f32 %v5033_v42, %v5058_v61  ;;  %v5825_v42 = vld [vmem:[#allocation126_spill] sm:$0xff] }
 0x429   : > { %v2229_v11 = vmul.f32 %v2187_v0, %v1268_v52  ;;  %v2077_v28 = vmul.f32 %v3112_v46, %v1194_v13 }
 0x42a   : > { %2606 = vst [vmem:[%s5082_s25] sm:$0xff] %v2564_v50  ;;  %v5086_v47 = vadd.f32 %v2008_v7, %v5819_v63  ;;  %2922 = vmatmul.msk.bf16.gmra.mxu3 %vm622_vm0, %v5702_v16  ;;  %v5823_v50 = vld [vmem:[#allocation88_spill] sm:$0xff] }
 0x42b   : > { %v2271_v2 = vadd.f32 %v2229_v11, %v5821_v36  ;;  %2907 = vmatmul.msk.bf16.gmra.mxu2 %vm622_vm0, %v3752_v18  ;;  %2136 = vadd.xlane.f32.xlu2 %v2077_v28  ;;  %v1120_v7 = vadd.f32 %v5823_v50, %v4422_v20  ;;  %v3113_v28 = vld [vmem:[%s3351_s23 + $0x90] sm:$0xff]  ;;  %v5824_v36 = vld [vmem:[#allocation123_spill] sm:$0xff] }
 0x42c   : > { %5820 = vst [vmem:[#allocation70_spill] sm:$0xff] %v5086_v47 }
 0x42d   : > { %v2523_v31 = vadd.f32 %v5822_v51, %v2271_v2  ;;  %v5094_v12 = vpop.f32.mrf.mxu3  ;;  %v2107_v22 = vpop.xlane.xlu2 %2106 }
 0x42e   : > { %v1196_v14 = vpop.f32.mrf.mxu2  ;;  %v2188_v52 = vmax.f32 %v2107_v22, 0.0 }
 0x42f   : > { %v2565_v13 = vmax.f32 %v2523_v31, 0.0  ;;  %v1197_v16 = vadd.f32 %v1196_v14, %v4806_v57  ;;  %v1917_v0 = vpop.xlane.xlu0 %1916  ;;  %v5826_v31 = vld [vmem:[#allocation69_spill] sm:$0xff] }
 0x430   : > { %v2230_v11 = vmul.f32 %v2188_v52, %v1271_v26  ;;  %v1967_v46 = vmax.f32 %v1917_v0, 0.0  ;;  %v5827_v26 = vld [vmem:[#allocation91_spill] sm:$0xff] }
 0x431   : > { %2607 = vst [vmem:[%s5082_s25 + $0x8] sm:$0xff] %v2565_v13  ;;  %v2078_v63 = vmul.f32 %v3113_v28, %v1197_v16  ;;  %v1123_v52 = vadd.f32 %v5827_v26, %v4422_v20  ;;  %v5830_v26 = vld [vmem:[#allocation95_spill] sm:$0xff] }
 0x432   : > { %v2272_v2 = vadd.f32 %v2230_v11, %v5824_v36  ;;  %v2009_v51 = vmul.f32 %v1967_v46, %v1120_v7  ;;  %v1273_v7 = vadd.f32 %v5042_v35, %v5058_v61 }
 0x433   : > { %2138 = vadd.xlane.f32.xlu0 %v2078_v63  ;;  %v3114_v63 = vld [vmem:[%s3351_s23 + $0x98] sm:$0xff] }
 0x434   : > { %v2524_v22 = vadd.f32 %v5825_v42, %v2272_v2  ;;  %v5106_v47 = vadd.f32 %v2009_v51, %v5826_v31  ;;  %v5828_v2 = vld [vmem:[#allocation9_spill] sm:$0xff] }
 0x435   : > { %v5108_v14 = vpop.f32.mrf.mxu3  ;;  %v1919_v38 = vpop.xlane.xlu1 %1918 }
 0x436   : > { %v2566_v13 = vmax.f32 %v2524_v22, 0.0  ;;  %v1198_v0 = vpop.f32.mrf.mxu2  ;;  %v1968_v50 = vmax.f32 %v1919_v38, 0.0  ;;  %v5829_v38 = vld [vmem:[#allocation125_spill] sm:$0xff] }
 0x437   : > { %v1199_v16 = vadd.f32 %v1198_v0, %v4806_v57  ;;  %v2109_v11 = vpop.xlane.xlu0 %2108 }
 0x438   : > { %2608 = vst [vmem:[%s5082_s25 + $0x10] sm:$0xff] %v2566_v13  ;;  %v2010_v46 = vmul.f32 %v1968_v50, %v1123_v52  ;;  %v2189_v28 = vmax.f32 %v2109_v11, 0.0  ;;  %v1125_v52 = vadd.f32 %v5830_v26, %v4422_v20  ;;  %v5831_v13 = vld [vmem:[#allocation25_spill] sm:$0xff] }
 0x439   : > { %v2079_v36 = vmul.f32 %v3114_v63, %v1199_v16 }
 0x43a   : > { %v5118_v51 = vadd.f32 %v2010_v46, %v5828_v2  ;;  %v2231_v42 = vmul.f32 %v2189_v28, %v1273_v7  ;;  %2923 = vmatmul.msk.bf16.gmra.mxu3 %vm622_vm0, %v5719_v32  ;;  %v1276_v7 = vadd.f32 %v5060_v56, %v5058_v61  ;;  %v1278_v56 = vadd.f32 %v5072_v29, %v5058_v61 }
 0x43b   : > { %2908 = vmatmul.msk.bf16.gmra.mxu2 %vm622_vm0, %v3771_v27  ;;  %2140 = vadd.xlane.f32.xlu1 %v2079_v36  ;;  %v3115_v36 = vld [vmem:[%s3351_s23 + $0xa0] sm:$0xff] }
 0x43c   : > { %v2273_v35 = vadd.f32 %v2231_v42, %v5829_v38  ;;  %v5832_v42 = vld [vmem:[#allocation90_spill] sm:$0xff] }
 0x43d   : > { %v5125_v22 = vpop.f32.mrf.mxu3  ;;  %v1921_v31 = vpop.xlane.xlu2 %1920 }
 0x43e   : > { %v2525_v0 = vadd.f32 %v5831_v13, %v2273_v35  ;;  %v1201_v50 = vpop.f32.mrf.mxu2  ;;  %v1969_v16 = vmax.f32 %v1921_v31, 0.0  ;;  %v5834_v35 = vld [vmem:[#allocation8_spill] sm:$0xff] }
 0x43f   : > { %v1202_v32 = vadd.f32 %v1201_v50, %v4806_v57  ;;  %v2111_v11 = vpop.xlane.xlu1 %2110 }
 0x440   : > { %v2567_v46 = vmax.f32 %v2525_v0, 0.0  ;;  %v2011_v28 = vmul.f32 %v1969_v16, %v1125_v52  ;;  %v2190_v63 = vmax.f32 %v2111_v11, 0.0  ;;  %v5835_v52 = vld [vmem:[#allocation26_spill] sm:$0xff] }
 0x441   : > { %v2080_v2 = vmul.f32 %v3115_v36, %v1202_v32 }
 0x442   : > { %2609 = vst [vmem:[%s5082_s25 + $0x18] sm:$0xff] %v2567_v46  ;;  %v5136_v38 = vadd.f32 %v2011_v28, %v5832_v42  ;;  %v2232_v26 = vmul.f32 %v2190_v63, %v1276_v7  ;;  %v5836_v46 = vld [vmem:[#allocation99_spill] sm:$0xff] }
 0x443   : > { %2142 = vadd.xlane.f32.xlu2 %v2080_v2  ;;  %v1128_v28 = vadd.f32 %v5836_v46, %v4422_v20 }
 0x444   : > { %5833 = vst [vmem:[#allocation11_spill] sm:$0xff] %v5136_v38  ;;  %v2274_v31 = vadd.f32 %v2232_v26, %v5834_v35  ;;  %v3116_v26 = vld [vmem:[%s3351_s23 + $0xa8] sm:$0xff]  ;;  %v5837_v38 = vld [vmem:[#allocation86_spill] sm:$0xff] }
 0x445   : > { %v5139_v13 = vpop.f32.mrf.mxu3  ;;  %v2113_v50 = vpop.xlane.xlu2 %2112 }
 0x446   : > { %v2526_v0 = vadd.f32 %v5835_v52, %v2274_v31  ;;  %v1203_v16 = vpop.f32.mrf.mxu2  ;;  %v2191_v32 = vmax.f32 %v2113_v50, 0.0  ;;  %v1923_v11 = vpop.xlane.xlu0 %1922  ;;  %v5838_v31 = vld [vmem:[#allocation41_spill] sm:$0xff] }
 0x447   : > { %v1204_v7 = vadd.f32 %v1203_v16, %v4806_v57  ;;  %v1970_v63 = vmax.f32 %v1923_v11, 0.0  ;;  %v5839_v52 = vld [vmem:[#allocation17_spill] sm:$0xff] }
 0x448   : > { %v2568_v36 = vmax.f32 %v2526_v0, 0.0  ;;  %v2233_v2 = vmul.f32 %v2191_v32, %v1278_v56  ;;  %v5840_v32 = vld [vmem:[#allocation102_spill] sm:$0xff] }
 0x449   : > { %v2012_v42 = vmul.f32 %v1970_v63, %v1128_v28  ;;  %v2081_v35 = vmul.f32 %v3116_v26, %v1204_v7  ;;  %v1130_v11 = vadd.f32 %v5840_v32, %v4422_v20  ;;  %v1281_v63 = vadd.f32 %v5094_v12, %v5058_v61  ;;  %v5842_v32 = vld [vmem:[#allocation106_spill] sm:$0xff] }
 0x44a   : > { %2610 = vst [vmem:[%s5082_s25 + $0x20] sm:$0xff] %v2568_v36  ;;  %v2275_v29 = vadd.f32 %v2233_v2, %v5837_v38  ;;  %2924 = vmatmul.msk.bf16.gmra.mxu3 %vm622_vm0, %v5736_v45  ;;  %v1133_v12 = vadd.f32 %v5842_v32, %v4422_v20 }
 0x44b   : > { %v5153_v50 = vadd.f32 %v2012_v42, %v5838_v31  ;;  %2909 = vmatmul.msk.bf16.gmra.mxu2 %vm622_vm0, %v3791_v30  ;;  %2144 = vadd.xlane.f32.xlu0 %v2081_v35  ;;  %v3117_v42 = vld [vmem:[%s3351_s23 + $0xb0] sm:$0xff] }
 0x44c   : > { %v2527_v56 = vadd.f32 %v5839_v52, %v2275_v29  ;;  %v5841_v31 = vld [vmem:[#allocation48_spill] sm:$0xff] }
 0x44d   : > { %v5158_v0 = vpop.f32.mrf.mxu3  ;;  %v1925_v16 = vpop.xlane.xlu1 %1924 }
 0x44e   : > { %v2569_v38 = vmax.f32 %v2527_v56, 0.0  ;;  %v1206_v46 = vpop.f32.mrf.mxu2  ;;  %v1971_v28 = vmax.f32 %v1925_v16, 0.0 }
 0x44f   : > { %v1207_v45 = vadd.f32 %v1206_v46, %v4806_v57  ;;  %v2115_v7 = vpop.xlane.xlu0 %2114 }
 0x450   : > { %2611 = vst [vmem:[%s5082_s25 + $0x28] sm:$0xff] %v2569_v38  ;;  %v2013_v36 = vmul.f32 %v1971_v28, %v1130_v11  ;;  %v2192_v2 = vmax.f32 %v2115_v7, 0.0  ;;  %v5843_v38 = vld [vmem:[#allocation93_spill] sm:$0xff] }
 0x451   : > { %v2082_v26 = vmul.f32 %v3117_v42, %v1207_v45 }
 0x452   : > { %v5168_v35 = vadd.f32 %v2013_v36, %v4684_v60  ;;  %v2234_v29 = vmul.f32 %v2192_v2, %v1281_v63  ;;  %v1283_v60 = vadd.f32 %v5108_v14, %v5058_v61  ;;  %v5845_v14 = vld [vmem:[#allocation28_spill] sm:$0xff] }
 0x453   : > { %2146 = vadd.xlane.f32.xlu1 %v2082_v26  ;;  %v3118_v26 = vld [vmem:[%s3351_s23 + $0xb8] sm:$0xff] }
 0x454   : > { %v2276_v52 = vadd.f32 %v2234_v29, %v5841_v31 }
 0x455   : > { %v5171_v56 = vpop.f32.mrf.mxu3  ;;  %v1927_v16 = vpop.xlane.xlu2 %1926 }
 0x456   : > { %v2528_v11 = vadd.f32 %v5843_v38, %v2276_v52  ;;  %v1208_v46 = vpop.f32.mrf.mxu2  ;;  %v1972_v28 = vmax.f32 %v1927_v16, 0.0  ;;  %v2117_v45 = vpop.xlane.xlu1 %2116  ;;  %v5844_v52 = vld [vmem:[#allocation27_spill] sm:$0xff] }
 0x457   : > { %v1209_v7 = vadd.f32 %v1208_v46, %v4806_v57  ;;  %v2193_v63 = vmax.f32 %v2117_v45, 0.0 }
 0x458   : > { %v2570_v36 = vmax.f32 %v2528_v11, 0.0  ;;  %v2014_v2 = vmul.f32 %v1972_v28, %v1133_v12 }
 0x459   : > { %v2235_v42 = vmul.f32 %v2193_v63, %v1283_v60  ;;  %v2083_v29 = vmul.f32 %v3118_v26, %v1209_v7  ;;  %v5846_v60 = vld [vmem:[#allocation110_spill] sm:$0xff]  ;;  %v5847_v26 = vld [vmem:[#allocation52_spill] sm:$0xff] }
 0x45a   : > { %2612 = vst [vmem:[%s5082_s25 + $0x30] sm:$0xff] %v2570_v36  ;;  %v5182_v31 = vadd.f32 %v2014_v2, %v4714_v17  ;;  %2925 = vmatmul.msk.bf16.gmra.mxu3 %vm622_vm0, %v5753_v41  ;;  %v1286_v17 = vadd.f32 %v5125_v22, %v5058_v61  ;;  %v1135_v7 = vadd.f32 %v5846_v60, %v4422_v20  ;;  %v3119_v2 = vld [vmem:[%s3351_s23 + $0xc0] sm:$0xff] }
 0x45b   : > { %v2277_v16 = vadd.f32 %v2235_v42, %v5844_v52  ;;  %2910 = vmatmul.msk.bf16.gmra.mxu2 %vm622_vm0, %v3811_v23  ;;  %2148 = vadd.xlane.f32.xlu2 %v2083_v29  ;;  %v1288_v60 = vadd.f32 %v5139_v13, %v5058_v61  ;;  %v5850_v13 = vld [vmem:[#allocation119_spill] sm:$0xff] }
 0x45d   : > { %v2529_v32 = vadd.f32 %v5845_v14, %v2277_v16  ;;  %v5190_v12 = vpop.f32.mrf.mxu3  ;;  %v2119_v38 = vpop.xlane.xlu2 %2118 }
 0x45e   : > { %v1211_v11 = vpop.f32.mrf.mxu2  ;;  %v2194_v46 = vmax.f32 %v2119_v38, 0.0  ;;  %v5848_v38 = vld [vmem:[#allocation114_spill] sm:$0xff] }
 0x45f   : > { %v2571_v28 = vmax.f32 %v2529_v32, 0.0  ;;  %v1212_v41 = vadd.f32 %v1211_v11, %v4806_v57  ;;  %v1929_v45 = vpop.xlane.xlu0 %1928 }
 0x460   : > { %v2236_v63 = vmul.f32 %v2194_v46, %v1286_v17  ;;  %v1973_v36 = vmax.f32 %v1929_v45, 0.0  ;;  %v1138_v17 = vadd.f32 %v5848_v38, %v4422_v20 }
 0x461   : > { %2613 = vst [vmem:[%s5082_s25 + $0x38] sm:$0xff] %v2571_v28  ;;  %v2084_v42 = vmul.f32 %v3119_v2, %v1212_v41 }
 0x462   : > { %v2278_v29 = vadd.f32 %v2236_v63, %v5847_v26  ;;  %v2015_v52 = vmul.f32 %v1973_v36, %v1135_v7 }
 0x463   : > { %2150 = vadd.xlane.f32.xlu0 %v2084_v42  ;;  %v5849_v42 = vld [vmem:[#allocation19_spill] sm:$0xff] }
 0x464   : > { %v2530_v22 = vadd.f32 %v4692_v39, %v2278_v29  ;;  %v5202_v16 = vadd.f32 %v2015_v52, %v4735_v62  ;;  %v3120_v62 = vld [vmem:[%s3351_s23 + $0xc8] sm:$0xff] }
 0x465   : > { %v5204_v14 = vpop.f32.mrf.mxu3  ;;  %v1931_v32 = vpop.xlane.xlu1 %1930 }
 0x466   : > { %v2572_v11 = vmax.f32 %v2530_v22, 0.0  ;;  %v1213_v46 = vpop.f32.mrf.mxu2  ;;  %v1974_v28 = vmax.f32 %v1931_v32, 0.0  ;;  %v1140_v22 = vadd.f32 %v5850_v13, %v4422_v20  ;;  %v5851_v32 = vld [vmem:[#allocation98_spill] sm:$0xff] }
 0x467   : > { %v1214_v41 = vadd.f32 %v1213_v46, %v4806_v57  ;;  %v2121_v45 = vpop.xlane.xlu0 %2120 }
 0x468   : > { %2614 = vst [vmem:[%s5082_s25 + $0x40] sm:$0xff] %v2572_v11  ;;  %v2016_v39 = vmul.f32 %v1974_v28, %v1138_v17  ;;  %v2195_v7 = vmax.f32 %v2121_v45, 0.0  ;;  %v1291_v28 = vadd.f32 %v5158_v0, %v5058_v61  ;;  %v1293_v0 = vadd.f32 %v5171_v56, %v5058_v61 }
 0x469   : > { %v2085_v63 = vmul.f32 %v3120_v62, %v1214_v41  ;;  %v5852_v62 = vld [vmem:[#allocation29_spill] sm:$0xff] }
 0x46a   : > { %v5214_v36 = vadd.f32 %v2016_v39, %v4760_v40  ;;  %v2237_v2 = vmul.f32 %v2195_v7, %v1288_v60  ;;  %2926 = vmatmul.msk.bf16.gmra.mxu3 %vm622_vm0, %v5765_v34  ;;  %v3121_v60 = vld [vmem:[%s3351_s23 + $0xd0] sm:$0xff] }
 0x46b   : > { %2152 = vadd.xlane.f32.xlu1 %v2085_v63 }
 0x46c   : > { %v2279_v26 = vadd.f32 %v2237_v2, %v5849_v42 }
 0x46d   : > { %v1300_v29 = vpop.f32.mrf.mxu3  ;;  %v1933_v52 = vpop.xlane.xlu2 %1932 }
 0x46e   : > { %v2531_v38 = vadd.f32 %v5851_v32, %v2279_v26  ;;  %v1216_v17 = vpop.f32.mrf.mxu2  ;;  %v1975_v11 = vmax.f32 %v1933_v52, 0.0  ;;  %v5853_v26 = vld [vmem:[#allocation40_spill] sm:$0xff] }
 0x46f   : > { %v1217_v40 = vadd.f32 %v1216_v17, %v4806_v57  ;;  %v2123_v46 = vpop.xlane.xlu1 %2122 }
 0x470   : > { %v2573_v34 = vmax.f32 %v2531_v38, 0.0  ;;  %v2017_v41 = vmul.f32 %v1975_v11, %v1140_v22  ;;  %v2196_v45 = vmax.f32 %v2123_v46, 0.0  ;;  %v3122_v46 = vld [vmem:[%s3351_s23 + $0xd8] sm:$0xff] }
 0x471   : > { %v2086_v39 = vmul.f32 %v3121_v60, %v1217_v40 }
 0x472   : > { %2615 = vst [vmem:[%s5082_s25 + $0x48] sm:$0xff] %v2573_v34  ;;  %v5228_v7 = vadd.f32 %v2017_v41, %v4779_v21  ;;  %v2238_v20 = vmul.f32 %v2196_v45, %v1291_v28  ;;  %v1296_v21 = vadd.f32 %v5190_v12, %v5058_v61  ;;  %v5854_v41 = vld [vmem:[#allocation59_spill] sm:$0xff]  ;;  %v5242_v45 = vpop.f32.mrf.mxu1  ;;  %v5855_v12 = vld [vmem:[#allocation100_spill] sm:$0xff] }
 0x473   : > { %2154 = vadd.xlane.f32.xlu2 %v2086_v39  ;;  %v5856_v39 = vld [vmem:[#allocation101_spill] sm:$0xff] }
 0x474   : > { %v2280_v63 = vadd.f32 %v2238_v20, %v5852_v62 }
 0x475   : > { %v1302_v2 = vpop.f32.mrf.mxu3  ;;  %v2125_v42 = vpop.xlane.xlu2 %2124 }
 0x476   : > { %v2532_v52 = vadd.f32 %v5853_v26, %v2280_v63  ;;  %v1218_v13 = vpop.f32.mrf.mxu2  ;;  %v2197_v22 = vmax.f32 %v2125_v42, 0.0  ;;  %v2127_v32 = vpop.xlane.xlu0 %2126 }
 0x477   : > { %v1219_v38 = vadd.f32 %v1218_v13, %v4806_v57  ;;  %v2198_v17 = vmax.f32 %v2127_v32, 0.0  ;;  %v3123_v32 = vld [vmem:[%s3351_s23 + $0xe0] sm:$0xff] }
 0x478   : > { %v2574_v11 = vmax.f32 %v2532_v52, 0.0  ;;  %v2239_v40 = vmul.f32 %v2197_v22, %v1293_v0  ;;  %v1298_v52 = vadd.f32 %v5204_v14, %v5058_v61 }
 0x479   : > { %v2087_v28 = vmul.f32 %v3122_v46, %v1219_v38  ;;  %v2240_v34 = vmul.f32 %v2198_v17, %v1296_v21  ;;  %v5857_v17 = vld [vmem:[#allocation20_spill] sm:$0xff] }
 0x47a   : > { %2616 = vst [vmem:[%s5082_s25 + $0x50] sm:$0xff] %v2574_v11  ;;  %v2281_v56 = vadd.f32 %v2239_v40, %v5854_v41  ;;  %2927 = vmatmul.msk.bf16.gmra.mxu3 %vm622_vm0, %v5774_v10  ;;  %v5254_v11 = vpop.f32.mrf.mxu1 }
 0x47b   : > { %v2282_v60 = vadd.f32 %v2240_v34, %v5855_v12  ;;  %2156 = vadd.xlane.f32.xlu0 %v2087_v28  ;;  %v1301_v34 = vadd.f32 %v1300_v29, %v5058_v61 }
 0x47c   : > { %v2533_v20 = vadd.f32 %v5856_v39, %v2281_v56 }
 0x47d   : > { %v2534_v62 = vadd.f32 %v4786_v53, %v2282_v60  ;;  %v1305_v63 = vpop.f32.mrf.mxu3  ;;  %v3124_v60 = vld [vmem:[%s3351_s23 + $0xe8] sm:$0xff] }
 0x47e   : > { %v2575_v42 = vmax.f32 %v2533_v20, 0.0  ;;  %v1221_v0 = vpop.f32.mrf.mxu2  ;;  %v2129_v26 = vpop.xlane.xlu1 %2128 }
 0x47f   : > { %v2576_v13 = vmax.f32 %v2534_v62, 0.0  ;;  %v1222_v10 = vadd.f32 %v1221_v0, %v4806_v57  ;;  %v2199_v22 = vmax.f32 %v2129_v26, 0.0  ;;  %v5858_v62 = vld [vmem:[#allocation65_spill] sm:$0xff] }
 0x480   : > { %2617 = vst [vmem:[%s5082_s25 + $0x58] sm:$0xff] %v2575_v42 }
 0x481   : > { %2618 = vst [vmem:[%s5082_s25 + $0x60] sm:$0xff] %v2576_v13  ;;  %v2088_v21 = vmul.f32 %v3123_v32, %v1222_v10  ;;  %v2241_v38 = vmul.f32 %v2199_v22, %v1298_v52  ;;  %v1303_v13 = vadd.f32 %v1302_v2, %v5058_v61  ;;  %v1306_v2 = vadd.f32 %v1305_v63, %v5058_v61 }
 0x482   : > { %v5265_v52 = vpop.f32.mrf.mxu1 }
 0x483   : > { %v2283_v53 = vadd.f32 %v2241_v38, %v5857_v17  ;;  %2158 = vadd.xlane.f32.xlu1 %v2088_v21  ;;  %v5859_v38 = vld [vmem:[#allocation103_spill] sm:$0xff] }
 0x485   : > { %v2535_v40 = vadd.f32 %v4808_v44, %v2283_v53  ;;  %v1307_v46 = vpop.f32.mrf.mxu3 }
 0x486   : > { %v1223_v14 = vpop.f32.mrf.mxu2  ;;  %v2131_v28 = vpop.xlane.xlu2 %2130 }
 0x487   : > { %v2577_v41 = vmax.f32 %v2535_v40, 0.0  ;;  %v1224_v56 = vadd.f32 %v1223_v14, %v4806_v57  ;;  %v2200_v12 = vmax.f32 %v2131_v28, 0.0 }
 0x489   : > { %2619 = vst [vmem:[%s5082_s25 + $0x68] sm:$0xff] %v2577_v41  ;;  %v2089_v39 = vmul.f32 %v3124_v60, %v1224_v56  ;;  %v2242_v20 = vmul.f32 %v2200_v12, %v1301_v34  ;;  %v3126_v60 = vld [vmem:[%s3351_s23 + $0xf8] sm:$0xff] }
 0x48a   : > { %2928 = vmatmul.msk.bf16.gmra.mxu3 %vm622_vm0, %v3752_v18  ;;  %v3125_v18 = vld [vmem:[%s3351_s23 + $0xf0] sm:$0xff]  ;;  %v5275_v12 = vpop.f32.mrf.mxu1 }
 0x48b   : > { %v2284_v44 = vadd.f32 %v2242_v20, %v4798_v5  ;;  %2160 = vadd.xlane.f32.xlu2 %v2089_v39 }
 0x48d   : > { %v2536_v42 = vadd.f32 %v5858_v62, %v2284_v44  ;;  %v1310_v0 = vpop.f32.mrf.mxu3 }
 0x48e   : > { %v1226_v29 = vpop.f32.mrf.mxu2  ;;  %v2133_v26 = vpop.xlane.xlu0 %2132 }
 0x48f   : > { %v2578_v10 = vmax.f32 %v2536_v42, 0.0  ;;  %v1227_v22 = vadd.f32 %v1226_v29, %v4806_v57  ;;  %v2201_v32 = vmax.f32 %v2133_v26, 0.0  ;;  %v1308_v29 = vadd.f32 %v1307_v46, %v5058_v61 }
 0x490   : > { %v1539_v46 = vadd.f32 %v5242_v45, %v4463_v54 }
 0x491   : > { %2620 = vst [vmem:[%s5082_s25 + $0x70] sm:$0xff] %v2578_v10  ;;  %v2090_v21 = vmul.f32 %v3125_v18, %v1227_v22  ;;  %v2243_v5 = vmul.f32 %v2201_v32, %v1303_v13  ;;  %v3127_v22 = vld [vmem:[%s3351_s23 + $0x100] sm:$0xff] }
 0x492   : > { %v5287_v18 = vpop.f32.mrf.mxu1 }
 0x493   : > { %v2285_v17 = vadd.f32 %v2243_v5, %v5859_v38  ;;  %2162 = vadd.xlane.f32.xlu0 %v2090_v21 }
 0x495   : > { %v2537_v53 = vadd.f32 %v4848_v24, %v2285_v17  ;;  %v1312_v40 = vpop.f32.mrf.mxu3  ;;  %v1311_v17 = vadd.f32 %v1310_v0, %v5058_v61 }
 0x496   : > { %v1228_v14 = vpop.f32.mrf.mxu2  ;;  %v2135_v28 = vpop.xlane.xlu1 %2134 }
 0x497   : > { %v2579_v34 = vmax.f32 %v2537_v53, 0.0  ;;  %v1229_v41 = vadd.f32 %v1228_v14, %v4806_v57  ;;  %v2202_v56 = vmax.f32 %v2135_v28, 0.0 }
 0x499   : > { %2621 = vst [vmem:[%s5082_s25 + $0x78] sm:$0xff] %v2579_v34  ;;  %v2091_v39 = vmul.f32 %v3126_v60, %v1229_v41  ;;  %v2244_v20 = vmul.f32 %v2202_v56, %v1306_v2  ;;  %v5860_v2 = vld [vmem:[#allocation84_spill] sm:$0xff]  ;;  %v3128_v41 = vld [vmem:[%s3351_s23 + $0x108] sm:$0xff] }
 0x49a   : > { %2929 = vmatmul.msk.bf16.gmra.mxu3 %vm622_vm0, %v3771_v27  ;;  %v2456_v34 = vmax.f32 %v5860_v2, 0.0  ;;  %v5301_v0 = vpop.f32.mrf.mxu1 }
 0x49b   : > { %v2286_v24 = vadd.f32 %v2244_v20, %v4840_v55  ;;  %2164 = vadd.xlane.f32.xlu1 %v2091_v39  ;;  %v1541_v20 = vadd.f32 %v5254_v11, %v4463_v54 }
 0x49d   : > { %v2538_v63 = vadd.f32 %v4867_v4, %v2286_v24  ;;  %v1315_v44 = vpop.f32.mrf.mxu3 }
 0x49e   : > { %v1231_v62 = vpop.f32.mrf.mxu2  ;;  %v2137_v42 = vpop.xlane.xlu2 %2136 }
 0x49f   : > { %v2580_v26 = vmax.f32 %v2538_v63, 0.0  ;;  %v1232_v13 = vadd.f32 %v1231_v62, %v4806_v57  ;;  %v2203_v10 = vmax.f32 %v2137_v42, 0.0  ;;  %v1313_v62 = vadd.f32 %v1312_v40, %v5058_v61 }
 0x4a0   : > { %v1544_v40 = vadd.f32 %v5265_v52, %v4463_v54 }
 0x4a1   : > { %2622 = vst [vmem:[%s5082_s25 + $0x80] sm:$0xff] %v2580_v26  ;;  %v2092_v32 = vmul.f32 %v3127_v22, %v1232_v13  ;;  %v2245_v27 = vmul.f32 %v2203_v10, %v1308_v29  ;;  %v5861_v26 = vld [vmem:[#allocation72_spill] sm:$0xff] }
 0x4a2   : > { %v2457_v13 = vmax.f32 %v5861_v26, 0.0 }
 0x4a3   : > { %v2287_v55 = vadd.f32 %v2245_v27, %v4857_v8  ;;  %2166 = vadd.xlane.f32.xlu2 %v2092_v32 }
 0x4a4   : > { %v2499_v32 = vmul.f32 %v2457_v13, %v1541_v20 }
 0x4a5   : > { %v2539_v4 = vadd.f32 %v4888_v15, %v2287_v55  ;;  %v1317_v21 = vpop.f32.mrf.mxu3  ;;  %v2498_v15 = vmul.f32 %v2456_v34, %v1539_v46 }
 0x4a6   : > { %v1233_v5 = vpop.f32.mrf.mxu2  ;;  %v2139_v38 = vpop.xlane.xlu0 %2138  ;;  %v1318_v20 = vadd.f32 %v1317_v21, %v5058_v61 }
 0x4a7   : > { %v2581_v53 = vmax.f32 %v2539_v4, 0.0  ;;  %v1234_v14 = vadd.f32 %v1233_v5, %v4806_v57  ;;  %v2204_v28 = vmax.f32 %v2139_v38, 0.0  ;;  %v5313_v5 = vpop.f32.mrf.mxu1  ;;  %v1316_v38 = vadd.f32 %v1315_v44, %v5058_v61 }
 0x4a9   : > { %2623 = vst [vmem:[%s5082_s25 + $0x88] sm:$0xff] %v2581_v53  ;;  %v2093_v8 = vmul.f32 %v3128_v41, %v1234_v14  ;;  %v2246_v56 = vmul.f32 %v2204_v28, %v1311_v17  ;;  %v5862_v28 = vld [vmem:[#allocation38_spill] sm:$0xff] }
 0x4aa   : > { %2930 = vmatmul.msk.bf16.gmra.mxu3 %vm622_vm0, %v3791_v30  ;;  %v2458_v2 = vmax.f32 %v5862_v28, 0.0 }
 0x4ab   : > { %v2288_v45 = vadd.f32 %v2246_v56, %v4880_v48  ;;  %2168 = vadd.xlane.f32.xlu0 %v2093_v8  ;;  %v3129_v48 = vld [vmem:[%s3351_s23 + $0x110] sm:$0xff] }
 0x4ac   : > { %v2500_v52 = vmul.f32 %v2458_v2, %v1544_v40 }
 0x4ad   : > { %v2540_v60 = vadd.f32 %v2498_v15, %v2288_v45  ;;  %v1320_v39 = vpop.f32.mrf.mxu3  ;;  %v1546_v15 = vadd.f32 %v5275_v12, %v4463_v54 }
 0x4ae   : > { %v1236_v24 = vpop.f32.mrf.mxu2  ;;  %v2141_v63 = vpop.xlane.xlu1 %2140 }
 0x4af   : > { %v2582_v42 = vmax.f32 %v2540_v60, 0.0  ;;  %v1237_v29 = vadd.f32 %v1236_v24, %v4806_v57  ;;  %v2205_v30 = vmax.f32 %v2141_v63, 0.0 }
 0x4b1   : > { %2624 = vst [vmem:[%s5082_s25 + $0x90] sm:$0xff] %v2582_v42  ;;  %v2094_v10 = vmul.f32 %v3129_v48, %v1237_v29  ;;  %v2247_v22 = vmul.f32 %v2205_v30, %v1313_v62  ;;  %v5863_v42 = vld [vmem:[#allocation92_spill] sm:$0xff]  ;;  %v5328_v29 = vpop.f32.mrf.mxu1 }
 0x4b3   : > { %v2289_v27 = vadd.f32 %v2247_v22, %v4897_v33  ;;  %2170 = vadd.xlane.f32.xlu1 %v2094_v10  ;;  %v3130_v33 = vld [vmem:[%s3351_s23 + $0x118] sm:$0xff]  ;;  %v1549_v10 = vadd.f32 %v5287_v18, %v4463_v54 }
 0x4b5   : > { %v2541_v11 = vadd.f32 %v2499_v32, %v2289_v27  ;;  %v1322_v55 = vpop.f32.mrf.mxu3  ;;  %v1321_v27 = vadd.f32 %v1320_v39, %v5058_v61 }
 0x4b6   : > { %v1238_v4 = vpop.f32.mrf.mxu2  ;;  %v2143_v46 = vpop.xlane.xlu2 %2142 }
 0x4b7   : > { %v2583_v17 = vmax.f32 %v2541_v11, 0.0  ;;  %v1239_v53 = vadd.f32 %v1238_v4, %v4806_v57  ;;  %v2206_v14 = vmax.f32 %v2143_v46, 0.0  ;;  %v5864_v46 = vld [vmem:[#allocation56_spill] sm:$0xff] }
 0x4b9   : > { %2625 = vst [vmem:[%s5082_s25 + $0x98] sm:$0xff] %v2583_v17  ;;  %v2095_v34 = vmul.f32 %v3130_v33, %v1239_v53  ;;  %v2248_v41 = vmul.f32 %v2206_v14, %v1316_v38  ;;  %v2460_v38 = vmax.f32 %v5864_v46, 0.0  ;;  %v3132_v17 = vld [vmem:[%s3351_s23 + $0x128] sm:$0xff]  ;;  %v5340_v28 = vpop.f32.mrf.mxu1  ;;  %v1551_v33 = vadd.f32 %v5301_v0, %v4463_v54  ;;  %v1476_v0 = vpop.f32.mrf.mxu0 }
 0x4ba   : > { %2931 = vmatmul.msk.bf16.gmra.mxu3 %vm622_vm0, %v3811_v23  ;;  %v2459_v23 = vmax.f32 %v5863_v42, 0.0 }
 0x4bb   : > { %v2290_v8 = vadd.f32 %v2248_v41, %v4916_v37  ;;  %2172 = vadd.xlane.f32.xlu2 %v2095_v34  ;;  %v3131_v37 = vld [vmem:[%s3351_s23 + $0x120] sm:$0xff]  ;;  %v2502_v14 = vmul.f32 %v2460_v38, %v1549_v10  ;;  %v1556_v38 = vadd.f32 %v5328_v29, %v4463_v54 }
 0x4bc   : > { %v2501_v13 = vmul.f32 %v2459_v23, %v1546_v15 }
 0x4bd   : > { %v2542_v44 = vadd.f32 %v2500_v52, %v2290_v8  ;;  %v1325_v56 = vpop.f32.mrf.mxu3  ;;  %v1323_v52 = vadd.f32 %v1322_v55, %v5058_v61 }
 0x4be   : > { %v1241_v45 = vpop.f32.mrf.mxu2  ;;  %v2145_v60 = vpop.xlane.xlu0 %2144 }
 0x4bf   : > { %v2584_v24 = vmax.f32 %v2542_v44, 0.0  ;;  %v1242_v63 = vadd.f32 %v1241_v45, %v4806_v57  ;;  %v2207_v62 = vmax.f32 %v2145_v60, 0.0  ;;  %v5865_v45 = vld [vmem:[#allocation46_spill] sm:$0xff] }
 0x4c0   : > { %v2461_v60 = vmax.f32 %v5865_v45, 0.0 }
 0x4c1   : > { %2626 = vst [vmem:[%s5082_s25 + $0xa0] sm:$0xff] %v2584_v24  ;;  %v2096_v30 = vmul.f32 %v3131_v37, %v1242_v63  ;;  %v2249_v26 = vmul.f32 %v2207_v62, %v1318_v20  ;;  %v3133_v20 = vld [vmem:[%s3351_s23 + $0x130] sm:$0xff]  ;;  %v5351_v42 = vpop.f32.mrf.mxu1  ;;  %v1554_v37 = vadd.f32 %v5313_v5, %v4463_v54 }
 0x4c2   : > { %v2503_v63 = vmul.f32 %v2461_v60, %v1551_v33  ;;  %v5867_v5 = vld [vmem:[#allocation34_spill] sm:$0xff]  ;;  %v3134_v33 = vld [vmem:[%s3351_s23 + $0x138] sm:$0xff] }
 0x4c3   : > { %v2291_v12 = vadd.f32 %v2249_v26, %v4929_v49  ;;  %2174 = vadd.xlane.f32.xlu0 %v2096_v30 }
 0x4c5   : > { %v2543_v48 = vadd.f32 %v2501_v13, %v2291_v12  ;;  %v1327_v21 = vpop.f32.mrf.mxu3  ;;  %v1326_v13 = vadd.f32 %v1325_v56, %v5058_v61 }
 0x4c6   : > { %v1243_v22 = vpop.f32.mrf.mxu2  ;;  %v2147_v32 = vpop.xlane.xlu1 %2146 }
 0x4c7   : > { %v2585_v11 = vmax.f32 %v2543_v48, 0.0  ;;  %v1244_v40 = vadd.f32 %v1243_v22, %v4806_v57  ;;  %v2208_v4 = vmax.f32 %v2147_v32, 0.0  ;;  %v5866_v22 = vld [vmem:[#allocation97_spill] sm:$0xff] }
 0x4c9   : > { %2627 = vst [vmem:[%s5082_s25 + $0xa8] sm:$0xff] %v2585_v11  ;;  %v2097_v53 = vmul.f32 %v3132_v17, %v1244_v40  ;;  %v2250_v49 = vmul.f32 %v2208_v4, %v1321_v27  ;;  %v1477_v4 = vadd.f32 %v1476_v0, %v5867_v5 }
 0x4cb   : > { %v2292_v18 = vadd.f32 %v2250_v49, %v4948_v3  ;;  %2176 = vadd.xlane.f32.xlu1 %v2097_v53  ;;  %v1328_v49 = vadd.f32 %v1327_v21, %v5058_v61 }
 0x4cd   : > { %v2544_v2 = vadd.f32 %v2502_v14, %v2292_v18  ;;  %v1330_v39 = vpop.f32.mrf.mxu3 }
 0x4ce   : > { %v1246_v34 = vpop.f32.mrf.mxu2  ;;  %v2149_v41 = vpop.xlane.xlu2 %2148 }
 0x4cf   : > { %v2586_v8 = vmax.f32 %v2544_v2, 0.0  ;;  %v1247_v44 = vadd.f32 %v1246_v34, %v4806_v57  ;;  %v2209_v15 = vmax.f32 %v2149_v41, 0.0  ;;  %v1479_v2 = vpop.f32.mrf.mxu0  ;;  %v2351_v34 = vmul.f32 %v3134_v33, %v1477_v4  ;;  %v5868_v41 = vld [vmem:[#allocation30_spill] sm:$0xff] }
 0x4d0   : > { %v1480_v21 = vadd.f32 %v1479_v2, %v5867_v5 }
 0x4d1   : > { %2628 = vst [vmem:[%s5082_s25 + $0xb0] sm:$0xff] %v2586_v8  ;;  %v2098_v24 = vmul.f32 %v3133_v20, %v1247_v44  ;;  %v2251_v3 = vmul.f32 %v2209_v15, %v1323_v52  ;;  %v2463_v52 = vmax.f32 %v5868_v41, 0.0  ;;  %v3135_v8 = vld [vmem:[%s3351_s23 + $0x140] sm:$0xff]  ;;  %v1559_v20 = vadd.f32 %v5340_v28, %v4463_v54 }
 0x4d3   : > { %v2293_v62 = vadd.f32 %v2251_v3, %v4961_v59  ;;  %2178 = vadd.xlane.f32.xlu2 %v2098_v24  ;;  %v2462_v59 = vmax.f32 %v5866_v22, 0.0  ;;  %v2505_v45 = vmul.f32 %v2463_v52, %v1556_v38  ;;  %v5870_v38 = vld [vmem:[#allocation44_spill] sm:$0xff] }
 0x4d5   : > { %v2545_v23 = vadd.f32 %v2503_v63, %v2293_v62  ;;  %v5353_v55 = vpop.f32.mrf.mxu3  ;;  %v2504_v11 = vmul.f32 %v2462_v59, %v1554_v37  ;;  %v1331_v63 = vadd.f32 %v1330_v39, %v5058_v61 }
 0x4d6   : > { %v1248_v30 = vpop.f32.mrf.mxu2  ;;  %v2151_v26 = vpop.xlane.xlu0 %2150 }
 0x4d7   : > { %v2587_v12 = vmax.f32 %v2545_v23, 0.0  ;;  %v1249_v48 = vadd.f32 %v1248_v30, %v4806_v57  ;;  %v2210_v10 = vmax.f32 %v2151_v26, 0.0  ;;  %v2352_v30 = vmul.f32 %v3135_v8, %v1480_v21 }
 0x4d9   : > { %2629 = vst [vmem:[%s5082_s25 + $0xb8] sm:$0xff] %v2587_v12  ;;  %v2099_v32 = vmul.f32 %v4965_v19, %v1249_v48  ;;  %v2252_v27 = vmul.f32 %v2210_v10, %v1326_v13  ;;  %v3136_v13 = vld [vmem:[%s3351_s23 + $0x148] sm:$0xff]  ;;  %v1481_v10 = vpop.f32.mrf.mxu0 }
 0x4da   : > { %v1482_v39 = vadd.f32 %v1481_v10, %v5867_v5 }
 0x4db   : > { %v2294_v40 = vadd.f32 %v2252_v27, %v4981_v6  ;;  %2180 = vadd.xlane.f32.xlu0 %v2099_v32  ;;  %v1563_v6 = vpop.f32.mrf.mxu1  ;;  %v1561_v27 = vadd.f32 %v5351_v42, %v4463_v54 }
 0x4dc   : > { %v1564_v42 = vadd.f32 %v1563_v6, %v4463_v54 }
 0x4dd   : > { %v2546_v56 = vadd.f32 %v2504_v11, %v2294_v40  ;;  %v1335_v46 = vpop.f32.mrf.mxu3  ;;  %v1333_v11 = vadd.f32 %v5353_v55, %v5058_v61 }
 0x4de   : > { %v1251_v17 = vpop.f32.mrf.mxu2  ;;  %v2153_v53 = vpop.xlane.xlu1 %2152  ;;  %v1336_v55 = vadd.f32 %v1335_v46, %v5058_v61 }
 0x4df   : > { %v2588_v19 = vmax.f32 %v2546_v56, 0.0  ;;  %v1252_v14 = vadd.f32 %v1251_v17, %v4806_v57  ;;  %v2211_v18 = vmax.f32 %v2153_v53, 0.0  ;;  %v2353_v56 = vmul.f32 %v3136_v13, %v1482_v39 }
 0x4e0   : > { %v2465_v17 = vmax.f32 %v5870_v38, 0.0 }
 0x4e1   : > { %2630 = vst [vmem:[%s5082_s25 + $0xc0] sm:$0xff] %v2588_v19  ;;  %v2100_v44 = vmul.f32 %v3135_v8, %v1252_v14  ;;  %v2253_v15 = vmul.f32 %v2211_v18, %v1328_v49 }
 0x4e2   : > { %v2507_v49 = vmul.f32 %v2465_v17, %v1561_v27 }
 0x4e3   : > { %v2295_v29 = vadd.f32 %v2253_v15, %v4994_v9  ;;  %2182 = vadd.xlane.f32.xlu1 %v2100_v44  ;;  %2432 = vadd.xlane.f32.xlu0 %v2351_v34  ;;  %v5869_v9 = vld [vmem:[#allocation62_spill] sm:$0xff]  ;;  %v1565_v22 = vpop.f32.mrf.mxu1  ;;  %v5871_v34 = vld [vmem:[#allocation31_spill] sm:$0xff] }
 0x4e4   : > { %v2464_v26 = vmax.f32 %v5869_v9, 0.0  ;;  %v2466_v41 = vmax.f32 %v5871_v34, 0.0  ;;  %v1566_v21 = vadd.f32 %v1565_v22, %v4463_v54 }
 0x4e5   : > { %v2547_v60 = vadd.f32 %v2505_v45, %v2295_v29  ;;  %v1337_v23 = vpop.f32.mrf.mxu3 }
 0x4e6   : > { %v1253_v24 = vpop.f32.mrf.mxu2  ;;  %v2155_v3 = vpop.xlane.xlu2 %2154  ;;  %v2506_v28 = vmul.f32 %v2464_v26, %v1559_v20  ;;  %v2508_v8 = vmul.f32 %v2466_v41, %v1564_v42  ;;  %v1338_v6 = vadd.f32 %v1337_v23, %v5058_v61  ;;  %v5872_v20 = vld [vmem:[#allocation50_spill] sm:$0xff] }
 0x4e7   : > { %v2589_v62 = vmax.f32 %v2547_v60, 0.0  ;;  %v1254_v0 = vadd.f32 %v1253_v24, %v4806_v57  ;;  %v2212_v37 = vmax.f32 %v2155_v3, 0.0  ;;  %v2467_v24 = vmax.f32 %v5872_v20, 0.0 }
 0x4e9   : > { %2631 = vst [vmem:[%s5082_s25 + $0xc8] sm:$0xff] %v2589_v62  ;;  %v2101_v12 = vmul.f32 %v3136_v13, %v1254_v0  ;;  %v2254_v48 = vmul.f32 %v2212_v37, %v1331_v63  ;;  %v2509_v63 = vmul.f32 %v2467_v24, %v1566_v21 }
 0x4eb   : > { %v2296_v59 = vadd.f32 %v2254_v48, %v5015_v58  ;;  %2184 = vadd.xlane.f32.xlu2 %v2101_v12  ;;  %2434 = vadd.xlane.f32.xlu1 %v2352_v30  ;;  %v1568_v19 = vpop.f32.mrf.mxu1  ;;  %v5873_v12 = vld [vmem:[#allocation32_spill] sm:$0xff] }
 0x4ec   : > { %v1569_v30 = vadd.f32 %v1568_v19, %v4463_v54  ;;  %v2468_v48 = vmax.f32 %v5873_v12, 0.0 }
 0x4ed   : > { %v2548_v57 = vadd.f32 %v2506_v28, %v2296_v59  ;;  %v1340_v58 = vpop.f32.mrf.mxu3  ;;  %v5874_v28 = vld [vmem:[#allocation118_spill] sm:$0xff] }
 0x4ee   : > { %v2157_v32 = vpop.xlane.xlu0 %2156  ;;  %v1341_v9 = vadd.f32 %v1340_v58, %v5058_v61  ;;  %v2510_v22 = vmul.f32 %v2468_v48, %v1569_v30 }
 0x4ef   : > { %v2590_v40 = vmax.f32 %v2548_v57, 0.0  ;;  %v2213_v4 = vmax.f32 %v2157_v32, 0.0 }
 0x4f1   : > { %2632 = vst [vmem:[%s5082_s25 + $0xd0] sm:$0xff] %v2590_v40  ;;  %v2255_v53 = vmul.f32 %v2213_v4, %v1333_v11  ;;  %v5875_v4 = vld [vmem:[#allocation108_spill] sm:$0xff] }
 0x4f3   : > { %v2297_v5 = vadd.f32 %v2255_v53, %v5020_v25  ;;  %2436 = vadd.xlane.f32.xlu2 %v2353_v56  ;;  %v1570_v45 = vpop.f32.mrf.mxu1  ;;  %v2469_v56 = vmax.f32 %v5875_v4, 0.0  ;;  %v5876_v53 = vld [vmem:[#allocation111_spill] sm:$0xff] }
 0x4f4   : > { %v1571_v57 = vadd.f32 %v1570_v45, %v4463_v54 }
 0x4f5   : > { %v2549_v14 = vadd.f32 %v2507_v49, %v2297_v5  ;;  %v1342_v44 = vpop.f32.mrf.mxu3 }
 0x4f6   : > { %v2159_v18 = vpop.xlane.xlu1 %2158  ;;  %v1343_v32 = vadd.f32 %v1342_v44, %v5058_v61  ;;  %v2511_v58 = vmul.f32 %v2469_v56, %v1571_v57 }
 0x4f7   : > { %v2591_v2 = vmax.f32 %v2549_v14, 0.0  ;;  %v2214_v33 = vmax.f32 %v2159_v18, 0.0 }
 0x4f9   : > { %2633 = vst [vmem:[%s5082_s25 + $0xd8] sm:$0xff] %v2591_v2  ;;  %v2256_v52 = vmul.f32 %v2214_v33, %v1336_v55  ;;  %v5877_v2 = vld [vmem:[#allocation107_spill] sm:$0xff] }
 0x4fa   : > { %v2470_v33 = vmax.f32 %v5877_v2, 0.0 }
 0x4fb   : > { %v2298_v15 = vadd.f32 %v2256_v52, %v5027_v43  ;;  %v1573_v13 = vpop.f32.mrf.mxu1 }
 0x4fc   : > { %v1574_v14 = vadd.f32 %v1573_v13, %v4463_v54  ;;  %v5880_v13 = vld [vmem:[#allocation10_spill] sm:$0xff] }
 0x4fd   : > { %v2550_v25 = vadd.f32 %v2508_v8, %v2298_v15  ;;  %v1345_v0 = vpop.f32.mrf.mxu3  ;;  %v5878_v8 = vld [vmem:[#allocation70_spill] sm:$0xff]  ;;  %v2472_v12 = vmax.f32 %v5880_v13, 0.0 }
 0x4fe   : > { %v2161_v29 = vpop.xlane.xlu2 %2160  ;;  %v1346_v18 = vadd.f32 %v1345_v0, %v5058_v61  ;;  %v2512_v52 = vmul.f32 %v2470_v33, %v1574_v14 }
 0x4ff   : > { %v2592_v60 = vmax.f32 %v2550_v25, 0.0  ;;  %v2215_v46 = vmax.f32 %v2161_v29, 0.0 }
 0x501   : > { %2634 = vst [vmem:[%s5082_s25 + $0xe0] sm:$0xff] %v2592_v60  ;;  %v2257_v3 = vmul.f32 %v2215_v46, %v1338_v6  ;;  %v5879_v46 = vld [vmem:[#allocation18_spill] sm:$0xff] }
 0x502   : > { %v2471_v20 = vmax.f32 %v5879_v46, 0.0 }
 0x503   : > { %v2299_v62 = vadd.f32 %v2257_v3, %v5040_v1  ;;  %v1575_v17 = vpop.f32.mrf.mxu1 }
 0x504   : > { %v1576_v29 = vadd.f32 %v1575_v17, %v4463_v54 }
 0x505   : > { %v2551_v37 = vadd.f32 %v2509_v63, %v2299_v62  ;;  %v1347_v27 = vpop.f32.mrf.mxu3 }
 0x506   : > { %v2163_v43 = vpop.xlane.xlu0 %2162  ;;  %v1348_v21 = vadd.f32 %v1347_v27, %v5058_v61  ;;  %v2513_v3 = vmul.f32 %v2471_v20, %v1576_v29 }
 0x507   : > { %v2593_v26 = vmax.f32 %v2551_v37, 0.0  ;;  %v2216_v23 = vmax.f32 %v2163_v43, 0.0 }
 0x509   : > { %2635 = vst [vmem:[%s5082_s25 + $0xe8] sm:$0xff] %v2593_v26  ;;  %v2258_v10 = vmul.f32 %v2216_v23, %v1341_v9 }
 0x50b   : > { %v2300_v59 = vadd.f32 %v2258_v10, %v5874_v28  ;;  %v1578_v15 = vpop.f32.mrf.mxu1 }
 0x50c   : > { %v1579_v30 = vadd.f32 %v1578_v15, %v4463_v54 }
 0x50d   : > { %v2552_v39 = vadd.f32 %v2510_v22, %v2300_v59  ;;  %v1350_v34 = vpop.f32.mrf.mxu3 }
 0x50e   : > { %v2165_v1 = vpop.xlane.xlu1 %2164  ;;  %v1351_v9 = vadd.f32 %v1350_v34, %v5058_v61  ;;  %v2514_v10 = vmul.f32 %v2472_v12, %v1579_v30 }
 0x50f   : > { %v2594_v11 = vmax.f32 %v2552_v39, 0.0  ;;  %v2217_v40 = vmax.f32 %v2165_v1, 0.0 }
 0x511   : > { %2636 = vst [vmem:[%s5082_s25 + $0xf0] sm:$0xff] %v2594_v11  ;;  %v2259_v38 = vmul.f32 %v2217_v40, %v1343_v32  ;;  %v5881_v11 = vld [vmem:[#allocation21_spill] sm:$0xff] }
 0x512   : > { %v2473_v40 = vmax.f32 %v5881_v11, 0.0 }
 0x513   : > { %v2301_v49 = vadd.f32 %v2259_v38, %v5876_v53  ;;  %v1580_v37 = vpop.f32.mrf.mxu1  ;;  %v5882_v38 = vld [vmem:[#allocation11_spill] sm:$0xff] }
 0x514   : > { %v1581_v39 = vadd.f32 %v1580_v37, %v4463_v54  ;;  %v5885_v37 = vld [vmem:[#allocation112_spill] sm:$0xff] }
 0x515   : > { %v2553_v5 = vadd.f32 %v2511_v58, %v2301_v49  ;;  %v1352_v63 = vpop.f32.mrf.mxu3 }
 0x516   : > { %v2167_v19 = vpop.xlane.xlu2 %2166  ;;  %v1353_v1 = vadd.f32 %v1352_v63, %v5058_v61  ;;  %v2515_v56 = vmul.f32 %v2473_v40, %v1581_v39 }
 0x517   : > { %v2595_v42 = vmax.f32 %v2553_v5, 0.0  ;;  %v2218_v55 = vmax.f32 %v2167_v19, 0.0 }
 0x519   : > { %2637 = vst [vmem:[%s5082_s25 + $0xf8] sm:$0xff] %v2595_v42  ;;  %v2260_v41 = vmul.f32 %v2218_v55, %v1346_v18  ;;  %v5883_v18 = vld [vmem:[#allocation43_spill] sm:$0xff] }
 0x51a   : > { %v2474_v42 = vmax.f32 %v5883_v18, 0.0 }
 0x51b   : > { %v2302_v44 = vadd.f32 %v2260_v41, %v5878_v8  ;;  %v1583_v27 = vpop.f32.mrf.mxu1 }
 0x51c   : > { %v1584_v53 = vadd.f32 %v1583_v27, %v4463_v54 }
 0x51d   : > { %v2554_v25 = vadd.f32 %v2512_v52, %v2302_v44  ;;  %v1355_v28 = vpop.f32.mrf.mxu3 }
 0x51e   : > { %v2169_v45 = vpop.xlane.xlu0 %2168  ;;  %v1356_v49 = vadd.f32 %v1355_v28, %v5058_v61  ;;  %v2516_v33 = vmul.f32 %v2474_v42, %v1584_v53 }
 0x51f   : > { %v2596_v6 = vmax.f32 %v2554_v25, 0.0  ;;  %v2219_v60 = vmax.f32 %v2169_v45, 0.0  ;;  %v5884_v45 = vld [vmem:[#allocation33_spill] sm:$0xff] }
 0x520   : > { %v2475_v29 = vmax.f32 %v5884_v45, 0.0 }
 0x521   : > { %2638 = vst [vmem:[%s5082_s25 + $0x100] sm:$0xff] %v2596_v6  ;;  %v2261_v24 = vmul.f32 %v2219_v60, %v1348_v21 }
 0x523   : > { %v2303_v62 = vadd.f32 %v2261_v24, %v5106_v47  ;;  %v1585_v2 = vpop.f32.mrf.mxu1 }
 0x524   : > { %v1586_v8 = vadd.f32 %v1585_v2, %v4463_v54 }
 0x525   : > { %v2555_v0 = vadd.f32 %v2513_v3, %v2303_v62  ;;  %v1357_v5 = vpop.f32.mrf.mxu3 }
 0x526   : > { %v2171_v43 = vpop.xlane.xlu1 %2170  ;;  %v1358_v44 = vadd.f32 %v1357_v5, %v5058_v61  ;;  %v2517_v60 = vmul.f32 %v2475_v29, %v1586_v8 }
 0x527   : > { %v2597_v26 = vmax.f32 %v2555_v0, 0.0  ;;  %v2220_v23 = vmax.f32 %v2171_v43, 0.0  ;;  %v2476_v43 = vmax.f32 %v5885_v37, 0.0 }
 0x529   : > { %2639 = vst [vmem:[%s5082_s25 + $0x108] sm:$0xff] %v2597_v26  ;;  %v2262_v48 = vmul.f32 %v2220_v23, %v1351_v9 }
 0x52b   : > { %v2304_v22 = vadd.f32 %v2262_v48, %v5118_v51  ;;  %v1588_v20 = vpop.f32.mrf.mxu1 }
 0x52c   : > { %v1589_v3 = vadd.f32 %v1588_v20, %v4463_v54 }
 0x52d   : > { %v2556_v59 = vadd.f32 %v2514_v10, %v2304_v22  ;;  %v1360_v21 = vpop.f32.mrf.mxu3 }
 0x52e   : > { %v2173_v47 = vpop.xlane.xlu2 %2172  ;;  %v1361_v63 = vadd.f32 %v1360_v21, %v5058_v61  ;;  %v2518_v9 = vmul.f32 %v2476_v43, %v1589_v3 }
 0x52f   : > { %v2598_v57 = vmax.f32 %v2556_v59, 0.0  ;;  %v2221_v32 = vmax.f32 %v2173_v47, 0.0 }
 0x531   : > { %2640 = vst [vmem:[%s5082_s25 + $0x110] sm:$0xff] %v2598_v57  ;;  %v2263_v4 = vmul.f32 %v2221_v32, %v1353_v1 }
 0x533   : > { %v2305_v17 = vadd.f32 %v2263_v4, %v5882_v38  ;;  %v1590_v48 = vpop.f32.mrf.mxu1 }
 0x534   : > { %v1591_v1 = vadd.f32 %v1590_v48, %v4463_v54 }
 0x535   : > { %v2557_v58 = vadd.f32 %v2515_v56, %v2305_v17  ;;  %v1362_v26 = vpop.f32.mrf.mxu3 }
 0x536   : > { %v2175_v51 = vpop.xlane.xlu0 %2174  ;;  %v1363_v22 = vadd.f32 %v1362_v26, %v5058_v61 }
 0x537   : > { %v2599_v19 = vmax.f32 %v2557_v58, 0.0  ;;  %v2222_v14 = vmax.f32 %v2175_v51, 0.0 }
 0x539   : > { %2641 = vst [vmem:[%s5082_s25 + $0x118] sm:$0xff] %v2599_v19  ;;  %v2264_v55 = vmul.f32 %v2222_v14, %v1356_v49 }
 0x53b   : > { %v2306_v34 = vadd.f32 %v2264_v55, %v5153_v50  ;;  %v1593_v11 = vpop.f32.mrf.mxu1 }
 0x53c   : > { %v1594_v51 = vadd.f32 %v1593_v11, %v4463_v54 }
 0x53d   : > { %v2558_v41 = vadd.f32 %v2516_v33, %v2306_v34  ;;  %v1365_v28 = vpop.f32.mrf.mxu3 }
 0x53e   : > { %v2177_v52 = vpop.xlane.xlu1 %2176  ;;  %v1366_v40 = vadd.f32 %v1365_v28, %v5058_v61 }
 0x53f   : > { %v2600_v15 = vmax.f32 %v2558_v41, 0.0  ;;  %v2223_v25 = vmax.f32 %v2177_v52, 0.0 }
 0x541   : > { %2642 = vst [vmem:[%s5082_s25 + $0x120] sm:$0xff] %v2600_v15  ;;  %v2265_v6 = vmul.f32 %v2223_v25, %v1358_v44 }
 0x543   : > { %v2307_v46 = vadd.f32 %v2265_v6, %v5168_v35  ;;  %v1595_v42 = vpop.f32.mrf.mxu1 }
 0x544   : > { %v1596_v34 = vadd.f32 %v1595_v42, %v4463_v54 }
 0x545   : > { %v2559_v24 = vadd.f32 %v2517_v60, %v2307_v46  ;;  %v1367_v49 = vpop.f32.mrf.mxu3 }
 0x546   : > { %v2179_v50 = vpop.xlane.xlu2 %2178  ;;  %v1368_v14 = vadd.f32 %v1367_v49, %v5058_v61 }
 0x547   : > { %v2601_v62 = vmax.f32 %v2559_v24, 0.0  ;;  %v2224_v0 = vmax.f32 %v2179_v50, 0.0 }
 0x549   : > { %2643 = vst [vmem:[%s5082_s25 + $0x128] sm:$0xff] %v2601_v62  ;;  %v2266_v30 = vmul.f32 %v2224_v0, %v1361_v63 }
 0x54b   : > { %v2308_v23 = vadd.f32 %v2266_v30, %v5182_v31 }
 0x54d   : > { %v2560_v13 = vadd.f32 %v2518_v9, %v2308_v23 }
 0x54e   : > { %v2181_v35 = vpop.xlane.xlu0 %2180 }
 0x54f   : > { %v2602_v12 = vmax.f32 %v2560_v13, 0.0  ;;  %v2225_v10 = vmax.f32 %v2181_v35, 0.0 }
 0x551   : > { %2644 = vst [vmem:[%s5082_s25 + $0x130] sm:$0xff] %v2602_v12  ;;  %v2267_v59 = vmul.f32 %v2225_v10, %v1363_v22 }
 0x553   : > { %v2309_v32 = vadd.f32 %v2267_v59, %v5202_v16 }
 0x556   : > { %v2183_v47 = vpop.xlane.xlu1 %2182  ;;  %v2433_v39 = vpop.xlane.xlu0 %2432 }
 0x557   : > { %v2477_v57 = vmax.f32 %v2433_v39, 0.0  ;;  %v2226_v27 = vmax.f32 %v2183_v47, 0.0 }
 0x559   : > { %v2519_v31 = vmul.f32 %v2477_v57, %v1591_v1  ;;  %v2268_v56 = vmul.f32 %v2226_v27, %v1366_v40 }
 0x55b   : > { %v2561_v4 = vadd.f32 %v2519_v31, %v2309_v32  ;;  %v2310_v5 = vadd.f32 %v2268_v56, %v5214_v36 }
 0x55d   : > { %v2603_v38 = vmax.f32 %v2561_v4, 0.0 }
 0x55e   : > { %v2185_v17 = vpop.xlane.xlu2 %2184  ;;  %v2435_v58 = vpop.xlane.xlu1 %2434 }
 0x55f   : > { %2645 = vst [vmem:[%s5082_s25 + $0x138] sm:$0xff] %v2603_v38  ;;  %v2478_v53 = vmax.f32 %v2435_v58, 0.0  ;;  %v2227_v16 = vmax.f32 %v2185_v17, 0.0 }
 0x561   : > { %v2520_v19 = vmul.f32 %v2478_v53, %v1594_v51  ;;  %v2269_v55 = vmul.f32 %v2227_v16, %v1368_v14 }
 0x563   : > { %v2562_v18 = vadd.f32 %v2520_v19, %v2310_v5  ;;  %v2311_v41 = vadd.f32 %v2269_v55, %v5228_v7 }
 0x565   : > { %v2604_v2 = vmax.f32 %v2562_v18, 0.0 }
 0x566   : > { %v2437_v33 = vpop.xlane.xlu2 %2436 }
 0x567   : > { %2646 = vst [vmem:[%s5082_s25 + $0x140] sm:$0xff] %v2604_v2  ;;  %v2479_v36 = vmax.f32 %v2437_v33, 0.0 }
 0x569   : > { %v2521_v52 = vmul.f32 %v2479_v36, %v1596_v34 }
 0x56b   : > { %v2563_v61 = vadd.f32 %v2521_v52, %v2311_v41 }
 0x56d   : > { %v2605_v8 = vmax.f32 %v2563_v61, 0.0 }
 0x56f   : > { %2647 = vst [vmem:[%s5082_s25 + $0x148] sm:$0xff] %v2605_v8 }
 0x570   : > { %3194 = shalt.err (!%p3191_p7)
}
 0x571   : > { %s3237_s11 = smov 128   ;;  %s3238_s16 = smov 8  }
 0x572   : > { %3002 = dma.vmem_to_hbm [thread:$0]  (%p3315_p11), %s2662_s22, 5376, %s2664_s7, %s2649_s9, %s3237_s11, %s3237_s11, %s3238_s16  }
 0x573 PF: > { %s2678_s25 = sand.u32 1, %s3221_s18   ;;  %p3009_p8 = pnand %p2739_p9, %p3319_p12 }
 0x574   : > { %s2679_s14 = scalar_lea.sflag [#allocation4], %s2678_s25 }
 0x575   : > { %p3010_p10 = pneg %p3009_p8 }
 0x577   : > { %3216 = dma.done.wait (%p3010_p10), %s2679_s14, 5376  }
 0x578   : > { %3218 = vsyncadd (%p3010_p10), %s2679_s14, 4294961920  ;;  %p18_p0 = scmp.ge.s32.totalorder %s3294_s24, 4   ;;  %s5886_s18 = smov %s3225_s19 }
 0x579   : > { %s5887_s19 = smov %s3229_s20  ;;  %s5888_s20 = smov %s3306_s27 }
 0x57a   : > { %s5889_s21 = smov %s3294_s24  ;;  %20 = sbr.rel (!%p18_p0) target bundleno = 5 (0x5), region = 85 }
 0x57f   :  { %2685 = vsyncpa [#allocation3], 1 }
 0x580   :  { %2687 = vsyncpa [#allocation3 + $0x1], 1 }
 0x581   :  { %2688 = vsyncpa [#allocation4], 1 }
 0x582   :  { %2690 = vsyncpa [#allocation4 + $0x1], 1 }

// kernel: tpu_custom_call.1
= control target key start
LH: loop header
LB: loop body
LE: loop exit
PB: predicated region body
PF: predicated region fallthrough
CT: control target
= control target key end

     0   :  { %10 = vsyncpa [#allocation3], 0  ;;  %s5492_s0 = inlined_call_operand.hbm [shape: f32[672,128], index: 0, kind: input, shape index: {}]   ;;  %s5493_s1 = inlined_call_operand.vmem [shape: bf16[128,16], index: 1, kind: input, shape index: {}]   ;;  %s5494_s2 = inlined_call_operand.vmem [shape: f32[1,16], index: 2, kind: input, shape index: {}]   ;;  %s5495_s3 = inlined_call_operand.vmem [shape: bf16[16,1024], index: 3, kind: input, shape index: {}]   ;;  %s5496_s4 = inlined_call_operand.vmem [shape: f32[1,1024], index: 4, kind: input, shape index: {}]   ;;  %s5497_s5 = inlined_call_operand.hbm [shape: f32[672,128], index: 5, kind: output, shape index: {}]  }
   0x1   :  { %12 = vsyncpa [#allocation3 + $0x1], 0 }
   0x2   :  { %13 = vsyncpa [#allocation4], 0 }
   0x3   :  { %15 = vsyncpa [#allocation4 + $0x1], 0  ;;  %s3269_s18 = smov 0   ;;  %s3271_s19 = smov 0  }
   0x4   :  { %s3273_s20 = smov 0   ;;  %s3275_s21 = smov 0  }
   0x5 LB: > { %s3290_s22 = sadd.s32 4294967295, %s3233_s21   ;;  %s2737_s23 = sadd.s32 4294967294, %s3233_s21   ;;  %s3233_s21 = sphi %s3275_s21, %s5889_s21   ;;  %s3229_s20 = sphi %s3273_s20, %s5888_s20   ;;  %s3225_s19 = sphi %s3271_s19, %s5887_s19   ;;  %s3221_s18 = sphi %s3269_s18, %s5886_s18  }
   0x6   : > { %s3294_s24 = sadd.s32 1, %s3233_s21   ;;  %s28_s25 = sadd.s32 1, %s3229_s20 }
   0x7   : > { %s25_s26 = ssub.s32 %s3233_s21, %s3294_s24  ;;  %p35_p0 = scmp.ne.s32.totalorder %s3229_s20, %s3225_s19 }
   0x8   : > { %p26_p1 = scmp.eq.s32.totalorder %s25_s26, 0  ;;  %p36_p2 = scmp.eq.s32.totalorder %s3233_s21, 0 }
   0x9   : > { %p41_p3 = scmp.ne.s32.totalorder %s3225_s19, %s3221_s18  ;;  %p42_p4 = scmp.eq.s32.totalorder %s3290_s22, 0 }
   0xa   : > { %s3306_s27 = scalar_select %p26_p1, %s3229_s20, %s28_s25  }
   0xb   : > { %p37_p5 = por %p36_p2, %p35_p0  ;;  %p3308_p6 = por %p42_p4, %p41_p3 }
   0xc   : > { %p149_p7 = scmp.eq.s32.totalorder %s3290_s22, 1  ;;  %p155_p8 = scmp.eq.s32.totalorder %s2737_s23, 1 }
   0xd   : > { %p2739_p9 = scmp.ge.s32.totalorder %s3233_s21, 2  ;;  %p3012_p10 = scmp.lt.s32.totalorder %s3233_s21, 2 }
   0xe   : > { %p3315_p11 = por %p149_p7, %p35_p0  ;;  %p3319_p12 = por %p155_p8, %p41_p3 }
   0xf   : > { %s187_s6 = sand.u32 1, %s3229_s20   ;;  %s2977_s7 = smul.u32 336, %s3233_s21 }
  0x10   : > { %s2998_s8 = smul.u32 336, %s187_s6  ;;  %p3328_p13 = pnand %p3012_p10, %p37_p5 }
  0x11   : > { %s196_s11 = scalar_lea.hbm %s5492_s0, %s2977_s7  ;;  %s188_s16 = scalar_lea.sflag [#allocation3], %s187_s6 }
  0x12   : > { %s197_s13 = sshll.u32 %s196_s11, 4  ;;  %s191_s14 = scalar_lea.vmem [#allocation2], %s2998_s8  ;;  %s198_s13 = int_to_ptr.hbm [resolvable:$true] %s197_s13 }
  0x13   : > { %s199_s15 = sshll.u32 %s191_s14, 4  ;;  %s3137_s17 = sshra.s32 %s198_s13, 4  ;;  %s200_s15 = int_to_ptr.vmem [resolvable:$true] %s199_s15  ;;  %s3138_s17 = int_to_ptr.hbm [resolvable:$true] %s3137_s17 }
  0x14   : > { %s3139_s23 = scalar_lea.hbm %s3138_s17, 336  ;;  %p3141_p1 = pneg %p3328_p13 }
  0x15   : > { %p3140_p0 = scmp.ne.s32.totalorder %s3138_s17, %s3139_s23  ;;  %s3144_s7 = scalar_lea.hbm %s5492_s0, 672 }
  0x16   : > { %p3145_p4 = scmp.lt.s32.totalorder %s3138_s17, %s5492_s0  ;;  %p3146_p5 = scmp.lt.s32.totalorder %s3144_s7, %s3139_s23 }
  0x17   : > { %p3142_p2 = pnand %p3141_p1, %p3140_p0 }
  0x18   : > { %p3147_p7 = por %p3146_p5, %p3145_p4 }
  0x19   : > { %p3143_p3 = pneg %p3142_p2 }
  0x1b   : > { %p3148_p8 = pnand %p3147_p7, %p3143_p3 }
  0x1d   : > { %3151 = shalt.err (!%p3148_p8)
}
  0x1e   : > { %s3235_s6 = smov 128   ;;  %s3236_s8 = smov 8  }
  0x1f   : > { %3007 = dma.hbm_to_vmem [thread:$0]  (!%p3328_p13), %s198_s13, 5376, %s200_s15, %s188_s16, %s3235_s6, %s3235_s6, %s3236_s8  }
  0x20   : > { %p2741_p10 = scmp.ge.s32.totalorder %s3233_s21, 1  ;;  %p207_p0 = scmp.lt.s32.totalorder %s3233_s21, 3 }
  0x22   : > { %p208_p1 = pnand %p2741_p10, %p207_p0 }
  0x24   : > { %211 = sbr.rel (%p208_p1) target bundleno = 1395 (0x573), region = 40 }
  0x29   : > { %s3345_s11 = sand.u32 1, %s3225_s19  }
  0x2a   : > { %s2999_s14 = smul.u32 336, %s3345_s11  ;;  %s214_s17 = scalar_lea.sflag [#allocation3], %s3345_s11 }
  0x2c   : > { %s3351_s23 = scalar_lea.vmem [#allocation2], %s2999_s14 }
  0x2d   : > { %3212 = dma.done.wait (%p3308_p6), %s214_s17, 5376  }
  0x2e   : > { %3214 = vsyncadd (%p3308_p6), %s214_s17, 4294961920  ;;  %v2985_v0 = vld [vmem:[%s5493_s1 + $0x38] sm:$0xff]  ;;  %v2984_v1 = vld [vmem:[%s5493_s1 + $0x30] sm:$0xff]  ;;  %vm622_vm0 = vcmask 130048   ;;  %s5082_s25 = scalar_lea.vmem [#allocation5], %s2999_s14  ;;  %s2994_s14 = smul.u32 336, %s3290_s22 }
  0x2f   : > { %379 = vmatpush.bf16.msra.mxu0 %v2985_v0  ;;  %v2983_v2 = vld [vmem:[%s5493_s1 + $0x28] sm:$0xff]  ;;  %v2982_v3 = vld [vmem:[%s5493_s1 + $0x20] sm:$0xff]  ;;  %v2981_v4 = vld [vmem:[%s5493_s1 + $0x18] sm:$0xff]  ;;  %s2661_s22 = sshll.u32 %s5082_s25, 4  ;;  %s2649_s9 = scalar_lea.sflag [#allocation4], %s3345_s11  ;;  %s2662_s22 = int_to_ptr.vmem [resolvable:$true] %s2661_s22 }
  0x30   : > { %v2980_v5 = vld [vmem:[%s5493_s1 + $0x10] sm:$0xff]  ;;  %v2979_v6 = vld [vmem:[%s5493_s1 + $0x8] sm:$0xff]  ;;  %v2978_v7 = vld [vmem:[%s5493_s1] sm:$0xff]  ;;  %s2660_s28 = scalar_lea.hbm %s5497_s5, %s2994_s14  ;;  %s3187_s12 = scalar_lea.hbm %s5497_s5, 672 }
  0x31   : > { %v3382_v8 = vld [vmem:[%s3351_s23] sm:$0xff]  ;;  %v3385_v9 = vld [vmem:[%s3351_s23 + $0x8] sm:$0xff]  ;;  %v3390_v11 = vld [vmem:[%s3351_s23 + $0x10] sm:$0xff]  ;;  %s2663_s7 = sshll.u32 %s2660_s28, 4  ;;  %s2664_s7 = int_to_ptr.hbm [resolvable:$true] %s2663_s7 }
  0x32   : > { %v290_v10 = vpack.c.bf16 %v3385_v9, %v3382_v8  ;;  %v3393_v12 = vld [vmem:[%s3351_s23 + $0x18] sm:$0xff]  ;;  %v3398_v14 = vld [vmem:[%s3351_s23 + $0x20] sm:$0xff]  ;;  %v3401_v15 = vld [vmem:[%s3351_s23 + $0x28] sm:$0xff]  ;;  %s3181_s10 = sshra.s32 %s2664_s7, 4  ;;  %s3182_s10 = int_to_ptr.hbm [resolvable:$true] %s3181_s10 }
  0x33   : > { %380 = vmatpush.bf16.msra.mxu0 %v2984_v1  ;;  %v291_v13 = vpack.c.bf16 %v3393_v12, %v3390_v11  ;;  %v292_v16 = vpack.c.bf16 %v3401_v15, %v3398_v14  ;;  %v3406_v17 = vld [vmem:[%s3351_s23 + $0x30] sm:$0xff]  ;;  %v3409_v18 = vld [vmem:[%s3351_s23 + $0x38] sm:$0xff]  ;;  %v3414_v20 = vld [vmem:[%s3351_s23 + $0x40] sm:$0xff]  ;;  %s3183_s6 = scalar_lea.hbm %s3182_s10, 336  ;;  %p3188_p3 = scmp.lt.s32.totalorder %s3182_s10, %s5497_s5 }
  0x34   : > { %v293_v19 = vpack.c.bf16 %v3409_v18, %v3406_v17  ;;  %v3417_v21 = vld [vmem:[%s3351_s23 + $0x48] sm:$0xff]  ;;  %v3422_v23 = vld [vmem:[%s3351_s23 + $0x50] sm:$0xff]  ;;  %v3425_v24 = vld [vmem:[%s3351_s23 + $0x58] sm:$0xff]  ;;  %p3184_p6 = scmp.ne.s32.totalorder %s3182_s10, %s3183_s6  ;;  %p3189_p4 = scmp.lt.s32.totalorder %s3187_s12, %s3183_s6 }
  0x35   : > { %v294_v22 = vpack.c.bf16 %v3417_v21, %v3414_v20  ;;  %v295_v25 = vpack.c.bf16 %v3425_v24, %v3422_v23  ;;  %v3430_v26 = vld [vmem:[%s3351_s23 + $0x60] sm:$0xff]  ;;  %v3433_v27 = vld [vmem:[%s3351_s23 + $0x68] sm:$0xff]  ;;  %v3438_v29 = vld [vmem:[%s3351_s23 + $0x70] sm:$0xff] }
  0x36   : > { %v296_v28 = vpack.c.bf16 %v3433_v27, %v3430_v26  ;;  %v3441_v30 = vld [vmem:[%s3351_s23 + $0x78] sm:$0xff]  ;;  %v3446_v32 = vld [vmem:[%s3351_s23 + $0x80] sm:$0xff]  ;;  %v3449_v33 = vld [vmem:[%s3351_s23 + $0x88] sm:$0xff]  ;;  %p3185_p13 = pnand %p3184_p6, %p3315_p11  ;;  %p3190_p5 = por %p3189_p4, %p3188_p3 }
  0x37   : > { %381 = vmatpush.bf16.msra.mxu0 %v2983_v2  ;;  %v297_v31 = vpack.c.bf16 %v3441_v30, %v3438_v29  ;;  %v298_v34 = vpack.c.bf16 %v3449_v33, %v3446_v32  ;;  %v3456_v36 = vld [vmem:[%s5494_s2] ss:$0 sm:$0xff]  ;;  %v3464_v43 = vld [vmem:[%s3351_s23 + $0x98] sm:$0xff]  ;;  %v3482_v56 = vld [vmem:[%s3351_s23 + $0xa8] sm:$0xff] }
  0x38   : > { %v3461_v42 = vld [vmem:[%s3351_s23 + $0x90] sm:$0xff]  ;;  %v3479_v55 = vld [vmem:[%s3351_s23 + $0xa0] sm:$0xff]  ;;  %v3494_v2 = vld [vmem:[%s3351_s23 + $0xb8] sm:$0xff]  ;;  %p3186_p2 = pneg %p3185_p13 }
  0x39   : > { %v299_v45 = vpack.c.bf16 %v3464_v43, %v3461_v42  ;;  %v2776_v50 = vld [vmem:[%s5495_s3] sm:$0xf]  ;;  %v300_v58 = vpack.c.bf16 %v3482_v56, %v3479_v55 }
  0x3a   : > { %v2990_v51 = vld [vmem:[%s5495_s3 + $0x1c] sm:$0xf0]  ;;  %p3191_p7 = pnand %p3190_p5, %p3186_p2 }
  0x3b   : > { %382 = vmatpush.bf16.msra.mxu0 %v2982_v3  ;;  %v2777_v52 = vor.u32 %v2990_v51, %v2776_v50  ;;  %v3491_v1 = vld [vmem:[%s3351_s23 + $0xb0] sm:$0xff] }
  0x3d   : > { %2995 = vmatpush.bf16.msra.mxu1 %v2777_v52  ;;  %2996 = vmatpush.bf16.msra.mxu2 %v2777_v52 }
  0x3e   : > { %2997 = vmatpush.bf16.msra.mxu3 %v2777_v52 }
  0x3f   : > { %383 = vmatpush.bf16.msra.mxu0 %v2981_v4  ;;  %v301_v4 = vpack.c.bf16 %v3494_v2, %v3491_v1 }
  0x43   : > { %384 = vmatpush.bf16.msra.mxu0 %v2980_v5 }
  0x47   : > { %385 = vmatpush.bf16.msra.mxu0 %v2979_v6 }
  0x4b   : > { %386 = vmatpush.bf16.msra.mxu0 %v2978_v7 }
  0x4e   : > { %387 = vmatmul.bf16.vlgmr.msra.gmra.mxu0 %v290_v10 }
  0x4f   : > { %693 = vmatpush.bf16.msrb.mxu0 %v2777_v52 }
  0x5e   : > { %392 = vmatmul.bf16.gmra.mxu0 %v291_v13 }
  0x6e   : > { %397 = vmatmul.bf16.gmra.mxu0 %v292_v16 }
  0x7e   : > { %402 = vmatmul.bf16.gmra.mxu0 %v293_v19  ;;  %v3503_v19 = vld [vmem:[%s3351_s23 + $0xc0] sm:$0xff] }
  0x8e   : > { %407 = vmatmul.bf16.gmra.mxu0 %v294_v22  ;;  %v3506_v22 = vld [vmem:[%s3351_s23 + $0xc8] sm:$0xff] }
  0x9e   : > { %412 = vmatmul.bf16.gmra.mxu0 %v295_v25 }
  0xae   : > { %417 = vmatmul.bf16.gmra.mxu0 %v296_v28  ;;  %v302_v28 = vpack.c.bf16 %v3506_v22, %v3503_v19 }
  0xbe   : > { %422 = vmatmul.bf16.gmra.mxu0 %v297_v31 }
  0xcb   : > { %v388_v35 = vpop.f32.mrf.mxu0 }
  0xcc   : > { %v389_v37 = vadd.f32 %v3456_v36, %v388_v35 }
  0xce   : > { %427 = vmatmul.bf16.gmra.mxu0 %v298_v34  ;;  %v493_v40 = vmax.f32 %v389_v37, 0.0 }
  0xd3   : > { %v390_v38 = vpop.f32.mrf.mxu0 }
  0xd4   : > { %v391_v39 = vadd.f32 %v3456_v36, %v390_v38 }
  0xd6   : > { %v494_v41 = vmax.f32 %v391_v39, 0.0 }
  0xd8   : > { %v3466_v44 = vpack.c.bf16 %v494_v41, %v493_v40  ;;  %v3517_v40 = vld [vmem:[%s3351_s23 + $0xd0] sm:$0xff]  ;;  %v3520_v41 = vld [vmem:[%s3351_s23 + $0xd8] sm:$0xff] }
  0xdb   : > { %v393_v46 = vpop.f32.mrf.mxu0 }
  0xdc   : > { %v394_v47 = vadd.f32 %v3456_v36, %v393_v46  ;;  %v303_v46 = vpack.c.bf16 %v3520_v41, %v3517_v40 }
  0xde   : > { %432 = vmatmul.bf16.gmra.mxu0 %v299_v45  ;;  %v495_v53 = vmax.f32 %v394_v47, 0.0 }
  0xe3   : > { %v395_v48 = vpop.f32.mrf.mxu0 }
  0xe4   : > { %v396_v49 = vadd.f32 %v3456_v36, %v395_v48 }
  0xe6   : > { %v496_v54 = vmax.f32 %v396_v49, 0.0 }
  0xe8   : > { %v3484_v57 = vpack.c.bf16 %v496_v54, %v495_v53  ;;  %v3531_v53 = vld [vmem:[%s3351_s23 + $0xe0] sm:$0xff]  ;;  %v3534_v54 = vld [vmem:[%s3351_s23 + $0xe8] sm:$0xff] }
  0xeb   : > { %v398_v59 = vpop.f32.mrf.mxu0 }
  0xec   : > { %v399_v60 = vadd.f32 %v3456_v36, %v398_v59  ;;  %v304_v59 = vpack.c.bf16 %v3534_v54, %v3531_v53 }
  0xee   : > { %437 = vmatmul.bf16.gmra.mxu0 %v300_v58  ;;  %v497_v63 = vmax.f32 %v399_v60, 0.0 }
  0xf3   : > { %v400_v61 = vpop.f32.mrf.mxu0 }
  0xf4   : > { %v401_v62 = vadd.f32 %v3456_v36, %v400_v61 }
  0xf6   : > { %v498_v0 = vmax.f32 %v401_v62, 0.0 }
  0xf8   : > { %v3496_v3 = vpack.c.bf16 %v498_v0, %v497_v63 }
  0xfb   : > { %v403_v5 = vpop.f32.mrf.mxu0 }
  0xfc   : > { %v404_v6 = vadd.f32 %v3456_v36, %v403_v5  ;;  %v3545_v5 = vld [vmem:[%s3351_s23 + $0xf0] sm:$0xff] }
  0xfe   : > { %442 = vmatmul.bf16.gmra.mxu0 %v301_v4  ;;  %v499_v13 = vmax.f32 %v404_v6, 0.0  ;;  %v3548_v6 = vld [vmem:[%s3351_s23 + $0xf8] sm:$0xff] }
 0x103   : > { %v405_v7 = vpop.f32.mrf.mxu0 }
 0x104   : > { %v406_v10 = vadd.f32 %v3456_v36, %v405_v7 }
 0x106   : > { %v500_v16 = vmax.f32 %v406_v10, 0.0  ;;  %v305_v10 = vpack.c.bf16 %v3548_v6, %v3545_v5 }
 0x108   : > { %v3508_v25 = vpack.c.bf16 %v500_v16, %v499_v13 }
 0x10a   : > { %5536 = vst [vmem:[#allocation8_spill] sm:$0xff] %v3508_v25  ;;  %2809 = vmatmul.msk.bf16.vlgmr.msra.gmra.mxu1 %vm622_vm0, %v3508_v25 }
 0x10b   : > { %v408_v31 = vpop.f32.mrf.mxu0 }
 0x10c   : > { %v409_v34 = vadd.f32 %v3456_v36, %v408_v31 }
 0x10e   : > { %447 = vmatmul.bf16.gmra.mxu0 %v302_v28  ;;  %v501_v38 = vmax.f32 %v409_v34, 0.0  ;;  %v2987_v34 = vld [vmem:[%s5495_s3 + $0xc] sm:$0xf] }
 0x113   : > { %v410_v35 = vpop.f32.mrf.mxu0 }
 0x114   : > { %v411_v37 = vadd.f32 %v3456_v36, %v410_v35  ;;  %v2786_v35 = vld [vmem:[%s5495_s3 + $0x28] sm:$0xf0] }
 0x116   : > { %v502_v39 = vmax.f32 %v411_v37, 0.0  ;;  %v2789_v37 = vor.u32 %v2987_v34, %v2786_v35 }
 0x118   : > { %v3522_v45 = vpack.c.bf16 %v502_v39, %v501_v38  ;;  %1035 = vmatpush.bf16.msrb.mxu1 %v2789_v37 }
 0x11a   : > { %5537 = vst [vmem:[#allocation9_spill] sm:$0xff] %v3522_v45  ;;  %2810 = vmatmul.msk.bf16.gmra.mxu1 %vm622_vm0, %v3522_v45 }
 0x11b   : > { %v413_v47 = vpop.f32.mrf.mxu0 }
 0x11c   : > { %v414_v48 = vadd.f32 %v3456_v36, %v413_v47  ;;  %v3568_v47 = vld [vmem:[%s3351_s23 + $0x108] sm:$0xff] }
 0x11e   : > { %452 = vmatmul.bf16.gmra.mxu0 %v303_v46  ;;  %v503_v51 = vmax.f32 %v414_v48, 0.0  ;;  %v3565_v46 = vld [vmem:[%s3351_s23 + $0x100] sm:$0xff] }
 0x123   : > { %v415_v49 = vpop.f32.mrf.mxu0 }
 0x124   : > { %v416_v50 = vadd.f32 %v3456_v36, %v415_v49  ;;  %v306_v49 = vpack.c.bf16 %v3568_v47, %v3565_v46 }
 0x126   : > { %v504_v52 = vmax.f32 %v416_v50, 0.0  ;;  %v2986_v50 = vld [vmem:[%s5495_s3 + $0x4] sm:$0xf] }
 0x128   : > { %v3536_v58 = vpack.c.bf16 %v504_v52, %v503_v51  ;;  %v2778_v51 = vld [vmem:[%s5495_s3 + $0x20] sm:$0xf0] }
 0x12a   : > { %2811 = vmatmul.msk.bf16.gmra.mxu1 %vm622_vm0, %v3536_v58 }
 0x12b   : > { %v418_v60 = vpop.f32.mrf.mxu0 }
 0x12c   : > { %v419_v61 = vadd.f32 %v3456_v36, %v418_v60 }
 0x12e   : > { %457 = vmatmul.bf16.gmra.mxu0 %v304_v59  ;;  %v505_v0 = vmax.f32 %v419_v61, 0.0  ;;  %v2781_v59 = vor.u32 %v2986_v50, %v2778_v51 }
 0x130   : > { %807 = vmatpush.bf16.msrb.mxu2 %v2781_v59 }
 0x133   : > { %v420_v62 = vpop.f32.mrf.mxu0 }
 0x134   : > { %v421_v63 = vadd.f32 %v3456_v36, %v420_v62 }
 0x136   : > { %v506_v4 = vmax.f32 %v421_v63, 0.0 }
 0x138   : > { %v3550_v7 = vpack.c.bf16 %v506_v4, %v505_v0  ;;  %v3585_v4 = vld [vmem:[%s3351_s23 + $0x110] sm:$0xff] }
 0x13a   : > { %2812 = vmatmul.msk.bf16.gmra.mxu1 %vm622_vm0, %v3550_v7 }
 0x13b   : > { %v423_v13 = vpop.f32.mrf.mxu0 }
 0x13c   : > { %v424_v16 = vadd.f32 %v3456_v36, %v423_v13 }
 0x13e   : > { %462 = vmatmul.bf16.gmra.mxu0 %v305_v10  ;;  %v507_v38 = vmax.f32 %v424_v16, 0.0  ;;  %v3588_v10 = vld [vmem:[%s3351_s23 + $0x118] sm:$0xff] }
 0x13f   : > { %5539 = vst [vmem:[#allocation11_spill] sm:$0xff] %v3588_v10  ;;  %v307_v16 = vpack.c.bf16 %v3588_v10, %v3585_v4 }
 0x143   : > { %v425_v28 = vpop.f32.mrf.mxu0 }
 0x144   : > { %v426_v31 = vadd.f32 %v3456_v36, %v425_v28 }
 0x146   : > { %v508_v39 = vmax.f32 %v426_v31, 0.0 }
 0x148   : > { %v3570_v48 = vpack.c.bf16 %v508_v39, %v507_v38  ;;  %v3599_v39 = vld [vmem:[%s3351_s23 + $0x120] sm:$0xff] }
 0x149   : > { %5540 = vst [vmem:[#allocation12_spill] sm:$0xff] %v3599_v39 }
 0x14a   : > { %5538 = vst [vmem:[#allocation10_spill] sm:$0xff] %v3570_v48  ;;  %2813 = vmatmul.msk.bf16.gmra.mxu1 %vm622_vm0, %v3570_v48 }
 0x14b   : > { %v428_v52 = vpop.f32.mrf.mxu0 }
 0x14c   : > { %v429_v60 = vadd.f32 %v3456_v36, %v428_v52 }
 0x14e   : > { %467 = vmatmul.bf16.gmra.mxu0 %v306_v49  ;;  %v509_v63 = vmax.f32 %v429_v60, 0.0  ;;  %v3602_v49 = vld [vmem:[%s3351_s23 + $0x128] sm:$0xff] }
 0x14f   : > { %5541 = vst [vmem:[#allocation13_spill] sm:$0xff] %v3602_v49  ;;  %v308_v51 = vpack.c.bf16 %v3602_v49, %v3599_v39 }
 0x153   : > { %v430_v61 = vpop.f32.mrf.mxu0 }
 0x154   : > { %v431_v62 = vadd.f32 %v3456_v36, %v430_v61 }
 0x156   : > { %v510_v0 = vmax.f32 %v431_v62, 0.0 }
 0x158   : > { %v3590_v13 = vpack.c.bf16 %v510_v0, %v509_v63  ;;  %v3615_v0 = vld [vmem:[%s3351_s23 + $0x130] sm:$0xff] }
 0x159   : > { %5543 = vst [vmem:[#allocation15_spill] sm:$0xff] %v3615_v0 }
 0x15a   : > { %2814 = vmatmul.msk.bf16.gmra.mxu1 %vm622_vm0, %v3590_v13 }
 0x15b   : > { %v433_v28 = vpop.f32.mrf.mxu0 }
 0x15c   : > { %v434_v31 = vadd.f32 %v3456_v36, %v433_v28 }
 0x15e   : > { %472 = vmatmul.bf16.gmra.mxu0 %v307_v16  ;;  %v511_v37 = vmax.f32 %v434_v31, 0.0  ;;  %v3618_v16 = vld [vmem:[%s3351_s23 + $0x138] sm:$0xff] }
 0x15f   : > { %5544 = vst [vmem:[#allocation16_spill] sm:$0xff] %v3618_v16  ;;  %v309_v31 = vpack.c.bf16 %v3618_v16, %v3615_v0 }
 0x163   : > { %v435_v34 = vpop.f32.mrf.mxu0 }
 0x164   : > { %v436_v35 = vadd.f32 %v3456_v36, %v435_v34 }
 0x166   : > { %v512_v38 = vmax.f32 %v436_v35, 0.0  ;;  %v3631_v35 = vld [vmem:[%s5496_s4] sm:$0xff] }
 0x168   : > { %v3604_v50 = vpack.c.bf16 %v512_v38, %v511_v37 }
 0x16a   : > { %5542 = vst [vmem:[#allocation14_spill] sm:$0xff] %v3604_v50  ;;  %2815 = vmatmul.msk.bf16.vlgmr.msra.gmra.mxu2 %vm622_vm0, %v3604_v50  ;;  %2869 = vmatmul.msk.bf16.vlgmr.msrb.gmra.mxu1 %vm622_vm0, %v3466_v44 }
 0x16b   : > { %v438_v52 = vpop.f32.mrf.mxu0 }
 0x16c   : > { %v439_v59 = vadd.f32 %v3456_v36, %v438_v52  ;;  %v3636_v52 = vperm.slane %v3631_v35, 0 }
 0x16e   : > { %477 = vmatmul.bf16.gmra.mxu0 %v308_v51  ;;  %v513_v62 = vmax.f32 %v439_v59, 0.0 }
 0x173   : > { %v440_v60 = vpop.f32.mrf.mxu0 }
 0x174   : > { %v441_v61 = vadd.f32 %v3456_v36, %v440_v60 }
 0x176   : > { %v514_v63 = vmax.f32 %v441_v61, 0.0 }
 0x178   : > { %v3620_v28 = vpack.c.bf16 %v514_v63, %v513_v62  ;;  %v3639_v62 = vld [vmem:[%s3351_s23 + $0x140] sm:$0xff]  ;;  %v3642_v63 = vld [vmem:[%s3351_s23 + $0x148] sm:$0xff] }
 0x179   : > { %5546 = vst [vmem:[#allocation18_spill] sm:$0xff] %v3642_v63 }
 0x17a   : > { %5545 = vst [vmem:[#allocation17_spill] sm:$0xff] %v3620_v28  ;;  %2816 = vmatmul.msk.bf16.gmra.mxu2 %vm622_vm0, %v3620_v28  ;;  %2870 = vmatmul.msk.bf16.gmra.mxu1 %vm622_vm0, %v3484_v57 }
 0x17b   : > { %v443_v34 = vpop.f32.mrf.mxu0 }
 0x17c   : > { %v444_v37 = vadd.f32 %v3456_v36, %v443_v34 }
 0x17e   : > { %482 = vmatmul.bf16.gmra.mxu0 %v309_v31  ;;  %v515_v59 = vmax.f32 %v444_v37, 0.0  ;;  %v310_v37 = vpack.c.bf16 %v3642_v63, %v3639_v62 }
 0x183   : > { %v445_v38 = vpop.f32.mrf.mxu0 }
 0x184   : > { %v446_v51 = vadd.f32 %v3456_v36, %v445_v38 }
 0x186   : > { %v516_v60 = vmax.f32 %v446_v51, 0.0 }
 0x187   : > { %v710_v61 = vpop.f32.mrf.mxu1 }
 0x188   : > { %v3644_v31 = vpack.c.bf16 %v516_v60, %v515_v59  ;;  %v711_v16 = vadd.f32 %v710_v61, %v3636_v52 }
 0x18a   : > { %5547 = vst [vmem:[#allocation19_spill] sm:$0xff] %v3644_v31  ;;  %2817 = vmatmul.msk.bf16.gmra.mxu2 %vm622_vm0, %v3644_v31  ;;  %2871 = vmatmul.msk.bf16.gmra.mxu1 %vm622_vm0, %v3496_v3  ;;  %v1604_v34 = vmul.f32 %v711_v16, %v3406_v17 }
 0x18b   : > { %v448_v38 = vpop.f32.mrf.mxu0 }
 0x18c   : > { %1652 = vadd.xlane.f32.xlu0 %v1604_v34  ;;  %v449_v60 = vadd.f32 %v3456_v36, %v448_v38 }
 0x18e   : > { %487 = vmatmul.bf16.gmra.mxu0 %v310_v37  ;;  %v517_v39 = vmax.f32 %v449_v60, 0.0 }
 0x18f   : > { %v712_v51 = vpop.f32.mrf.mxu1 }
 0x190   : > { %v713_v59 = vadd.f32 %v712_v51, %v3636_v52 }
 0x192   : > { %v1605_v61 = vmul.f32 %v713_v59, %v3409_v18 }
 0x193   : > { %v450_v0 = vpop.f32.mrf.mxu0 }
 0x194   : > { %v451_v49 = vadd.f32 %v3456_v36, %v450_v0  ;;  %1654 = vadd.xlane.f32.xlu1 %v1605_v61  ;;  %v2800_v61 = vld [vmem:[%s5495_s3 + $0x18] sm:$0xf] }
 0x196   : > { %v518_v10 = vmax.f32 %v451_v49, 0.0 }
 0x197   : > { %v715_v17 = vpop.f32.mrf.mxu1 }
 0x198   : > { %v3658_v16 = vpack.c.bf16 %v518_v10, %v517_v39  ;;  %v716_v63 = vadd.f32 %v715_v17, %v3636_v52  ;;  %v2993_v17 = vld [vmem:[%s5495_s3 + $0x34] sm:$0xf0] }
 0x19a   : > { %5548 = vst [vmem:[#allocation20_spill] sm:$0xff] %v3658_v16  ;;  %2818 = vmatmul.msk.bf16.gmra.mxu2 %vm622_vm0, %v3658_v16  ;;  %2872 = vmatmul.msk.bf16.gmra.mxu1 %vm622_vm0, %v3508_v25  ;;  %v1606_v34 = vmul.f32 %v716_v63, %v3414_v20 }
 0x19b   : > { %v453_v18 = vpop.f32.mrf.mxu0 }
 0x19c   : > { %1656 = vadd.xlane.f32.xlu2 %v1606_v34  ;;  %v454_v10 = vadd.f32 %v3456_v36, %v453_v18  ;;  %v2801_v34 = vor.u32 %v2993_v17, %v2800_v61 }
 0x19e   : > { %2806 = vmatmul.msk.bf16.vlgmr.msrb.gmra.mxu0 %vm622_vm0, %v3466_v44  ;;  %v519_v51 = vmax.f32 %v454_v10, 0.0 }
 0x19f   : > { %v717_v0 = vpop.f32.mrf.mxu1  ;;  %1377 = vmatpush.bf16.msra.mxu0 %v2801_v34 }
 0x1a0   : > { %v718_v49 = vadd.f32 %v717_v0, %v3636_v52  ;;  %v2792_v0 = vld [vmem:[%s5495_s3 + $0x10] sm:$0xf] }
 0x1a2   : > { %v1607_v39 = vmul.f32 %v718_v49, %v3417_v21  ;;  %v2992_v49 = vld [vmem:[%s5495_s3 + $0x2c] sm:$0xf0] }
 0x1a3   : > { %v455_v37 = vpop.f32.mrf.mxu0  ;;  %v2793_v10 = vor.u32 %v2992_v49, %v2792_v0 }
 0x1a4   : > { %v456_v38 = vadd.f32 %v3456_v36, %v455_v37  ;;  %1658 = vadd.xlane.f32.xlu0 %v1607_v39 }
 0x1a5   : > { %1149 = vmatpush.bf16.msra.mxu2 %v2793_v10 }
 0x1a6   : > { %v520_v59 = vmax.f32 %v456_v38, 0.0 }
 0x1a7   : > { %v720_v60 = vpop.f32.mrf.mxu1 }
 0x1a8   : > { %v3672_v20 = vpack.c.bf16 %v520_v59, %v519_v51  ;;  %v721_v63 = vadd.f32 %v720_v60, %v3636_v52 }
 0x1aa   : > { %5549 = vst [vmem:[#allocation21_spill] sm:$0xff] %v3672_v20  ;;  %2819 = vmatmul.msk.bf16.gmra.mxu2 %vm622_vm0, %v3672_v20  ;;  %2873 = vmatmul.msk.bf16.gmra.mxu1 %vm622_vm0, %v3522_v45  ;;  %v1608_v21 = vmul.f32 %v721_v63, %v3422_v23 }
 0x1ab   : > { %v458_v18 = vpop.f32.mrf.mxu0 }
 0x1ac   : > { %1660 = vadd.xlane.f32.xlu1 %v1608_v21  ;;  %v459_v37 = vadd.f32 %v3456_v36, %v458_v18 }
 0x1ae   : > { %2807 = vmatmul.msk.bf16.gmra.mxu0 %vm622_vm0, %v3484_v57  ;;  %v521_v60 = vmax.f32 %v459_v37, 0.0 }
 0x1af   : > { %v722_v39 = vpop.f32.mrf.mxu1 }
 0x1b0   : > { %v723_v23 = vadd.f32 %v722_v39, %v3636_v52 }
 0x1b2   : > { %v1609_v38 = vmul.f32 %v723_v23, %v3425_v24 }
 0x1b3   : > { %v460_v51 = vpop.f32.mrf.mxu0 }
 0x1b4   : > { %v461_v59 = vadd.f32 %v3456_v36, %v460_v51  ;;  %1662 = vadd.xlane.f32.xlu2 %v1609_v38 }
 0x1b6   : > { %v522_v63 = vmax.f32 %v461_v59, 0.0 }
 0x1b7   : > { %v725_v61 = vpop.f32.mrf.mxu1 }
 0x1b8   : > { %v3698_v17 = vpack.c.bf16 %v522_v63, %v521_v60  ;;  %v726_v21 = vadd.f32 %v725_v61, %v3636_v52  ;;  %v2784_v60 = vld [vmem:[%s5495_s3 + $0x8] sm:$0xf] }
 0x1b9   : > { %v2991_v63 = vld [vmem:[%s5495_s3 + $0x24] sm:$0xf0] }
 0x1ba   : > { %5550 = vst [vmem:[#allocation22_spill] sm:$0xff] %v3698_v17  ;;  %2820 = vmatmul.msk.bf16.gmra.mxu2 %vm622_vm0, %v3698_v17  ;;  %2874 = vmatmul.msk.bf16.gmra.mxu1 %vm622_vm0, %v3536_v58  ;;  %v1610_v34 = vmul.f32 %v726_v21, %v3430_v26 }
 0x1bb   : > { %v463_v24 = vpop.f32.mrf.mxu0 }
 0x1bc   : > { %1664 = vadd.xlane.f32.xlu0 %v1610_v34  ;;  %v464_v0 = vadd.f32 %v3456_v36, %v463_v24 }
 0x1be   : > { %2808 = vmatmul.msk.bf16.gmra.mxu0 %vm622_vm0, %v3496_v3  ;;  %v523_v23 = vmax.f32 %v464_v0, 0.0 }
 0x1bf   : > { %v727_v18 = vpop.f32.mrf.mxu1 }
 0x1c0   : > { %v728_v49 = vadd.f32 %v727_v18, %v3636_v52 }
 0x1c2   : > { %v1611_v10 = vmul.f32 %v728_v49, %v3433_v27  ;;  %v2785_v27 = vor.u32 %v2991_v63, %v2784_v60 }
 0x1c3   : > { %v465_v39 = vpop.f32.mrf.mxu0 }
 0x1c4   : > { %v466_v37 = vadd.f32 %v3456_v36, %v465_v39  ;;  %1666 = vadd.xlane.f32.xlu1 %v1611_v10  ;;  %921 = vmatpush.bf16.msrb.mxu3 %v2785_v27 }
 0x1c6   : > { %v524_v38 = vmax.f32 %v466_v37, 0.0 }
 0x1c7   : > { %v730_v51 = vpop.f32.mrf.mxu1 }
 0x1c8   : > { %v3712_v26 = vpack.c.bf16 %v524_v38, %v523_v23  ;;  %v731_v59 = vadd.f32 %v730_v51, %v3636_v52 }
 0x1ca   : > { %5551 = vst [vmem:[#allocation23_spill] sm:$0xff] %v3712_v26  ;;  %2821 = vmatmul.msk.bf16.vlgmr.msra.gmra.mxu3 %vm622_vm0, %v3712_v26  ;;  %2827 = vmatmul.msk.bf16.vlgmr.msrb.gmra.mxu2 %vm622_vm0, %v3466_v44  ;;  %v1612_v61 = vmul.f32 %v731_v59, %v3438_v29 }
 0x1cb   : > { %2875 = vmatmul.msk.bf16.gmra.mxu1 %vm622_vm0, %v3550_v7  ;;  %v468_v21 = vpop.f32.mrf.mxu0 }
 0x1cc   : > { %1668 = vadd.xlane.f32.xlu2 %v1612_v61  ;;  %v469_v24 = vadd.f32 %v3456_v36, %v468_v21 }
 0x1ce   : > { %2932 = vmatmul.msk.bf16.vlgmr.msra.gmra.mxu0 %vm622_vm0, %v3466_v44  ;;  %v525_v10 = vmax.f32 %v469_v24, 0.0 }
 0x1cf   : > { %v732_v34 = vpop.f32.mrf.mxu1 }
 0x1d0   : > { %v733_v18 = vadd.f32 %v732_v34, %v3636_v52 }
 0x1d2   : > { %v1613_v0 = vmul.f32 %v733_v18, %v3441_v30 }
 0x1d3   : > { %v470_v49 = vpop.f32.mrf.mxu0 }
 0x1d4   : > { %v471_v29 = vadd.f32 %v3456_v36, %v470_v49  ;;  %1670 = vadd.xlane.f32.xlu0 %v1613_v0 }
 0x1d6   : > { %v526_v39 = vmax.f32 %v471_v29, 0.0 }
 0x1d7   : > { %v735_v23 = vpop.f32.mrf.mxu1 }
 0x1d8   : > { %v3734_v37 = vpack.c.bf16 %v526_v39, %v525_v10  ;;  %v736_v38 = vadd.f32 %v735_v23, %v3636_v52 }
 0x1da   : > { %5552 = vst [vmem:[#allocation24_spill] sm:$0xff] %v3734_v37  ;;  %2822 = vmatmul.msk.bf16.gmra.mxu3 %vm622_vm0, %v3734_v37  ;;  %2828 = vmatmul.msk.bf16.gmra.mxu2 %vm622_vm0, %v3484_v57  ;;  %v1614_v51 = vmul.f32 %v736_v38, %v3446_v32 }
 0x1db   : > { %2876 = vmatmul.msk.bf16.gmra.mxu1 %vm622_vm0, %v3570_v48  ;;  %v473_v30 = vpop.f32.mrf.mxu0 }
 0x1dc   : > { %1672 = vadd.xlane.f32.xlu1 %v1614_v51  ;;  %v474_v60 = vadd.f32 %v3456_v36, %v473_v30 }
 0x1de   : > { %2933 = vmatmul.msk.bf16.gmra.mxu0 %vm622_vm0, %v3484_v57  ;;  %v527_v21 = vmax.f32 %v474_v60, 0.0 }
 0x1df   : > { %v737_v59 = vpop.f32.mrf.mxu1 }
 0x1e0   : > { %v738_v63 = vadd.f32 %v737_v59, %v3636_v52 }
 0x1e2   : > { %v1615_v27 = vmul.f32 %v738_v63, %v3449_v33 }
 0x1e3   : > { %v475_v61 = vpop.f32.mrf.mxu0 }
 0x1e4   : > { %v476_v34 = vadd.f32 %v3456_v36, %v475_v61  ;;  %1674 = vadd.xlane.f32.xlu2 %v1615_v27 }
 0x1e6   : > { %v528_v32 = vmax.f32 %v476_v34, 0.0 }
 0x1e7   : > { %v3750_v24 = vpop.f32.mrf.mxu1 }
 0x1e8   : > { %v3752_v18 = vpack.c.bf16 %v528_v32, %v527_v21 }
 0x1ea   : > { %2823 = vmatmul.msk.bf16.gmra.mxu3 %vm622_vm0, %v3752_v18  ;;  %2829 = vmatmul.msk.bf16.gmra.mxu2 %vm622_vm0, %v3496_v3 }
 0x1eb   : > { %2877 = vmatmul.msk.bf16.gmra.mxu1 %vm622_vm0, %v3590_v13  ;;  %v478_v33 = vpop.f32.mrf.mxu0 }
 0x1ec   : > { %v479_v29 = vadd.f32 %v3456_v36, %v478_v33 }
 0x1ed   : > { %v740_v0 = vpop.f32.mrf.mxu2 }
 0x1ee   : > { %v741_v49 = vadd.f32 %v740_v0, %v3636_v52  ;;  %2934 = vmatmul.msk.bf16.gmra.mxu0 %vm622_vm0, %v3496_v3  ;;  %v529_v38 = vmax.f32 %v479_v29, 0.0 }
 0x1ef   : > { %v3763_v10 = vpop.f32.mrf.mxu1 }
 0x1f0   : > { %v1616_v39 = vmul.f32 %v741_v49, %v3461_v42 }
 0x1f2   : > { %1676 = vadd.xlane.f32.xlu0 %v1616_v39 }
 0x1f3   : > { %v480_v23 = vpop.f32.mrf.mxu0 }
 0x1f4   : > { %v481_v51 = vadd.f32 %v3456_v36, %v480_v23 }
 0x1f5   : > { %v742_v30 = vpop.f32.mrf.mxu2 }
 0x1f6   : > { %v530_v59 = vmax.f32 %v481_v51, 0.0  ;;  %v743_v60 = vadd.f32 %v742_v30, %v3636_v52 }
 0x1f7   : > { %v3769_v63 = vpop.f32.mrf.mxu1 }
 0x1f8   : > { %v3771_v27 = vpack.c.bf16 %v530_v59, %v529_v38  ;;  %v1617_v61 = vmul.f32 %v743_v60, %v3464_v43 }
 0x1fa   : > { %2824 = vmatmul.msk.bf16.gmra.mxu3 %vm622_vm0, %v3771_v27  ;;  %1678 = vadd.xlane.f32.xlu1 %v1617_v61 }
 0x1fb   : > { %2830 = vmatmul.msk.bf16.gmra.mxu2 %vm622_vm0, %v3508_v25  ;;  %2878 = vmatmul.msk.bf16.gmra.mxu1 %vm622_vm0, %v3604_v50  ;;  %v483_v42 = vpop.f32.mrf.mxu0 }
 0x1fc   : > { %v484_v43 = vadd.f32 %v3456_v36, %v483_v42 }
 0x1fd   : > { %v745_v21 = vpop.f32.mrf.mxu2 }
 0x1fe   : > { %v746_v34 = vadd.f32 %v745_v21, %v3636_v52  ;;  %2935 = vmatmul.msk.bf16.gmra.mxu0 %vm622_vm0, %v3508_v25  ;;  %v531_v49 = vmax.f32 %v484_v43, 0.0 }
 0x1ff   : > { %v3783_v32 = vpop.f32.mrf.mxu1 }
 0x200   : > { %v1618_v33 = vmul.f32 %v746_v34, %v3479_v55 }
 0x202   : > { %1680 = vadd.xlane.f32.xlu2 %v1618_v33 }
 0x203   : > { %v485_v0 = vpop.f32.mrf.mxu0 }
 0x204   : > { %v486_v29 = vadd.f32 %v3456_v36, %v485_v0 }
 0x205   : > { %v747_v39 = vpop.f32.mrf.mxu2 }
 0x206   : > { %v532_v23 = vmax.f32 %v486_v29, 0.0  ;;  %v748_v38 = vadd.f32 %v747_v39, %v3636_v52 }
 0x207   : > { %v3789_v51 = vpop.f32.mrf.mxu1 }
 0x208   : > { %5553 = vst [vmem:[#allocation25_spill] sm:$0xff] %v3789_v51  ;;  %v3791_v30 = vpack.c.bf16 %v532_v23, %v531_v49  ;;  %v1619_v59 = vmul.f32 %v748_v38, %v3482_v56 }
 0x20a   : > { %2825 = vmatmul.msk.bf16.gmra.mxu3 %vm622_vm0, %v3791_v30  ;;  %1682 = vadd.xlane.f32.xlu0 %v1619_v59 }
 0x20b   : > { %2831 = vmatmul.msk.bf16.gmra.mxu2 %vm622_vm0, %v3522_v45  ;;  %2879 = vmatmul.msk.bf16.gmra.mxu1 %vm622_vm0, %v3620_v28  ;;  %v488_v55 = vpop.f32.mrf.mxu0 }
 0x20c   : > { %v489_v56 = vadd.f32 %v3456_v36, %v488_v55 }
 0x20d   : > { %v750_v60 = vpop.f32.mrf.mxu2 }
 0x20e   : > { %v751_v61 = vadd.f32 %v750_v60, %v3636_v52  ;;  %2936 = vmatmul.msk.bf16.gmra.mxu0 %vm622_vm0, %v3522_v45  ;;  %v533_v43 = vmax.f32 %v489_v56, 0.0 }
 0x20f   : > { %v3803_v42 = vpop.f32.mrf.mxu1 }
 0x210   : > { %5554 = vst [vmem:[#allocation26_spill] sm:$0xff] %v3803_v42  ;;  %v1620_v21 = vmul.f32 %v751_v61, %v3491_v1  ;;  %v4248_v42 = vld [vmem:[%s3351_s23 + $0x98] sm:$0xff] }
 0x211   : > { %5624 = vst [vmem:[#allocation84_spill] sm:$0xff] %v4248_v42 }
 0x212   : > { %1684 = vadd.xlane.f32.xlu1 %v1620_v21 }
 0x213   : > { %v490_v34 = vpop.f32.mrf.mxu0 }
 0x214   : > { %v491_v33 = vadd.f32 %v3456_v36, %v490_v34 }
 0x215   : > { %v752_v0 = vpop.f32.mrf.mxu2 }
 0x216   : > { %v534_v49 = vmax.f32 %v491_v33, 0.0  ;;  %v753_v29 = vadd.f32 %v752_v0, %v3636_v52  ;;  %v2988_v0 = vld [vmem:[%s5495_s3 + $0x14] sm:$0xf] }
 0x217   : > { %v3809_v39 = vpop.f32.mrf.mxu1 }
 0x218   : > { %5555 = vst [vmem:[#allocation27_spill] sm:$0xff] %v3809_v39  ;;  %v3811_v23 = vpack.c.bf16 %v534_v49, %v533_v43  ;;  %v1621_v38 = vmul.f32 %v753_v29, %v3494_v2  ;;  %v2794_v49 = vld [vmem:[%s5495_s3 + $0x30] sm:$0xf0] }
 0x21a   : > { %2826 = vmatmul.msk.bf16.gmra.mxu3 %vm622_vm0, %v3811_v23  ;;  %1686 = vadd.xlane.f32.xlu2 %v1621_v38 }
 0x21b   : > { %2832 = vmatmul.msk.bf16.gmra.mxu2 %vm622_vm0, %v3536_v58  ;;  %2880 = vmatmul.msk.bf16.gmra.mxu1 %vm622_vm0, %v3644_v31  ;;  %v695_v36 = vpop.f32.mrf.mxu0 }
 0x21c   : > { %v696_v1 = vadd.f32 %v695_v36, %v3636_v52 }
 0x21d   : > { %v755_v59 = vpop.f32.mrf.mxu2 }
 0x21e   : > { %2937 = vmatmul.msk.bf16.gmra.mxu0 %vm622_vm0, %v3536_v58  ;;  %v1598_v55 = vmul.f32 %v696_v1, %v3382_v8  ;;  %v756_v60 = vadd.f32 %v755_v59, %v3636_v52 }
 0x21f   : > { %v3824_v2 = vpop.f32.mrf.mxu1 }
 0x220   : > { %5556 = vst [vmem:[#allocation28_spill] sm:$0xff] %v3824_v2  ;;  %1640 = vadd.xlane.f32.xlu0 %v1598_v55  ;;  %v1622_v34 = vmul.f32 %v756_v60, %v3503_v19  ;;  %v2797_v19 = vor.u32 %v2988_v0, %v2794_v49 }
 0x222   : > { %1263 = vmatpush.bf16.msra.mxu3 %v2797_v19 }
 0x223   : > { %v697_v61 = vpop.f32.mrf.mxu0 }
 0x224   : > { %v698_v29 = vadd.f32 %v697_v61, %v3636_v52 }
 0x225   : > { %v757_v56 = vpop.f32.mrf.mxu2 }
 0x226   : > { %v758_v21 = vadd.f32 %v757_v56, %v3636_v52  ;;  %v1599_v59 = vmul.f32 %v698_v29, %v3385_v9  ;;  %v2989_v56 = vld [vmem:[%s5495_s3 + $0x1c] sm:$0xf] }
 0x227   : > { %v3829_v43 = vpop.f32.mrf.mxu1 }
 0x228   : > { %5557 = vst [vmem:[#allocation29_spill] sm:$0xff] %v3829_v43  ;;  %1688 = vadd.xlane.f32.xlu0 %v1622_v34  ;;  %v1623_v33 = vmul.f32 %v758_v21, %v3506_v22  ;;  %v2802_v21 = vld [vmem:[%s5495_s3 + $0x38] sm:$0xf0] }
 0x229   : > { %v2805_v34 = vor.u32 %v2989_v56, %v2802_v21 }
 0x22a   : > { %1690 = vadd.xlane.f32.xlu1 %v1623_v33  ;;  %2848 = vmatmul.msk.bf16.vlgmr.msrb.gmra.mxu3 %vm622_vm0, %v3466_v44 }
 0x22b   : > { %2833 = vmatmul.msk.bf16.gmra.mxu2 %vm622_vm0, %v3550_v7  ;;  %2881 = vmatmul.msk.bf16.gmra.mxu1 %vm622_vm0, %v3658_v16  ;;  %v700_v22 = vpop.f32.mrf.mxu0 }
 0x22c   : > { %v701_v38 = vadd.f32 %v700_v22, %v3636_v52  ;;  %1491 = vmatpush.bf16.msra.mxu1 %v2805_v34 }
 0x22d   : > { %v760_v36 = vpop.f32.mrf.mxu2 }
 0x22e   : > { %v761_v1 = vadd.f32 %v760_v36, %v3636_v52  ;;  %2938 = vmatmul.msk.bf16.gmra.mxu0 %vm622_vm0, %v3550_v7  ;;  %v1600_v61 = vmul.f32 %v701_v38, %v3390_v11 }
 0x22f   : > { %v3850_v55 = vpop.f32.mrf.mxu1 }
 0x230   : > { %5558 = vst [vmem:[#allocation30_spill] sm:$0xff] %v3850_v55  ;;  %1642 = vadd.xlane.f32.xlu0 %v1599_v59  ;;  %v1624_v60 = vmul.f32 %v761_v1, %v3517_v40 }
 0x232   : > { %1692 = vadd.xlane.f32.xlu2 %v1624_v60  ;;  %1644 = vadd.xlane.f32.xlu1 %v1600_v61 }
 0x233   : > { %v702_v33 = vpop.f32.mrf.mxu0 }
 0x234   : > { %v703_v0 = vadd.f32 %v702_v33, %v3636_v52 }
 0x235   : > { %v762_v49 = vpop.f32.mrf.mxu2 }
 0x236   : > { %v763_v40 = vadd.f32 %v762_v49, %v3636_v52  ;;  %v1601_v19 = vmul.f32 %v703_v0, %v3393_v12  ;;  %v3885_v49 = vperm.slane %v3631_v35, 6 }
 0x237   : > { %v3862_v29 = vpop.f32.mrf.mxu1 }
 0x238   : > { %5559 = vst [vmem:[#allocation31_spill] sm:$0xff] %v3862_v29  ;;  %v1625_v22 = vmul.f32 %v763_v40, %v3520_v41 }
 0x239   : > { %5562 = vst [vmem:[#allocation34_spill] sm:$0xff] %v3885_v49 }
 0x23a   : > { %2849 = vmatmul.msk.bf16.gmra.mxu3 %vm622_vm0, %v3484_v57  ;;  %1646 = vadd.xlane.f32.xlu1 %v1601_v19 }
 0x23b   : > { %2834 = vmatmul.msk.bf16.gmra.mxu2 %vm622_vm0, %v3570_v48  ;;  %2882 = vmatmul.msk.bf16.gmra.mxu1 %vm622_vm0, %v3672_v20  ;;  %v705_v38 = vpop.f32.mrf.mxu0 }
 0x23c   : > { %1694 = vadd.xlane.f32.xlu0 %v1625_v22  ;;  %v706_v36 = vadd.f32 %v705_v38, %v3636_v52 }
 0x23d   : > { %v765_v1 = vpop.f32.mrf.mxu2 }
 0x23e   : > { %v766_v59 = vadd.f32 %v765_v1, %v3636_v52  ;;  %2939 = vmatmul.msk.bf16.gmra.mxu0 %vm622_vm0, %v3570_v48  ;;  %v1602_v41 = vmul.f32 %v706_v36, %v3398_v14 }
 0x23f   : > { %v3877_v60 = vpop.f32.mrf.mxu1 }
 0x240   : > { %5560 = vst [vmem:[#allocation32_spill] sm:$0xff] %v3877_v60  ;;  %1648 = vadd.xlane.f32.xlu2 %v1602_v41  ;;  %v1626_v61 = vmul.f32 %v766_v59, %v3531_v53 }
 0x242   : > { %1696 = vadd.xlane.f32.xlu1 %v1626_v61 }
 0x243   : > { %v707_v56 = vpop.f32.mrf.mxu0 }
 0x244   : > { %v708_v21 = vadd.f32 %v707_v56, %v3636_v52 }
 0x245   : > { %v767_v34 = vpop.f32.mrf.mxu2 }
 0x246   : > { %v1603_v33 = vmul.f32 %v708_v21, %v3401_v15  ;;  %v768_v40 = vadd.f32 %v767_v34, %v3636_v52 }
 0x248   : > { %v3882_v0 = vpop.f32.mrf.mxu1  ;;  %1650 = vadd.xlane.f32.xlu2 %v1603_v33  ;;  %v1627_v38 = vmul.f32 %v768_v40, %v3534_v54 }
 0x249   : > { %5561 = vst [vmem:[#allocation33_spill] sm:$0xff] %v3882_v0 }
 0x24a   : > { %2850 = vmatmul.msk.bf16.gmra.mxu3 %vm622_vm0, %v3496_v3 }
 0x24b   : > { %2835 = vmatmul.msk.bf16.gmra.mxu2 %vm622_vm0, %v3590_v13  ;;  %2883 = vmatmul.msk.bf16.gmra.mxu1 %vm622_vm0, %v3698_v17  ;;  %v1379_v53 = vpop.f32.mrf.mxu0 }
 0x24c   : > { %v1380_v15 = vadd.f32 %v1379_v53, %v3885_v49 }
 0x24d   : > { %v770_v19 = vpop.f32.mrf.mxu3  ;;  %v3895_v22 = vpop.f32.mrf.mxu2 }
 0x24e   : > { %2940 = vmatmul.msk.bf16.gmra.mxu0 %vm622_vm0, %v3590_v13  ;;  %v2312_v36 = vmul.f32 %v1380_v15, %v3382_v8  ;;  %v771_v1 = vadd.f32 %v770_v19, %v3636_v52 }
 0x250   : > { %v3902_v59 = vpop.f32.mrf.mxu1  ;;  %1698 = vadd.xlane.f32.xlu2 %v1627_v38  ;;  %2354 = vadd.xlane.f32.xlu0 %v2312_v36  ;;  %v1628_v56 = vmul.f32 %v771_v1, %v3545_v5  ;;  %v3928_v1 = vpop.xlane.xlu0 %1652 }
 0x251   : > { %5563 = vst [vmem:[#allocation35_spill] sm:$0xff] %v3902_v59 }
 0x252   : > { %5566 = vst [vmem:[#allocation38_spill] sm:$0xff] %v3928_v1  ;;  %v4177_v1 = vld [vmem:[%s3351_s23 + $0x78] sm:$0xff] }
 0x253   : > { %v1381_v41 = vpop.f32.mrf.mxu0 }
 0x254   : > { %v1382_v61 = vadd.f32 %v1381_v41, %v3885_v49 }
 0x255   : > { %v772_v21 = vpop.f32.mrf.mxu3  ;;  %v3906_v34 = vpop.f32.mrf.mxu2 }
 0x256   : > { %v2313_v33 = vmul.f32 %v1382_v61, %v3385_v9  ;;  %v773_v54 = vadd.f32 %v772_v21, %v3636_v52 }
 0x258   : > { %v3910_v40 = vpop.f32.mrf.mxu1  ;;  %2356 = vadd.xlane.f32.xlu1 %v2313_v33  ;;  %1700 = vadd.xlane.f32.xlu0 %v1628_v56  ;;  %v1629_v9 = vmul.f32 %v773_v54, %v3548_v6 }
 0x259   : > { %5564 = vst [vmem:[#allocation36_spill] sm:$0xff] %v3910_v40 }
 0x25a   : > { %2851 = vmatmul.msk.bf16.gmra.mxu3 %vm622_vm0, %v3508_v25 }
 0x25b   : > { %2836 = vmatmul.msk.bf16.gmra.mxu2 %vm622_vm0, %v3604_v50  ;;  %2884 = vmatmul.msk.bf16.gmra.mxu1 %vm622_vm0, %v3712_v26  ;;  %v1384_v8 = vpop.f32.mrf.mxu0 }
 0x25c   : > { %v1385_v5 = vadd.f32 %v1384_v8, %v3885_v49  ;;  %v3940_v8 = vpop.xlane.xlu0 %1658 }
 0x25d   : > { %v775_v53 = vpop.f32.mrf.mxu3  ;;  %v3920_v15 = vpop.f32.mrf.mxu2  ;;  %5568 = vst [vmem:[#allocation40_spill] sm:$0xff] %v3940_v8 }
 0x25e   : > { %2941 = vmatmul.msk.bf16.gmra.mxu0 %vm622_vm0, %v3604_v50  ;;  %v2314_v19 = vmul.f32 %v1385_v5, %v3390_v11  ;;  %v776_v38 = vadd.f32 %v775_v53, %v3636_v52 }
 0x260   : > { %v3926_v36 = vpop.f32.mrf.mxu1  ;;  %2358 = vadd.xlane.f32.xlu2 %v2314_v19  ;;  %1702 = vadd.xlane.f32.xlu1 %v1629_v9  ;;  %v1630_v6 = vmul.f32 %v776_v38, %v3565_v46  ;;  %v3948_v9 = vpop.xlane.xlu1 %1654 }
 0x261   : > { %5565 = vst [vmem:[#allocation37_spill] sm:$0xff] %v3926_v36  ;;  %v3967_v36 = vld [vmem:[%s3351_s23 + $0x28] sm:$0xff] }
 0x262   : > { %5569 = vst [vmem:[#allocation41_spill] sm:$0xff] %v3948_v9 }
 0x263   : > { %v1386_v41 = vpop.f32.mrf.mxu0 }
 0x264   : > { %v1387_v61 = vadd.f32 %v1386_v41, %v3885_v49 }
 0x265   : > { %v777_v56 = vpop.f32.mrf.mxu3  ;;  %v3932_v21 = vpop.f32.mrf.mxu2 }
 0x266   : > { %v2315_v33 = vmul.f32 %v1387_v61, %v3393_v12  ;;  %v778_v11 = vadd.f32 %v777_v56, %v3636_v52 }
 0x268   : > { %v3936_v54 = vpop.f32.mrf.mxu1  ;;  %2360 = vadd.xlane.f32.xlu0 %v2315_v33  ;;  %1704 = vadd.xlane.f32.xlu2 %v1630_v6  ;;  %v1631_v5 = vmul.f32 %v778_v11, %v3568_v47  ;;  %v3958_v6 = vpop.xlane.xlu0 %1664 }
 0x269   : > { %5567 = vst [vmem:[#allocation39_spill] sm:$0xff] %v3936_v54  ;;  %v3962_v11 = vpop.xlane.xlu1 %1660 }
 0x26a   : > { %2852 = vmatmul.msk.bf16.gmra.mxu3 %vm622_vm0, %v3522_v45  ;;  %5571 = vst [vmem:[#allocation43_spill] sm:$0xff] %v3958_v6 }
 0x26b   : > { %2837 = vmatmul.msk.bf16.gmra.mxu2 %vm622_vm0, %v3620_v28  ;;  %2885 = vmatmul.msk.bf16.gmra.mxu1 %vm622_vm0, %v3734_v37  ;;  %v1389_v46 = vpop.f32.mrf.mxu0  ;;  %5572 = vst [vmem:[#allocation44_spill] sm:$0xff] %v3962_v11 }
 0x26c   : > { %v1390_v12 = vadd.f32 %v1389_v46, %v3885_v49 }
 0x26d   : > { %v780_v53 = vpop.f32.mrf.mxu3  ;;  %v3950_v19 = vpop.f32.mrf.mxu2 }
 0x26e   : > { %2942 = vmatmul.msk.bf16.gmra.mxu0 %vm622_vm0, %v3620_v28  ;;  %v2316_v38 = vmul.f32 %v1390_v12, %v3398_v14  ;;  %v781_v41 = vadd.f32 %v780_v53, %v3636_v52  ;;  %v3973_v53 = vpop.xlane.xlu2 %1656 }
 0x26f   : > { %5574 = vst [vmem:[#allocation46_spill] sm:$0xff] %v3973_v53 }
 0x270   : > { %v3956_v61 = vpop.f32.mrf.mxu1  ;;  %2362 = vadd.xlane.f32.xlu1 %v2316_v38  ;;  %1706 = vadd.xlane.f32.xlu0 %v1631_v5  ;;  %v1632_v33 = vmul.f32 %v781_v41, %v3585_v4  ;;  %v3977_v4 = vpop.xlane.xlu0 %1670 }
 0x271   : > { %5570 = vst [vmem:[#allocation42_spill] sm:$0xff] %v3956_v61 }
 0x272   : > { %5575 = vst [vmem:[#allocation47_spill] sm:$0xff] %v3977_v4 }
 0x273   : > { %v1391_v47 = vpop.f32.mrf.mxu0 }
 0x274   : > { %v1392_v56 = vadd.f32 %v1391_v47, %v3885_v49  ;;  %v5576_v47 = vld [vmem:[#allocation11_spill] sm:$0xff] }
 0x275   : > { %v782_v46 = vpop.f32.mrf.mxu3  ;;  %v3964_v54 = vpop.f32.mrf.mxu2 }
 0x276   : > { %v2317_v14 = vmul.f32 %v3967_v36, %v1392_v56  ;;  %v783_v12 = vadd.f32 %v782_v46, %v3636_v52  ;;  %v3985_v46 = vpop.xlane.xlu1 %1666 }
 0x277   : > { %5577 = vst [vmem:[#allocation11_spill] sm:$0xff] %v3985_v46  ;;  %v5582_v46 = vld [vmem:[#allocation12_spill] sm:$0xff] }
 0x278   : > { %v3971_v5 = vpop.f32.mrf.mxu1  ;;  %2364 = vadd.xlane.f32.xlu2 %v2317_v14  ;;  %1708 = vadd.xlane.f32.xlu1 %v1632_v33  ;;  %v1633_v56 = vmul.f32 %v783_v12, %v5576_v47  ;;  %v3998_v12 = vpop.xlane.xlu2 %1662 }
 0x279   : > { %5573 = vst [vmem:[#allocation45_spill] sm:$0xff] %v3971_v5  ;;  %v3992_v5 = vld [vmem:[%s3351_s23 + $0x30] sm:$0xff] }
 0x27a   : > { %2853 = vmatmul.msk.bf16.gmra.mxu3 %vm622_vm0, %v3536_v58  ;;  %5580 = vst [vmem:[#allocation50_spill] sm:$0xff] %v3998_v12  ;;  %v5593_v12 = vld [vmem:[#allocation15_spill] sm:$0xff] }
 0x27b   : > { %2838 = vmatmul.msk.bf16.gmra.mxu2 %vm622_vm0, %v3644_v31  ;;  %2886 = vmatmul.msk.bf16.gmra.mxu1 %vm622_vm0, %v3752_v18  ;;  %v1394_v38 = vpop.f32.mrf.mxu0 }
 0x27c   : > { %v1395_v41 = vadd.f32 %v1394_v38, %v3885_v49  ;;  %v4000_v38 = vpop.xlane.xlu0 %1676 }
 0x27d   : > { %v785_v33 = vpop.f32.mrf.mxu3  ;;  %5581 = vst [vmem:[#allocation51_spill] sm:$0xff] %v4000_v38 }
 0x27e   : > { %v3987_v14 = vpop.f32.mrf.mxu2  ;;  %2943 = vmatmul.msk.bf16.gmra.mxu0 %vm622_vm0, %v3644_v31  ;;  %v2318_v61 = vmul.f32 %v3992_v5, %v1395_v41  ;;  %v786_v4 = vadd.f32 %v785_v33, %v3636_v52  ;;  %v4004_v6 = vpop.xlane.xlu1 %1672  ;;  %v4009_v41 = vld [vmem:[%s3351_s23 + $0x38] sm:$0xff] }
 0x27f   : > { %5578 = vst [vmem:[#allocation48_spill] sm:$0xff] %v3987_v14  ;;  %v3068_v14 = vld [vmem:[%s3351_s23 + $0x20] sm:$0xff] }
 0x280   : > { %v3996_v40 = vpop.f32.mrf.mxu1  ;;  %2366 = vadd.xlane.f32.xlu0 %v2318_v61  ;;  %1710 = vadd.xlane.f32.xlu2 %v1633_v56  ;;  %v1634_v0 = vmul.f32 %v786_v4, %v5582_v46  ;;  %5583 = vst [vmem:[#allocation12_spill] sm:$0xff] %v4004_v6  ;;  %v5588_v46 = vld [vmem:[#allocation13_spill] sm:$0xff] }
 0x281   : > { %5579 = vst [vmem:[#allocation49_spill] sm:$0xff] %v3996_v40  ;;  %v4015_v40 = vpop.xlane.xlu2 %1668 }
 0x282   : > { %5586 = vst [vmem:[#allocation54_spill] sm:$0xff] %v4015_v40 }
 0x283   : > { %v1396_v47 = vpop.f32.mrf.mxu0 }
 0x284   : > { %v1397_v59 = vadd.f32 %v1396_v47, %v3885_v49  ;;  %v4019_v4 = vpop.xlane.xlu0 %1682 }
 0x285   : > { %v787_v60 = vpop.f32.mrf.mxu3  ;;  %5587 = vst [vmem:[#allocation55_spill] sm:$0xff] %v4019_v4  ;;  %v4034_v4 = vld [vmem:[%s3351_s23 + $0x40] sm:$0xff] }
 0x286   : > { %v4006_v29 = vpop.f32.mrf.mxu2  ;;  %v2319_v33 = vmul.f32 %v4009_v41, %v1397_v59  ;;  %v788_v61 = vadd.f32 %v787_v60, %v3636_v52 }
 0x287   : > { %5584 = vst [vmem:[#allocation52_spill] sm:$0xff] %v4006_v29 }
 0x288   : > { %v4013_v56 = vpop.f32.mrf.mxu1  ;;  %2368 = vadd.xlane.f32.xlu1 %v2319_v33  ;;  %1712 = vadd.xlane.f32.xlu0 %v1634_v0  ;;  %v1635_v47 = vmul.f32 %v788_v61, %v5588_v46  ;;  %v4027_v33 = vpop.xlane.xlu1 %1678 }
 0x289   : > { %5585 = vst [vmem:[#allocation53_spill] sm:$0xff] %v4013_v56  ;;  %v4040_v61 = vpop.xlane.xlu2 %1674 }
 0x28a   : > { %2854 = vmatmul.msk.bf16.gmra.mxu3 %vm622_vm0, %v3550_v7  ;;  %5589 = vst [vmem:[#allocation13_spill] sm:$0xff] %v4027_v33 }
 0x28b   : > { %2839 = vmatmul.msk.bf16.gmra.mxu2 %vm622_vm0, %v3658_v16  ;;  %2887 = vmatmul.msk.bf16.gmra.mxu1 %vm622_vm0, %v3771_v27  ;;  %v1399_v59 = vpop.f32.mrf.mxu0  ;;  %5592 = vst [vmem:[#allocation58_spill] sm:$0xff] %v4040_v61 }
 0x28c   : > { %v1400_v60 = vadd.f32 %v1399_v59, %v3885_v49 }
 0x28d   : > { %v790_v0 = vpop.f32.mrf.mxu3 }
 0x28e   : > { %v4029_v56 = vpop.f32.mrf.mxu2  ;;  %2944 = vmatmul.msk.bf16.gmra.mxu0 %vm622_vm0, %v3658_v16  ;;  %v2320_v38 = vmul.f32 %v4034_v4, %v1400_v60  ;;  %v791_v6 = vadd.f32 %v790_v0, %v3636_v52  ;;  %v4051_v60 = vld [vmem:[%s3351_s23 + $0x48] sm:$0xff] }
 0x28f   : > { %5590 = vst [vmem:[#allocation56_spill] sm:$0xff] %v4029_v56 }
 0x290   : > { %v4038_v40 = vpop.f32.mrf.mxu1  ;;  %2370 = vadd.xlane.f32.xlu2 %v2320_v38  ;;  %1714 = vadd.xlane.f32.xlu1 %v1635_v47  ;;  %v1636_v11 = vmul.f32 %v791_v6, %v5593_v12  ;;  %v4046_v55 = vpop.xlane.xlu1 %1684 }
 0x291   : > { %5591 = vst [vmem:[#allocation57_spill] sm:$0xff] %v4038_v40  ;;  %v4057_v40 = vpop.xlane.xlu2 %1680 }
 0x292   : > { %5594 = vst [vmem:[#allocation15_spill] sm:$0xff] %v4046_v55  ;;  %v4076_v55 = vld [vmem:[%s3351_s23 + $0x50] sm:$0xff] }
 0x293   : > { %v1401_v59 = vpop.f32.mrf.mxu0  ;;  %v4042_v46 = vpop.xlane.xlu0 %1640  ;;  %5597 = vst [vmem:[#allocation61_spill] sm:$0xff] %v4057_v40 }
 0x294   : > { %v1402_v33 = vadd.f32 %v1401_v59, %v3885_v49 }
 0x295   : > { %v792_v8 = vpop.f32.mrf.mxu3 }
 0x296   : > { %v4048_v43 = vpop.f32.mrf.mxu2  ;;  %v2321_v0 = vmul.f32 %v4051_v60, %v1402_v33  ;;  %v793_v38 = vadd.f32 %v792_v8, %v3636_v52  ;;  %v5598_v33 = vld [vmem:[#allocation16_spill] sm:$0xff] }
 0x297   : > { %5595 = vst [vmem:[#allocation59_spill] sm:$0xff] %v4048_v43 }
 0x298   : > { %v4055_v47 = vpop.f32.mrf.mxu1  ;;  %2372 = vadd.xlane.f32.xlu0 %v2321_v0  ;;  %1716 = vadd.xlane.f32.xlu2 %v1636_v11  ;;  %v1637_v59 = vmul.f32 %v793_v38, %v5598_v33  ;;  %v4083_v38 = vperm.slane %v3631_v35, 1 }
 0x299   : > { %5596 = vst [vmem:[#allocation60_spill] sm:$0xff] %v4055_v47 }
 0x29a   : > { %2855 = vmatmul.msk.bf16.gmra.mxu3 %vm622_vm0, %v3570_v48  ;;  %v815_v9 = vadd.f32 %v3920_v15, %v4083_v38 }
 0x29b   : > { %2840 = vmatmul.msk.bf16.gmra.mxu2 %vm622_vm0, %v3672_v20  ;;  %2888 = vmatmul.msk.bf16.gmra.mxu1 %vm622_vm0, %v3791_v30  ;;  %v1404_v6 = vpop.f32.mrf.mxu0  ;;  %v4065_v12 = vpop.xlane.xlu0 %1688 }
 0x29c   : > { %v1405_v8 = vadd.f32 %v1404_v6, %v3885_v49  ;;  %v4085_v6 = vpop.xlane.xlu2 %1686 }
 0x29d   : > { %v795_v0 = vpop.f32.mrf.mxu3  ;;  %v4069_v11 = vpop.xlane.xlu1 %1690  ;;  %5602 = vst [vmem:[#allocation64_spill] sm:$0xff] %v4085_v6 }
 0x29e   : > { %5599 = vst [vmem:[#allocation16_spill] sm:$0xff] %v4069_v11  ;;  %v4071_v47 = vpop.f32.mrf.mxu2  ;;  %2945 = vmatmul.msk.bf16.gmra.mxu0 %vm622_vm0, %v3672_v20  ;;  %v2322_v40 = vmul.f32 %v4076_v55, %v1405_v8  ;;  %v796_v61 = vadd.f32 %v795_v0, %v3636_v52 }
 0x29f   : > { %5600 = vst [vmem:[#allocation62_spill] sm:$0xff] %v4071_v47  ;;  %v812_v47 = vadd.f32 %v3906_v34, %v4083_v38 }
 0x2a0   : > { %v4080_v43 = vpop.f32.mrf.mxu1  ;;  %2374 = vadd.xlane.f32.xlu1 %v2322_v40  ;;  %1718 = vadd.xlane.f32.xlu0 %v1637_v59  ;;  %v1638_v0 = vmul.f32 %v796_v61, %v3639_v62 }
 0x2a1   : > { %5601 = vst [vmem:[#allocation63_spill] sm:$0xff] %v4080_v43  ;;  %v4096_v43 = vld [vmem:[%s3351_s23 + $0x58] sm:$0xff] }
 0x2a3   : > { %v1406_v33 = vpop.f32.mrf.mxu0  ;;  %v1643_v11 = vpop.xlane.xlu0 %1642 }
 0x2a4   : > { %v1407_v53 = vadd.f32 %v1406_v33, %v3885_v49  ;;  %v1725_v8 = vmax.f32 %v1643_v11, 0.0 }
 0x2a5   : > { %v797_v56 = vpop.f32.mrf.mxu3  ;;  %v1645_v59 = vpop.xlane.xlu1 %1644 }
 0x2a6   : > { %v4091_v2 = vmul.f32 %v1725_v8, %v812_v47  ;;  %v4093_v40 = vpop.f32.mrf.mxu2  ;;  %v2323_v6 = vmul.f32 %v4096_v43, %v1407_v53  ;;  %v1726_v29 = vmax.f32 %v1645_v59, 0.0  ;;  %v798_v34 = vadd.f32 %v797_v56, %v3636_v52  ;;  %v4108_v61 = vpop.xlane.xlu2 %1692  ;;  %v5606_v53 = vld [vmem:[#allocation18_spill] sm:$0xff] }
 0x2a7   : > { %5603 = vst [vmem:[#allocation65_spill] sm:$0xff] %v4093_v40 }
 0x2a8   : > { %v4102_v33 = vpop.f32.mrf.mxu1  ;;  %2376 = vadd.xlane.f32.xlu2 %v2323_v6  ;;  %1720 = vadd.xlane.f32.xlu1 %v1638_v0  ;;  %v4104_v62 = vmul.f32 %v1726_v29, %v815_v9  ;;  %5605 = vst [vmem:[#allocation67_spill] sm:$0xff] %v4108_v61  ;;  %v1639_v56 = vmul.f32 %v798_v34, %v5606_v53  ;;  %v4119_v29 = vperm.slane %v3631_v35, 2  ;;  %v4124_v6 = vld [vmem:[%s3351_s23 + $0x60] sm:$0xff] }
 0x2a9   : > { %5604 = vst [vmem:[#allocation66_spill] sm:$0xff] %v4102_v33  ;;  %v817_v0 = vadd.f32 %v3932_v21, %v4083_v38  ;;  %v820_v33 = vadd.f32 %v3950_v19, %v4083_v38 }
 0x2aa   : > { %2856 = vmatmul.msk.bf16.gmra.mxu3 %vm622_vm0, %v3590_v13 }
 0x2ab   : > { %2841 = vmatmul.msk.bf16.gmra.mxu2 %vm622_vm0, %v3698_v17  ;;  %2889 = vmatmul.msk.bf16.gmra.mxu1 %vm622_vm0, %v3811_v23  ;;  %v1409_v15 = vpop.f32.mrf.mxu0 }
 0x2ac   : > { %v1410_v52 = vadd.f32 %v1409_v15, %v3885_v49 }
 0x2ad   : > { %v923_v47 = vpop.f32.mrf.mxu3  ;;  %v1647_v9 = vpop.xlane.xlu1 %1646 }
 0x2ae   : > { %v4116_v11 = vpop.f32.mrf.mxu2  ;;  %2946 = vmatmul.msk.bf16.gmra.mxu0 %vm622_vm0, %v3698_v17  ;;  %v2324_v8 = vmul.f32 %v4124_v6, %v1410_v52  ;;  %v1727_v59 = vmax.f32 %v1647_v9, 0.0  ;;  %v924_v15 = vadd.f32 %v923_v47, %v4119_v29 }
 0x2af   : > { %5607 = vst [vmem:[#allocation18_spill] sm:$0xff] %v4116_v11 }
 0x2b0   : > { %v4129_v34 = vpop.f32.mrf.mxu1  ;;  %2378 = vadd.xlane.f32.xlu0 %v2324_v8  ;;  %1722 = vadd.xlane.f32.xlu2 %v1639_v56  ;;  %v4131_v35 = vmul.f32 %v1727_v59, %v817_v0  ;;  %v3060_v8 = vld [vmem:[%s3351_s23] sm:$0xff] }
 0x2b1   : > { %5608 = vst [vmem:[#allocation68_spill] sm:$0xff] %v4129_v34  ;;  %v4142_v34 = vld [vmem:[%s3351_s23 + $0x68] sm:$0xff]  ;;  %v1808_v0 = vmul.f32 %v3060_v8, %v924_v15 }
 0x2b3   : > { %v1411_v53 = vpop.f32.mrf.mxu0  ;;  %v1649_v61 = vpop.xlane.xlu2 %1648 }
 0x2b4   : > { %v1412_v52 = vadd.f32 %v1411_v53, %v3885_v49  ;;  %v1728_v11 = vmax.f32 %v1649_v61, 0.0 }
 0x2b5   : > { %v925_v40 = vpop.f32.mrf.mxu3 }
 0x2b6   : > { %v4137_v21 = vmul.f32 %v1728_v11, %v820_v33  ;;  %v4139_v9 = vpop.f32.mrf.mxu2  ;;  %v2325_v56 = vmul.f32 %v4142_v34, %v1412_v52  ;;  %v926_v19 = vadd.f32 %v925_v40, %v4119_v29  ;;  %v822_v11 = vadd.f32 %v3964_v54, %v4083_v38 }
 0x2b7   : > { %5610 = vst [vmem:[#allocation70_spill] sm:$0xff] %v4139_v9  ;;  %v3063_v9 = vld [vmem:[%s3351_s23 + $0x10] sm:$0xff] }
 0x2b8   : > { %5609 = vst [vmem:[#allocation69_spill] sm:$0xff] %v4137_v21  ;;  %v4146_v47 = vpop.f32.mrf.mxu1  ;;  %2380 = vadd.xlane.f32.xlu1 %v2325_v56  ;;  %1850 = vadd.xlane.f32.xlu0 %v1808_v0  ;;  %v4165_v56 = vld [vmem:[%s3351_s23 + $0x70] sm:$0xff]  ;;  %v3062_v0 = vld [vmem:[%s3351_s23 + $0x8] sm:$0xff] }
 0x2b9   : > { %5611 = vst [vmem:[#allocation71_spill] sm:$0xff] %v4146_v47  ;;  %v1809_v47 = vmul.f32 %v3062_v0, %v926_v19 }
 0x2ba   : > { %2857 = vmatmul.msk.bf16.gmra.mxu3 %vm622_vm0, %v3604_v50 }
 0x2bb   : > { %2842 = vmatmul.msk.bf16.gmra.mxu2 %vm622_vm0, %v3712_v26  ;;  %2953 = vmatmul.msk.bf16.vlgmr.msra.gmra.mxu1 %vm622_vm0, %v3466_v44  ;;  %v1414_v33 = vpop.f32.mrf.mxu0  ;;  %v1651_v61 = vpop.xlane.xlu2 %1650 }
 0x2bc   : > { %v1415_v59 = vadd.f32 %v1414_v33, %v3885_v49  ;;  %v1729_v15 = vmax.f32 %v1651_v61, 0.0 }
 0x2bd   : > { %v928_v53 = vpop.f32.mrf.mxu3 }
 0x2be   : > { %v4158_v40 = vmul.f32 %v1729_v15, %v822_v11  ;;  %v4160_v52 = vpop.f32.mrf.mxu2  ;;  %2947 = vmatmul.msk.bf16.gmra.mxu0 %vm622_vm0, %v3712_v26  ;;  %v2326_v8 = vmul.f32 %v4165_v56, %v1415_v59  ;;  %v929_v33 = vadd.f32 %v928_v53, %v4119_v29 }
 0x2bf   : > { %5613 = vst [vmem:[#allocation73_spill] sm:$0xff] %v4160_v52 }
 0x2c0   : > { %5612 = vst [vmem:[#allocation72_spill] sm:$0xff] %v4158_v40  ;;  %v4169_v54 = vpop.f32.mrf.mxu1  ;;  %2382 = vadd.xlane.f32.xlu2 %v2326_v8  ;;  %1852 = vadd.xlane.f32.xlu1 %v1809_v47  ;;  %v1810_v39 = vmul.f32 %v3063_v9, %v929_v33 }
 0x2c1   : > { %5614 = vst [vmem:[#allocation74_spill] sm:$0xff] %v4169_v54 }
 0x2c3   : > { %v1416_v61 = vpop.f32.mrf.mxu0 }
 0x2c4   : > { %v1417_v11 = vadd.f32 %v1416_v61, %v3885_v49  ;;  %v3066_v61 = vld [vmem:[%s3351_s23 + $0x18] sm:$0xff] }
 0x2c5   : > { %v930_v15 = vpop.f32.mrf.mxu3 }
 0x2c6   : > { %v4173_v52 = vpop.f32.mrf.mxu2  ;;  %v2327_v19 = vmul.f32 %v4177_v1, %v1417_v11  ;;  %v931_v47 = vadd.f32 %v930_v15, %v4119_v29 }
 0x2c7   : > { %5615 = vst [vmem:[#allocation75_spill] sm:$0xff] %v4173_v52 }
 0x2c8   : > { %v4180_v59 = vpop.f32.mrf.mxu1  ;;  %1854 = vadd.xlane.f32.xlu2 %v1810_v39  ;;  %2384 = vadd.xlane.f32.xlu0 %v2327_v19  ;;  %v4195_v39 = vld [vmem:[%s3351_s23 + $0x80] sm:$0xff]  ;;  %v1811_v11 = vmul.f32 %v3066_v61, %v931_v47 }
 0x2c9   : > { %5616 = vst [vmem:[#allocation76_spill] sm:$0xff] %v4180_v59 }
 0x2ca   : > { %2858 = vmatmul.msk.bf16.gmra.mxu3 %vm622_vm0, %v3620_v28  ;;  %v4208_v28 = vld [vmem:[%s3351_s23 + $0x88] sm:$0xff] }
 0x2cb   : > { %2843 = vmatmul.msk.bf16.gmra.mxu2 %vm622_vm0, %v3734_v37  ;;  %2954 = vmatmul.msk.bf16.gmra.mxu1 %vm622_vm0, %v3484_v57  ;;  %v1419_v9 = vpop.f32.mrf.mxu0 }
 0x2cc   : > { %v1420_v53 = vadd.f32 %v1419_v9, %v3885_v49  ;;  %v4202_v9 = vpop.xlane.xlu0 %1694 }
 0x2cd   : > { %v933_v8 = vpop.f32.mrf.mxu3 }
 0x2ce   : > { %v4190_v0 = vpop.f32.mrf.mxu2  ;;  %2948 = vmatmul.msk.bf16.gmra.mxu0 %vm622_vm0, %v3734_v37  ;;  %v2328_v33 = vmul.f32 %v4195_v39, %v1420_v53  ;;  %v934_v19 = vadd.f32 %v933_v8, %v4119_v29  ;;  %v4214_v8 = vpop.xlane.xlu1 %1696 }
 0x2cf   : > { %5617 = vst [vmem:[#allocation77_spill] sm:$0xff] %v4190_v0 }
 0x2d0   : > { %v4199_v15 = vpop.f32.mrf.mxu1  ;;  %2386 = vadd.xlane.f32.xlu1 %v2328_v33  ;;  %1856 = vadd.xlane.f32.xlu0 %v1811_v11  ;;  %v1812_v47 = vmul.f32 %v3068_v14, %v934_v19 }
 0x2d1   : > { %5618 = vst [vmem:[#allocation78_spill] sm:$0xff] %v4199_v15  ;;  %v4237_v15 = vpop.xlane.xlu2 %1698 }
 0x2d3   : > { %v1421_v59 = vpop.f32.mrf.mxu0 }
 0x2d4   : > { %v1422_v54 = vadd.f32 %v1421_v59, %v3885_v49  ;;  %v4219_v59 = vpop.xlane.xlu0 %2354 }
 0x2d5   : > { %v935_v0 = vpop.f32.mrf.mxu3 }
 0x2d6   : > { %v4205_v52 = vpop.f32.mrf.mxu2  ;;  %v2329_v53 = vmul.f32 %v4208_v28, %v1422_v54  ;;  %v936_v33 = vadd.f32 %v935_v0, %v4119_v29 }
 0x2d7   : > { %5619 = vst [vmem:[#allocation79_spill] sm:$0xff] %v4205_v52 }
 0x2d8   : > { %v4212_v61 = vpop.f32.mrf.mxu1  ;;  %2388 = vadd.xlane.f32.xlu2 %v2329_v53  ;;  %1858 = vadd.xlane.f32.xlu1 %v1812_v47  ;;  %v1813_v0 = vmul.f32 %v3967_v36, %v936_v33  ;;  %v4232_v53 = vld [vmem:[%s3351_s23 + $0x90] sm:$0xff] }
 0x2d9   : > { %5620 = vst [vmem:[#allocation80_spill] sm:$0xff] %v4212_v61 }
 0x2da   : > { %2859 = vmatmul.msk.bf16.gmra.mxu3 %vm622_vm0, %v3644_v31 }
 0x2db   : > { %2844 = vmatmul.msk.bf16.gmra.mxu2 %vm622_vm0, %v3752_v18  ;;  %2955 = vmatmul.msk.bf16.gmra.mxu1 %vm622_vm0, %v3496_v3  ;;  %v1424_v14 = vpop.f32.mrf.mxu0 }
 0x2dc   : > { %v1425_v54 = vadd.f32 %v1424_v14, %v3885_v49  ;;  %v4239_v14 = vpop.xlane.xlu1 %2356  ;;  %v4242_v52 = vpop.xlane.xlu0 %1700 }
 0x2dd   : > { %v938_v11 = vpop.f32.mrf.mxu3 }
 0x2de   : > { %v4226_v19 = vpop.f32.mrf.mxu2  ;;  %2949 = vmatmul.msk.bf16.gmra.mxu0 %vm622_vm0, %v3752_v18  ;;  %v2330_v47 = vmul.f32 %v4232_v53, %v1425_v54 }
 0x2df   : > { %5621 = vst [vmem:[#allocation81_spill] sm:$0xff] %v4226_v19  ;;  %v939_v19 = vadd.f32 %v938_v11, %v4119_v29  ;;  %v4254_v11 = vpop.xlane.xlu2 %2358 }
 0x2e0   : > { %v4235_v61 = vpop.f32.mrf.mxu1  ;;  %1860 = vadd.xlane.f32.xlu2 %v1813_v0  ;;  %2390 = vadd.xlane.f32.xlu0 %v2330_v47 }
 0x2e1   : > { %5622 = vst [vmem:[#allocation82_spill] sm:$0xff] %v4235_v61  ;;  %v1814_v0 = vmul.f32 %v3992_v5, %v939_v19 }
 0x2e3   : > { %v1426_v31 = vpop.f32.mrf.mxu0 }
 0x2e4   : > { %v1427_v40 = vadd.f32 %v1426_v31, %v3885_v49  ;;  %v4256_v61 = vpop.xlane.xlu1 %1702  ;;  %v4266_v19 = vpop.xlane.xlu0 %2360 }
 0x2e5   : > { %v940_v36 = vpop.f32.mrf.mxu3  ;;  %5626 = vst [vmem:[#allocation86_spill] sm:$0xff] %v4266_v19 }
 0x2e6   : > { %v4245_v33 = vpop.f32.mrf.mxu2  ;;  %v2331_v54 = vmul.f32 %v4248_v42, %v1427_v40  ;;  %v941_v31 = vadd.f32 %v940_v36, %v4119_v29  ;;  %v4273_v36 = vld [vmem:[%s3351_s23 + $0xa0] sm:$0xff] }
 0x2e7   : > { %5623 = vst [vmem:[#allocation83_spill] sm:$0xff] %v4245_v33 }
 0x2e8   : > { %v4252_v47 = vpop.f32.mrf.mxu1  ;;  %2392 = vadd.xlane.f32.xlu1 %v2331_v54  ;;  %1862 = vadd.xlane.f32.xlu0 %v1814_v0  ;;  %v1815_v33 = vmul.f32 %v4009_v41, %v941_v31  ;;  %v4291_v31 = vld [vmem:[%s3351_s23 + $0xa8] sm:$0xff] }
 0x2e9   : > { %5625 = vst [vmem:[#allocation85_spill] sm:$0xff] %v4252_v47 }
 0x2ea   : > { %2860 = vmatmul.msk.bf16.gmra.mxu3 %vm622_vm0, %v3658_v16  ;;  %5630 = vst [vmem:[#allocation90_spill] sm:$0xff] %v4291_v31 }
 0x2eb   : > { %2845 = vmatmul.msk.bf16.gmra.mxu2 %vm622_vm0, %v3771_v27  ;;  %2956 = vmatmul.msk.bf16.gmra.mxu1 %vm622_vm0, %v3508_v25  ;;  %v1429_v5 = vpop.f32.mrf.mxu0 }
 0x2ec   : > { %v1430_v40 = vadd.f32 %v1429_v5, %v3885_v49  ;;  %v4279_v5 = vpop.xlane.xlu2 %1704  ;;  %v4285_v51 = vpop.xlane.xlu0 %1706 }
 0x2ed   : > { %v943_v54 = vpop.f32.mrf.mxu3 }
 0x2ee   : > { %v4268_v0 = vpop.f32.mrf.mxu2  ;;  %2950 = vmatmul.msk.bf16.gmra.mxu0 %vm622_vm0, %v3771_v27  ;;  %v2332_v47 = vmul.f32 %v4273_v36, %v1430_v40  ;;  %v944_v21 = vadd.f32 %v943_v54, %v4119_v29 }
 0x2ef   : > { %5627 = vst [vmem:[#allocation87_spill] sm:$0xff] %v4268_v0  ;;  %v4282_v0 = vpop.xlane.xlu1 %2362 }
 0x2f0   : > { %v4277_v16 = vpop.f32.mrf.mxu1  ;;  %2394 = vadd.xlane.f32.xlu2 %v2332_v47  ;;  %1864 = vadd.xlane.f32.xlu1 %v1815_v33  ;;  %v1816_v41 = vmul.f32 %v4034_v4, %v944_v21 }
 0x2f1   : > { %5628 = vst [vmem:[#allocation88_spill] sm:$0xff] %v4277_v16 }
 0x2f3   : > { %v1431_v19 = vpop.f32.mrf.mxu0 }
 0x2f4   : > { %v1432_v42 = vadd.f32 %v1431_v19, %v3885_v49  ;;  %v4303_v21 = vpop.xlane.xlu2 %2364  ;;  %v4317_v16 = vpop.xlane.xlu0 %2366 }
 0x2f5   : > { %v945_v50 = vpop.f32.mrf.mxu3  ;;  %5632 = vst [vmem:[#allocation92_spill] sm:$0xff] %v4303_v21 }
 0x2f6   : > { %v4287_v25 = vpop.f32.mrf.mxu2  ;;  %v2333_v33 = vmul.f32 %v4291_v31, %v1432_v42  ;;  %v946_v40 = vadd.f32 %v945_v50, %v4119_v29  ;;  %v4313_v50 = vld [vmem:[%s3351_s23 + $0xb0] sm:$0xff] }
 0x2f7   : > { %5629 = vst [vmem:[#allocation89_spill] sm:$0xff] %v4287_v25  ;;  %v4306_v19 = vpop.xlane.xlu1 %1708 }
 0x2f8   : > { %v4294_v47 = vpop.f32.mrf.mxu1  ;;  %1866 = vadd.xlane.f32.xlu2 %v1816_v41  ;;  %2396 = vadd.xlane.f32.xlu0 %v2333_v33  ;;  %5633 = vst [vmem:[#allocation93_spill] sm:$0xff] %v4306_v19 }
 0x2f9   : > { %5631 = vst [vmem:[#allocation91_spill] sm:$0xff] %v4294_v47  ;;  %v1817_v47 = vmul.f32 %v4051_v60, %v946_v40 }
 0x2fa   : > { %2861 = vmatmul.msk.bf16.gmra.mxu3 %vm622_vm0, %v3672_v20 }
 0x2fb   : > { %2846 = vmatmul.msk.bf16.gmra.mxu2 %vm622_vm0, %v3791_v30  ;;  %2957 = vmatmul.msk.bf16.gmra.mxu1 %vm622_vm0, %v3522_v45  ;;  %v1434_v4 = vpop.f32.mrf.mxu0  ;;  %v4328_v45 = vld [vmem:[%s3351_s23 + $0xb8] sm:$0xff] }
 0x2fc   : > { %v1435_v42 = vadd.f32 %v1434_v4, %v3885_v49  ;;  %v4323_v21 = vpop.xlane.xlu2 %1710 }
 0x2fd   : > { %v948_v54 = vpop.f32.mrf.mxu3 }
 0x2fe   : > { %v4308_v41 = vpop.f32.mrf.mxu2  ;;  %2951 = vmatmul.msk.bf16.gmra.mxu0 %vm622_vm0, %v3791_v30  ;;  %v2334_v33 = vmul.f32 %v4313_v50, %v1435_v42  ;;  %v949_v4 = vadd.f32 %v948_v54, %v4119_v29 }
 0x2ff   : > { %5634 = vst [vmem:[#allocation94_spill] sm:$0xff] %v4308_v41  ;;  %v4332_v42 = vpop.xlane.xlu1 %2368 }
 0x300   : > { %v4319_v25 = vpop.f32.mrf.mxu1  ;;  %2398 = vadd.xlane.f32.xlu1 %v2334_v33  ;;  %1868 = vadd.xlane.f32.xlu0 %v1817_v47  ;;  %v1818_v40 = vmul.f32 %v4076_v55, %v949_v4  ;;  %5637 = vst [vmem:[#allocation97_spill] sm:$0xff] %v4332_v42  ;;  %v4334_v47 = vpop.xlane.xlu0 %1712 }
 0x301   : > { %5635 = vst [vmem:[#allocation95_spill] sm:$0xff] %v4319_v25 }
 0x302   : > { %5638 = vst [vmem:[#allocation98_spill] sm:$0xff] %v4334_v47 }
 0x303   : > { %v1436_v20 = vpop.f32.mrf.mxu0 }
 0x304   : > { %v1437_v41 = vadd.f32 %v1436_v20, %v3885_v49  ;;  %v4354_v25 = vpop.xlane.xlu2 %2370 }
 0x305   : > { %v950_v19 = vpop.f32.mrf.mxu3  ;;  %5641 = vst [vmem:[#allocation101_spill] sm:$0xff] %v4354_v25  ;;  %v4370_v25 = vld [vmem:[%s3351_s23 + $0xc8] sm:$0xff] }
 0x306   : > { %v4325_v31 = vpop.f32.mrf.mxu2  ;;  %v2335_v60 = vmul.f32 %v4328_v45, %v1437_v41  ;;  %v951_v20 = vadd.f32 %v950_v19, %v4119_v29  ;;  %v4350_v19 = vld [vmem:[%s3351_s23 + $0xc0] sm:$0xff] }
 0x307   : > { %5636 = vst [vmem:[#allocation96_spill] sm:$0xff] %v4325_v31  ;;  %v4356_v31 = vpop.xlane.xlu1 %1714 }
 0x308   : > { %v4336_v54 = vpop.f32.mrf.mxu1  ;;  %2400 = vadd.xlane.f32.xlu2 %v2335_v60  ;;  %1870 = vadd.xlane.f32.xlu1 %v1818_v40  ;;  %v1819_v60 = vmul.f32 %v4096_v43, %v951_v20  ;;  %5640 = vst [vmem:[#allocation100_spill] sm:$0xff] %v4350_v19 }
 0x309   : > { %5639 = vst [vmem:[#allocation99_spill] sm:$0xff] %v4336_v54  ;;  %v1748_v54 = vmax.f32 %v4065_v12, 0.0 }
 0x30a   : > { %2862 = vmatmul.msk.bf16.gmra.mxu3 %vm622_vm0, %v3698_v17 }
 0x30b   : > { %2847 = vmatmul.msk.bf16.gmra.mxu2 %vm622_vm0, %v3811_v23  ;;  %2958 = vmatmul.msk.bf16.gmra.mxu1 %vm622_vm0, %v3536_v58  ;;  %v1439_v55 = vpop.f32.mrf.mxu0  ;;  %v4361_v42 = vpop.xlane.xlu0 %2372 }
 0x30c   : > { %v1440_v41 = vadd.f32 %v1439_v55, %v3885_v49  ;;  %5643 = vst [vmem:[#allocation103_spill] sm:$0xff] %v4361_v42 }
 0x30d   : > { %v953_v33 = vpop.f32.mrf.mxu3 }
 0x30e   : > { %v869_v4 = vpop.f32.mrf.mxu2  ;;  %2952 = vmatmul.msk.bf16.gmra.mxu0 %vm622_vm0, %v3811_v23  ;;  %v2336_v40 = vmul.f32 %v4350_v19, %v1440_v41  ;;  %v954_v20 = vadd.f32 %v953_v33, %v4119_v29 }
 0x30f   : > { %v870_v55 = vadd.f32 %v869_v4, %v4083_v38 }
 0x310   : > { %v4359_v17 = vpop.f32.mrf.mxu1  ;;  %1872 = vadd.xlane.f32.xlu2 %v1819_v60  ;;  %2402 = vadd.xlane.f32.xlu0 %v2336_v40  ;;  %v1820_v60 = vmul.f32 %v4124_v6, %v954_v20  ;;  %v4374_v40 = vpop.xlane.xlu2 %1716 }
 0x311   : > { %5642 = vst [vmem:[#allocation102_spill] sm:$0xff] %v4359_v17  ;;  %v4363_v43 = vmul.f32 %v1748_v54, %v870_v55 }
 0x313   : > { %5644 = vst [vmem:[#allocation104_spill] sm:$0xff] %v4363_v43  ;;  %v1441_v47 = vpop.f32.mrf.mxu0  ;;  %v4378_v54 = vpop.xlane.xlu1 %2374 }
 0x314   : > { %v1442_v41 = vadd.f32 %v1441_v47, %v3885_v49  ;;  %5647 = vst [vmem:[#allocation107_spill] sm:$0xff] %v4378_v54  ;;  %v4380_v33 = vpop.xlane.xlu0 %1718 }
 0x315   : > { %v955_v12 = vpop.f32.mrf.mxu3  ;;  %5648 = vst [vmem:[#allocation108_spill] sm:$0xff] %v4380_v33 }
 0x316   : > { %v4367_v19 = vpop.f32.mrf.mxu2  ;;  %v2337_v4 = vmul.f32 %v4370_v25, %v1442_v41  ;;  %v956_v47 = vadd.f32 %v955_v12, %v4119_v29 }
 0x317   : > { %5645 = vst [vmem:[#allocation105_spill] sm:$0xff] %v4367_v19 }
 0x318   : > { %v4376_v17 = vpop.f32.mrf.mxu1  ;;  %2404 = vadd.xlane.f32.xlu1 %v2337_v4  ;;  %1874 = vadd.xlane.f32.xlu0 %v1820_v60  ;;  %v4393_v4 = vld [vmem:[%s3351_s23 + $0xd0] sm:$0xff]  ;;  %v1821_v60 = vmul.f32 %v4142_v34, %v956_v47  ;;  %v4409_v34 = vld [vmem:[%s3351_s23 + $0xd8] sm:$0xff] }
 0x319   : > { %5646 = vst [vmem:[#allocation106_spill] sm:$0xff] %v4376_v17 }
 0x31a   : > { %2863 = vmatmul.msk.bf16.gmra.mxu3 %vm622_vm0, %v3712_v26 }
 0x31b   : > { %2890 = vmatmul.msk.bf16.vlgmr.msra.gmra.mxu2 %vm622_vm0, %v3466_v44  ;;  %2959 = vmatmul.msk.bf16.gmra.mxu1 %vm622_vm0, %v3550_v7  ;;  %v1444_v6 = vpop.f32.mrf.mxu0  ;;  %v4399_v19 = vpop.xlane.xlu2 %2376 }
 0x31c   : > { %v1445_v55 = vadd.f32 %v1444_v6, %v3885_v49  ;;  %5651 = vst [vmem:[#allocation111_spill] sm:$0xff] %v4399_v19  ;;  %v4401_v43 = vpop.xlane.xlu1 %1720 }
 0x31d   : > { %v958_v20 = vpop.f32.mrf.mxu3  ;;  %5652 = vst [vmem:[#allocation112_spill] sm:$0xff] %v4401_v43 }
 0x31e   : > { %v4390_v41 = vpop.f32.mrf.mxu2  ;;  %v2338_v12 = vmul.f32 %v4393_v4, %v1445_v55  ;;  %v959_v6 = vadd.f32 %v958_v20, %v4119_v29 }
 0x31f   : > { %5649 = vst [vmem:[#allocation109_spill] sm:$0xff] %v4390_v41 }
 0x320   : > { %v4397_v17 = vpop.f32.mrf.mxu1  ;;  %2406 = vadd.xlane.f32.xlu2 %v2338_v12  ;;  %1876 = vadd.xlane.f32.xlu1 %v1821_v60  ;;  %v1822_v55 = vmul.f32 %v4165_v56, %v959_v6  ;;  %v1751_v12 = vmax.f32 %v4202_v9, 0.0 }
 0x321   : > { %5650 = vst [vmem:[#allocation110_spill] sm:$0xff] %v4397_v17 }
 0x323   : > { %v1446_v26 = vpop.f32.mrf.mxu0  ;;  %v4404_v54 = vpop.xlane.xlu0 %2378 }
 0x324   : > { %5653 = vst [vmem:[#allocation113_spill] sm:$0xff] %v4404_v54  ;;  %v1447_v41 = vadd.f32 %v1446_v26, %v3885_v49  ;;  %v4419_v26 = vld [vmem:[%s5496_s4] sm:$0xff] }
 0x325   : > { %v960_v33 = vpop.f32.mrf.mxu3  ;;  %v4422_v20 = vperm.slane %v4419_v26, 3 }
 0x326   : > { %v876_v42 = vpop.f32.mrf.mxu2  ;;  %v2339_v47 = vmul.f32 %v4409_v34, %v1447_v41  ;;  %v4426_v41 = vpop.xlane.xlu2 %1722  ;;  %v961_v9 = vadd.f32 %v960_v33, %v4119_v29 }
 0x327   : > { %v877_v60 = vadd.f32 %v876_v42, %v4083_v38  ;;  %5656 = vst [vmem:[#allocation116_spill] sm:$0xff] %v4426_v41  ;;  %v1724_v42 = vmax.f32 %v4042_v46, 0.0  ;;  %v1038_v33 = vadd.f32 %v3750_v24, %v4422_v20 }
 0x328   : > { %v4414_v17 = vpop.f32.mrf.mxu1  ;;  %1878 = vadd.xlane.f32.xlu2 %v1822_v55  ;;  %2408 = vadd.xlane.f32.xlu0 %v2339_v47  ;;  %v1823_v41 = vmul.f32 %v4177_v1, %v961_v9 }
 0x329   : > { %5654 = vst [vmem:[#allocation114_spill] sm:$0xff] %v4414_v17  ;;  %v4424_v56 = vmul.f32 %v1751_v12, %v877_v60  ;;  %v810_v60 = vadd.f32 %v3895_v22, %v4083_v38 }
 0x32a   : > { %2864 = vmatmul.msk.bf16.gmra.mxu3 %vm622_vm0, %v3734_v37  ;;  %v4444_v37 = vld [vmem:[%s3351_s23 + $0xe0] sm:$0xff] }
 0x32b   : > { %5655 = vst [vmem:[#allocation115_spill] sm:$0xff] %v4424_v56  ;;  %2891 = vmatmul.msk.bf16.gmra.mxu2 %vm622_vm0, %v3484_v57  ;;  %2960 = vmatmul.msk.bf16.gmra.mxu1 %vm622_vm0, %v3570_v48  ;;  %v1449_v6 = vpop.f32.mrf.mxu0  ;;  %v4436_v55 = vpop.xlane.xlu1 %2380  ;;  %v1766_v19 = vmul.f32 %v1724_v42, %v810_v60 }
 0x32c   : > { %5657 = vst [vmem:[#allocation117_spill] sm:$0xff] %v4436_v55  ;;  %v1450_v47 = vadd.f32 %v1449_v6, %v3885_v49  ;;  %v1851_v12 = vpop.xlane.xlu0 %1850  ;;  %v1752_v55 = vmax.f32 %v4214_v8, 0.0 }
 0x32d   : > { %v1934_v17 = vmax.f32 %v1851_v12, 0.0  ;;  %v963_v46 = vpop.f32.mrf.mxu3  ;;  %5658 = vst [vmem:[#allocation118_spill] sm:$0xff] %v4444_v37 }
 0x32e   : > { %v879_v56 = vpop.f32.mrf.mxu2  ;;  %v2340_v54 = vmul.f32 %v4444_v37, %v1450_v47  ;;  %v964_v48 = vadd.f32 %v963_v46, %v4119_v29 }
 0x32f   : > { %v1976_v6 = vmul.f32 %v1934_v17, %v1038_v33  ;;  %v880_v43 = vadd.f32 %v879_v56, %v4083_v38  ;;  %v1040_v17 = vadd.f32 %v3763_v10, %v4422_v20  ;;  %v2438_v10 = vmax.f32 %v4219_v59, 0.0 }
 0x330   : > { %v4450_v24 = vpop.f32.mrf.mxu1  ;;  %2410 = vadd.xlane.f32.xlu1 %v2340_v54  ;;  %1880 = vadd.xlane.f32.xlu0 %v1823_v41  ;;  %v4463_v54 = vperm.slane %v4419_v26, 7  ;;  %v4466_v41 = vld [vmem:[%s3351_s23 + $0xe8] sm:$0xff]  ;;  %v1824_v42 = vmul.f32 %v4195_v39, %v964_v48  ;;  %v1043_v59 = vadd.f32 %v3769_v63, %v4422_v20 }
 0x331   : > { %5659 = vst [vmem:[#allocation119_spill] sm:$0xff] %v4450_v24  ;;  %v4452_v22 = vadd.f32 %v1976_v6, %v1766_v19  ;;  %v4454_v12 = vmul.f32 %v1752_v55, %v880_v43  ;;  %v1753_v55 = vmax.f32 %v4237_v15, 0.0 }
 0x333   : > { %5660 = vst [vmem:[#allocation120_spill] sm:$0xff] %v4452_v22  ;;  %v1451_v47 = vpop.f32.mrf.mxu0  ;;  %v4457_v37 = vpop.xlane.xlu2 %2382 }
 0x334   : > { %v1452_v1 = vadd.f32 %v1451_v47, %v3885_v49  ;;  %v1853_v8 = vpop.xlane.xlu1 %1852 }
 0x335   : > { %v1935_v56 = vmax.f32 %v1853_v8, 0.0  ;;  %v965_v9 = vpop.f32.mrf.mxu3 }
 0x336   : > { %v881_v19 = vpop.f32.mrf.mxu2  ;;  %v2341_v43 = vmul.f32 %v4466_v41, %v1452_v1  ;;  %v966_v48 = vadd.f32 %v965_v9, %v4119_v29 }
 0x337   : > { %v1977_v33 = vmul.f32 %v1935_v56, %v1040_v17  ;;  %v882_v60 = vadd.f32 %v881_v19, %v4083_v38 }
 0x338   : > { %v1493_v46 = vpop.f32.mrf.mxu1  ;;  %2412 = vadd.xlane.f32.xlu2 %v2341_v43  ;;  %1882 = vadd.xlane.f32.xlu1 %v1824_v42  ;;  %v1825_v42 = vmul.f32 %v4208_v28, %v966_v48 }
 0x339   : > { %v4474_v6 = vadd.f32 %v1977_v33, %v4091_v2  ;;  %v4476_v47 = vmul.f32 %v1753_v55, %v882_v60  ;;  %v1494_v8 = vadd.f32 %v1493_v46, %v4463_v54  ;;  %v4495_v55 = vld [vmem:[%s3351_s23 + $0xf0] sm:$0xff]  ;;  %v1754_v60 = vmax.f32 %v4242_v52, 0.0 }
 0x33a   : > { %2865 = vmatmul.msk.bf16.gmra.mxu3 %vm622_vm0, %v3752_v18 }
 0x33b   : > { %5661 = vst [vmem:[#allocation121_spill] sm:$0xff] %v4474_v6  ;;  %v4482_v39 = vmul.f32 %v2438_v10, %v1494_v8  ;;  %2892 = vmatmul.msk.bf16.gmra.mxu2 %vm622_vm0, %v3496_v3  ;;  %2961 = vmatmul.msk.bf16.gmra.mxu1 %vm622_vm0, %v3590_v13  ;;  %v1454_v2 = vpop.f32.mrf.mxu0  ;;  %v1855_v15 = vpop.xlane.xlu2 %1854  ;;  %v2439_v8 = vmax.f32 %v4239_v14, 0.0  ;;  %v5689_v6 = vld [vmem:[#allocation93_spill] sm:$0xff] }
 0x33c   : > { %v1455_v1 = vadd.f32 %v1454_v2, %v3885_v49  ;;  %v1936_v17 = vmax.f32 %v1855_v15, 0.0  ;;  %v4491_v56 = vpop.xlane.xlu0 %2384 }
 0x33d   : > { %5662 = vst [vmem:[#allocation122_spill] sm:$0xff] %v4482_v39  ;;  %v968_v9 = vpop.f32.mrf.mxu3 }
 0x33e   : > { %v1978_v19 = vmul.f32 %v1936_v17, %v1043_v59  ;;  %v884_v43 = vpop.f32.mrf.mxu2  ;;  %v2342_v33 = vmul.f32 %v4495_v55, %v1455_v1  ;;  %v969_v48 = vadd.f32 %v968_v9, %v4119_v29  ;;  %v1045_v17 = vadd.f32 %v3783_v32, %v4422_v20 }
 0x33f   : > { %v885_v46 = vadd.f32 %v884_v43, %v4083_v38 }
 0x340   : > { %v4501_v63 = vadd.f32 %v1978_v19, %v4104_v62  ;;  %v1495_v10 = vpop.f32.mrf.mxu1  ;;  %1884 = vadd.xlane.f32.xlu2 %v1825_v42  ;;  %2414 = vadd.xlane.f32.xlu0 %v2342_v33  ;;  %v4516_v42 = vld [vmem:[%s3351_s23 + $0xf8] sm:$0xff]  ;;  %v1826_v9 = vmul.f32 %v4232_v53, %v969_v48  ;;  %v5667_v48 = vld [vmem:[#allocation8_spill] sm:$0xff] }
 0x341   : > { %v4504_v2 = vmul.f32 %v1754_v60, %v885_v46  ;;  %v1496_v28 = vadd.f32 %v1495_v10, %v4463_v54  ;;  %v1755_v60 = vmax.f32 %v4256_v61, 0.0 }
 0x342   : > { %5663 = vst [vmem:[#allocation123_spill] sm:$0xff] %v4501_v63 }
 0x343   : > { %v4508_v15 = vmul.f32 %v2439_v8, %v1496_v28  ;;  %v1456_v52 = vpop.f32.mrf.mxu0  ;;  %v4510_v59 = vpop.xlane.xlu1 %2386  ;;  %v2440_v28 = vmax.f32 %v4254_v11, 0.0 }
 0x344   : > { %v1457_v62 = vadd.f32 %v1456_v52, %v3885_v49  ;;  %v1857_v1 = vpop.xlane.xlu0 %1856 }
 0x345   : > { %5664 = vst [vmem:[#allocation124_spill] sm:$0xff] %v4508_v15  ;;  %v1937_v19 = vmax.f32 %v1857_v1, 0.0  ;;  %v970_v43 = vpop.f32.mrf.mxu3  ;;  %v5668_v1 = vld [vmem:[#allocation14_spill] sm:$0xff] }
 0x346   : > { %v886_v14 = vpop.f32.mrf.mxu2  ;;  %v2343_v33 = vmul.f32 %v4516_v42, %v1457_v62  ;;  %v971_v53 = vadd.f32 %v970_v43, %v4119_v29 }
 0x347   : > { %v1979_v46 = vmul.f32 %v1937_v19, %v1045_v17  ;;  %v887_v10 = vadd.f32 %v886_v14, %v4083_v38  ;;  %v5669_v14 = vld [vmem:[#allocation25_spill] sm:$0xff] }
 0x348   : > { %v1498_v8 = vpop.f32.mrf.mxu1  ;;  %2416 = vadd.xlane.f32.xlu1 %v2343_v33  ;;  %1886 = vadd.xlane.f32.xlu0 %v1826_v9  ;;  %v1048_v43 = vadd.f32 %v5669_v14, %v4422_v20  ;;  %v5672_v14 = vld [vmem:[#allocation69_spill] sm:$0xff] }
 0x349   : > { %v4524_v32 = vadd.f32 %v1979_v46, %v4131_v35  ;;  %v4526_v52 = vmul.f32 %v1755_v60, %v887_v10  ;;  %v1499_v62 = vadd.f32 %v1498_v8, %v4463_v54  ;;  %v4544_v46 = vld [vmem:[%s3351_s23 + $0x100] sm:$0xff] }
 0x34a   : > { %2866 = vmatmul.msk.bf16.gmra.mxu3 %vm622_vm0, %v3771_v27  ;;  %v5670_v8 = vld [vmem:[#allocation84_spill] sm:$0xff] }
 0x34b   : > { %5665 = vst [vmem:[#allocation125_spill] sm:$0xff] %v4524_v32  ;;  %v4532_v61 = vmul.f32 %v2440_v28, %v1499_v62  ;;  %2893 = vmatmul.msk.bf16.gmra.mxu2 %vm622_vm0, %v5667_v48  ;;  %2962 = vmatmul.msk.bf16.gmra.mxu1 %vm622_vm0, %v5668_v1  ;;  %v1459_v35 = vpop.f32.mrf.mxu0  ;;  %v4538_v11 = vpop.xlane.xlu2 %2388  ;;  %v1827_v28 = vmul.f32 %v5670_v8, %v971_v53  ;;  %v1756_v62 = vmax.f32 %v4279_v5, 0.0 }
 0x34c   : > { %v1460_v17 = vadd.f32 %v1459_v35, %v3885_v49  ;;  %v1859_v19 = vpop.xlane.xlu1 %1858  ;;  %v5671_v35 = vld [vmem:[#allocation86_spill] sm:$0xff] }
 0x34d   : > { %5666 = vst [vmem:[#allocation126_spill] sm:$0xff] %v4532_v61  ;;  %v1938_v33 = vmax.f32 %v1859_v19, 0.0  ;;  %v973_v9 = vpop.f32.mrf.mxu3  ;;  %v2441_v63 = vmax.f32 %v5671_v35, 0.0 }
 0x34e   : > { %v889_v60 = vpop.f32.mrf.mxu2  ;;  %v2344_v10 = vmul.f32 %v4544_v46, %v1460_v17  ;;  %v974_v53 = vadd.f32 %v973_v9, %v4119_v29  ;;  %v1757_v9 = vmax.f32 %v4285_v51, 0.0  ;;  %v5681_v51 = vld [vmem:[#allocation48_spill] sm:$0xff] }
 0x34f   : > { %v1980_v24 = vmul.f32 %v1938_v33, %v1048_v43  ;;  %v890_v32 = vadd.f32 %v889_v60, %v4083_v38  ;;  %v5676_v33 = vld [vmem:[#allocation26_spill] sm:$0xff] }
 0x350   : > { %v1500_v61 = vpop.f32.mrf.mxu1  ;;  %2418 = vadd.xlane.f32.xlu2 %v2344_v10  ;;  %1888 = vadd.xlane.f32.xlu1 %v1827_v28  ;;  %v1050_v60 = vadd.f32 %v5676_v33, %v4422_v20 }
 0x351   : > { %v4552_v19 = vadd.f32 %v1980_v24, %v5672_v14  ;;  %v4554_v15 = vmul.f32 %v1756_v62, %v890_v32  ;;  %v1501_v17 = vadd.f32 %v1500_v61, %v4463_v54  ;;  %v1828_v62 = vmul.f32 %v4273_v36, %v974_v53  ;;  %v4567_v61 = vld [vmem:[%s3351_s23 + $0x108] sm:$0xff] }
 0x353   : > { %5673 = vst [vmem:[#allocation8_spill] sm:$0xff] %v4552_v19  ;;  %v4558_v8 = vmul.f32 %v2441_v63, %v1501_v17  ;;  %v1461_v5 = vpop.f32.mrf.mxu0  ;;  %v1861_v43 = vpop.xlane.xlu2 %1860  ;;  %v5678_v19 = vld [vmem:[#allocation72_spill] sm:$0xff] }
 0x354   : > { %5674 = vst [vmem:[#allocation14_spill] sm:$0xff] %v4554_v15  ;;  %v1462_v10 = vadd.f32 %v1461_v5, %v3885_v49  ;;  %v1939_v28 = vmax.f32 %v1861_v43, 0.0  ;;  %v4563_v35 = vpop.xlane.xlu0 %2390  ;;  %v2442_v43 = vmax.f32 %v4282_v0, 0.0 }
 0x355   : > { %5675 = vst [vmem:[#allocation25_spill] sm:$0xff] %v4558_v8  ;;  %v975_v24 = vpop.f32.mrf.mxu3 }
 0x356   : > { %5677 = vst [vmem:[#allocation84_spill] sm:$0xff] %v4563_v35  ;;  %v1981_v14 = vmul.f32 %v1939_v28, %v1050_v60  ;;  %v891_v32 = vpop.f32.mrf.mxu2  ;;  %v2345_v63 = vmul.f32 %v4567_v61, %v1462_v10  ;;  %v976_v53 = vadd.f32 %v975_v24, %v4119_v29  ;;  %v825_v10 = vadd.f32 %v5681_v51, %v4083_v38  ;;  %v5683_v28 = vld [vmem:[#allocation9_spill] sm:$0xff]  ;;  %v4597_v35 = vld [vmem:[%s3351_s23 + $0x110] sm:$0xff] }
 0x357   : > { %v892_v17 = vadd.f32 %v891_v32, %v4083_v38 }
 0x358   : > { %v4573_v33 = vadd.f32 %v1981_v14, %v5678_v19  ;;  %v1503_v5 = vpop.f32.mrf.mxu1  ;;  %1890 = vadd.xlane.f32.xlu2 %v1828_v62  ;;  %2420 = vadd.xlane.f32.xlu0 %v2345_v63  ;;  %v5684_v14 = vld [vmem:[#allocation17_spill] sm:$0xff]  ;;  %v5686_v63 = vld [vmem:[#allocation38_spill] sm:$0xff] }
 0x359   : > { %v4576_v60 = vmul.f32 %v1757_v9, %v892_v17  ;;  %v1504_v36 = vadd.f32 %v1503_v5, %v4463_v54  ;;  %v1730_v9 = vmax.f32 %v5686_v63, 0.0  ;;  %v5687_v17 = vld [vmem:[#allocation27_spill] sm:$0xff]  ;;  %v5690_v63 = vld [vmem:[#allocation92_spill] sm:$0xff] }
 0x35a   : > { %5679 = vst [vmem:[#allocation86_spill] sm:$0xff] %v4573_v33  ;;  %2867 = vmatmul.msk.bf16.gmra.mxu3 %vm622_vm0, %v3791_v30  ;;  %v1053_v5 = vadd.f32 %v5687_v17, %v4422_v20  ;;  %v2443_v17 = vmax.f32 %v5690_v63, 0.0 }
 0x35b   : > { %5680 = vst [vmem:[#allocation69_spill] sm:$0xff] %v4576_v60  ;;  %v4584_v19 = vmul.f32 %v2442_v43, %v1504_v36  ;;  %2894 = vmatmul.msk.bf16.gmra.mxu2 %vm622_vm0, %v5683_v28  ;;  %2963 = vmatmul.msk.bf16.gmra.mxu1 %vm622_vm0, %v5684_v14  ;;  %v1464_v0 = vpop.f32.mrf.mxu0  ;;  %v4590_v32 = vpop.xlane.xlu1 %2392  ;;  %v1772_v60 = vmul.f32 %v1730_v9, %v825_v10  ;;  %v5693_v10 = vld [vmem:[#allocation52_spill] sm:$0xff] }
 0x35c   : > { %5685 = vst [vmem:[#allocation72_spill] sm:$0xff] %v4590_v32  ;;  %v1465_v62 = vadd.f32 %v1464_v0, %v3885_v49  ;;  %v1863_v24 = vpop.xlane.xlu0 %1862  ;;  %v1758_v32 = vmax.f32 %v5689_v6, 0.0  ;;  %v827_v6 = vadd.f32 %v5693_v10, %v4083_v38  ;;  %v1759_v10 = vmax.f32 %v4323_v21, 0.0 }
 0x35d   : > { %5682 = vst [vmem:[#allocation26_spill] sm:$0xff] %v4584_v19  ;;  %v1940_v51 = vmax.f32 %v1863_v24, 0.0  ;;  %v978_v43 = vpop.f32.mrf.mxu3  ;;  %v5688_v19 = vld [vmem:[#allocation90_spill] sm:$0xff] }
 0x35e   : > { %v894_v36 = vpop.f32.mrf.mxu2  ;;  %v2346_v33 = vmul.f32 %v4597_v35, %v1465_v62  ;;  %v1829_v8 = vmul.f32 %v5688_v19, %v976_v53  ;;  %v979_v53 = vadd.f32 %v978_v43, %v4119_v29  ;;  %v4621_v43 = vld [vmem:[%s3351_s23 + $0x118] sm:$0xff] }
 0x35f   : > { %v1982_v15 = vmul.f32 %v1940_v51, %v1053_v5  ;;  %v895_v0 = vadd.f32 %v894_v36, %v4083_v38  ;;  %v5696_v51 = vld [vmem:[#allocation41_spill] sm:$0xff] }
 0x360   : > { %v1505_v39 = vpop.f32.mrf.mxu1  ;;  %2422 = vadd.xlane.f32.xlu1 %v2346_v33  ;;  %1892 = vadd.xlane.f32.xlu0 %v1829_v8 }
 0x361   : > { %v4604_v24 = vadd.f32 %v1982_v15, %v1772_v60  ;;  %v4606_v22 = vmul.f32 %v1758_v32, %v895_v0  ;;  %v1506_v62 = vadd.f32 %v1505_v39, %v4463_v54  ;;  %v1731_v15 = vmax.f32 %v5696_v51, 0.0  ;;  %v5697_v60 = vld [vmem:[#allocation28_spill] sm:$0xff] }
 0x362   : > { %v1055_v32 = vadd.f32 %v5697_v60, %v4422_v20  ;;  %v2444_v51 = vmax.f32 %v4317_v16, 0.0  ;;  %v5702_v16 = vld [vmem:[#allocation19_spill] sm:$0xff] }
 0x363   : > { %5691 = vst [vmem:[#allocation48_spill] sm:$0xff] %v4604_v24  ;;  %v4612_v19 = vmul.f32 %v2443_v17, %v1506_v62  ;;  %v1466_v9 = vpop.f32.mrf.mxu0  ;;  %v4614_v5 = vpop.xlane.xlu2 %2394  ;;  %v1830_v17 = vmul.f32 %v4313_v50, %v979_v53  ;;  %v1773_v62 = vmul.f32 %v1731_v15, %v827_v6 }
 0x364   : > { %5692 = vst [vmem:[#allocation9_spill] sm:$0xff] %v4606_v22  ;;  %v1467_v8 = vadd.f32 %v1466_v9, %v3885_v49  ;;  %v1865_v33 = vpop.xlane.xlu1 %1864 }
 0x365   : > { %5694 = vst [vmem:[#allocation17_spill] sm:$0xff] %v4612_v19  ;;  %v1941_v36 = vmax.f32 %v1865_v33, 0.0  ;;  %v980_v39 = vpop.f32.mrf.mxu3 }
 0x366   : > { %5695 = vst [vmem:[#allocation38_spill] sm:$0xff] %v4614_v5  ;;  %v896_v0 = vpop.f32.mrf.mxu2  ;;  %v2347_v63 = vmul.f32 %v4621_v43, %v1467_v8  ;;  %v5700_v8 = vld [vmem:[#allocation56_spill] sm:$0xff]  ;;  %v981_v53 = vadd.f32 %v980_v39, %v4119_v29 }
 0x367   : > { %v1983_v5 = vmul.f32 %v1941_v36, %v1055_v32  ;;  %v897_v9 = vadd.f32 %v896_v0, %v4083_v38  ;;  %v830_v50 = vadd.f32 %v5700_v8, %v4083_v38  ;;  %v5704_v32 = vld [vmem:[#allocation29_spill] sm:$0xff] }
 0x368   : > { %v1508_v24 = vpop.f32.mrf.mxu1  ;;  %2424 = vadd.xlane.f32.xlu2 %v2347_v63  ;;  %1894 = vadd.xlane.f32.xlu1 %v1830_v17  ;;  %v1058_v36 = vadd.f32 %v5704_v32, %v4422_v20 }
 0x369   : > { %v4628_v33 = vadd.f32 %v1983_v5, %v1773_v62  ;;  %v4630_v60 = vmul.f32 %v1759_v10, %v897_v9  ;;  %v1509_v19 = vadd.f32 %v1508_v24, %v4463_v54  ;;  %v5703_v24 = vld [vmem:[#allocation46_spill] sm:$0xff]  ;;  %v1831_v9 = vmul.f32 %v4328_v45, %v981_v53 }
 0x36a   : > { %2868 = vmatmul.msk.bf16.gmra.mxu3 %vm622_vm0, %v3811_v23  ;;  %v1732_v15 = vmax.f32 %v5703_v24, 0.0 }
 0x36b   : > { %5698 = vst [vmem:[#allocation27_spill] sm:$0xff] %v4628_v33  ;;  %v4638_v21 = vmul.f32 %v2444_v51, %v1509_v19  ;;  %2895 = vmatmul.msk.bf16.gmra.mxu2 %vm622_vm0, %v3536_v58  ;;  %2964 = vmatmul.msk.bf16.gmra.mxu1 %vm622_vm0, %v5702_v16  ;;  %v1469_v6 = vpop.f32.mrf.mxu0  ;;  %v1867_v5 = vpop.xlane.xlu2 %1866  ;;  %v4652_v51 = vld [vmem:[%s3351_s23 + $0x120] sm:$0xff] }
 0x36c   : > { %5699 = vst [vmem:[#allocation90_spill] sm:$0xff] %v4630_v60  ;;  %v1470_v39 = vadd.f32 %v1469_v6, %v3885_v49  ;;  %v1942_v0 = vmax.f32 %v1867_v5, 0.0  ;;  %v4648_v63 = vpop.xlane.xlu0 %2396  ;;  %v1774_v17 = vmul.f32 %v1732_v15, %v830_v50  ;;  %v5706_v33 = vld [vmem:[#allocation98_spill] sm:$0xff]  ;;  %v5708_v5 = vld [vmem:[#allocation97_spill] sm:$0xff] }
 0x36d   : > { %5701 = vst [vmem:[#allocation93_spill] sm:$0xff] %v4638_v21  ;;  %v983_v19 = vpop.f32.mrf.mxu3  ;;  %v1760_v24 = vmax.f32 %v5706_v33, 0.0  ;;  %v2445_v50 = vmax.f32 %v5708_v5, 0.0 }
 0x36e   : > { %5705 = vst [vmem:[#allocation92_spill] sm:$0xff] %v4648_v63  ;;  %v1984_v62 = vmul.f32 %v1942_v0, %v1058_v36  ;;  %v899_v10 = vpop.f32.mrf.mxu2  ;;  %v2348_v8 = vmul.f32 %v4652_v51, %v1470_v39  ;;  %v984_v53 = vadd.f32 %v983_v19, %v4119_v29  ;;  %v5710_v36 = vld [vmem:[#allocation59_spill] sm:$0xff] }
 0x36f   : > { %v900_v21 = vadd.f32 %v899_v10, %v4083_v38  ;;  %v832_v39 = vadd.f32 %v5710_v36, %v4083_v38  ;;  %v4675_v19 = vld [vmem:[%s3351_s23 + $0x128] sm:$0xff] }
 0x370   : > { %v4657_v32 = vadd.f32 %v1984_v62, %v1774_v17  ;;  %v1510_v6 = vpop.f32.mrf.mxu1  ;;  %1896 = vadd.xlane.f32.xlu2 %v1831_v9  ;;  %2426 = vadd.xlane.f32.xlu0 %v2348_v8  ;;  %v5713_v9 = vld [vmem:[#allocation40_spill] sm:$0xff] }
 0x371   : > { %v4660_v15 = vmul.f32 %v1760_v24, %v900_v21  ;;  %v1511_v45 = vadd.f32 %v1510_v6, %v4463_v54  ;;  %v1733_v8 = vmax.f32 %v5713_v9, 0.0  ;;  %v5714_v21 = vld [vmem:[#allocation30_spill] sm:$0xff]  ;;  %v5716_v9 = vld [vmem:[#allocation101_spill] sm:$0xff] }
 0x372   : > { %5707 = vst [vmem:[#allocation52_spill] sm:$0xff] %v4657_v32  ;;  %v1060_v24 = vadd.f32 %v5714_v21, %v4422_v20  ;;  %v2446_v21 = vmax.f32 %v5716_v9, 0.0 }
 0x373   : > { %5709 = vst [vmem:[#allocation41_spill] sm:$0xff] %v4660_v15  ;;  %v4666_v33 = vmul.f32 %v2445_v50, %v1511_v45  ;;  %v1471_v0 = vpop.f32.mrf.mxu0  ;;  %v4668_v17 = vpop.xlane.xlu1 %2398  ;;  %v5715_v50 = vld [vmem:[#allocation100_spill] sm:$0xff]  ;;  %v1775_v32 = vmul.f32 %v1733_v8, %v832_v39 }
 0x374   : > { %5712 = vst [vmem:[#allocation56_spill] sm:$0xff] %v4668_v17  ;;  %v1472_v62 = vadd.f32 %v1471_v0, %v3885_v49  ;;  %v1869_v10 = vpop.xlane.xlu0 %1868  ;;  %v1832_v45 = vmul.f32 %v5715_v50, %v984_v53  ;;  %v1761_v17 = vmax.f32 %v4356_v31, 0.0  ;;  %v5718_v31 = vld [vmem:[#allocation62_spill] sm:$0xff]  ;;  %v5721_v8 = vld [vmem:[#allocation44_spill] sm:$0xff] }
 0x375   : > { %5711 = vst [vmem:[#allocation28_spill] sm:$0xff] %v4666_v33  ;;  %v1943_v5 = vmax.f32 %v1869_v10, 0.0  ;;  %v985_v6 = vpop.f32.mrf.mxu3  ;;  %v4705_v50 = vld [vmem:[%s3351_s23 + $0x130] sm:$0xff] }
 0x376   : > { %v901_v63 = vpop.f32.mrf.mxu2  ;;  %v2349_v36 = vmul.f32 %v4675_v19, %v1472_v62  ;;  %v986_v53 = vadd.f32 %v985_v6, %v4119_v29 }
 0x377   : > { %v1985_v33 = vmul.f32 %v1943_v5, %v1060_v24  ;;  %v902_v0 = vadd.f32 %v901_v63, %v4083_v38  ;;  %v835_v63 = vadd.f32 %v5718_v31, %v4083_v38  ;;  %v1734_v24 = vmax.f32 %v5721_v8, 0.0  ;;  %v5723_v8 = vld [vmem:[#allocation103_spill] sm:$0xff] }
 0x378   : > { %v1513_v15 = vpop.f32.mrf.mxu1  ;;  %2428 = vadd.xlane.f32.xlu1 %v2349_v36  ;;  %1898 = vadd.xlane.f32.xlu0 %v1832_v45 }
 0x379   : > { %v4682_v10 = vadd.f32 %v1985_v33, %v1775_v32  ;;  %v4684_v60 = vmul.f32 %v1761_v17, %v902_v0  ;;  %v1514_v22 = vadd.f32 %v1513_v15, %v4463_v54  ;;  %v5719_v32 = vld [vmem:[#allocation20_spill] sm:$0xff]  ;;  %v1833_v0 = vmul.f32 %v4370_v25, %v986_v53 }
 0x37a   : > { %2911 = vmatmul.msk.bf16.vlgmr.msra.gmra.mxu3 %vm622_vm0, %v3466_v44  ;;  %v5722_v44 = vld [vmem:[#allocation31_spill] sm:$0xff]  ;;  %v1776_v9 = vmul.f32 %v1734_v24, %v835_v63  ;;  %v5727_v24 = vld [vmem:[#allocation50_spill] sm:$0xff] }
 0x37b   : > { %5717 = vst [vmem:[#allocation19_spill] sm:$0xff] %v4682_v10  ;;  %v4692_v39 = vmul.f32 %v2446_v21, %v1514_v22  ;;  %2896 = vmatmul.msk.bf16.gmra.mxu2 %vm622_vm0, %v3550_v7  ;;  %2965 = vmatmul.msk.bf16.gmra.mxu1 %vm622_vm0, %v5719_v32  ;;  %v1474_v33 = vpop.f32.mrf.mxu0  ;;  %v4698_v17 = vpop.xlane.xlu2 %2400  ;;  %v1063_v5 = vadd.f32 %v5722_v44, %v4422_v20  ;;  %v1762_v21 = vmax.f32 %v4374_v40, 0.0  ;;  %v2447_v44 = vmax.f32 %v5723_v8, 0.0 }
 0x37c   : > { %5720 = vst [vmem:[#allocation46_spill] sm:$0xff] %v4698_v17  ;;  %v1475_v15 = vadd.f32 %v1474_v33, %v3885_v49  ;;  %v1871_v62 = vpop.xlane.xlu1 %1870 }
 0x37d   : > { %v1944_v6 = vmax.f32 %v1871_v62, 0.0  ;;  %v988_v22 = vpop.f32.mrf.mxu3 }
 0x37e   : > { %v904_v36 = vpop.f32.mrf.mxu2  ;;  %v2350_v45 = vmul.f32 %v4705_v50, %v1475_v15  ;;  %v5725_v15 = vld [vmem:[#allocation65_spill] sm:$0xff]  ;;  %v989_v53 = vadd.f32 %v988_v22, %v4119_v29  ;;  %v5730_v22 = vld [vmem:[#allocation108_spill] sm:$0xff] }
 0x37f   : > { %v1986_v31 = vmul.f32 %v1944_v6, %v1063_v5  ;;  %v905_v33 = vadd.f32 %v904_v36, %v4083_v38  ;;  %v837_v25 = vadd.f32 %v5725_v15, %v4083_v38  ;;  %v1735_v5 = vmax.f32 %v5727_v24, 0.0  ;;  %v5728_v6 = vld [vmem:[#allocation32_spill] sm:$0xff] }
 0x380   : > { %v1515_v49 = vpop.f32.mrf.mxu1  ;;  %2430 = vadd.xlane.f32.xlu2 %v2350_v45  ;;  %1900 = vadd.xlane.f32.xlu1 %v1833_v0  ;;  %v1065_v36 = vadd.f32 %v5728_v6, %v4422_v20  ;;  %v1834_v8 = vmul.f32 %v4393_v4, %v989_v53  ;;  %v5732_v6 = vld [vmem:[#allocation107_spill] sm:$0xff]  ;;  %v5733_v4 = vld [vmem:[#allocation18_spill] sm:$0xff] }
 0x381   : > { %v4712_v62 = vadd.f32 %v1986_v31, %v1776_v9  ;;  %v4714_v17 = vmul.f32 %v1762_v21, %v905_v33  ;;  %v1516_v10 = vadd.f32 %v1515_v49, %v4463_v54  ;;  %v1777_v21 = vmul.f32 %v1735_v5, %v837_v25 }
 0x382   : > { %v840_v53 = vadd.f32 %v5733_v4, %v4083_v38  ;;  %v5741_v4 = vld [vmem:[#allocation118_spill] sm:$0xff] }
 0x383   : > { %5724 = vst [vmem:[#allocation29_spill] sm:$0xff] %v4712_v62  ;;  %v4720_v40 = vmul.f32 %v2447_v44, %v1516_v10  ;;  %v1873_v63 = vpop.xlane.xlu2 %1872  ;;  %v4725_v0 = vpop.xlane.xlu0 %2402  ;;  %v1763_v10 = vmax.f32 %v5730_v22, 0.0 }
 0x384   : > { %v1945_v45 = vmax.f32 %v1873_v63, 0.0  ;;  %5729 = vst [vmem:[#allocation97_spill] sm:$0xff] %v4725_v0  ;;  %v2448_v0 = vmax.f32 %v5732_v6, 0.0 }
 0x385   : > { %5726 = vst [vmem:[#allocation98_spill] sm:$0xff] %v4720_v40  ;;  %v990_v9 = vpop.f32.mrf.mxu3 }
 0x386   : > { %v1987_v31 = vmul.f32 %v1945_v45, %v1065_v36  ;;  %v906_v49 = vpop.f32.mrf.mxu2  ;;  %v991_v33 = vadd.f32 %v990_v9, %v4119_v29  ;;  %v5735_v36 = vld [vmem:[#allocation10_spill] sm:$0xff]  ;;  %v5736_v45 = vld [vmem:[#allocation21_spill] sm:$0xff] }
 0x387   : > { %v907_v44 = vadd.f32 %v906_v49, %v4083_v38  ;;  %v5739_v49 = vld [vmem:[#allocation33_spill] sm:$0xff] }
 0x388   : > { %v4731_v15 = vadd.f32 %v1987_v31, %v1777_v21  ;;  %v1518_v24 = vpop.f32.mrf.mxu1  ;;  %1902 = vadd.xlane.f32.xlu2 %v1834_v8  ;;  %v1835_v63 = vmul.f32 %v4409_v34, %v991_v33  ;;  %v5738_v21 = vld [vmem:[#allocation43_spill] sm:$0xff] }
 0x389   : > { %v4735_v62 = vmul.f32 %v1763_v10, %v907_v44  ;;  %v1519_v25 = vadd.f32 %v1518_v24, %v4463_v54  ;;  %v1736_v31 = vmax.f32 %v5738_v21, 0.0  ;;  %v5740_v44 = vld [vmem:[#allocation112_spill] sm:$0xff] }
 0x38a   : > { %5731 = vst [vmem:[#allocation59_spill] sm:$0xff] %v4731_v15  ;;  %2912 = vmatmul.msk.bf16.gmra.mxu3 %vm622_vm0, %v3484_v57  ;;  %1904 = vadd.xlane.f32.xlu0 %v1835_v63  ;;  %v1068_v57 = vadd.f32 %v5739_v49, %v4422_v20  ;;  %v1764_v24 = vmax.f32 %v5740_v44, 0.0  ;;  %v5742_v15 = vld [vmem:[#allocation111_spill] sm:$0xff]  ;;  %v5744_v49 = vld [vmem:[#allocation70_spill] sm:$0xff] }
 0x38b   : > { %v4742_v5 = vmul.f32 %v2448_v0, %v1519_v25  ;;  %2897 = vmatmul.msk.bf16.gmra.mxu2 %vm622_vm0, %v5735_v36  ;;  %2966 = vmatmul.msk.bf16.gmra.mxu1 %vm622_vm0, %v5736_v45  ;;  %v4748_v34 = vpop.xlane.xlu1 %2404  ;;  %v1875_v9 = vpop.xlane.xlu0 %1874  ;;  %v1778_v10 = vmul.f32 %v1736_v31, %v840_v53  ;;  %v842_v53 = vadd.f32 %v5744_v49, %v4083_v38 }
 0x38c   : > { %5737 = vst [vmem:[#allocation30_spill] sm:$0xff] %v4748_v34  ;;  %v1946_v33 = vmax.f32 %v1875_v9, 0.0 }
 0x38d   : > { %5734 = vst [vmem:[#allocation40_spill] sm:$0xff] %v4742_v5  ;;  %v993_v8 = vpop.f32.mrf.mxu3  ;;  %v2449_v5 = vmax.f32 %v5742_v15, 0.0 }
 0x38e   : > { %v909_v22 = vpop.f32.mrf.mxu2  ;;  %v994_v0 = vadd.f32 %v993_v8, %v4119_v29  ;;  %v1988_v63 = vmul.f32 %v1946_v33, %v1068_v57  ;;  %v5747_v8 = vld [vmem:[#allocation11_spill] sm:$0xff] }
 0x38f   : > { %v910_v6 = vadd.f32 %v909_v22, %v4083_v38  ;;  %v1737_v22 = vmax.f32 %v5747_v8, 0.0 }
 0x390   : > { %v1520_v25 = vpop.f32.mrf.mxu1  ;;  %v1836_v34 = vmul.f32 %v5741_v4, %v994_v0  ;;  %v4758_v21 = vadd.f32 %v1988_v63, %v1778_v10  ;;  %v5748_v0 = vld [vmem:[#allocation35_spill] sm:$0xff] }
 0x391   : > { %v4760_v40 = vmul.f32 %v1764_v24, %v910_v6  ;;  %v1521_v9 = vadd.f32 %v1520_v25, %v4463_v54  ;;  %v1070_v15 = vadd.f32 %v5748_v0, %v4422_v20  ;;  %v1779_v6 = vmul.f32 %v1737_v22, %v842_v53  ;;  %v5752_v0 = vld [vmem:[#allocation73_spill] sm:$0xff] }
 0x392   : > { %5743 = vst [vmem:[#allocation100_spill] sm:$0xff] %v4758_v21  ;;  %1906 = vadd.xlane.f32.xlu1 %v1836_v34  ;;  %v5749_v34 = vld [vmem:[#allocation116_spill] sm:$0xff] }
 0x393   : > { %v4765_v31 = vmul.f32 %v2449_v5, %v1521_v9  ;;  %v4767_v57 = vpop.xlane.xlu2 %2406  ;;  %v1877_v33 = vpop.xlane.xlu1 %1876  ;;  %v1765_v25 = vmax.f32 %v5749_v34, 0.0 }
 0x394   : > { %5746 = vst [vmem:[#allocation62_spill] sm:$0xff] %v4767_v57  ;;  %v1947_v10 = vmax.f32 %v1877_v33, 0.0  ;;  %v5750_v57 = vld [vmem:[#allocation113_spill] sm:$0xff] }
 0x395   : > { %5745 = vst [vmem:[#allocation101_spill] sm:$0xff] %v4765_v31  ;;  %v995_v44 = vpop.f32.mrf.mxu3  ;;  %v2450_v31 = vmax.f32 %v5750_v57, 0.0 }
 0x396   : > { %v911_v24 = vpop.f32.mrf.mxu2  ;;  %v996_v63 = vadd.f32 %v995_v44, %v4119_v29  ;;  %v1989_v4 = vmul.f32 %v1947_v10, %v1070_v15  ;;  %v845_v44 = vadd.f32 %v5752_v0, %v4083_v38  ;;  %v5755_v15 = vld [vmem:[#allocation54_spill] sm:$0xff] }
 0x397   : > { %v912_v5 = vadd.f32 %v911_v24, %v4083_v38  ;;  %v1738_v10 = vmax.f32 %v5755_v15, 0.0  ;;  %v5756_v24 = vld [vmem:[#allocation36_spill] sm:$0xff]  ;;  %v5758_v15 = vld [vmem:[#allocation75_spill] sm:$0xff] }
 0x398   : > { %v1523_v9 = vpop.f32.mrf.mxu1  ;;  %v1837_v49 = vmul.f32 %v4466_v41, %v996_v63  ;;  %v4777_v8 = vadd.f32 %v1989_v4, %v1779_v6  ;;  %v5753_v41 = vld [vmem:[#allocation22_spill] sm:$0xff]  ;;  %v1073_v63 = vadd.f32 %v5756_v24, %v4422_v20 }
 0x399   : > { %v4779_v21 = vmul.f32 %v1765_v25, %v912_v5  ;;  %v1524_v33 = vadd.f32 %v1523_v9, %v4463_v54 }
 0x39a   : > { %5751 = vst [vmem:[#allocation20_spill] sm:$0xff] %v4777_v8  ;;  %2913 = vmatmul.msk.bf16.gmra.mxu3 %vm622_vm0, %v3496_v3  ;;  %1908 = vadd.xlane.f32.xlu2 %v1837_v49  ;;  %v1780_v3 = vmul.f32 %v1738_v10, %v845_v44  ;;  %v847_v8 = vadd.f32 %v5758_v15, %v4083_v38 }
 0x39b   : > { %v4786_v53 = vmul.f32 %v2450_v31, %v1524_v33  ;;  %2898 = vmatmul.msk.bf16.gmra.mxu2 %vm622_vm0, %v3590_v13  ;;  %2967 = vmatmul.msk.bf16.gmra.mxu1 %vm622_vm0, %v5753_v41  ;;  %v1879_v57 = vpop.xlane.xlu2 %1878  ;;  %v4792_v22 = vpop.xlane.xlu0 %2408  ;;  %v5757_v33 = vld [vmem:[#allocation117_spill] sm:$0xff] }
 0x39c   : > { %5754 = vst [vmem:[#allocation44_spill] sm:$0xff] %v4792_v22  ;;  %v1948_v6 = vmax.f32 %v1879_v57, 0.0  ;;  %v2451_v0 = vmax.f32 %v5757_v33, 0.0  ;;  %v4806_v57 = vperm.slane %v4419_v26, 4 }
 0x39d   : > { %v998_v34 = vpop.f32.mrf.mxu3 }
 0x39e   : > { %v1990_v25 = vmul.f32 %v1948_v6, %v1073_v63  ;;  %v999_v31 = vadd.f32 %v998_v34, %v4119_v29  ;;  %v1151_v4 = vpop.f32.mrf.mxu2  ;;  %v5760_v63 = vld [vmem:[#allocation47_spill] sm:$0xff] }
 0x39f   : > { %v1739_v6 = vmax.f32 %v5760_v63, 0.0  ;;  %v2452_v63 = vmax.f32 %v4457_v37, 0.0 }
 0x3a0   : > { %v4798_v5 = vadd.f32 %v1990_v25, %v1780_v3  ;;  %v1525_v9 = vpop.f32.mrf.mxu1  ;;  %v1838_v49 = vmul.f32 %v4495_v55, %v999_v31  ;;  %v5761_v55 = vld [vmem:[#allocation37_spill] sm:$0xff] }
 0x3a1   : > { %v1526_v22 = vadd.f32 %v1525_v9, %v4463_v54  ;;  %v1075_v34 = vadd.f32 %v5761_v55, %v4422_v20  ;;  %v1781_v31 = vmul.f32 %v1739_v6, %v847_v8  ;;  %v1152_v9 = vadd.f32 %v1151_v4, %v4806_v57  ;;  %v5763_v55 = vld [vmem:[#allocation77_spill] sm:$0xff]  ;;  %v3091_v8 = vld [vmem:[%s3351_s23] sm:$0xff] }
 0x3a2   : > { %1910 = vadd.xlane.f32.xlu0 %v1838_v49 }
 0x3a3   : > { %v4808_v44 = vmul.f32 %v2451_v0, %v1526_v22  ;;  %v4810_v10 = vpop.xlane.xlu1 %2410  ;;  %v1881_v24 = vpop.xlane.xlu0 %1880  ;;  %v2060_v4 = vmul.f32 %v3091_v8, %v1152_v9 }
 0x3a4   : > { %5759 = vst [vmem:[#allocation31_spill] sm:$0xff] %v4810_v10  ;;  %v1949_v3 = vmax.f32 %v1881_v24, 0.0  ;;  %v850_v24 = vadd.f32 %v5763_v55, %v4083_v38 }
 0x3a5   : > { %v1000_v25 = vpop.f32.mrf.mxu3 }
 0x3a6   : > { %v1991_v33 = vmul.f32 %v1949_v3, %v1075_v34  ;;  %v1001_v26 = vadd.f32 %v1000_v25, %v4119_v29  ;;  %v1153_v49 = vpop.f32.mrf.mxu2  ;;  %v5765_v34 = vld [vmem:[#allocation23_spill] sm:$0xff]  ;;  %v5767_v3 = vld [vmem:[#allocation12_spill] sm:$0xff] }
 0x3a7   : > { %v1740_v25 = vmax.f32 %v5767_v3, 0.0 }
 0x3a8   : > { %v4817_v22 = vadd.f32 %v1991_v33, %v1781_v31  ;;  %v1528_v0 = vpop.f32.mrf.mxu1  ;;  %v1839_v15 = vmul.f32 %v4516_v42, %v1001_v26  ;;  %v5768_v31 = vld [vmem:[#allocation39_spill] sm:$0xff]  ;;  %v1154_v33 = vadd.f32 %v1153_v49, %v4806_v57 }
 0x3a9   : > { %v1529_v10 = vadd.f32 %v1528_v0, %v4463_v54  ;;  %v1782_v26 = vmul.f32 %v1740_v25, %v850_v24  ;;  %v5769_v49 = vld [vmem:[#allocation79_spill] sm:$0xff] }
 0x3aa   : > { %5762 = vst [vmem:[#allocation103_spill] sm:$0xff] %v4817_v22  ;;  %2914 = vmatmul.msk.bf16.gmra.mxu3 %vm622_vm0, %v5667_v48  ;;  %1912 = vadd.xlane.f32.xlu1 %v1839_v15  ;;  %v1078_v48 = vadd.f32 %v5768_v31, %v4422_v20  ;;  %v3092_v22 = vld [vmem:[%s3351_s23 + $0x8] sm:$0xff] }
 0x3ab   : > { %v4827_v6 = vmul.f32 %v2452_v63, %v1529_v10  ;;  %2899 = vmatmul.msk.bf16.gmra.mxu2 %vm622_vm0, %v5668_v1  ;;  %2968 = vmatmul.msk.bf16.gmra.mxu1 %vm622_vm0, %v5765_v34  ;;  %v4833_v37 = vpop.xlane.xlu2 %2412  ;;  %v1883_v42 = vpop.xlane.xlu1 %1882  ;;  %v2061_v3 = vmul.f32 %v3092_v22, %v1154_v33 }
 0x3ac   : > { %5766 = vst [vmem:[#allocation50_spill] sm:$0xff] %v4833_v37  ;;  %2102 = vadd.xlane.f32.xlu0 %v2060_v4  ;;  %v1950_v10 = vmax.f32 %v1883_v42, 0.0  ;;  %v852_v4 = vadd.f32 %v5769_v49, %v4083_v38 }
 0x3ad   : > { %5764 = vst [vmem:[#allocation65_spill] sm:$0xff] %v4827_v6  ;;  %v1003_v9 = vpop.f32.mrf.mxu3  ;;  %v2453_v6 = vmax.f32 %v4491_v56, 0.0 }
 0x3ae   : > { %v1992_v0 = vmul.f32 %v1950_v10, %v1078_v48  ;;  %v1004_v15 = vadd.f32 %v1003_v9, %v4119_v29  ;;  %v1156_v63 = vpop.f32.mrf.mxu2  ;;  %v5771_v48 = vld [vmem:[#allocation58_spill] sm:$0xff] }
 0x3af   : > { %v1741_v10 = vmax.f32 %v5771_v48, 0.0  ;;  %v1157_v56 = vadd.f32 %v1156_v63, %v4806_v57  ;;  %v2454_v48 = vmax.f32 %v4510_v59, 0.0  ;;  %v5773_v63 = vld [vmem:[#allocation81_spill] sm:$0xff] }
 0x3b0   : > { %v4840_v55 = vadd.f32 %v1992_v0, %v1782_v26  ;;  %v1530_v8 = vpop.f32.mrf.mxu1  ;;  %v1840_v37 = vmul.f32 %v4544_v46, %v1004_v15  ;;  %v5772_v46 = vld [vmem:[#allocation42_spill] sm:$0xff] }
 0x3b1   : > { %v1531_v31 = vadd.f32 %v1530_v8, %v4463_v54  ;;  %v1080_v22 = vadd.f32 %v5772_v46, %v4422_v20  ;;  %v1783_v26 = vmul.f32 %v1741_v10, %v852_v4  ;;  %v5774_v10 = vld [vmem:[#allocation24_spill] sm:$0xff] }
 0x3b2   : > { %1914 = vadd.xlane.f32.xlu2 %v1840_v37  ;;  %2104 = vadd.xlane.f32.xlu1 %v2061_v3  ;;  %v3093_v3 = vld [vmem:[%s3351_s23 + $0x10] sm:$0xff] }
 0x3b3   : > { %v4848_v24 = vmul.f32 %v2453_v6, %v1531_v31  ;;  %v1885_v42 = vpop.xlane.xlu2 %1884  ;;  %v4850_v25 = vpop.xlane.xlu0 %2414  ;;  %v2062_v31 = vmul.f32 %v3093_v3, %v1157_v56 }
 0x3b4   : > { %5770 = vst [vmem:[#allocation32_spill] sm:$0xff] %v4850_v25  ;;  %v1951_v33 = vmax.f32 %v1885_v42, 0.0  ;;  %v855_v42 = vadd.f32 %v5773_v63, %v4083_v38 }
 0x3b5   : > { %v1005_v9 = vpop.f32.mrf.mxu3 }
 0x3b6   : > { %v1993_v0 = vmul.f32 %v1951_v33, %v1080_v22  ;;  %v1006_v37 = vadd.f32 %v1005_v9, %v4119_v29  ;;  %v1158_v15 = vpop.f32.mrf.mxu2  ;;  %v5776_v22 = vld [vmem:[#allocation51_spill] sm:$0xff]  ;;  %v5777_v33 = vld [vmem:[#allocation45_spill] sm:$0xff] }
 0x3b7   : > { %v1742_v56 = vmax.f32 %v5776_v22, 0.0  ;;  %v1083_v9 = vadd.f32 %v5777_v33, %v4422_v20  ;;  %v2455_v22 = vmax.f32 %v4538_v11, 0.0 }
 0x3b8   : > { %v4857_v8 = vadd.f32 %v1993_v0, %v1783_v26  ;;  %v1533_v6 = vpop.f32.mrf.mxu1  ;;  %v1841_v49 = vmul.f32 %v4567_v61, %v1006_v37  ;;  %v1159_v37 = vadd.f32 %v1158_v15, %v4806_v57 }
 0x3b9   : > { %v1534_v46 = vadd.f32 %v1533_v6, %v4463_v54  ;;  %v1784_v0 = vmul.f32 %v1742_v56, %v855_v42  ;;  %v3094_v42 = vld [vmem:[%s3351_s23 + $0x18] sm:$0xff] }
 0x3ba   : > { %2915 = vmatmul.msk.bf16.gmra.mxu3 %vm622_vm0, %v5683_v28  ;;  %2106 = vadd.xlane.f32.xlu2 %v2062_v31  ;;  %v2063_v56 = vmul.f32 %v3094_v42, %v1159_v37 }
 0x3bb   : > { %v4867_v4 = vmul.f32 %v2454_v48, %v1534_v46  ;;  %2900 = vmatmul.msk.bf16.gmra.mxu2 %vm622_vm0, %v5684_v14  ;;  %2969 = vmatmul.msk.bf16.gmra.mxu1 %vm622_vm0, %v5774_v10  ;;  %v4873_v61 = vpop.xlane.xlu1 %2416  ;;  %v1887_v59 = vpop.xlane.xlu0 %1886 }
 0x3bc   : > { %5775 = vst [vmem:[#allocation108_spill] sm:$0xff] %v4873_v61  ;;  %1916 = vadd.xlane.f32.xlu0 %v1841_v49  ;;  %v1952_v28 = vmax.f32 %v1887_v59, 0.0  ;;  %v5778_v49 = vld [vmem:[#allocation83_spill] sm:$0xff] }
 0x3bd   : > { %v1008_v26 = vpop.f32.mrf.mxu3  ;;  %v857_v59 = vadd.f32 %v5778_v49, %v4083_v38 }
 0x3be   : > { %v1994_v6 = vmul.f32 %v1952_v28, %v1083_v9  ;;  %v1009_v3 = vadd.f32 %v1008_v26, %v4119_v29  ;;  %v1161_v31 = vpop.f32.mrf.mxu2  ;;  %v5780_v26 = vld [vmem:[#allocation13_spill] sm:$0xff] }
 0x3bf   : > { %v1162_v49 = vadd.f32 %v1161_v31, %v4806_v57 }
 0x3c0   : > { %v4880_v48 = vadd.f32 %v1994_v6, %v1784_v0  ;;  %v1535_v46 = vpop.f32.mrf.mxu1  ;;  %v1842_v63 = vmul.f32 %v4597_v35, %v1009_v3  ;;  %v1743_v0 = vmax.f32 %v5780_v26, 0.0  ;;  %v5781_v35 = vld [vmem:[#allocation49_spill] sm:$0xff] }
 0x3c1   : > { %v1536_v33 = vadd.f32 %v1535_v46, %v4463_v54  ;;  %v1085_v6 = vadd.f32 %v5781_v35, %v4422_v20 }
 0x3c2   : > { %1918 = vadd.xlane.f32.xlu1 %v1842_v63  ;;  %v1785_v46 = vmul.f32 %v1743_v0, %v857_v59 }
 0x3c3   : > { %v4888_v15 = vmul.f32 %v2455_v22, %v1536_v33  ;;  %v4890_v9 = vpop.xlane.xlu2 %2418  ;;  %v1889_v28 = vpop.xlane.xlu1 %1888 }
 0x3c4   : > { %5779 = vst [vmem:[#allocation107_spill] sm:$0xff] %v4890_v9  ;;  %2108 = vadd.xlane.f32.xlu0 %v2063_v56  ;;  %v1953_v11 = vmax.f32 %v1889_v28, 0.0  ;;  %v5782_v9 = vld [vmem:[#allocation87_spill] sm:$0xff]  ;;  %v3095_v56 = vld [vmem:[%s3351_s23 + $0x20] sm:$0xff] }
 0x3c5   : > { %v1010_v3 = vpop.f32.mrf.mxu3  ;;  %v860_v26 = vadd.f32 %v5782_v9, %v4083_v38  ;;  %v2064_v28 = vmul.f32 %v3095_v56, %v1162_v49  ;;  %v5785_v9 = vld [vmem:[#allocation53_spill] sm:$0xff] }
 0x3c6   : > { %v1995_v63 = vmul.f32 %v1953_v11, %v1085_v6  ;;  %v1011_v37 = vadd.f32 %v1010_v3, %v4119_v29  ;;  %v1163_v22 = vpop.f32.mrf.mxu2  ;;  %v1088_v35 = vadd.f32 %v5785_v9, %v4422_v20 }
 0x3c8   : > { %v4897_v33 = vadd.f32 %v1995_v63, %v1785_v46  ;;  %v1843_v42 = vmul.f32 %v4621_v43, %v1011_v37  ;;  %v5784_v43 = vld [vmem:[#allocation61_spill] sm:$0xff] }
 0x3c9   : > { %v1744_v0 = vmax.f32 %v5784_v43, 0.0  ;;  %v5786_v43 = vld [vmem:[#allocation89_spill] sm:$0xff] }
 0x3ca   : > { %2916 = vmatmul.msk.bf16.gmra.mxu3 %vm622_vm0, %v3536_v58  ;;  %1920 = vadd.xlane.f32.xlu2 %v1843_v42  ;;  %v1164_v58 = vadd.f32 %v1163_v22, %v4806_v57  ;;  %v3096_v42 = vld [vmem:[%s3351_s23 + $0x28] sm:$0xff]  ;;  %v862_v61 = vadd.f32 %v5786_v43, %v4083_v38  ;;  %v3097_v43 = vld [vmem:[%s3351_s23 + $0x30] sm:$0xff] }
 0x3cb   : > { %2901 = vmatmul.msk.bf16.gmra.mxu2 %vm622_vm0, %v5702_v16  ;;  %2970 = vmatmul.msk.bf16.gmra.mxu1 %vm622_vm0, %v3752_v18  ;;  %v1891_v31 = vpop.xlane.xlu2 %1890  ;;  %v4909_v59 = vpop.xlane.xlu0 %2420  ;;  %v1786_v3 = vmul.f32 %v1744_v0, %v860_v26  ;;  %v5788_v26 = vld [vmem:[#allocation55_spill] sm:$0xff]  ;;  %v5789_v0 = vld [vmem:[#allocation57_spill] sm:$0xff] }
 0x3cc   : > { %5783 = vst [vmem:[#allocation18_spill] sm:$0xff] %v4909_v59  ;;  %2110 = vadd.xlane.f32.xlu1 %v2064_v28  ;;  %v1954_v6 = vmax.f32 %v1891_v31, 0.0  ;;  %v2065_v56 = vmul.f32 %v3096_v42, %v1164_v58  ;;  %v1745_v31 = vmax.f32 %v5788_v26, 0.0  ;;  %v1090_v9 = vadd.f32 %v5789_v0, %v4422_v20  ;;  %v5790_v42 = vld [vmem:[#allocation94_spill] sm:$0xff] }
 0x3cd   : > { %v1013_v11 = vpop.f32.mrf.mxu3 }
 0x3ce   : > { %v1996_v46 = vmul.f32 %v1954_v6, %v1088_v35  ;;  %v1014_v49 = vadd.f32 %v1013_v11, %v4119_v29  ;;  %v1166_v63 = vpop.f32.mrf.mxu2  ;;  %v1787_v11 = vmul.f32 %v1745_v31, %v862_v61  ;;  %v5793_v31 = vld [vmem:[#allocation60_spill] sm:$0xff] }
 0x3cf   : > { %v1167_v58 = vadd.f32 %v1166_v63, %v4806_v57  ;;  %v1093_v0 = vadd.f32 %v5793_v31, %v4422_v20 }
 0x3d0   : > { %v4916_v37 = vadd.f32 %v1996_v46, %v1786_v3  ;;  %v1844_v59 = vmul.f32 %v4652_v51, %v1014_v49 }
 0x3d2   : > { %2112 = vadd.xlane.f32.xlu2 %v2065_v56  ;;  %1922 = vadd.xlane.f32.xlu0 %v1844_v59  ;;  %v865_v56 = vadd.f32 %v5790_v42, %v4083_v38  ;;  %v3098_v42 = vld [vmem:[%s3351_s23 + $0x38] sm:$0xff] }
 0x3d3   : > { %v4922_v22 = vpop.xlane.xlu1 %2422  ;;  %v1893_v28 = vpop.xlane.xlu0 %1892 }
 0x3d4   : > { %5787 = vst [vmem:[#allocation10_spill] sm:$0xff] %v4922_v22  ;;  %v1955_v35 = vmax.f32 %v1893_v28, 0.0  ;;  %v2066_v28 = vmul.f32 %v3097_v43, %v1167_v58 }
 0x3d5   : > { %v1015_v6 = vpop.f32.mrf.mxu3 }
 0x3d6   : > { %v1997_v51 = vmul.f32 %v1955_v35, %v1090_v9  ;;  %v1016_v3 = vadd.f32 %v1015_v6, %v4119_v29  ;;  %v1168_v46 = vpop.f32.mrf.mxu2 }
 0x3d8   : > { %v4929_v49 = vadd.f32 %v1997_v51, %v1787_v11  ;;  %v1845_v59 = vmul.f32 %v4675_v19, %v1016_v3  ;;  %v5792_v19 = vld [vmem:[#allocation15_spill] sm:$0xff] }
 0x3d9   : > { %v1746_v26 = vmax.f32 %v5792_v19, 0.0  ;;  %v5794_v19 = vld [vmem:[#allocation96_spill] sm:$0xff] }
 0x3da   : > { %2917 = vmatmul.msk.bf16.gmra.mxu3 %vm622_vm0, %v3550_v7  ;;  %1924 = vadd.xlane.f32.xlu1 %v1845_v59  ;;  %v1169_v7 = vadd.f32 %v1168_v46, %v4806_v57  ;;  %v867_v31 = vadd.f32 %v5794_v19, %v4083_v38  ;;  %v4965_v19 = vld [vmem:[%s3351_s23 + $0x138] sm:$0xff] }
 0x3db   : > { %2902 = vmatmul.msk.bf16.gmra.mxu2 %vm622_vm0, %v5719_v32  ;;  %2971 = vmatmul.msk.bf16.gmra.mxu1 %vm622_vm0, %v3771_v27  ;;  %v4941_v61 = vpop.xlane.xlu2 %2424  ;;  %v1895_v63 = vpop.xlane.xlu1 %1894  ;;  %v1788_v6 = vmul.f32 %v1746_v26, %v865_v56  ;;  %v5796_v56 = vld [vmem:[#allocation64_spill] sm:$0xff]  ;;  %v5797_v26 = vld [vmem:[#allocation63_spill] sm:$0xff] }
 0x3dc   : > { %5791 = vst [vmem:[#allocation21_spill] sm:$0xff] %v4941_v61  ;;  %2114 = vadd.xlane.f32.xlu0 %v2066_v28  ;;  %v1956_v9 = vmax.f32 %v1895_v63, 0.0  ;;  %v2067_v43 = vmul.f32 %v3098_v42, %v1169_v7  ;;  %v1747_v63 = vmax.f32 %v5796_v56, 0.0  ;;  %v3099_v42 = vld [vmem:[%s3351_s23 + $0x40] sm:$0xff] }
 0x3dd   : > { %v1018_v35 = vpop.f32.mrf.mxu3 }
 0x3de   : > { %v1998_v11 = vmul.f32 %v1956_v9, %v1093_v0  ;;  %v1019_v58 = vadd.f32 %v1018_v35, %v4119_v29  ;;  %v1171_v51 = vpop.f32.mrf.mxu2  ;;  %v1095_v0 = vadd.f32 %v5797_v26, %v4422_v20  ;;  %v1789_v7 = vmul.f32 %v1747_v63, %v867_v31 }
 0x3df   : > { %v1172_v9 = vadd.f32 %v1171_v51, %v4806_v57 }
 0x3e0   : > { %v4948_v3 = vadd.f32 %v1998_v11, %v1788_v6  ;;  %v1846_v59 = vmul.f32 %v4705_v50, %v1019_v58 }
 0x3e2   : > { %1926 = vadd.xlane.f32.xlu2 %v1846_v59  ;;  %2116 = vadd.xlane.f32.xlu1 %v2067_v43  ;;  %v2068_v43 = vmul.f32 %v3099_v42, %v1172_v9 }
 0x3e3   : > { %v1897_v46 = vpop.xlane.xlu2 %1896  ;;  %v4954_v28 = vpop.xlane.xlu0 %2426 }
 0x3e4   : > { %5795 = vst [vmem:[#allocation43_spill] sm:$0xff] %v4954_v28  ;;  %v1957_v50 = vmax.f32 %v1897_v46, 0.0  ;;  %v5799_v46 = vld [vmem:[#allocation66_spill] sm:$0xff] }
 0x3e5   : > { %v1020_v35 = vpop.f32.mrf.mxu3  ;;  %v1098_v63 = vadd.f32 %v5799_v46, %v4422_v20  ;;  %v3102_v46 = vld [vmem:[%s3351_s23 + $0x48] sm:$0xff] }
 0x3e6   : > { %v1999_v6 = vmul.f32 %v1957_v50, %v1095_v0  ;;  %v1021_v11 = vadd.f32 %v1020_v35, %v4119_v29  ;;  %v1173_v58 = vpop.f32.mrf.mxu2 }
 0x3e7   : > { %v1174_v9 = vadd.f32 %v1173_v58, %v4806_v57  ;;  %v5803_v58 = vld [vmem:[#allocation16_spill] sm:$0xff] }
 0x3e8   : > { %v4961_v59 = vadd.f32 %v1999_v6, %v1789_v7  ;;  %v1847_v56 = vmul.f32 %v4965_v19, %v1021_v11  ;;  %v5800_v7 = vld [vmem:[#allocation104_spill] sm:$0xff] }
 0x3e9   : > { %v3101_v11 = vld [vmem:[%s3351_s23 + $0x140] sm:$0xff] }
 0x3ea   : > { %2918 = vmatmul.msk.bf16.gmra.mxu3 %vm622_vm0, %v5735_v36  ;;  %2118 = vadd.xlane.f32.xlu2 %v2068_v43  ;;  %v5801_v43 = vld [vmem:[#allocation105_spill] sm:$0xff] }
 0x3eb   : > { %2903 = vmatmul.msk.bf16.gmra.mxu2 %vm622_vm0, %v5736_v45  ;;  %2972 = vmatmul.msk.bf16.gmra.mxu1 %vm622_vm0, %v3791_v30  ;;  %v4974_v51 = vpop.xlane.xlu1 %2428  ;;  %v1899_v31 = vpop.xlane.xlu0 %1898 }
 0x3ec   : > { %5798 = vst [vmem:[#allocation33_spill] sm:$0xff] %v4974_v51  ;;  %1928 = vadd.xlane.f32.xlu0 %v1847_v56  ;;  %v1958_v26 = vmax.f32 %v1899_v31, 0.0  ;;  %v872_v51 = vadd.f32 %v5801_v43, %v4083_v38  ;;  %v2069_v56 = vmul.f32 %v3102_v46, %v1174_v9  ;;  %v3103_v46 = vld [vmem:[%s3351_s23 + $0x148] sm:$0xff] }
 0x3ed   : > { %v1023_v0 = vpop.f32.mrf.mxu3 }
 0x3ee   : > { %v2000_v36 = vmul.f32 %v1958_v26, %v1098_v63  ;;  %v1024_v50 = vadd.f32 %v1023_v0, %v4119_v29  ;;  %v1176_v35 = vpop.f32.mrf.mxu2  ;;  %v1749_v63 = vmax.f32 %v5803_v58, 0.0  ;;  %v5804_v26 = vld [vmem:[#allocation68_spill] sm:$0xff]  ;;  %v5805_v58 = vld [vmem:[#allocation109_spill] sm:$0xff] }
 0x3ef   : > { %v1100_v0 = vadd.f32 %v5804_v26, %v4422_v20  ;;  %v875_v22 = vadd.f32 %v5805_v58, %v4083_v38 }
 0x3f0   : > { %v4981_v6 = vadd.f32 %v2000_v36, %v5800_v7  ;;  %v1848_v42 = vmul.f32 %v3101_v11, %v1024_v50  ;;  %v1791_v50 = vmul.f32 %v1749_v63, %v872_v51  ;;  %v1177_v11 = vadd.f32 %v1176_v35, %v4806_v57  ;;  %v5806_v51 = vld [vmem:[#allocation67_spill] sm:$0xff] }
 0x3f1   : > { %v1750_v35 = vmax.f32 %v5806_v51, 0.0  ;;  %v5807_v63 = vld [vmem:[#allocation71_spill] sm:$0xff] }
 0x3f2   : > { %1930 = vadd.xlane.f32.xlu1 %v1848_v42  ;;  %v1103_v26 = vadd.f32 %v5807_v63, %v4422_v20  ;;  %v3105_v51 = vld [vmem:[%s3351_s23 + $0x58] sm:$0xff] }
 0x3f3   : > { %v4987_v31 = vpop.xlane.xlu2 %2430  ;;  %v1901_v28 = vpop.xlane.xlu1 %1900  ;;  %v5809_v63 = vld [vmem:[#allocation115_spill] sm:$0xff] }
 0x3f4   : > { %5802 = vst [vmem:[#allocation112_spill] sm:$0xff] %v4987_v31  ;;  %2120 = vadd.xlane.f32.xlu0 %v2069_v56  ;;  %v1959_v36 = vmax.f32 %v1901_v28, 0.0  ;;  %v3104_v28 = vld [vmem:[%s3351_s23 + $0x50] sm:$0xff] }
 0x3f5   : > { %v1025_v7 = vpop.f32.mrf.mxu3  ;;  %v2070_v56 = vmul.f32 %v3104_v28, %v1177_v11 }
 0x3f6   : > { %v2001_v43 = vmul.f32 %v1959_v36, %v1100_v0  ;;  %v1026_v42 = vadd.f32 %v1025_v7, %v4119_v29  ;;  %v1178_v61 = vpop.f32.mrf.mxu2  ;;  %v5808_v36 = vld [vmem:[#allocation74_spill] sm:$0xff] }
 0x3f7   : > { %v1179_v38 = vadd.f32 %v1178_v61, %v4806_v57  ;;  %v1105_v7 = vadd.f32 %v5808_v36, %v4422_v20 }
 0x3f8   : > { %v4994_v9 = vadd.f32 %v2001_v43, %v1791_v50  ;;  %v1849_v31 = vmul.f32 %v3103_v46, %v1026_v42  ;;  %v1792_v50 = vmul.f32 %v1750_v35, %v875_v22  ;;  %v5810_v35 = vld [vmem:[#allocation76_spill] sm:$0xff] }
 0x3f9   : > { %v2071_v61 = vmul.f32 %v3105_v51, %v1179_v38 }
 0x3fa   : > { %2919 = vmatmul.msk.bf16.gmra.mxu3 %vm622_vm0, %v3590_v13  ;;  %1932 = vadd.xlane.f32.xlu2 %v1849_v31 }
 0x3fb   : > { %2904 = vmatmul.msk.bf16.gmra.mxu2 %vm622_vm0, %v5753_v41  ;;  %2973 = vmatmul.msk.bf16.gmra.mxu1 %vm622_vm0, %v3811_v23  ;;  %v1903_v29 = vpop.xlane.xlu2 %1902 }
 0x3fc   : > { %2122 = vadd.xlane.f32.xlu1 %v2070_v56  ;;  %v1960_v13 = vmax.f32 %v1903_v29, 0.0  ;;  %v3106_v56 = vld [vmem:[%s3351_s23 + $0x60] sm:$0xff] }
 0x3fd   : > { %v5010_v31 = vpop.f32.mrf.mxu3  ;;  %v1905_v0 = vpop.xlane.xlu0 %1904 }
 0x3fe   : > { %v2002_v11 = vmul.f32 %v1960_v13, %v1103_v26  ;;  %v1181_v43 = vpop.f32.mrf.mxu2  ;;  %v1961_v42 = vmax.f32 %v1905_v0, 0.0  ;;  %v1108_v26 = vadd.f32 %v5810_v35, %v4422_v20 }
 0x3ff   : > { %v1182_v46 = vadd.f32 %v1181_v43, %v4806_v57 }
 0x400   : > { %v5015_v58 = vadd.f32 %v2002_v11, %v1792_v50  ;;  %v2003_v28 = vmul.f32 %v1961_v42, %v1105_v7  ;;  %v3107_v11 = vld [vmem:[%s3351_s23 + $0x68] sm:$0xff] }
 0x401   : > { %v2072_v29 = vmul.f32 %v3106_v56, %v1182_v46 }
 0x402   : > { %v5020_v25 = vadd.f32 %v2003_v28, %v5809_v63  ;;  %2124 = vadd.xlane.f32.xlu2 %v2071_v61  ;;  %v5811_v28 = vld [vmem:[#allocation78_spill] sm:$0xff] }
 0x403   : > { %2126 = vadd.xlane.f32.xlu0 %v2072_v29  ;;  %v1110_v51 = vadd.f32 %v5811_v28, %v4422_v20  ;;  %v3108_v63 = vld [vmem:[%s3351_s23 + $0x70] sm:$0xff] }
 0x405   : > { %v1267_v36 = vpop.f32.mrf.mxu3  ;;  %v1907_v22 = vpop.xlane.xlu1 %1906 }
 0x406   : > { %v1183_v13 = vpop.f32.mrf.mxu2  ;;  %v1962_v0 = vmax.f32 %v1907_v22, 0.0 }
 0x407   : > { %v1184_v50 = vadd.f32 %v1183_v13, %v4806_v57  ;;  %v5812_v13 = vld [vmem:[#allocation80_spill] sm:$0xff] }
 0x408   : > { %v2004_v7 = vmul.f32 %v1962_v0, %v1108_v26  ;;  %v1113_v0 = vadd.f32 %v5812_v13, %v4422_v20 }
 0x409   : > { %v2073_v38 = vmul.f32 %v3107_v11, %v1184_v50 }
 0x40a   : > { %v5027_v43 = vadd.f32 %v2004_v7, %v4454_v12  ;;  %2920 = vmatmul.msk.bf16.gmra.mxu3 %vm622_vm0, %v5668_v1 }
 0x40b   : > { %2905 = vmatmul.msk.bf16.gmra.mxu2 %vm622_vm0, %v5765_v34  ;;  %2128 = vadd.xlane.f32.xlu1 %v2073_v38 }
 0x40d   : > { %v5033_v42 = vpop.f32.mrf.mxu3  ;;  %v1909_v46 = vpop.xlane.xlu2 %1908 }
 0x40e   : > { %v1186_v61 = vpop.f32.mrf.mxu2  ;;  %v1963_v56 = vmax.f32 %v1909_v46, 0.0  ;;  %v3109_v46 = vld [vmem:[%s3351_s23 + $0x78] sm:$0xff] }
 0x40f   : > { %v1187_v29 = vadd.f32 %v1186_v61, %v4806_v57 }
 0x410   : > { %v2005_v12 = vmul.f32 %v1963_v56, %v1110_v51 }
 0x411   : > { %v2074_v22 = vmul.f32 %v3108_v63, %v1187_v29 }
 0x412   : > { %v5040_v1 = vadd.f32 %v2005_v12, %v4476_v47  ;;  %v3110_v47 = vld [vmem:[%s5496_s4] sm:$0xff] }
 0x413   : > { %2130 = vadd.xlane.f32.xlu2 %v2074_v22  ;;  %v5058_v61 = vperm.slane %v3110_v47, 5 }
 0x415   : > { %v5042_v35 = vpop.f32.mrf.mxu3  ;;  %v1911_v26 = vpop.xlane.xlu0 %1910  ;;  %v1266_v13 = vadd.f32 %v5010_v31, %v5058_v61  ;;  %v5818_v31 = vld [vmem:[#allocation122_spill] sm:$0xff] }
 0x416   : > { %v1188_v50 = vpop.f32.mrf.mxu2  ;;  %v1964_v7 = vmax.f32 %v1911_v26, 0.0 }
 0x417   : > { %v1189_v11 = vadd.f32 %v1188_v50, %v4806_v57 }
 0x418   : > { %v2006_v38 = vmul.f32 %v1964_v7, %v1113_v0  ;;  %v3111_v7 = vld [vmem:[%s3351_s23 + $0x80] sm:$0xff] }
 0x419   : > { %v2075_v28 = vmul.f32 %v3109_v46, %v1189_v11 }
 0x41a   : > { %v5049_v51 = vadd.f32 %v2006_v38, %v4504_v2  ;;  %2921 = vmatmul.msk.bf16.gmra.mxu3 %vm622_vm0, %v5684_v14  ;;  %v5814_v2 = vld [vmem:[#allocation82_spill] sm:$0xff] }
 0x41b   : > { %2906 = vmatmul.msk.bf16.gmra.mxu2 %vm622_vm0, %v5774_v10  ;;  %2132 = vadd.xlane.f32.xlu0 %v2075_v28  ;;  %v1115_v12 = vadd.f32 %v5814_v2, %v4422_v20  ;;  %v5816_v28 = vld [vmem:[#allocation120_spill] sm:$0xff] }
 0x41c   : > { %5813 = vst [vmem:[#allocation118_spill] sm:$0xff] %v5049_v51 }
 0x41d   : > { %v5060_v56 = vpop.f32.mrf.mxu3  ;;  %v1913_v29 = vpop.xlane.xlu1 %1912 }
 0x41e   : > { %v1191_v63 = vpop.f32.mrf.mxu2  ;;  %v1965_v22 = vmax.f32 %v1913_v29, 0.0 }
 0x41f   : > { %v1192_v14 = vadd.f32 %v1191_v63, %v4806_v57  ;;  %v2103_v26 = vpop.xlane.xlu0 %2102  ;;  %v5817_v63 = vld [vmem:[#allocation85_spill] sm:$0xff] }
 0x420   : > { %v2007_v0 = vmul.f32 %v1965_v22, %v1115_v12  ;;  %v2186_v50 = vmax.f32 %v2103_v26, 0.0  ;;  %v1118_v51 = vadd.f32 %v5817_v63, %v4422_v20  ;;  %v5819_v63 = vld [vmem:[#allocation14_spill] sm:$0xff] }
 0x421   : > { %v2076_v11 = vmul.f32 %v3111_v7, %v1192_v14 }
 0x422   : > { %v5069_v38 = vadd.f32 %v2007_v0, %v4526_v52  ;;  %v2228_v46 = vmul.f32 %v2186_v50, %v1266_v13  ;;  %v1268_v52 = vadd.f32 %v1267_v36, %v5058_v61  ;;  %v5821_v36 = vld [vmem:[#allocation121_spill] sm:$0xff] }
 0x423   : > { %2134 = vadd.xlane.f32.xlu1 %v2076_v11 }
 0x424   : > { %5815 = vst [vmem:[#allocation111_spill] sm:$0xff] %v5069_v38  ;;  %v2270_v47 = vadd.f32 %v2228_v46, %v5816_v28  ;;  %v3112_v46 = vld [vmem:[%s3351_s23 + $0x88] sm:$0xff] }
 0x425   : > { %v5072_v29 = vpop.f32.mrf.mxu3  ;;  %v1915_v2 = vpop.xlane.xlu2 %1914 }
 0x426   : > { %v2522_v12 = vadd.f32 %v5818_v31, %v2270_v47  ;;  %v1193_v22 = vpop.f32.mrf.mxu2  ;;  %v1966_v26 = vmax.f32 %v1915_v2, 0.0  ;;  %v2105_v14 = vpop.xlane.xlu1 %2104 }
 0x427   : > { %v1194_v13 = vadd.f32 %v1193_v22, %v4806_v57  ;;  %v2187_v0 = vmax.f32 %v2105_v14, 0.0 }
 0x428   : > { %v2564_v50 = vmax.f32 %v2522_v12, 0.0  ;;  %v2008_v7 = vmul.f32 %v1966_v26, %v1118_v51  ;;  %v5822_v51 = vld [vmem:[#allocation124_spill] sm:$0xff]  ;;  %v1271_v26 = vadd.f32 %v5033_v42, %v5058_v61  ;;  %v5825_v42 = vld [vmem:[#allocation126_spill] sm:$0xff] }
 0x429   : > { %v2229_v11 = vmul.f32 %v2187_v0, %v1268_v52  ;;  %v2077_v28 = vmul.f32 %v3112_v46, %v1194_v13 }
 0x42a   : > { %2606 = vst [vmem:[%s5082_s25] sm:$0xff] %v2564_v50  ;;  %v5086_v47 = vadd.f32 %v2008_v7, %v5819_v63  ;;  %2922 = vmatmul.msk.bf16.gmra.mxu3 %vm622_vm0, %v5702_v16  ;;  %v5823_v50 = vld [vmem:[#allocation88_spill] sm:$0xff] }
 0x42b   : > { %v2271_v2 = vadd.f32 %v2229_v11, %v5821_v36  ;;  %2907 = vmatmul.msk.bf16.gmra.mxu2 %vm622_vm0, %v3752_v18  ;;  %2136 = vadd.xlane.f32.xlu2 %v2077_v28  ;;  %v1120_v7 = vadd.f32 %v5823_v50, %v4422_v20  ;;  %v3113_v28 = vld [vmem:[%s3351_s23 + $0x90] sm:$0xff]  ;;  %v5824_v36 = vld [vmem:[#allocation123_spill] sm:$0xff] }
 0x42c   : > { %5820 = vst [vmem:[#allocation70_spill] sm:$0xff] %v5086_v47 }
 0x42d   : > { %v2523_v31 = vadd.f32 %v5822_v51, %v2271_v2  ;;  %v5094_v12 = vpop.f32.mrf.mxu3  ;;  %v2107_v22 = vpop.xlane.xlu2 %2106 }
 0x42e   : > { %v1196_v14 = vpop.f32.mrf.mxu2  ;;  %v2188_v52 = vmax.f32 %v2107_v22, 0.0 }
 0x42f   : > { %v2565_v13 = vmax.f32 %v2523_v31, 0.0  ;;  %v1197_v16 = vadd.f32 %v1196_v14, %v4806_v57  ;;  %v1917_v0 = vpop.xlane.xlu0 %1916  ;;  %v5826_v31 = vld [vmem:[#allocation69_spill] sm:$0xff] }
 0x430   : > { %v2230_v11 = vmul.f32 %v2188_v52, %v1271_v26  ;;  %v1967_v46 = vmax.f32 %v1917_v0, 0.0  ;;  %v5827_v26 = vld [vmem:[#allocation91_spill] sm:$0xff] }
 0x431   : > { %2607 = vst [vmem:[%s5082_s25 + $0x8] sm:$0xff] %v2565_v13  ;;  %v2078_v63 = vmul.f32 %v3113_v28, %v1197_v16  ;;  %v1123_v52 = vadd.f32 %v5827_v26, %v4422_v20  ;;  %v5830_v26 = vld [vmem:[#allocation95_spill] sm:$0xff] }
 0x432   : > { %v2272_v2 = vadd.f32 %v2230_v11, %v5824_v36  ;;  %v2009_v51 = vmul.f32 %v1967_v46, %v1120_v7  ;;  %v1273_v7 = vadd.f32 %v5042_v35, %v5058_v61 }
 0x433   : > { %2138 = vadd.xlane.f32.xlu0 %v2078_v63  ;;  %v3114_v63 = vld [vmem:[%s3351_s23 + $0x98] sm:$0xff] }
 0x434   : > { %v2524_v22 = vadd.f32 %v5825_v42, %v2272_v2  ;;  %v5106_v47 = vadd.f32 %v2009_v51, %v5826_v31  ;;  %v5828_v2 = vld [vmem:[#allocation9_spill] sm:$0xff] }
 0x435   : > { %v5108_v14 = vpop.f32.mrf.mxu3  ;;  %v1919_v38 = vpop.xlane.xlu1 %1918 }
 0x436   : > { %v2566_v13 = vmax.f32 %v2524_v22, 0.0  ;;  %v1198_v0 = vpop.f32.mrf.mxu2  ;;  %v1968_v50 = vmax.f32 %v1919_v38, 0.0  ;;  %v5829_v38 = vld [vmem:[#allocation125_spill] sm:$0xff] }
 0x437   : > { %v1199_v16 = vadd.f32 %v1198_v0, %v4806_v57  ;;  %v2109_v11 = vpop.xlane.xlu0 %2108 }
 0x438   : > { %2608 = vst [vmem:[%s5082_s25 + $0x10] sm:$0xff] %v2566_v13  ;;  %v2010_v46 = vmul.f32 %v1968_v50, %v1123_v52  ;;  %v2189_v28 = vmax.f32 %v2109_v11, 0.0  ;;  %v1125_v52 = vadd.f32 %v5830_v26, %v4422_v20  ;;  %v5831_v13 = vld [vmem:[#allocation25_spill] sm:$0xff] }
 0x439   : > { %v2079_v36 = vmul.f32 %v3114_v63, %v1199_v16 }
 0x43a   : > { %v5118_v51 = vadd.f32 %v2010_v46, %v5828_v2  ;;  %v2231_v42 = vmul.f32 %v2189_v28, %v1273_v7  ;;  %2923 = vmatmul.msk.bf16.gmra.mxu3 %vm622_vm0, %v5719_v32  ;;  %v1276_v7 = vadd.f32 %v5060_v56, %v5058_v61  ;;  %v1278_v56 = vadd.f32 %v5072_v29, %v5058_v61 }
 0x43b   : > { %2908 = vmatmul.msk.bf16.gmra.mxu2 %vm622_vm0, %v3771_v27  ;;  %2140 = vadd.xlane.f32.xlu1 %v2079_v36  ;;  %v3115_v36 = vld [vmem:[%s3351_s23 + $0xa0] sm:$0xff] }
 0x43c   : > { %v2273_v35 = vadd.f32 %v2231_v42, %v5829_v38  ;;  %v5832_v42 = vld [vmem:[#allocation90_spill] sm:$0xff] }
 0x43d   : > { %v5125_v22 = vpop.f32.mrf.mxu3  ;;  %v1921_v31 = vpop.xlane.xlu2 %1920 }
 0x43e   : > { %v2525_v0 = vadd.f32 %v5831_v13, %v2273_v35  ;;  %v1201_v50 = vpop.f32.mrf.mxu2  ;;  %v1969_v16 = vmax.f32 %v1921_v31, 0.0  ;;  %v5834_v35 = vld [vmem:[#allocation8_spill] sm:$0xff] }
 0x43f   : > { %v1202_v32 = vadd.f32 %v1201_v50, %v4806_v57  ;;  %v2111_v11 = vpop.xlane.xlu1 %2110 }
 0x440   : > { %v2567_v46 = vmax.f32 %v2525_v0, 0.0  ;;  %v2011_v28 = vmul.f32 %v1969_v16, %v1125_v52  ;;  %v2190_v63 = vmax.f32 %v2111_v11, 0.0  ;;  %v5835_v52 = vld [vmem:[#allocation26_spill] sm:$0xff] }
 0x441   : > { %v2080_v2 = vmul.f32 %v3115_v36, %v1202_v32 }
 0x442   : > { %2609 = vst [vmem:[%s5082_s25 + $0x18] sm:$0xff] %v2567_v46  ;;  %v5136_v38 = vadd.f32 %v2011_v28, %v5832_v42  ;;  %v2232_v26 = vmul.f32 %v2190_v63, %v1276_v7  ;;  %v5836_v46 = vld [vmem:[#allocation99_spill] sm:$0xff] }
 0x443   : > { %2142 = vadd.xlane.f32.xlu2 %v2080_v2  ;;  %v1128_v28 = vadd.f32 %v5836_v46, %v4422_v20 }
 0x444   : > { %5833 = vst [vmem:[#allocation11_spill] sm:$0xff] %v5136_v38  ;;  %v2274_v31 = vadd.f32 %v2232_v26, %v5834_v35  ;;  %v3116_v26 = vld [vmem:[%s3351_s23 + $0xa8] sm:$0xff]  ;;  %v5837_v38 = vld [vmem:[#allocation86_spill] sm:$0xff] }
 0x445   : > { %v5139_v13 = vpop.f32.mrf.mxu3  ;;  %v2113_v50 = vpop.xlane.xlu2 %2112 }
 0x446   : > { %v2526_v0 = vadd.f32 %v5835_v52, %v2274_v31  ;;  %v1203_v16 = vpop.f32.mrf.mxu2  ;;  %v2191_v32 = vmax.f32 %v2113_v50, 0.0  ;;  %v1923_v11 = vpop.xlane.xlu0 %1922  ;;  %v5838_v31 = vld [vmem:[#allocation41_spill] sm:$0xff] }
 0x447   : > { %v1204_v7 = vadd.f32 %v1203_v16, %v4806_v57  ;;  %v1970_v63 = vmax.f32 %v1923_v11, 0.0  ;;  %v5839_v52 = vld [vmem:[#allocation17_spill] sm:$0xff] }
 0x448   : > { %v2568_v36 = vmax.f32 %v2526_v0, 0.0  ;;  %v2233_v2 = vmul.f32 %v2191_v32, %v1278_v56  ;;  %v5840_v32 = vld [vmem:[#allocation102_spill] sm:$0xff] }
 0x449   : > { %v2012_v42 = vmul.f32 %v1970_v63, %v1128_v28  ;;  %v2081_v35 = vmul.f32 %v3116_v26, %v1204_v7  ;;  %v1130_v11 = vadd.f32 %v5840_v32, %v4422_v20  ;;  %v1281_v63 = vadd.f32 %v5094_v12, %v5058_v61  ;;  %v5842_v32 = vld [vmem:[#allocation106_spill] sm:$0xff] }
 0x44a   : > { %2610 = vst [vmem:[%s5082_s25 + $0x20] sm:$0xff] %v2568_v36  ;;  %v2275_v29 = vadd.f32 %v2233_v2, %v5837_v38  ;;  %2924 = vmatmul.msk.bf16.gmra.mxu3 %vm622_vm0, %v5736_v45  ;;  %v1133_v12 = vadd.f32 %v5842_v32, %v4422_v20 }
 0x44b   : > { %v5153_v50 = vadd.f32 %v2012_v42, %v5838_v31  ;;  %2909 = vmatmul.msk.bf16.gmra.mxu2 %vm622_vm0, %v3791_v30  ;;  %2144 = vadd.xlane.f32.xlu0 %v2081_v35  ;;  %v3117_v42 = vld [vmem:[%s3351_s23 + $0xb0] sm:$0xff] }
 0x44c   : > { %v2527_v56 = vadd.f32 %v5839_v52, %v2275_v29  ;;  %v5841_v31 = vld [vmem:[#allocation48_spill] sm:$0xff] }
 0x44d   : > { %v5158_v0 = vpop.f32.mrf.mxu3  ;;  %v1925_v16 = vpop.xlane.xlu1 %1924 }
 0x44e   : > { %v2569_v38 = vmax.f32 %v2527_v56, 0.0  ;;  %v1206_v46 = vpop.f32.mrf.mxu2  ;;  %v1971_v28 = vmax.f32 %v1925_v16, 0.0 }
 0x44f   : > { %v1207_v45 = vadd.f32 %v1206_v46, %v4806_v57  ;;  %v2115_v7 = vpop.xlane.xlu0 %2114 }
 0x450   : > { %2611 = vst [vmem:[%s5082_s25 + $0x28] sm:$0xff] %v2569_v38  ;;  %v2013_v36 = vmul.f32 %v1971_v28, %v1130_v11  ;;  %v2192_v2 = vmax.f32 %v2115_v7, 0.0  ;;  %v5843_v38 = vld [vmem:[#allocation93_spill] sm:$0xff] }
 0x451   : > { %v2082_v26 = vmul.f32 %v3117_v42, %v1207_v45 }
 0x452   : > { %v5168_v35 = vadd.f32 %v2013_v36, %v4684_v60  ;;  %v2234_v29 = vmul.f32 %v2192_v2, %v1281_v63  ;;  %v1283_v60 = vadd.f32 %v5108_v14, %v5058_v61  ;;  %v5845_v14 = vld [vmem:[#allocation28_spill] sm:$0xff] }
 0x453   : > { %2146 = vadd.xlane.f32.xlu1 %v2082_v26  ;;  %v3118_v26 = vld [vmem:[%s3351_s23 + $0xb8] sm:$0xff] }
 0x454   : > { %v2276_v52 = vadd.f32 %v2234_v29, %v5841_v31 }
 0x455   : > { %v5171_v56 = vpop.f32.mrf.mxu3  ;;  %v1927_v16 = vpop.xlane.xlu2 %1926 }
 0x456   : > { %v2528_v11 = vadd.f32 %v5843_v38, %v2276_v52  ;;  %v1208_v46 = vpop.f32.mrf.mxu2  ;;  %v1972_v28 = vmax.f32 %v1927_v16, 0.0  ;;  %v2117_v45 = vpop.xlane.xlu1 %2116  ;;  %v5844_v52 = vld [vmem:[#allocation27_spill] sm:$0xff] }
 0x457   : > { %v1209_v7 = vadd.f32 %v1208_v46, %v4806_v57  ;;  %v2193_v63 = vmax.f32 %v2117_v45, 0.0 }
 0x458   : > { %v2570_v36 = vmax.f32 %v2528_v11, 0.0  ;;  %v2014_v2 = vmul.f32 %v1972_v28, %v1133_v12 }
 0x459   : > { %v2235_v42 = vmul.f32 %v2193_v63, %v1283_v60  ;;  %v2083_v29 = vmul.f32 %v3118_v26, %v1209_v7  ;;  %v5846_v60 = vld [vmem:[#allocation110_spill] sm:$0xff]  ;;  %v5847_v26 = vld [vmem:[#allocation52_spill] sm:$0xff] }
 0x45a   : > { %2612 = vst [vmem:[%s5082_s25 + $0x30] sm:$0xff] %v2570_v36  ;;  %v5182_v31 = vadd.f32 %v2014_v2, %v4714_v17  ;;  %2925 = vmatmul.msk.bf16.gmra.mxu3 %vm622_vm0, %v5753_v41  ;;  %v1286_v17 = vadd.f32 %v5125_v22, %v5058_v61  ;;  %v1135_v7 = vadd.f32 %v5846_v60, %v4422_v20  ;;  %v3119_v2 = vld [vmem:[%s3351_s23 + $0xc0] sm:$0xff] }
 0x45b   : > { %v2277_v16 = vadd.f32 %v2235_v42, %v5844_v52  ;;  %2910 = vmatmul.msk.bf16.gmra.mxu2 %vm622_vm0, %v3811_v23  ;;  %2148 = vadd.xlane.f32.xlu2 %v2083_v29  ;;  %v1288_v60 = vadd.f32 %v5139_v13, %v5058_v61  ;;  %v5850_v13 = vld [vmem:[#allocation119_spill] sm:$0xff] }
 0x45d   : > { %v2529_v32 = vadd.f32 %v5845_v14, %v2277_v16  ;;  %v5190_v12 = vpop.f32.mrf.mxu3  ;;  %v2119_v38 = vpop.xlane.xlu2 %2118 }
 0x45e   : > { %v1211_v11 = vpop.f32.mrf.mxu2  ;;  %v2194_v46 = vmax.f32 %v2119_v38, 0.0  ;;  %v5848_v38 = vld [vmem:[#allocation114_spill] sm:$0xff] }
 0x45f   : > { %v2571_v28 = vmax.f32 %v2529_v32, 0.0  ;;  %v1212_v41 = vadd.f32 %v1211_v11, %v4806_v57  ;;  %v1929_v45 = vpop.xlane.xlu0 %1928 }
 0x460   : > { %v2236_v63 = vmul.f32 %v2194_v46, %v1286_v17  ;;  %v1973_v36 = vmax.f32 %v1929_v45, 0.0  ;;  %v1138_v17 = vadd.f32 %v5848_v38, %v4422_v20 }
 0x461   : > { %2613 = vst [vmem:[%s5082_s25 + $0x38] sm:$0xff] %v2571_v28  ;;  %v2084_v42 = vmul.f32 %v3119_v2, %v1212_v41 }
 0x462   : > { %v2278_v29 = vadd.f32 %v2236_v63, %v5847_v26  ;;  %v2015_v52 = vmul.f32 %v1973_v36, %v1135_v7 }
 0x463   : > { %2150 = vadd.xlane.f32.xlu0 %v2084_v42  ;;  %v5849_v42 = vld [vmem:[#allocation19_spill] sm:$0xff] }
 0x464   : > { %v2530_v22 = vadd.f32 %v4692_v39, %v2278_v29  ;;  %v5202_v16 = vadd.f32 %v2015_v52, %v4735_v62  ;;  %v3120_v62 = vld [vmem:[%s3351_s23 + $0xc8] sm:$0xff] }
 0x465   : > { %v5204_v14 = vpop.f32.mrf.mxu3  ;;  %v1931_v32 = vpop.xlane.xlu1 %1930 }
 0x466   : > { %v2572_v11 = vmax.f32 %v2530_v22, 0.0  ;;  %v1213_v46 = vpop.f32.mrf.mxu2  ;;  %v1974_v28 = vmax.f32 %v1931_v32, 0.0  ;;  %v1140_v22 = vadd.f32 %v5850_v13, %v4422_v20  ;;  %v5851_v32 = vld [vmem:[#allocation98_spill] sm:$0xff] }
 0x467   : > { %v1214_v41 = vadd.f32 %v1213_v46, %v4806_v57  ;;  %v2121_v45 = vpop.xlane.xlu0 %2120 }
 0x468   : > { %2614 = vst [vmem:[%s5082_s25 + $0x40] sm:$0xff] %v2572_v11  ;;  %v2016_v39 = vmul.f32 %v1974_v28, %v1138_v17  ;;  %v2195_v7 = vmax.f32 %v2121_v45, 0.0  ;;  %v1291_v28 = vadd.f32 %v5158_v0, %v5058_v61  ;;  %v1293_v0 = vadd.f32 %v5171_v56, %v5058_v61 }
 0x469   : > { %v2085_v63 = vmul.f32 %v3120_v62, %v1214_v41  ;;  %v5852_v62 = vld [vmem:[#allocation29_spill] sm:$0xff] }
 0x46a   : > { %v5214_v36 = vadd.f32 %v2016_v39, %v4760_v40  ;;  %v2237_v2 = vmul.f32 %v2195_v7, %v1288_v60  ;;  %2926 = vmatmul.msk.bf16.gmra.mxu3 %vm622_vm0, %v5765_v34  ;;  %v3121_v60 = vld [vmem:[%s3351_s23 + $0xd0] sm:$0xff] }
 0x46b   : > { %2152 = vadd.xlane.f32.xlu1 %v2085_v63 }
 0x46c   : > { %v2279_v26 = vadd.f32 %v2237_v2, %v5849_v42 }
 0x46d   : > { %v1300_v29 = vpop.f32.mrf.mxu3  ;;  %v1933_v52 = vpop.xlane.xlu2 %1932 }
 0x46e   : > { %v2531_v38 = vadd.f32 %v5851_v32, %v2279_v26  ;;  %v1216_v17 = vpop.f32.mrf.mxu2  ;;  %v1975_v11 = vmax.f32 %v1933_v52, 0.0  ;;  %v5853_v26 = vld [vmem:[#allocation40_spill] sm:$0xff] }
 0x46f   : > { %v1217_v40 = vadd.f32 %v1216_v17, %v4806_v57  ;;  %v2123_v46 = vpop.xlane.xlu1 %2122 }
 0x470   : > { %v2573_v34 = vmax.f32 %v2531_v38, 0.0  ;;  %v2017_v41 = vmul.f32 %v1975_v11, %v1140_v22  ;;  %v2196_v45 = vmax.f32 %v2123_v46, 0.0  ;;  %v3122_v46 = vld [vmem:[%s3351_s23 + $0xd8] sm:$0xff] }
 0x471   : > { %v2086_v39 = vmul.f32 %v3121_v60, %v1217_v40 }
 0x472   : > { %2615 = vst [vmem:[%s5082_s25 + $0x48] sm:$0xff] %v2573_v34  ;;  %v5228_v7 = vadd.f32 %v2017_v41, %v4779_v21  ;;  %v2238_v20 = vmul.f32 %v2196_v45, %v1291_v28  ;;  %v1296_v21 = vadd.f32 %v5190_v12, %v5058_v61  ;;  %v5854_v41 = vld [vmem:[#allocation59_spill] sm:$0xff]  ;;  %v5242_v45 = vpop.f32.mrf.mxu1  ;;  %v5855_v12 = vld [vmem:[#allocation100_spill] sm:$0xff] }
 0x473   : > { %2154 = vadd.xlane.f32.xlu2 %v2086_v39  ;;  %v5856_v39 = vld [vmem:[#allocation101_spill] sm:$0xff] }
 0x474   : > { %v2280_v63 = vadd.f32 %v2238_v20, %v5852_v62 }
 0x475   : > { %v1302_v2 = vpop.f32.mrf.mxu3  ;;  %v2125_v42 = vpop.xlane.xlu2 %2124 }
 0x476   : > { %v2532_v52 = vadd.f32 %v5853_v26, %v2280_v63  ;;  %v1218_v13 = vpop.f32.mrf.mxu2  ;;  %v2197_v22 = vmax.f32 %v2125_v42, 0.0  ;;  %v2127_v32 = vpop.xlane.xlu0 %2126 }
 0x477   : > { %v1219_v38 = vadd.f32 %v1218_v13, %v4806_v57  ;;  %v2198_v17 = vmax.f32 %v2127_v32, 0.0  ;;  %v3123_v32 = vld [vmem:[%s3351_s23 + $0xe0] sm:$0xff] }
 0x478   : > { %v2574_v11 = vmax.f32 %v2532_v52, 0.0  ;;  %v2239_v40 = vmul.f32 %v2197_v22, %v1293_v0  ;;  %v1298_v52 = vadd.f32 %v5204_v14, %v5058_v61 }
 0x479   : > { %v2087_v28 = vmul.f32 %v3122_v46, %v1219_v38  ;;  %v2240_v34 = vmul.f32 %v2198_v17, %v1296_v21  ;;  %v5857_v17 = vld [vmem:[#allocation20_spill] sm:$0xff] }
 0x47a   : > { %2616 = vst [vmem:[%s5082_s25 + $0x50] sm:$0xff] %v2574_v11  ;;  %v2281_v56 = vadd.f32 %v2239_v40, %v5854_v41  ;;  %2927 = vmatmul.msk.bf16.gmra.mxu3 %vm622_vm0, %v5774_v10  ;;  %v5254_v11 = vpop.f32.mrf.mxu1 }
 0x47b   : > { %v2282_v60 = vadd.f32 %v2240_v34, %v5855_v12  ;;  %2156 = vadd.xlane.f32.xlu0 %v2087_v28  ;;  %v1301_v34 = vadd.f32 %v1300_v29, %v5058_v61 }
 0x47c   : > { %v2533_v20 = vadd.f32 %v5856_v39, %v2281_v56 }
 0x47d   : > { %v2534_v62 = vadd.f32 %v4786_v53, %v2282_v60  ;;  %v1305_v63 = vpop.f32.mrf.mxu3  ;;  %v3124_v60 = vld [vmem:[%s3351_s23 + $0xe8] sm:$0xff] }
 0x47e   : > { %v2575_v42 = vmax.f32 %v2533_v20, 0.0  ;;  %v1221_v0 = vpop.f32.mrf.mxu2  ;;  %v2129_v26 = vpop.xlane.xlu1 %2128 }
 0x47f   : > { %v2576_v13 = vmax.f32 %v2534_v62, 0.0  ;;  %v1222_v10 = vadd.f32 %v1221_v0, %v4806_v57  ;;  %v2199_v22 = vmax.f32 %v2129_v26, 0.0  ;;  %v5858_v62 = vld [vmem:[#allocation65_spill] sm:$0xff] }
 0x480   : > { %2617 = vst [vmem:[%s5082_s25 + $0x58] sm:$0xff] %v2575_v42 }
 0x481   : > { %2618 = vst [vmem:[%s5082_s25 + $0x60] sm:$0xff] %v2576_v13  ;;  %v2088_v21 = vmul.f32 %v3123_v32, %v1222_v10  ;;  %v2241_v38 = vmul.f32 %v2199_v22, %v1298_v52  ;;  %v1303_v13 = vadd.f32 %v1302_v2, %v5058_v61  ;;  %v1306_v2 = vadd.f32 %v1305_v63, %v5058_v61 }
 0x482   : > { %v5265_v52 = vpop.f32.mrf.mxu1 }
 0x483   : > { %v2283_v53 = vadd.f32 %v2241_v38, %v5857_v17  ;;  %2158 = vadd.xlane.f32.xlu1 %v2088_v21  ;;  %v5859_v38 = vld [vmem:[#allocation103_spill] sm:$0xff] }
 0x485   : > { %v2535_v40 = vadd.f32 %v4808_v44, %v2283_v53  ;;  %v1307_v46 = vpop.f32.mrf.mxu3 }
 0x486   : > { %v1223_v14 = vpop.f32.mrf.mxu2  ;;  %v2131_v28 = vpop.xlane.xlu2 %2130 }
 0x487   : > { %v2577_v41 = vmax.f32 %v2535_v40, 0.0  ;;  %v1224_v56 = vadd.f32 %v1223_v14, %v4806_v57  ;;  %v2200_v12 = vmax.f32 %v2131_v28, 0.0 }
 0x489   : > { %2619 = vst [vmem:[%s5082_s25 + $0x68] sm:$0xff] %v2577_v41  ;;  %v2089_v39 = vmul.f32 %v3124_v60, %v1224_v56  ;;  %v2242_v20 = vmul.f32 %v2200_v12, %v1301_v34  ;;  %v3126_v60 = vld [vmem:[%s3351_s23 + $0xf8] sm:$0xff] }
 0x48a   : > { %2928 = vmatmul.msk.bf16.gmra.mxu3 %vm622_vm0, %v3752_v18  ;;  %v3125_v18 = vld [vmem:[%s3351_s23 + $0xf0] sm:$0xff]  ;;  %v5275_v12 = vpop.f32.mrf.mxu1 }
 0x48b   : > { %v2284_v44 = vadd.f32 %v2242_v20, %v4798_v5  ;;  %2160 = vadd.xlane.f32.xlu2 %v2089_v39 }
 0x48d   : > { %v2536_v42 = vadd.f32 %v5858_v62, %v2284_v44  ;;  %v1310_v0 = vpop.f32.mrf.mxu3 }
 0x48e   : > { %v1226_v29 = vpop.f32.mrf.mxu2  ;;  %v2133_v26 = vpop.xlane.xlu0 %2132 }
 0x48f   : > { %v2578_v10 = vmax.f32 %v2536_v42, 0.0  ;;  %v1227_v22 = vadd.f32 %v1226_v29, %v4806_v57  ;;  %v2201_v32 = vmax.f32 %v2133_v26, 0.0  ;;  %v1308_v29 = vadd.f32 %v1307_v46, %v5058_v61 }
 0x490   : > { %v1539_v46 = vadd.f32 %v5242_v45, %v4463_v54 }
 0x491   : > { %2620 = vst [vmem:[%s5082_s25 + $0x70] sm:$0xff] %v2578_v10  ;;  %v2090_v21 = vmul.f32 %v3125_v18, %v1227_v22  ;;  %v2243_v5 = vmul.f32 %v2201_v32, %v1303_v13  ;;  %v3127_v22 = vld [vmem:[%s3351_s23 + $0x100] sm:$0xff] }
 0x492   : > { %v5287_v18 = vpop.f32.mrf.mxu1 }
 0x493   : > { %v2285_v17 = vadd.f32 %v2243_v5, %v5859_v38  ;;  %2162 = vadd.xlane.f32.xlu0 %v2090_v21 }
 0x495   : > { %v2537_v53 = vadd.f32 %v4848_v24, %v2285_v17  ;;  %v1312_v40 = vpop.f32.mrf.mxu3  ;;  %v1311_v17 = vadd.f32 %v1310_v0, %v5058_v61 }
 0x496   : > { %v1228_v14 = vpop.f32.mrf.mxu2  ;;  %v2135_v28 = vpop.xlane.xlu1 %2134 }
 0x497   : > { %v2579_v34 = vmax.f32 %v2537_v53, 0.0  ;;  %v1229_v41 = vadd.f32 %v1228_v14, %v4806_v57  ;;  %v2202_v56 = vmax.f32 %v2135_v28, 0.0 }
 0x499   : > { %2621 = vst [vmem:[%s5082_s25 + $0x78] sm:$0xff] %v2579_v34  ;;  %v2091_v39 = vmul.f32 %v3126_v60, %v1229_v41  ;;  %v2244_v20 = vmul.f32 %v2202_v56, %v1306_v2  ;;  %v5860_v2 = vld [vmem:[#allocation84_spill] sm:$0xff]  ;;  %v3128_v41 = vld [vmem:[%s3351_s23 + $0x108] sm:$0xff] }
 0x49a   : > { %2929 = vmatmul.msk.bf16.gmra.mxu3 %vm622_vm0, %v3771_v27  ;;  %v2456_v34 = vmax.f32 %v5860_v2, 0.0  ;;  %v5301_v0 = vpop.f32.mrf.mxu1 }
 0x49b   : > { %v2286_v24 = vadd.f32 %v2244_v20, %v4840_v55  ;;  %2164 = vadd.xlane.f32.xlu1 %v2091_v39  ;;  %v1541_v20 = vadd.f32 %v5254_v11, %v4463_v54 }
 0x49d   : > { %v2538_v63 = vadd.f32 %v4867_v4, %v2286_v24  ;;  %v1315_v44 = vpop.f32.mrf.mxu3 }
 0x49e   : > { %v1231_v62 = vpop.f32.mrf.mxu2  ;;  %v2137_v42 = vpop.xlane.xlu2 %2136 }
 0x49f   : > { %v2580_v26 = vmax.f32 %v2538_v63, 0.0  ;;  %v1232_v13 = vadd.f32 %v1231_v62, %v4806_v57  ;;  %v2203_v10 = vmax.f32 %v2137_v42, 0.0  ;;  %v1313_v62 = vadd.f32 %v1312_v40, %v5058_v61 }
 0x4a0   : > { %v1544_v40 = vadd.f32 %v5265_v52, %v4463_v54 }
 0x4a1   : > { %2622 = vst [vmem:[%s5082_s25 + $0x80] sm:$0xff] %v2580_v26  ;;  %v2092_v32 = vmul.f32 %v3127_v22, %v1232_v13  ;;  %v2245_v27 = vmul.f32 %v2203_v10, %v1308_v29  ;;  %v5861_v26 = vld [vmem:[#allocation72_spill] sm:$0xff] }
 0x4a2   : > { %v2457_v13 = vmax.f32 %v5861_v26, 0.0 }
 0x4a3   : > { %v2287_v55 = vadd.f32 %v2245_v27, %v4857_v8  ;;  %2166 = vadd.xlane.f32.xlu2 %v2092_v32 }
 0x4a4   : > { %v2499_v32 = vmul.f32 %v2457_v13, %v1541_v20 }
 0x4a5   : > { %v2539_v4 = vadd.f32 %v4888_v15, %v2287_v55  ;;  %v1317_v21 = vpop.f32.mrf.mxu3  ;;  %v2498_v15 = vmul.f32 %v2456_v34, %v1539_v46 }
 0x4a6   : > { %v1233_v5 = vpop.f32.mrf.mxu2  ;;  %v2139_v38 = vpop.xlane.xlu0 %2138  ;;  %v1318_v20 = vadd.f32 %v1317_v21, %v5058_v61 }
 0x4a7   : > { %v2581_v53 = vmax.f32 %v2539_v4, 0.0  ;;  %v1234_v14 = vadd.f32 %v1233_v5, %v4806_v57  ;;  %v2204_v28 = vmax.f32 %v2139_v38, 0.0  ;;  %v5313_v5 = vpop.f32.mrf.mxu1  ;;  %v1316_v38 = vadd.f32 %v1315_v44, %v5058_v61 }
 0x4a9   : > { %2623 = vst [vmem:[%s5082_s25 + $0x88] sm:$0xff] %v2581_v53  ;;  %v2093_v8 = vmul.f32 %v3128_v41, %v1234_v14  ;;  %v2246_v56 = vmul.f32 %v2204_v28, %v1311_v17  ;;  %v5862_v28 = vld [vmem:[#allocation38_spill] sm:$0xff] }
 0x4aa   : > { %2930 = vmatmul.msk.bf16.gmra.mxu3 %vm622_vm0, %v3791_v30  ;;  %v2458_v2 = vmax.f32 %v5862_v28, 0.0 }
 0x4ab   : > { %v2288_v45 = vadd.f32 %v2246_v56, %v4880_v48  ;;  %2168 = vadd.xlane.f32.xlu0 %v2093_v8  ;;  %v3129_v48 = vld [vmem:[%s3351_s23 + $0x110] sm:$0xff] }
 0x4ac   : > { %v2500_v52 = vmul.f32 %v2458_v2, %v1544_v40 }
 0x4ad   : > { %v2540_v60 = vadd.f32 %v2498_v15, %v2288_v45  ;;  %v1320_v39 = vpop.f32.mrf.mxu3  ;;  %v1546_v15 = vadd.f32 %v5275_v12, %v4463_v54 }
 0x4ae   : > { %v1236_v24 = vpop.f32.mrf.mxu2  ;;  %v2141_v63 = vpop.xlane.xlu1 %2140 }
 0x4af   : > { %v2582_v42 = vmax.f32 %v2540_v60, 0.0  ;;  %v1237_v29 = vadd.f32 %v1236_v24, %v4806_v57  ;;  %v2205_v30 = vmax.f32 %v2141_v63, 0.0 }
 0x4b1   : > { %2624 = vst [vmem:[%s5082_s25 + $0x90] sm:$0xff] %v2582_v42  ;;  %v2094_v10 = vmul.f32 %v3129_v48, %v1237_v29  ;;  %v2247_v22 = vmul.f32 %v2205_v30, %v1313_v62  ;;  %v5863_v42 = vld [vmem:[#allocation92_spill] sm:$0xff]  ;;  %v5328_v29 = vpop.f32.mrf.mxu1 }
 0x4b3   : > { %v2289_v27 = vadd.f32 %v2247_v22, %v4897_v33  ;;  %2170 = vadd.xlane.f32.xlu1 %v2094_v10  ;;  %v3130_v33 = vld [vmem:[%s3351_s23 + $0x118] sm:$0xff]  ;;  %v1549_v10 = vadd.f32 %v5287_v18, %v4463_v54 }
 0x4b5   : > { %v2541_v11 = vadd.f32 %v2499_v32, %v2289_v27  ;;  %v1322_v55 = vpop.f32.mrf.mxu3  ;;  %v1321_v27 = vadd.f32 %v1320_v39, %v5058_v61 }
 0x4b6   : > { %v1238_v4 = vpop.f32.mrf.mxu2  ;;  %v2143_v46 = vpop.xlane.xlu2 %2142 }
 0x4b7   : > { %v2583_v17 = vmax.f32 %v2541_v11, 0.0  ;;  %v1239_v53 = vadd.f32 %v1238_v4, %v4806_v57  ;;  %v2206_v14 = vmax.f32 %v2143_v46, 0.0  ;;  %v5864_v46 = vld [vmem:[#allocation56_spill] sm:$0xff] }
 0x4b9   : > { %2625 = vst [vmem:[%s5082_s25 + $0x98] sm:$0xff] %v2583_v17  ;;  %v2095_v34 = vmul.f32 %v3130_v33, %v1239_v53  ;;  %v2248_v41 = vmul.f32 %v2206_v14, %v1316_v38  ;;  %v2460_v38 = vmax.f32 %v5864_v46, 0.0  ;;  %v3132_v17 = vld [vmem:[%s3351_s23 + $0x128] sm:$0xff]  ;;  %v5340_v28 = vpop.f32.mrf.mxu1  ;;  %v1551_v33 = vadd.f32 %v5301_v0, %v4463_v54  ;;  %v1476_v0 = vpop.f32.mrf.mxu0 }
 0x4ba   : > { %2931 = vmatmul.msk.bf16.gmra.mxu3 %vm622_vm0, %v3811_v23  ;;  %v2459_v23 = vmax.f32 %v5863_v42, 0.0 }
 0x4bb   : > { %v2290_v8 = vadd.f32 %v2248_v41, %v4916_v37  ;;  %2172 = vadd.xlane.f32.xlu2 %v2095_v34  ;;  %v3131_v37 = vld [vmem:[%s3351_s23 + $0x120] sm:$0xff]  ;;  %v2502_v14 = vmul.f32 %v2460_v38, %v1549_v10  ;;  %v1556_v38 = vadd.f32 %v5328_v29, %v4463_v54 }
 0x4bc   : > { %v2501_v13 = vmul.f32 %v2459_v23, %v1546_v15 }
 0x4bd   : > { %v2542_v44 = vadd.f32 %v2500_v52, %v2290_v8  ;;  %v1325_v56 = vpop.f32.mrf.mxu3  ;;  %v1323_v52 = vadd.f32 %v1322_v55, %v5058_v61 }
 0x4be   : > { %v1241_v45 = vpop.f32.mrf.mxu2  ;;  %v2145_v60 = vpop.xlane.xlu0 %2144 }
 0x4bf   : > { %v2584_v24 = vmax.f32 %v2542_v44, 0.0  ;;  %v1242_v63 = vadd.f32 %v1241_v45, %v4806_v57  ;;  %v2207_v62 = vmax.f32 %v2145_v60, 0.0  ;;  %v5865_v45 = vld [vmem:[#allocation46_spill] sm:$0xff] }
 0x4c0   : > { %v2461_v60 = vmax.f32 %v5865_v45, 0.0 }
 0x4c1   : > { %2626 = vst [vmem:[%s5082_s25 + $0xa0] sm:$0xff] %v2584_v24  ;;  %v2096_v30 = vmul.f32 %v3131_v37, %v1242_v63  ;;  %v2249_v26 = vmul.f32 %v2207_v62, %v1318_v20  ;;  %v3133_v20 = vld [vmem:[%s3351_s23 + $0x130] sm:$0xff]  ;;  %v5351_v42 = vpop.f32.mrf.mxu1  ;;  %v1554_v37 = vadd.f32 %v5313_v5, %v4463_v54 }
 0x4c2   : > { %v2503_v63 = vmul.f32 %v2461_v60, %v1551_v33  ;;  %v5867_v5 = vld [vmem:[#allocation34_spill] sm:$0xff]  ;;  %v3134_v33 = vld [vmem:[%s3351_s23 + $0x138] sm:$0xff] }
 0x4c3   : > { %v2291_v12 = vadd.f32 %v2249_v26, %v4929_v49  ;;  %2174 = vadd.xlane.f32.xlu0 %v2096_v30 }
 0x4c5   : > { %v2543_v48 = vadd.f32 %v2501_v13, %v2291_v12  ;;  %v1327_v21 = vpop.f32.mrf.mxu3  ;;  %v1326_v13 = vadd.f32 %v1325_v56, %v5058_v61 }
 0x4c6   : > { %v1243_v22 = vpop.f32.mrf.mxu2  ;;  %v2147_v32 = vpop.xlane.xlu1 %2146 }
 0x4c7   : > { %v2585_v11 = vmax.f32 %v2543_v48, 0.0  ;;  %v1244_v40 = vadd.f32 %v1243_v22, %v4806_v57  ;;  %v2208_v4 = vmax.f32 %v2147_v32, 0.0  ;;  %v5866_v22 = vld [vmem:[#allocation97_spill] sm:$0xff] }
 0x4c9   : > { %2627 = vst [vmem:[%s5082_s25 + $0xa8] sm:$0xff] %v2585_v11  ;;  %v2097_v53 = vmul.f32 %v3132_v17, %v1244_v40  ;;  %v2250_v49 = vmul.f32 %v2208_v4, %v1321_v27  ;;  %v1477_v4 = vadd.f32 %v1476_v0, %v5867_v5 }
 0x4cb   : > { %v2292_v18 = vadd.f32 %v2250_v49, %v4948_v3  ;;  %2176 = vadd.xlane.f32.xlu1 %v2097_v53  ;;  %v1328_v49 = vadd.f32 %v1327_v21, %v5058_v61 }
 0x4cd   : > { %v2544_v2 = vadd.f32 %v2502_v14, %v2292_v18  ;;  %v1330_v39 = vpop.f32.mrf.mxu3 }
 0x4ce   : > { %v1246_v34 = vpop.f32.mrf.mxu2  ;;  %v2149_v41 = vpop.xlane.xlu2 %2148 }
 0x4cf   : > { %v2586_v8 = vmax.f32 %v2544_v2, 0.0  ;;  %v1247_v44 = vadd.f32 %v1246_v34, %v4806_v57  ;;  %v2209_v15 = vmax.f32 %v2149_v41, 0.0  ;;  %v1479_v2 = vpop.f32.mrf.mxu0  ;;  %v2351_v34 = vmul.f32 %v3134_v33, %v1477_v4  ;;  %v5868_v41 = vld [vmem:[#allocation30_spill] sm:$0xff] }
 0x4d0   : > { %v1480_v21 = vadd.f32 %v1479_v2, %v5867_v5 }
 0x4d1   : > { %2628 = vst [vmem:[%s5082_s25 + $0xb0] sm:$0xff] %v2586_v8  ;;  %v2098_v24 = vmul.f32 %v3133_v20, %v1247_v44  ;;  %v2251_v3 = vmul.f32 %v2209_v15, %v1323_v52  ;;  %v2463_v52 = vmax.f32 %v5868_v41, 0.0  ;;  %v3135_v8 = vld [vmem:[%s3351_s23 + $0x140] sm:$0xff]  ;;  %v1559_v20 = vadd.f32 %v5340_v28, %v4463_v54 }
 0x4d3   : > { %v2293_v62 = vadd.f32 %v2251_v3, %v4961_v59  ;;  %2178 = vadd.xlane.f32.xlu2 %v2098_v24  ;;  %v2462_v59 = vmax.f32 %v5866_v22, 0.0  ;;  %v2505_v45 = vmul.f32 %v2463_v52, %v1556_v38  ;;  %v5870_v38 = vld [vmem:[#allocation44_spill] sm:$0xff] }
 0x4d5   : > { %v2545_v23 = vadd.f32 %v2503_v63, %v2293_v62  ;;  %v5353_v55 = vpop.f32.mrf.mxu3  ;;  %v2504_v11 = vmul.f32 %v2462_v59, %v1554_v37  ;;  %v1331_v63 = vadd.f32 %v1330_v39, %v5058_v61 }
 0x4d6   : > { %v1248_v30 = vpop.f32.mrf.mxu2  ;;  %v2151_v26 = vpop.xlane.xlu0 %2150 }
 0x4d7   : > { %v2587_v12 = vmax.f32 %v2545_v23, 0.0  ;;  %v1249_v48 = vadd.f32 %v1248_v30, %v4806_v57  ;;  %v2210_v10 = vmax.f32 %v2151_v26, 0.0  ;;  %v2352_v30 = vmul.f32 %v3135_v8, %v1480_v21 }
 0x4d9   : > { %2629 = vst [vmem:[%s5082_s25 + $0xb8] sm:$0xff] %v2587_v12  ;;  %v2099_v32 = vmul.f32 %v4965_v19, %v1249_v48  ;;  %v2252_v27 = vmul.f32 %v2210_v10, %v1326_v13  ;;  %v3136_v13 = vld [vmem:[%s3351_s23 + $0x148] sm:$0xff]  ;;  %v1481_v10 = vpop.f32.mrf.mxu0 }
 0x4da   : > { %v1482_v39 = vadd.f32 %v1481_v10, %v5867_v5 }
 0x4db   : > { %v2294_v40 = vadd.f32 %v2252_v27, %v4981_v6  ;;  %2180 = vadd.xlane.f32.xlu0 %v2099_v32  ;;  %v1563_v6 = vpop.f32.mrf.mxu1  ;;  %v1561_v27 = vadd.f32 %v5351_v42, %v4463_v54 }
 0x4dc   : > { %v1564_v42 = vadd.f32 %v1563_v6, %v4463_v54 }
 0x4dd   : > { %v2546_v56 = vadd.f32 %v2504_v11, %v2294_v40  ;;  %v1335_v46 = vpop.f32.mrf.mxu3  ;;  %v1333_v11 = vadd.f32 %v5353_v55, %v5058_v61 }
 0x4de   : > { %v1251_v17 = vpop.f32.mrf.mxu2  ;;  %v2153_v53 = vpop.xlane.xlu1 %2152  ;;  %v1336_v55 = vadd.f32 %v1335_v46, %v5058_v61 }
 0x4df   : > { %v2588_v19 = vmax.f32 %v2546_v56, 0.0  ;;  %v1252_v14 = vadd.f32 %v1251_v17, %v4806_v57  ;;  %v2211_v18 = vmax.f32 %v2153_v53, 0.0  ;;  %v2353_v56 = vmul.f32 %v3136_v13, %v1482_v39 }
 0x4e0   : > { %v2465_v17 = vmax.f32 %v5870_v38, 0.0 }
 0x4e1   : > { %2630 = vst [vmem:[%s5082_s25 + $0xc0] sm:$0xff] %v2588_v19  ;;  %v2100_v44 = vmul.f32 %v3135_v8, %v1252_v14  ;;  %v2253_v15 = vmul.f32 %v2211_v18, %v1328_v49 }
 0x4e2   : > { %v2507_v49 = vmul.f32 %v2465_v17, %v1561_v27 }
 0x4e3   : > { %v2295_v29 = vadd.f32 %v2253_v15, %v4994_v9  ;;  %2182 = vadd.xlane.f32.xlu1 %v2100_v44  ;;  %2432 = vadd.xlane.f32.xlu0 %v2351_v34  ;;  %v5869_v9 = vld [vmem:[#allocation62_spill] sm:$0xff]  ;;  %v1565_v22 = vpop.f32.mrf.mxu1  ;;  %v5871_v34 = vld [vmem:[#allocation31_spill] sm:$0xff] }
 0x4e4   : > { %v2464_v26 = vmax.f32 %v5869_v9, 0.0  ;;  %v2466_v41 = vmax.f32 %v5871_v34, 0.0  ;;  %v1566_v21 = vadd.f32 %v1565_v22, %v4463_v54 }
 0x4e5   : > { %v2547_v60 = vadd.f32 %v2505_v45, %v2295_v29  ;;  %v1337_v23 = vpop.f32.mrf.mxu3 }
 0x4e6   : > { %v1253_v24 = vpop.f32.mrf.mxu2  ;;  %v2155_v3 = vpop.xlane.xlu2 %2154  ;;  %v2506_v28 = vmul.f32 %v2464_v26, %v1559_v20  ;;  %v2508_v8 = vmul.f32 %v2466_v41, %v1564_v42  ;;  %v1338_v6 = vadd.f32 %v1337_v23, %v5058_v61  ;;  %v5872_v20 = vld [vmem:[#allocation50_spill] sm:$0xff] }
 0x4e7   : > { %v2589_v62 = vmax.f32 %v2547_v60, 0.0  ;;  %v1254_v0 = vadd.f32 %v1253_v24, %v4806_v57  ;;  %v2212_v37 = vmax.f32 %v2155_v3, 0.0  ;;  %v2467_v24 = vmax.f32 %v5872_v20, 0.0 }
 0x4e9   : > { %2631 = vst [vmem:[%s5082_s25 + $0xc8] sm:$0xff] %v2589_v62  ;;  %v2101_v12 = vmul.f32 %v3136_v13, %v1254_v0  ;;  %v2254_v48 = vmul.f32 %v2212_v37, %v1331_v63  ;;  %v2509_v63 = vmul.f32 %v2467_v24, %v1566_v21 }
 0x4eb   : > { %v2296_v59 = vadd.f32 %v2254_v48, %v5015_v58  ;;  %2184 = vadd.xlane.f32.xlu2 %v2101_v12  ;;  %2434 = vadd.xlane.f32.xlu1 %v2352_v30  ;;  %v1568_v19 = vpop.f32.mrf.mxu1  ;;  %v5873_v12 = vld [vmem:[#allocation32_spill] sm:$0xff] }
 0x4ec   : > { %v1569_v30 = vadd.f32 %v1568_v19, %v4463_v54  ;;  %v2468_v48 = vmax.f32 %v5873_v12, 0.0 }
 0x4ed   : > { %v2548_v57 = vadd.f32 %v2506_v28, %v2296_v59  ;;  %v1340_v58 = vpop.f32.mrf.mxu3  ;;  %v5874_v28 = vld [vmem:[#allocation118_spill] sm:$0xff] }
 0x4ee   : > { %v2157_v32 = vpop.xlane.xlu0 %2156  ;;  %v1341_v9 = vadd.f32 %v1340_v58, %v5058_v61  ;;  %v2510_v22 = vmul.f32 %v2468_v48, %v1569_v30 }
 0x4ef   : > { %v2590_v40 = vmax.f32 %v2548_v57, 0.0  ;;  %v2213_v4 = vmax.f32 %v2157_v32, 0.0 }
 0x4f1   : > { %2632 = vst [vmem:[%s5082_s25 + $0xd0] sm:$0xff] %v2590_v40  ;;  %v2255_v53 = vmul.f32 %v2213_v4, %v1333_v11  ;;  %v5875_v4 = vld [vmem:[#allocation108_spill] sm:$0xff] }
 0x4f3   : > { %v2297_v5 = vadd.f32 %v2255_v53, %v5020_v25  ;;  %2436 = vadd.xlane.f32.xlu2 %v2353_v56  ;;  %v1570_v45 = vpop.f32.mrf.mxu1  ;;  %v2469_v56 = vmax.f32 %v5875_v4, 0.0  ;;  %v5876_v53 = vld [vmem:[#allocation111_spill] sm:$0xff] }
 0x4f4   : > { %v1571_v57 = vadd.f32 %v1570_v45, %v4463_v54 }
 0x4f5   : > { %v2549_v14 = vadd.f32 %v2507_v49, %v2297_v5  ;;  %v1342_v44 = vpop.f32.mrf.mxu3 }
 0x4f6   : > { %v2159_v18 = vpop.xlane.xlu1 %2158  ;;  %v1343_v32 = vadd.f32 %v1342_v44, %v5058_v61  ;;  %v2511_v58 = vmul.f32 %v2469_v56, %v1571_v57 }
 0x4f7   : > { %v2591_v2 = vmax.f32 %v2549_v14, 0.0  ;;  %v2214_v33 = vmax.f32 %v2159_v18, 0.0 }
 0x4f9   : > { %2633 = vst [vmem:[%s5082_s25 + $0xd8] sm:$0xff] %v2591_v2  ;;  %v2256_v52 = vmul.f32 %v2214_v33, %v1336_v55  ;;  %v5877_v2 = vld [vmem:[#allocation107_spill] sm:$0xff] }
 0x4fa   : > { %v2470_v33 = vmax.f32 %v5877_v2, 0.0 }
 0x4fb   : > { %v2298_v15 = vadd.f32 %v2256_v52, %v5027_v43  ;;  %v1573_v13 = vpop.f32.mrf.mxu1 }
 0x4fc   : > { %v1574_v14 = vadd.f32 %v1573_v13, %v4463_v54  ;;  %v5880_v13 = vld [vmem:[#allocation10_spill] sm:$0xff] }
 0x4fd   : > { %v2550_v25 = vadd.f32 %v2508_v8, %v2298_v15  ;;  %v1345_v0 = vpop.f32.mrf.mxu3  ;;  %v5878_v8 = vld [vmem:[#allocation70_spill] sm:$0xff]  ;;  %v2472_v12 = vmax.f32 %v5880_v13, 0.0 }
 0x4fe   : > { %v2161_v29 = vpop.xlane.xlu2 %2160  ;;  %v1346_v18 = vadd.f32 %v1345_v0, %v5058_v61  ;;  %v2512_v52 = vmul.f32 %v2470_v33, %v1574_v14 }
 0x4ff   : > { %v2592_v60 = vmax.f32 %v2550_v25, 0.0  ;;  %v2215_v46 = vmax.f32 %v2161_v29, 0.0 }
 0x501   : > { %2634 = vst [vmem:[%s5082_s25 + $0xe0] sm:$0xff] %v2592_v60  ;;  %v2257_v3 = vmul.f32 %v2215_v46, %v1338_v6  ;;  %v5879_v46 = vld [vmem:[#allocation18_spill] sm:$0xff] }
 0x502   : > { %v2471_v20 = vmax.f32 %v5879_v46, 0.0 }
 0x503   : > { %v2299_v62 = vadd.f32 %v2257_v3, %v5040_v1  ;;  %v1575_v17 = vpop.f32.mrf.mxu1 }
 0x504   : > { %v1576_v29 = vadd.f32 %v1575_v17, %v4463_v54 }
 0x505   : > { %v2551_v37 = vadd.f32 %v2509_v63, %v2299_v62  ;;  %v1347_v27 = vpop.f32.mrf.mxu3 }
 0x506   : > { %v2163_v43 = vpop.xlane.xlu0 %2162  ;;  %v1348_v21 = vadd.f32 %v1347_v27, %v5058_v61  ;;  %v2513_v3 = vmul.f32 %v2471_v20, %v1576_v29 }
 0x507   : > { %v2593_v26 = vmax.f32 %v2551_v37, 0.0  ;;  %v2216_v23 = vmax.f32 %v2163_v43, 0.0 }
 0x509   : > { %2635 = vst [vmem:[%s5082_s25 + $0xe8] sm:$0xff] %v2593_v26  ;;  %v2258_v10 = vmul.f32 %v2216_v23, %v1341_v9 }
 0x50b   : > { %v2300_v59 = vadd.f32 %v2258_v10, %v5874_v28  ;;  %v1578_v15 = vpop.f32.mrf.mxu1 }
 0x50c   : > { %v1579_v30 = vadd.f32 %v1578_v15, %v4463_v54 }
 0x50d   : > { %v2552_v39 = vadd.f32 %v2510_v22, %v2300_v59  ;;  %v1350_v34 = vpop.f32.mrf.mxu3 }
 0x50e   : > { %v2165_v1 = vpop.xlane.xlu1 %2164  ;;  %v1351_v9 = vadd.f32 %v1350_v34, %v5058_v61  ;;  %v2514_v10 = vmul.f32 %v2472_v12, %v1579_v30 }
 0x50f   : > { %v2594_v11 = vmax.f32 %v2552_v39, 0.0  ;;  %v2217_v40 = vmax.f32 %v2165_v1, 0.0 }
 0x511   : > { %2636 = vst [vmem:[%s5082_s25 + $0xf0] sm:$0xff] %v2594_v11  ;;  %v2259_v38 = vmul.f32 %v2217_v40, %v1343_v32  ;;  %v5881_v11 = vld [vmem:[#allocation21_spill] sm:$0xff] }
 0x512   : > { %v2473_v40 = vmax.f32 %v5881_v11, 0.0 }
 0x513   : > { %v2301_v49 = vadd.f32 %v2259_v38, %v5876_v53  ;;  %v1580_v37 = vpop.f32.mrf.mxu1  ;;  %v5882_v38 = vld [vmem:[#allocation11_spill] sm:$0xff] }
 0x514   : > { %v1581_v39 = vadd.f32 %v1580_v37, %v4463_v54  ;;  %v5885_v37 = vld [vmem:[#allocation112_spill] sm:$0xff] }
 0x515   : > { %v2553_v5 = vadd.f32 %v2511_v58, %v2301_v49  ;;  %v1352_v63 = vpop.f32.mrf.mxu3 }
 0x516   : > { %v2167_v19 = vpop.xlane.xlu2 %2166  ;;  %v1353_v1 = vadd.f32 %v1352_v63, %v5058_v61  ;;  %v2515_v56 = vmul.f32 %v2473_v40, %v1581_v39 }
 0x517   : > { %v2595_v42 = vmax.f32 %v2553_v5, 0.0  ;;  %v2218_v55 = vmax.f32 %v2167_v19, 0.0 }
 0x519   : > { %2637 = vst [vmem:[%s5082_s25 + $0xf8] sm:$0xff] %v2595_v42  ;;  %v2260_v41 = vmul.f32 %v2218_v55, %v1346_v18  ;;  %v5883_v18 = vld [vmem:[#allocation43_spill] sm:$0xff] }
 0x51a   : > { %v2474_v42 = vmax.f32 %v5883_v18, 0.0 }
 0x51b   : > { %v2302_v44 = vadd.f32 %v2260_v41, %v5878_v8  ;;  %v1583_v27 = vpop.f32.mrf.mxu1 }
 0x51c   : > { %v1584_v53 = vadd.f32 %v1583_v27, %v4463_v54 }
 0x51d   : > { %v2554_v25 = vadd.f32 %v2512_v52, %v2302_v44  ;;  %v1355_v28 = vpop.f32.mrf.mxu3 }
 0x51e   : > { %v2169_v45 = vpop.xlane.xlu0 %2168  ;;  %v1356_v49 = vadd.f32 %v1355_v28, %v5058_v61  ;;  %v2516_v33 = vmul.f32 %v2474_v42, %v1584_v53 }
 0x51f   : > { %v2596_v6 = vmax.f32 %v2554_v25, 0.0  ;;  %v2219_v60 = vmax.f32 %v2169_v45, 0.0  ;;  %v5884_v45 = vld [vmem:[#allocation33_spill] sm:$0xff] }
 0x520   : > { %v2475_v29 = vmax.f32 %v5884_v45, 0.0 }
 0x521   : > { %2638 = vst [vmem:[%s5082_s25 + $0x100] sm:$0xff] %v2596_v6  ;;  %v2261_v24 = vmul.f32 %v2219_v60, %v1348_v21 }
 0x523   : > { %v2303_v62 = vadd.f32 %v2261_v24, %v5106_v47  ;;  %v1585_v2 = vpop.f32.mrf.mxu1 }
 0x524   : > { %v1586_v8 = vadd.f32 %v1585_v2, %v4463_v54 }
 0x525   : > { %v2555_v0 = vadd.f32 %v2513_v3, %v2303_v62  ;;  %v1357_v5 = vpop.f32.mrf.mxu3 }
 0x526   : > { %v2171_v43 = vpop.xlane.xlu1 %2170  ;;  %v1358_v44 = vadd.f32 %v1357_v5, %v5058_v61  ;;  %v2517_v60 = vmul.f32 %v2475_v29, %v1586_v8 }
 0x527   : > { %v2597_v26 = vmax.f32 %v2555_v0, 0.0  ;;  %v2220_v23 = vmax.f32 %v2171_v43, 0.0  ;;  %v2476_v43 = vmax.f32 %v5885_v37, 0.0 }
 0x529   : > { %2639 = vst [vmem:[%s5082_s25 + $0x108] sm:$0xff] %v2597_v26  ;;  %v2262_v48 = vmul.f32 %v2220_v23, %v1351_v9 }
 0x52b   : > { %v2304_v22 = vadd.f32 %v2262_v48, %v5118_v51  ;;  %v1588_v20 = vpop.f32.mrf.mxu1 }
 0x52c   : > { %v1589_v3 = vadd.f32 %v1588_v20, %v4463_v54 }
 0x52d   : > { %v2556_v59 = vadd.f32 %v2514_v10, %v2304_v22  ;;  %v1360_v21 = vpop.f32.mrf.mxu3 }
 0x52e   : > { %v2173_v47 = vpop.xlane.xlu2 %2172  ;;  %v1361_v63 = vadd.f32 %v1360_v21, %v5058_v61  ;;  %v2518_v9 = vmul.f32 %v2476_v43, %v1589_v3 }
 0x52f   : > { %v2598_v57 = vmax.f32 %v2556_v59, 0.0  ;;  %v2221_v32 = vmax.f32 %v2173_v47, 0.0 }
 0x531   : > { %2640 = vst [vmem:[%s5082_s25 + $0x110] sm:$0xff] %v2598_v57  ;;  %v2263_v4 = vmul.f32 %v2221_v32, %v1353_v1 }
 0x533   : > { %v2305_v17 = vadd.f32 %v2263_v4, %v5882_v38  ;;  %v1590_v48 = vpop.f32.mrf.mxu1 }
 0x534   : > { %v1591_v1 = vadd.f32 %v1590_v48, %v4463_v54 }
 0x535   : > { %v2557_v58 = vadd.f32 %v2515_v56, %v2305_v17  ;;  %v1362_v26 = vpop.f32.mrf.mxu3 }
 0x536   : > { %v2175_v51 = vpop.xlane.xlu0 %2174  ;;  %v1363_v22 = vadd.f32 %v1362_v26, %v5058_v61 }
 0x537   : > { %v2599_v19 = vmax.f32 %v2557_v58, 0.0  ;;  %v2222_v14 = vmax.f32 %v2175_v51, 0.0 }
 0x539   : > { %2641 = vst [vmem:[%s5082_s25 + $0x118] sm:$0xff] %v2599_v19  ;;  %v2264_v55 = vmul.f32 %v2222_v14, %v1356_v49 }
 0x53b   : > { %v2306_v34 = vadd.f32 %v2264_v55, %v5153_v50  ;;  %v1593_v11 = vpop.f32.mrf.mxu1 }
 0x53c   : > { %v1594_v51 = vadd.f32 %v1593_v11, %v4463_v54 }
 0x53d   : > { %v2558_v41 = vadd.f32 %v2516_v33, %v2306_v34  ;;  %v1365_v28 = vpop.f32.mrf.mxu3 }
 0x53e   : > { %v2177_v52 = vpop.xlane.xlu1 %2176  ;;  %v1366_v40 = vadd.f32 %v1365_v28, %v5058_v61 }
 0x53f   : > { %v2600_v15 = vmax.f32 %v2558_v41, 0.0  ;;  %v2223_v25 = vmax.f32 %v2177_v52, 0.0 }
 0x541   : > { %2642 = vst [vmem:[%s5082_s25 + $0x120] sm:$0xff] %v2600_v15  ;;  %v2265_v6 = vmul.f32 %v2223_v25, %v1358_v44 }
 0x543   : > { %v2307_v46 = vadd.f32 %v2265_v6, %v5168_v35  ;;  %v1595_v42 = vpop.f32.mrf.mxu1 }
 0x544   : > { %v1596_v34 = vadd.f32 %v1595_v42, %v4463_v54 }
 0x545   : > { %v2559_v24 = vadd.f32 %v2517_v60, %v2307_v46  ;;  %v1367_v49 = vpop.f32.mrf.mxu3 }
 0x546   : > { %v2179_v50 = vpop.xlane.xlu2 %2178  ;;  %v1368_v14 = vadd.f32 %v1367_v49, %v5058_v61 }
 0x547   : > { %v2601_v62 = vmax.f32 %v2559_v24, 0.0  ;;  %v2224_v0 = vmax.f32 %v2179_v50, 0.0 }
 0x549   : > { %2643 = vst [vmem:[%s5082_s25 + $0x128] sm:$0xff] %v2601_v62  ;;  %v2266_v30 = vmul.f32 %v2224_v0, %v1361_v63 }
 0x54b   : > { %v2308_v23 = vadd.f32 %v2266_v30, %v5182_v31 }
 0x54d   : > { %v2560_v13 = vadd.f32 %v2518_v9, %v2308_v23 }
 0x54e   : > { %v2181_v35 = vpop.xlane.xlu0 %2180 }
 0x54f   : > { %v2602_v12 = vmax.f32 %v2560_v13, 0.0  ;;  %v2225_v10 = vmax.f32 %v2181_v35, 0.0 }
 0x551   : > { %2644 = vst [vmem:[%s5082_s25 + $0x130] sm:$0xff] %v2602_v12  ;;  %v2267_v59 = vmul.f32 %v2225_v10, %v1363_v22 }
 0x553   : > { %v2309_v32 = vadd.f32 %v2267_v59, %v5202_v16 }
 0x556   : > { %v2183_v47 = vpop.xlane.xlu1 %2182  ;;  %v2433_v39 = vpop.xlane.xlu0 %2432 }
 0x557   : > { %v2477_v57 = vmax.f32 %v2433_v39, 0.0  ;;  %v2226_v27 = vmax.f32 %v2183_v47, 0.0 }
 0x559   : > { %v2519_v31 = vmul.f32 %v2477_v57, %v1591_v1  ;;  %v2268_v56 = vmul.f32 %v2226_v27, %v1366_v40 }
 0x55b   : > { %v2561_v4 = vadd.f32 %v2519_v31, %v2309_v32  ;;  %v2310_v5 = vadd.f32 %v2268_v56, %v5214_v36 }
 0x55d   : > { %v2603_v38 = vmax.f32 %v2561_v4, 0.0 }
 0x55e   : > { %v2185_v17 = vpop.xlane.xlu2 %2184  ;;  %v2435_v58 = vpop.xlane.xlu1 %2434 }
 0x55f   : > { %2645 = vst [vmem:[%s5082_s25 + $0x138] sm:$0xff] %v2603_v38  ;;  %v2478_v53 = vmax.f32 %v2435_v58, 0.0  ;;  %v2227_v16 = vmax.f32 %v2185_v17, 0.0 }
 0x561   : > { %v2520_v19 = vmul.f32 %v2478_v53, %v1594_v51  ;;  %v2269_v55 = vmul.f32 %v2227_v16, %v1368_v14 }
 0x563   : > { %v2562_v18 = vadd.f32 %v2520_v19, %v2310_v5  ;;  %v2311_v41 = vadd.f32 %v2269_v55, %v5228_v7 }
 0x565   : > { %v2604_v2 = vmax.f32 %v2562_v18, 0.0 }
 0x566   : > { %v2437_v33 = vpop.xlane.xlu2 %2436 }
 0x567   : > { %2646 = vst [vmem:[%s5082_s25 + $0x140] sm:$0xff] %v2604_v2  ;;  %v2479_v36 = vmax.f32 %v2437_v33, 0.0 }
 0x569   : > { %v2521_v52 = vmul.f32 %v2479_v36, %v1596_v34 }
 0x56b   : > { %v2563_v61 = vadd.f32 %v2521_v52, %v2311_v41 }
 0x56d   : > { %v2605_v8 = vmax.f32 %v2563_v61, 0.0 }
 0x56f   : > { %2647 = vst [vmem:[%s5082_s25 + $0x148] sm:$0xff] %v2605_v8 }
 0x570   : > { %3194 = shalt.err (!%p3191_p7)
}
 0x571   : > { %s3237_s11 = smov 128   ;;  %s3238_s16 = smov 8  }
 0x572   : > { %3002 = dma.vmem_to_hbm [thread:$0]  (%p3315_p11), %s2662_s22, 5376, %s2664_s7, %s2649_s9, %s3237_s11, %s3237_s11, %s3238_s16  }
 0x573 PF: > { %s2678_s25 = sand.u32 1, %s3221_s18   ;;  %p3009_p8 = pnand %p2739_p9, %p3319_p12 }
 0x574   : > { %s2679_s14 = scalar_lea.sflag [#allocation4], %s2678_s25 }
 0x575   : > { %p3010_p10 = pneg %p3009_p8 }
 0x577   : > { %3216 = dma.done.wait (%p3010_p10), %s2679_s14, 5376  }
 0x578   : > { %3218 = vsyncadd (%p3010_p10), %s2679_s14, 4294961920  ;;  %p18_p0 = scmp.ge.s32.totalorder %s3294_s24, 4   ;;  %s5886_s18 = smov %s3225_s19 }
 0x579   : > { %s5887_s19 = smov %s3229_s20  ;;  %s5888_s20 = smov %s3306_s27 }
 0x57a   : > { %s5889_s21 = smov %s3294_s24  ;;  %20 = sbr.rel (!%p18_p0) target bundleno = 5 (0x5), region = 85 }
 0x57f   :  { %2685 = vsyncpa [#allocation3], 1 }
 0x580   :  { %2687 = vsyncpa [#allocation3 + $0x1], 1 }
 0x581   :  { %2688 = vsyncpa [#allocation4], 1 }
 0x582   :  { %2690 = vsyncpa [#allocation4 + $0x1], 1 }

</bundles_post_ra>
